<compile_context>
chip_gen: v7x
topology: tpu7x:2x2x1
jax: 0.10.0
libtpu: 0.0.40
codegen_flags: <defaults>
</compile_context>

<pallas_src>
import functools

import jax
import jax.numpy as jnp
from jax import lax
from jax.experimental import pallas as pl
from jax.experimental.pallas import tpu as pltpu


_VMEM_LIMIT = 32 * 1024 * 1024
_MAX_BAND_ELEMS = 2048      # target (band rows) * (row length) per grid step
_MAX_BAND_ROWS = 32


def _compiler_params():
    return pltpu.CompilerParams(
        dimension_semantics=("parallel", "parallel"),
        vmem_limit_bytes=_VMEM_LIMIT)


def _pick_band(n_rows, row_elems, *, even=False, need_align=True):
    """Largest divisor of n_rows usable as a row-band height.

    When the flattened conv layout is used (need_align=True), banding requires
    the per-row length to be 8-sublane aligned; otherwise fall back to a single
    band (always correct, only matters for exotic widths).
    """
    if need_align and row_elems % 8 != 0:
        return n_rows
    cands = [t for t in range(1, n_rows + 1)
             if n_rows % t == 0 and (not even or t % 2 == 0)
             and t <= _MAX_BAND_ROWS]
    if not cands:
        return n_rows
    fit = [t for t in cands if t * row_elems <= _MAX_BAND_ELEMS]
    return max(fit) if fit else min(cands)


# ----------------------------------------------------------------------------
# Kernel 1a: 3x3 stride-1 conv (+bias, +optional ReLU) on one row band
# ----------------------------------------------------------------------------
def _conv3x3_s1_kernel(*refs, W, relu, halo):
    """x: (1, TB*W, Cin) bf16 flattened rows of the band; top/bot: (1, W, Cin)
    halo rows (only when halo=True); w: (9*Cin, Cout) bf16 taps concatenated
    along K in (kh, kw, cin) order; b: (1, Cout) f32; out: (1, 1, TB*W, Cout).
    """
    if halo:
        x_ref, top_ref, bot_ref, w_ref, b_ref, o_ref = refs
    else:
        x_ref, w_ref, b_ref, o_ref = refs
    M = x_ref.shape[1]
    cin = x_ref.shape[2]
    x = x_ref[0]
    if halo:
        bidx = pl.program_id(1)
        nb = pl.num_programs(1)
        top = jnp.where(bidx > 0, top_ref[0], jnp.zeros_like(top_ref[0]))
        bot = jnp.where(bidx < nb - 1, bot_ref[0], jnp.zeros_like(bot_ref[0]))
    else:
        top = jnp.zeros((W, cin), x.dtype)
        bot = jnp.zeros((W, cin), x.dtype)
    xf = jnp.concatenate([top, x, bot], axis=0)            # ((TB+2)*W, Cin)
    R = xf.shape[0]

    # Shifted + edge-masked column sources, built ONCE and reused by all three
    # kh taps.  Masks come from an in-kernel iota (no padded side inputs).
    col = lax.broadcasted_iota(jnp.int32, (R, 1), 0) % W
    z1 = jnp.zeros((1, cin), x.dtype)
    shift_l = jnp.concatenate([z1, xf[:-1]], axis=0)       # holds col j-1
    shift_r = jnp.concatenate([xf[1:], z1], axis=0)        # holds col j+1
    src_l = jnp.where(col != 0, shift_l, jnp.zeros_like(shift_l))
    src_r = jnp.where(col != W - 1, shift_r, jnp.zeros_like(shift_r))
    sc = jnp.concatenate([src_l, xf, src_r], axis=-1)      # (R, 3*Cin)

    # 9 taps concatenated along K -> ONE MXU matmul with K = 9*Cin.
    big = jnp.concatenate([sc[0:M], sc[W:W + M], sc[2 * W:2 * W + M]], axis=-1)
    acc = jnp.dot(big, w_ref[...], preferred_element_type=jnp.float32)
    acc = acc + b_ref[...]
    if relu:
        acc = jnp.maximum(acc, 0.0)
    o_ref[0, 0] = acc.astype(o_ref.dtype)


# ----------------------------------------------------------------------------
# Kernel 1b: 3x3 stride-2 conv (+bias, +optional ReLU) on one row band
# ----------------------------------------------------------------------------
def _conv3x3_s2_kernel(*refs, Wo, relu, halo):
    """The wrapper passes the input column-phased, (1, TB*Wo, 2*Cin), so even /
    odd input columns are lane slices and only the windows of the kept (even)
    output pixels are ever built -- no quadratic one-hot select, no full-res
    writeback.  out: (1, 1, (TB//2)*Wo, Cout)."""
    if halo:
        x_ref, top_ref, w_ref, b_ref, o_ref = refs
    else:
        x_ref, w_ref, b_ref, o_ref = refs
    cin2 = x_ref.shape[2]
    cin = cin2 // 2
    TB = x_ref.shape[1] // Wo
    TBo = TB // 2
    Mo = TBo * Wo
    x = x_ref[0]
    if halo:
        bidx = pl.program_id(1)
        top = jnp.where(bidx > 0, top_ref[0], jnp.zeros_like(top_ref[0]))
    else:
        top = jnp.zeros((Wo, cin2), x.dtype)
    # xf slab k (Wo rows) holds input row (band_start + k - 1); the bottom halo
    # is never needed by a stride-2 window.
    xf = jnp.concatenate([top, x], axis=0)                 # ((TB+1)*Wo, 2*Cin)

    # Row-phase images, one per kh, already in output-row-major order:
    # rows[kh][io*Wo + jo] = input(row = 2*io + kh - 1, column pair jo).
    slabs = [[], [], []]
    for io in range(TBo):
        for kh in range(3):
            s = (2 * io + kh) * Wo
            slabs[kh].append(xf[s:s + Wo])
    rows = [jnp.concatenate(sl, axis=0) for sl in slabs]   # 3 x (Mo, 2*Cin)

    col = lax.broadcasted_iota(jnp.int32, (Mo, 1), 0) % Wo
    z1 = jnp.zeros((1, cin), x.dtype)
    parts = []
    for kh in range(3):
        ev = rows[kh][:, :cin]        # input col 2*jo     -> kw = 1
        od = rows[kh][:, cin:]        # input col 2*jo + 1 -> kw = 2
        od_l = jnp.concatenate([z1, od[:-1]], axis=0)      # col 2*jo-1 -> kw = 0
        od_l = jnp.where(col != 0, od_l, jnp.zeros_like(od_l))
        parts += [od_l, ev, od]
    big = jnp.concatenate(parts, axis=-1)                  # (Mo, 9*Cin)
    acc = jnp.dot(big, w_ref[...], preferred_element_type=jnp.float32)
    acc = acc + b_ref[...]
    if relu:
        acc = jnp.maximum(acc, 0.0)
    o_ref[0, 0] = acc.astype(o_ref.dtype)


def conv3x3(x, p, *, stride=1, relu=True, out_dtype=jnp.bfloat16):
    """x: (N, H, W, Cin) -> (N, H//stride, W//stride, Cout)."""
    N, H, W, Cin = x.shape
    w = p["w"].reshape(9 * Cin, -1).astype(jnp.bfloat16)
    Cout = w.shape[-1]
    b = p["b"].reshape(1, Cout).astype(jnp.float32)
    x = x.astype(jnp.bfloat16)

    if stride == 1:
        Ho, Wout = H, W
        TB = _pick_band(H, W)
        nb = H // TB
        Mo = TB * W
        xin = x.reshape(N, H * W, Cin)                 # free row-major reshape
        row = W
        kern = functools.partial(_conv3x3_s1_kernel, W=W, relu=relu,
                                 halo=nb > 1)
        n_halo = 2
    else:
        assert stride == 2 and H % 2 == 0 and W % 2 == 0
        Ho, Wout = H // 2, W // 2
        TB = _pick_band(H, Wout, even=True)
        nb = H // TB
        Mo = (TB // 2) * Wout
        xin = x.reshape(N, H * Wout, 2 * Cin)          # column-phased (free)
        row = Wout
        kern = functools.partial(_conv3x3_s2_kernel, Wo=Wout, relu=relu,
                                 halo=nb > 1)
        n_halo = 1

    Cb = xin.shape[-1]
    band_spec = pl.BlockSpec((1, TB * row, Cb), lambda n, b_: (n, b_, 0))
    halo_specs = []
    args = [xin]
    if nb > 1:
        halo_specs.append(pl.BlockSpec(
            (1, row, Cb), lambda n, b_: (n, jnp.maximum(b_ * TB - 1, 0), 0)))
        args.append(xin)
        if n_halo == 2:
            halo_specs.append(pl.BlockSpec(
                (1, row, Cb),
                lambda n, b_: (n, jnp.minimum(b_ * TB + TB, H - 1), 0)))
            args.append(xin)
    args += [w, b]

    out = pl.pallas_call(
        kern,
        out_shape=jax.ShapeDtypeStruct((N, nb, Mo, Cout), out_dtype),
        grid=(N, nb),
        in_specs=[band_spec] + halo_specs + [
            pl.BlockSpec((9 * Cin, Cout), lambda n, b_: (0, 0)),
            pl.BlockSpec((1, Cout), lambda n, b_: (0, 0)),
        ],
        out_specs=pl.BlockSpec((1, 1, Mo, Cout), lambda n, b_: (n, b_, 0, 0)),
        compiler_params=_compiler_params(),
    )(*args)
    return out.reshape(N, Ho, Wout, Cout)


# ----------------------------------------------------------------------------
# Kernel 2: bilinear x2 upsample (align_corners=False), row-banded
# ----------------------------------------------------------------------------
def _upsample2x_kernel(x_ref, top_ref, bot_ref, o_ref):
    """x: (1, TB, W, C); top/bot: (1, 1, W, C) edge-clamped halo rows.
    out: (1, TB, 2, W, 2C) with out[0,i,r,j,s*C:(s+1)*C] = up[2i+r, 2j+s]."""
    x = x_ref[0].astype(jnp.float32)          # (TB, W, C)
    top = top_ref[0].astype(jnp.float32)      # (1, W, C)
    bot = bot_ref[0].astype(jnp.float32)
    TB = x.shape[0]
    if TB > 1:
        xu = jnp.concatenate([top, x[:-1]], axis=0)
        xd = jnp.concatenate([x[1:], bot], axis=0)
    else:
        xu, xd = top, bot
    row_e = 0.25 * xu + 0.75 * x              # even output rows
    row_o = 0.75 * x + 0.25 * xd              # odd output rows

    def col_mix(t):
        tl = jnp.concatenate([t[:, :1], t[:, :-1]], axis=1)
        tr = jnp.concatenate([t[:, 1:], t[:, -1:]], axis=1)
        return 0.25 * tl + 0.75 * t, 0.75 * t + 0.25 * tr

    ee, eo = col_mix(row_e)
    oe, oo = col_mix(row_o)
    o_ref[0, :, 0, :, :] = jnp.concatenate([ee, eo], axis=-1).astype(o_ref.dtype)
    o_ref[0, :, 1, :, :] = jnp.concatenate([oe, oo], axis=-1).astype(o_ref.dtype)


def upsample2x(x):
    """(N, H, W, C) -> (N, 2H, 2W, C), bilinear, align_corners=False."""
    N, H, W, C = x.shape
    x = x.astype(jnp.bfloat16)
    TB = _pick_band(H, W, need_align=False)
    nb = H // TB
    out = pl.pallas_call(
        _upsample2x_kernel,
        out_shape=jax.ShapeDtypeStruct((N, H, 2, W, 2 * C), jnp.bfloat16),
        grid=(N, nb),
        in_specs=[
            pl.BlockSpec((1, TB, W, C), lambda n, b_: (n, b_, 0, 0)),
            pl.BlockSpec((1, 1, W, C),
                         lambda n, b_: (n, jnp.maximum(b_ * TB - 1, 0), 0, 0)),
            pl.BlockSpec((1, 1, W, C),
                         lambda n, b_: (n, jnp.minimum(b_ * TB + TB, H - 1), 0, 0)),
        ],
        out_specs=pl.BlockSpec((1, TB, 2, W, 2 * C),
                               lambda n, b_: (n, b_, 0, 0, 0)),
        compiler_params=_compiler_params(),
    )(x, x, x)
    # (N, H, 2, W, 2C) and (N, 2H, 2W, C) share row-major order -> free reshape.
    return out.reshape(N, 2 * H, 2 * W, C)


# ----------------------------------------------------------------------------
# backward_warp (grid_sample, bilinear, border, align_corners=False)
# ----------------------------------------------------------------------------
def backward_warp(frame, flow):
    """frame: (N, H, W, C); flow: (N, H, W, 2) with [...,0]=dx, [...,1]=dy.

    # TODO(synk): the data-dependent per-pixel bilinear gather has no robust
    # Pallas TPU lowering (dynamic vector gather), so it runs as an XLA gather
    # on these tiny 2-channel context tensors.
    """
    N, H, W, C = frame.shape
    frame = frame.astype(jnp.float32)
    fx = flow[..., 0].astype(jnp.float32)
    fy = flow[..., 1].astype(jnp.float32)
    jj = jnp.arange(W, dtype=jnp.float32)[None, None, :]
    ii = jnp.arange(H, dtype=jnp.float32)[None, :, None]
    # grid = linspace(-1+1/W, 1-1/W, W) + 2*flow/(W-1); with grid_sample
    # (align_corners=False) the pixel coordinate reduces to j + fx*W/(W-1);
    # 'border' padding == clamping the coordinate to [0, size-1].
    ix = jnp.clip(jj + fx * (W / (W - 1.0)), 0.0, W - 1.0)
    iy = jnp.clip(ii + fy * (H / (H - 1.0)), 0.0, H - 1.0)
    x0f = jnp.floor(ix)
    y0f = jnp.floor(iy)
    wx1 = (ix - x0f)[..., None]
    wy1 = (iy - y0f)[..., None]
    wx0 = 1.0 - wx1
    wy0 = 1.0 - wy1
    x0 = x0f.astype(jnp.int32)
    y0 = y0f.astype(jnp.int32)
    x1 = jnp.minimum(x0 + 1, W - 1)
    y1 = jnp.minimum(y0 + 1, H - 1)
    flat = frame.reshape(N * H * W, C)
    base = (jnp.arange(N, dtype=jnp.int32) * (H * W))[:, None, None]

    def tap(y, x):
        idx = (base + y * W + x).reshape(-1)
        return jnp.take(flat, idx, axis=0).reshape(N, H, W, C)

    return (wy0 * wx0 * tap(y0, x0) + wy0 * wx1 * tap(y0, x1)
            + wy1 * wx0 * tap(y1, x0) + wy1 * wx1 * tap(y1, x1))


# ----------------------------------------------------------------------------
# RefinementNet
# ----------------------------------------------------------------------------
def init_params(key, *, hidden=(32, 64, 96), ce=(2, 2, 2, 0), output_dim=4):
    input_dim = 3 * 2 + ce[0] * 2
    shapes = {
        "down0_0": (input_dim, hidden[0]),
        "down0_1": (hidden[0], hidden[0]),
        "down1_0": (hidden[0] + ce[1] * 2, hidden[1]),
        "down1_1": (hidden[1], hidden[1]),
        "down2_0": (hidden[1] + ce[2] * 2, hidden[2]),
        "down2_1": (hidden[2], hidden[2]),
        "up0": (hidden[2], hidden[1]),
        "up1": (hidden[1] * 2, hidden[0]),
        "up2": (hidden[0] * 2, input_dim),
        "conv": (input_dim, output_dim),
    }
    params = {}
    for name, (cin, cout) in shapes.items():
        key, kw, kb = jax.random.split(key, 3)
        params[name] = {
            "w": 0.1 * jax.random.normal(kw, (3, 3, cin, cout), jnp.float32),
            "b": 0.02 * jax.random.normal(kb, (cout,), jnp.float32),
        }
    return params


def _to_nhwc(t):
    return jnp.transpose(t.astype(jnp.float32), (0, 2, 3, 1))


def refinement_net_forward(params, img0, img1, ft_0, ft_1, ft_0_s2, ft_1_s2,
                           ft_0_s4, ft_1_s4, c0, c1):
    bf16 = jnp.bfloat16

    def warp(frame_nchw, flow_nchw):
        return backward_warp(_to_nhwc(frame_nchw), _to_nhwc(flow_nchw))

    # --- down path ---
    d0 = jnp.concatenate([_to_nhwc(img0), _to_nhwc(img1),
                          warp(c0[0], ft_0), warp(c1[0], ft_1)],
                         axis=-1).astype(bf16)
    s0 = conv3x3(d0, params["down0_0"], stride=2, relu=True)
    s0 = conv3x3(s0, params["down0_1"], stride=1, relu=True)

    d1 = jnp.concatenate([s0, warp(c0[1], ft_0_s2).astype(bf16),
                          warp(c1[1], ft_1_s2).astype(bf16)], axis=-1)
    s1 = conv3x3(d1, params["down1_0"], stride=2, relu=True)
    s1 = conv3x3(s1, params["down1_1"], stride=1, relu=True)

    d2 = jnp.concatenate([s1, warp(c0[2], ft_0_s4).astype(bf16),
                          warp(c1[2], ft_1_s4).astype(bf16)], axis=-1)
    s2 = conv3x3(d2, params["down2_0"], stride=2, relu=True)
    s2 = conv3x3(s2, params["down2_1"], stride=1, relu=True)

    # --- up path.  The leading nn.ReLU of up0/up1/up2 is a no-op: each input
    # is a nonnegative bilinear mix of post-ReLU activations, so it is dropped.
    # TODO(synk): the 2x upsample could additionally be fused into the
    # consuming conv kernel to save one HBM round trip of the 4x intermediate.
    x = conv3x3(upsample2x(s2), params["up0"], stride=1, relu=True)
    x = conv3x3(upsample2x(jnp.concatenate([x, s1], axis=-1)),
                params["up1"], stride=1, relu=True)
    x = conv3x3(upsample2x(jnp.concatenate([x, s0], axis=-1)),
                params["up2"], stride=1, relu=True)
    x = conv3x3(x, params["conv"], stride=1, relu=False, out_dtype=jnp.float32)
    return jnp.transpose(x, (0, 3, 1, 2))          # NCHW


if __name__ == "__main__":
    key = jax.random.PRNGKey(0)
    N, H, W = 2, 16, 16
    # ce_layers chosen non-zero so the context-feature/warp path is exercised.
    ce = (2, 2, 2, 0)
    kp, *ks = jax.random.split(key, 16)
    params = init_params(kp, ce=ce)

    def rnd(k, shape, scale=1.0):
        return scale * jax.random.normal(k, shape, jnp.float32)

    img0 = rnd(ks[0], (N, 3, H, W))
    img1 = rnd(ks[1], (N, 3, H, W))
    ft_0 = rnd(ks[2], (N, 2, H, W), 2.0)
    ft_1 = rnd(ks[3], (N, 2, H, W), 2.0)
    ft_0_s2 = rnd(ks[4], (N, 2, H // 2, W // 2), 1.0)
    ft_1_s2 = rnd(ks[5], (N, 2, H // 2, W // 2), 1.0)
    ft_0_s4 = rnd(ks[6], (N, 2, H // 4, W // 4), 0.5)
    ft_1_s4 = rnd(ks[7], (N, 2, H // 4, W // 4), 0.5)
    c0 = [rnd(ks[8], (N, ce[0], H, W)),
          rnd(ks[9], (N, ce[1], H // 2, W // 2)),
          rnd(ks[10], (N, ce[2], H // 4, W // 4))]
    c1 = [rnd(ks[11], (N, ce[0], H, W)),
          rnd(ks[12], (N, ce[1], H // 2, W // 2)),
          rnd(ks[13], (N, ce[2], H // 4, W // 4))]

    fwd = jax.jit(refinement_net_forward)
    out = fwd(params, img0, img1, ft_0, ft_1, ft_0_s2, ft_1_s2,
              ft_0_s4, ft_1_s4, c0, c1)
    out = jax.block_until_ready(out)
    assert out.shape == (N, 4, H, W), out.shape
    assert bool(jnp.all(jnp.isfinite(out)))
    print("KERNEL_OK")
</pallas_src>

<mosaic_0001>
module attributes {stable_mosaic.version = 11 : i64} {
  func.func @_conv3x3_s2_kernel(%arg0: i32, %arg1: i32, %arg2: memref<1x128x20xbf16, #tpu.memory_space<vmem>>, %arg3: memref<90x32xbf16, #tpu.memory_space<vmem>>, %arg4: memref<1x32xf32, #tpu.memory_space<vmem>>, %arg5: memref<1x1x64x32xbf16, #tpu.memory_space<vmem>>) attributes {dimension_semantics = [#tpu.dimension_semantics<parallel>, #tpu.dimension_semantics<parallel>], iteration_bounds = array<i64: 2, 1>, scalar_prefetch = 0 : i64, scratch_operands = 0 : i64, tpu.core_type = #tpu.core_type<tc>, window_params = [{transform_indices = @transform_0, window_bounds = array<i64: 1, 128, 20>}, {pipeline_mode = #tpu.pipeline_mode<synchronous>, transform_indices = @transform_1, window_bounds = array<i64: 90, 32>}, {pipeline_mode = #tpu.pipeline_mode<synchronous>, transform_indices = @transform_2, window_bounds = array<i64: 1, 32>}, {transform_indices = @transform_3, window_bounds = array<i64: 1, 1, 64, 32>}]} {
    %c0 = arith.constant 0 : index
    %c0_0 = arith.constant 0 : index
    %c0_1 = arith.constant 0 : index
    %0 = vector.load %arg2[%c0, %c0_0, %c0_1] : memref<1x128x20xbf16, #tpu.memory_space<vmem>>, vector<1x128x20xbf16>
    %1 = vector.shape_cast %0 : vector<1x128x20xbf16> to vector<128x20xbf16>
    %cst = arith.constant 0.000000e+00 : bf16
    %2 = vector.broadcast %cst : bf16 to vector<8x20xbf16>
    %3 = tpu.concatenate %2, %1 in 0 : vector<8x20xbf16>, vector<128x20xbf16> -> vector<136x20xbf16>
    %4 = vector.extract_strided_slice %3 {offsets = [0, 0], sizes = [8, 20], strides = [1, 1]} : vector<136x20xbf16> to vector<8x20xbf16>
    %5 = vector.extract_strided_slice %3 {offsets = [8, 0], sizes = [8, 20], strides = [1, 1]} : vector<136x20xbf16> to vector<8x20xbf16>
    %6 = vector.extract_strided_slice %3 {offsets = [16, 0], sizes = [8, 20], strides = [1, 1]} : vector<136x20xbf16> to vector<8x20xbf16>
    %7 = vector.extract_strided_slice %3 {offsets = [16, 0], sizes = [8, 20], strides = [1, 1]} : vector<136x20xbf16> to vector<8x20xbf16>
    %8 = vector.extract_strided_slice %3 {offsets = [24, 0], sizes = [8, 20], strides = [1, 1]} : vector<136x20xbf16> to vector<8x20xbf16>
    %9 = vector.extract_strided_slice %3 {offsets = [32, 0], sizes = [8, 20], strides = [1, 1]} : vector<136x20xbf16> to vector<8x20xbf16>
    %10 = vector.extract_strided_slice %3 {offsets = [32, 0], sizes = [8, 20], strides = [1, 1]} : vector<136x20xbf16> to vector<8x20xbf16>
    %11 = vector.extract_strided_slice %3 {offsets = [40, 0], sizes = [8, 20], strides = [1, 1]} : vector<136x20xbf16> to vector<8x20xbf16>
    %12 = vector.extract_strided_slice %3 {offsets = [48, 0], sizes = [8, 20], strides = [1, 1]} : vector<136x20xbf16> to vector<8x20xbf16>
    %13 = vector.extract_strided_slice %3 {offsets = [48, 0], sizes = [8, 20], strides = [1, 1]} : vector<136x20xbf16> to vector<8x20xbf16>
    %14 = vector.extract_strided_slice %3 {offsets = [56, 0], sizes = [8, 20], strides = [1, 1]} : vector<136x20xbf16> to vector<8x20xbf16>
    %15 = vector.extract_strided_slice %3 {offsets = [64, 0], sizes = [8, 20], strides = [1, 1]} : vector<136x20xbf16> to vector<8x20xbf16>
    %16 = vector.extract_strided_slice %3 {offsets = [64, 0], sizes = [8, 20], strides = [1, 1]} : vector<136x20xbf16> to vector<8x20xbf16>
    %17 = vector.extract_strided_slice %3 {offsets = [72, 0], sizes = [8, 20], strides = [1, 1]} : vector<136x20xbf16> to vector<8x20xbf16>
    %18 = vector.extract_strided_slice %3 {offsets = [80, 0], sizes = [8, 20], strides = [1, 1]} : vector<136x20xbf16> to vector<8x20xbf16>
    %19 = vector.extract_strided_slice %3 {offsets = [80, 0], sizes = [8, 20], strides = [1, 1]} : vector<136x20xbf16> to vector<8x20xbf16>
    %20 = vector.extract_strided_slice %3 {offsets = [88, 0], sizes = [8, 20], strides = [1, 1]} : vector<136x20xbf16> to vector<8x20xbf16>
    %21 = vector.extract_strided_slice %3 {offsets = [96, 0], sizes = [8, 20], strides = [1, 1]} : vector<136x20xbf16> to vector<8x20xbf16>
    %22 = vector.extract_strided_slice %3 {offsets = [96, 0], sizes = [8, 20], strides = [1, 1]} : vector<136x20xbf16> to vector<8x20xbf16>
    %23 = vector.extract_strided_slice %3 {offsets = [104, 0], sizes = [8, 20], strides = [1, 1]} : vector<136x20xbf16> to vector<8x20xbf16>
    %24 = vector.extract_strided_slice %3 {offsets = [112, 0], sizes = [8, 20], strides = [1, 1]} : vector<136x20xbf16> to vector<8x20xbf16>
    %25 = vector.extract_strided_slice %3 {offsets = [112, 0], sizes = [8, 20], strides = [1, 1]} : vector<136x20xbf16> to vector<8x20xbf16>
    %26 = vector.extract_strided_slice %3 {offsets = [120, 0], sizes = [8, 20], strides = [1, 1]} : vector<136x20xbf16> to vector<8x20xbf16>
    %27 = vector.extract_strided_slice %3 {offsets = [128, 0], sizes = [8, 20], strides = [1, 1]} : vector<136x20xbf16> to vector<8x20xbf16>
    %28 = tpu.concatenate %4, %7, %10, %13, %16, %19, %22, %25 in 0 : vector<8x20xbf16>, vector<8x20xbf16>, vector<8x20xbf16>, vector<8x20xbf16>, vector<8x20xbf16>, vector<8x20xbf16>, vector<8x20xbf16>, vector<8x20xbf16> -> vector<64x20xbf16>
    %29 = tpu.concatenate %5, %8, %11, %14, %17, %20, %23, %26 in 0 : vector<8x20xbf16>, vector<8x20xbf16>, vector<8x20xbf16>, vector<8x20xbf16>, vector<8x20xbf16>, vector<8x20xbf16>, vector<8x20xbf16>, vector<8x20xbf16> -> vector<64x20xbf16>
    %30 = tpu.concatenate %6, %9, %12, %15, %18, %21, %24, %27 in 0 : vector<8x20xbf16>, vector<8x20xbf16>, vector<8x20xbf16>, vector<8x20xbf16>, vector<8x20xbf16>, vector<8x20xbf16>, vector<8x20xbf16>, vector<8x20xbf16> -> vector<64x20xbf16>
    %31 = tpu.iota {dimensions = array<i32: 0>} : vector<64x1xi32>
    %c8_i32 = arith.constant 8 : i32
    %c0_i32 = arith.constant 0 : i32
    %32 = arith.cmpi eq, %c8_i32, %c0_i32 : i32
    %c1_i32 = arith.constant 1 : i32
    %33 = arith.select %32, %c1_i32, %c8_i32 : i32
    %34 = vector.broadcast %33 : i32 to vector<64x1xi32>
    %35 = arith.remsi %31, %34 : vector<64x1xi32>
    %c0_i32_2 = arith.constant 0 : i32
    %36 = vector.broadcast %c0_i32_2 : i32 to vector<64x1xi32>
    %37 = arith.cmpi ne, %35, %36 : vector<64x1xi32>
    %c0_i32_3 = arith.constant 0 : i32
    %38 = vector.broadcast %c0_i32_3 : i32 to vector<64x1xi32>
    %39 = arith.cmpi slt, %35, %38 : vector<64x1xi32>
    %c0_i32_4 = arith.constant 0 : i32
    %40 = arith.cmpi slt, %33, %c0_i32_4 : i32
    %41 = vector.broadcast %40 : i1 to vector<64x1xi1>
    %42 = vector.broadcast %41 : vector<64x1xi1> to vector<64x1xi1>
    %43 = arith.xori %39, %42 : vector<64x1xi1>
    %44 = arith.andi %43, %37 : vector<64x1xi1>
    %45 = vector.broadcast %33 : i32 to vector<64x1xi32>
    %46 = arith.addi %35, %45 : vector<64x1xi32>
    %47 = arith.select %44, %46, %35 : vector<64x1xi1>, vector<64x1xi32>
    %cst_5 = arith.constant 0.000000e+00 : bf16
    %48 = vector.broadcast %cst_5 : bf16 to vector<1x10xbf16>
    %49 = vector.extract_strided_slice %28 {offsets = [0, 0], sizes = [64, 10], strides = [1, 1]} : vector<64x20xbf16> to vector<64x10xbf16>
    %50 = vector.extract_strided_slice %28 {offsets = [0, 10], sizes = [64, 10], strides = [1, 1]} : vector<64x20xbf16> to vector<64x10xbf16>
    %51 = vector.extract_strided_slice %50 {offsets = [0, 0], sizes = [63, 10], strides = [1, 1]} : vector<64x10xbf16> to vector<63x10xbf16>
    %52 = tpu.concatenate %48, %51 in 0 : vector<1x10xbf16>, vector<63x10xbf16> -> vector<64x10xbf16>
    %c0_i32_6 = arith.constant 0 : i32
    %53 = vector.broadcast %c0_i32_6 : i32 to vector<64x1xi32>
    %54 = arith.cmpi ne, %47, %53 : vector<64x1xi32>
    %cst_7 = arith.constant 0.000000e+00 : bf16
    %55 = vector.broadcast %cst_7 : bf16 to vector<64x10xbf16>
    %56 = vector.shape_cast %54 : vector<64x1xi1> to vector<64x1xi1>
    %57 = vector.broadcast %56 : vector<64x1xi1> to vector<64x10xi1>
    %58 = arith.select %57, %52, %55 : vector<64x10xi1>, vector<64x10xbf16>
    %59 = vector.extract_strided_slice %29 {offsets = [0, 0], sizes = [64, 10], strides = [1, 1]} : vector<64x20xbf16> to vector<64x10xbf16>
    %60 = vector.extract_strided_slice %29 {offsets = [0, 10], sizes = [64, 10], strides = [1, 1]} : vector<64x20xbf16> to vector<64x10xbf16>
    %61 = vector.extract_strided_slice %60 {offsets = [0, 0], sizes = [63, 10], strides = [1, 1]} : vector<64x10xbf16> to vector<63x10xbf16>
    %62 = tpu.concatenate %48, %61 in 0 : vector<1x10xbf16>, vector<63x10xbf16> -> vector<64x10xbf16>
    %c0_i32_8 = arith.constant 0 : i32
    %63 = vector.broadcast %c0_i32_8 : i32 to vector<64x1xi32>
    %64 = arith.cmpi ne, %47, %63 : vector<64x1xi32>
    %cst_9 = arith.constant 0.000000e+00 : bf16
    %65 = vector.broadcast %cst_9 : bf16 to vector<64x10xbf16>
    %66 = vector.shape_cast %64 : vector<64x1xi1> to vector<64x1xi1>
    %67 = vector.broadcast %66 : vector<64x1xi1> to vector<64x10xi1>
    %68 = arith.select %67, %62, %65 : vector<64x10xi1>, vector<64x10xbf16>
    %69 = vector.extract_strided_slice %30 {offsets = [0, 0], sizes = [64, 10], strides = [1, 1]} : vector<64x20xbf16> to vector<64x10xbf16>
    %70 = vector.extract_strided_slice %30 {offsets = [0, 10], sizes = [64, 10], strides = [1, 1]} : vector<64x20xbf16> to vector<64x10xbf16>
    %71 = vector.extract_strided_slice %70 {offsets = [0, 0], sizes = [63, 10], strides = [1, 1]} : vector<64x10xbf16> to vector<63x10xbf16>
    %72 = tpu.concatenate %48, %71 in 0 : vector<1x10xbf16>, vector<63x10xbf16> -> vector<64x10xbf16>
    %c0_i32_10 = arith.constant 0 : i32
    %73 = vector.broadcast %c0_i32_10 : i32 to vector<64x1xi32>
    %74 = arith.cmpi ne, %47, %73 : vector<64x1xi32>
    %cst_11 = arith.constant 0.000000e+00 : bf16
    %75 = vector.broadcast %cst_11 : bf16 to vector<64x10xbf16>
    %76 = vector.shape_cast %74 : vector<64x1xi1> to vector<64x1xi1>
    %77 = vector.broadcast %76 : vector<64x1xi1> to vector<64x10xi1>
    %78 = arith.select %77, %72, %75 : vector<64x10xi1>, vector<64x10xbf16>
    %79 = tpu.concatenate %58, %49, %50, %68, %59, %60, %78, %69, %70 in 1 : vector<64x10xbf16>, vector<64x10xbf16>, vector<64x10xbf16>, vector<64x10xbf16>, vector<64x10xbf16>, vector<64x10xbf16>, vector<64x10xbf16>, vector<64x10xbf16>, vector<64x10xbf16> -> vector<64x90xbf16>
    %c0_12 = arith.constant 0 : index
    %c0_13 = arith.constant 0 : index
    %80 = vector.load %arg3[%c0_12, %c0_13] : memref<90x32xbf16, #tpu.memory_space<vmem>>, vector<90x32xbf16>
    %cst_14 = arith.constant dense<0.000000e+00> : vector<64x32xf32>
    %81 = tpu.matmul %79, %80, %cst_14 {dimension_numbers = #tpu.dot_dimension_numbers<[1], [0], [0], [1], [0, 0, 1, 1], [], []>} : vector<64x90xbf16>, vector<90x32xbf16>, vector<64x32xf32> -> vector<64x32xf32>
    %c0_15 = arith.constant 0 : index
    %c0_16 = arith.constant 0 : index
    %82 = vector.load %arg4[%c0_15, %c0_16] : memref<1x32xf32, #tpu.memory_space<vmem>>, vector<1x32xf32>
    %83 = vector.broadcast %82 : vector<1x32xf32> to vector<64x32xf32>
    %84 = arith.addf %81, %83 : vector<64x32xf32>
    %cst_17 = arith.constant 0.000000e+00 : f32
    %85 = vector.broadcast %cst_17 : f32 to vector<64x32xf32>
    %86 = arith.maximumf %84, %85 : vector<64x32xf32>
    %87 = arith.truncf %86 : vector<64x32xf32> to vector<64x32xbf16>
    %c0_18 = arith.constant 0 : index
    %c0_19 = arith.constant 0 : index
    %c0_20 = arith.constant 0 : index
    %c0_21 = arith.constant 0 : index
    %88 = vector.load %arg5[%c0_18, %c0_19, %c0_20, %c0_21] : memref<1x1x64x32xbf16, #tpu.memory_space<vmem>>, vector<1x1x64x32xbf16>
    %89 = vector.shape_cast %88 : vector<1x1x64x32xbf16> to vector<64x32xbf16>
    %90 = vector.shape_cast %87 : vector<64x32xbf16> to vector<1x1x64x32xbf16>
    tpu.vector_store %arg5[%c0_18, %c0_19, %c0_20, %c0_21], %90 {strides = array<i32>} : memref<1x1x64x32xbf16, #tpu.memory_space<vmem>>, vector<1x1x64x32xbf16>,
    return
  }
  func.func @transform_0(%arg0: i32, %arg1: i32) -> (i32, i32, i32) {
    %c0_i32 = arith.constant 0 : i32
    %c0_i32_0 = arith.constant 0 : i32
    return %arg0, %arg1, %c0_i32 : i32, i32, i32
  }
  func.func @transform_1(%arg0: i32, %arg1: i32) -> (i32, i32) {
    %c0_i32 = arith.constant 0 : i32
    %c0_i32_0 = arith.constant 0 : i32
    %c0_i32_1 = arith.constant 0 : i32
    return %c0_i32, %c0_i32_0 : i32, i32
  }
  func.func @transform_2(%arg0: i32, %arg1: i32) -> (i32, i32) {
    %c0_i32 = arith.constant 0 : i32
    %c0_i32_0 = arith.constant 0 : i32
    %c0_i32_1 = arith.constant 0 : i32
    return %c0_i32, %c0_i32_0 : i32, i32
  }
  func.func @transform_3(%arg0: i32, %arg1: i32) -> (i32, i32, i32, i32) {
    %c0_i32 = arith.constant 0 : i32
    %c0_i32_0 = arith.constant 0 : i32
    %c0_i32_1 = arith.constant 0 : i32
    return %arg0, %arg1, %c0_i32, %c0_i32_0 : i32, i32, i32, i32
  }
}

module attributes {stable_mosaic.version = 11 : i64} {
  func.func @_conv3x3_s1_kernel(%arg0: i32, %arg1: i32, %arg2: memref<1x64x32xbf16, #tpu.memory_space<vmem>>, %arg3: memref<288x32xbf16, #tpu.memory_space<vmem>>, %arg4: memref<1x32xf32, #tpu.memory_space<vmem>>, %arg5: memref<1x1x64x32xbf16, #tpu.memory_space<vmem>>) attributes {dimension_semantics = [#tpu.dimension_semantics<parallel>, #tpu.dimension_semantics<parallel>], iteration_bounds = array<i64: 2, 1>, scalar_prefetch = 0 : i64, scratch_operands = 0 : i64, tpu.core_type = #tpu.core_type<tc>, window_params = [{transform_indices = @transform_0, window_bounds = array<i64: 1, 64, 32>}, {pipeline_mode = #tpu.pipeline_mode<synchronous>, transform_indices = @transform_1, window_bounds = array<i64: 288, 32>}, {pipeline_mode = #tpu.pipeline_mode<synchronous>, transform_indices = @transform_2, window_bounds = array<i64: 1, 32>}, {transform_indices = @transform_3, window_bounds = array<i64: 1, 1, 64, 32>}]} {
    %c0 = arith.constant 0 : index
    %c0_0 = arith.constant 0 : index
    %c0_1 = arith.constant 0 : index
    %0 = vector.load %arg2[%c0, %c0_0, %c0_1] : memref<1x64x32xbf16, #tpu.memory_space<vmem>>, vector<1x64x32xbf16>
    %1 = vector.shape_cast %0 : vector<1x64x32xbf16> to vector<64x32xbf16>
    %cst = arith.constant 0.000000e+00 : bf16
    %2 = vector.broadcast %cst : bf16 to vector<8x32xbf16>
    %cst_2 = arith.constant 0.000000e+00 : bf16
    %3 = vector.broadcast %cst_2 : bf16 to vector<8x32xbf16>
    %4 = tpu.concatenate %2, %1, %3 in 0 : vector<8x32xbf16>, vector<64x32xbf16>, vector<8x32xbf16> -> vector<80x32xbf16>
    %5 = tpu.iota {dimensions = array<i32: 0>} : vector<80x1xi32>
    %c8_i32 = arith.constant 8 : i32
    %c0_i32 = arith.constant 0 : i32
    %6 = arith.cmpi eq, %c8_i32, %c0_i32 : i32
    %c1_i32 = arith.constant 1 : i32
    %7 = arith.select %6, %c1_i32, %c8_i32 : i32
    %8 = vector.broadcast %7 : i32 to vector<80x1xi32>
    %9 = arith.remsi %5, %8 : vector<80x1xi32>
    %c0_i32_3 = arith.constant 0 : i32
    %10 = vector.broadcast %c0_i32_3 : i32 to vector<80x1xi32>
    %11 = arith.cmpi ne, %9, %10 : vector<80x1xi32>
    %c0_i32_4 = arith.constant 0 : i32
    %12 = vector.broadcast %c0_i32_4 : i32 to vector<80x1xi32>
    %13 = arith.cmpi slt, %9, %12 : vector<80x1xi32>
    %c0_i32_5 = arith.constant 0 : i32
    %14 = arith.cmpi slt, %7, %c0_i32_5 : i32
    %15 = vector.broadcast %14 : i1 to vector<80x1xi1>
    %16 = vector.broadcast %15 : vector<80x1xi1> to vector<80x1xi1>
    %17 = arith.xori %13, %16 : vector<80x1xi1>
    %18 = arith.andi %17, %11 : vector<80x1xi1>
    %19 = vector.broadcast %7 : i32 to vector<80x1xi32>
    %20 = arith.addi %9, %19 : vector<80x1xi32>
    %21 = arith.select %18, %20, %9 : vector<80x1xi1>, vector<80x1xi32>
    %cst_6 = arith.constant 0.000000e+00 : bf16
    %22 = vector.broadcast %cst_6 : bf16 to vector<1x32xbf16>
    %23 = vector.extract_strided_slice %4 {offsets = [0, 0], sizes = [79, 32], strides = [1, 1]} : vector<80x32xbf16> to vector<79x32xbf16>
    %24 = tpu.concatenate %22, %23 in 0 : vector<1x32xbf16>, vector<79x32xbf16> -> vector<80x32xbf16>
    %25 = vector.extract_strided_slice %4 {offsets = [1, 0], sizes = [79, 32], strides = [1, 1]} : vector<80x32xbf16> to vector<79x32xbf16>
    %26 = tpu.concatenate %25, %22 in 0 : vector<79x32xbf16>, vector<1x32xbf16> -> vector<80x32xbf16>
    %c0_i32_7 = arith.constant 0 : i32
    %27 = vector.broadcast %c0_i32_7 : i32 to vector<80x1xi32>
    %28 = arith.cmpi ne, %21, %27 : vector<80x1xi32>
    %cst_8 = arith.constant 0.000000e+00 : bf16
    %29 = vector.broadcast %cst_8 : bf16 to vector<80x32xbf16>
    %30 = vector.shape_cast %28 : vector<80x1xi1> to vector<80x1xi1>
    %31 = vector.broadcast %30 : vector<80x1xi1> to vector<80x32xi1>
    %32 = arith.select %31, %24, %29 : vector<80x32xi1>, vector<80x32xbf16>
    %c7_i32 = arith.constant 7 : i32
    %33 = vector.broadcast %c7_i32 : i32 to vector<80x1xi32>
    %34 = arith.cmpi ne, %21, %33 : vector<80x1xi32>
    %cst_9 = arith.constant 0.000000e+00 : bf16
    %35 = vector.broadcast %cst_9 : bf16 to vector<80x32xbf16>
    %36 = vector.shape_cast %34 : vector<80x1xi1> to vector<80x1xi1>
    %37 = vector.broadcast %36 : vector<80x1xi1> to vector<80x32xi1>
    %38 = arith.select %37, %26, %35 : vector<80x32xi1>, vector<80x32xbf16>
    %39 = tpu.concatenate %32, %4, %38 in 1 : vector<80x32xbf16>, vector<80x32xbf16>, vector<80x32xbf16> -> vector<80x96xbf16>
    %40 = vector.extract_strided_slice %39 {offsets = [0, 0], sizes = [64, 96], strides = [1, 1]} : vector<80x96xbf16> to vector<64x96xbf16>
    %41 = vector.extract_strided_slice %39 {offsets = [8, 0], sizes = [64, 96], strides = [1, 1]} : vector<80x96xbf16> to vector<64x96xbf16>
    %42 = vector.extract_strided_slice %39 {offsets = [16, 0], sizes = [64, 96], strides = [1, 1]} : vector<80x96xbf16> to vector<64x96xbf16>
    %43 = tpu.concatenate %40, %41, %42 in 1 : vector<64x96xbf16>, vector<64x96xbf16>, vector<64x96xbf16> -> vector<64x288xbf16>
    %c0_10 = arith.constant 0 : index
    %c0_11 = arith.constant 0 : index
    %44 = vector.load %arg3[%c0_10, %c0_11] : memref<288x32xbf16, #tpu.memory_space<vmem>>, vector<288x32xbf16>
    %cst_12 = arith.constant dense<0.000000e+00> : vector<64x32xf32>
    %45 = tpu.matmul %43, %44, %cst_12 {dimension_numbers = #tpu.dot_dimension_numbers<[1], [0], [0], [1], [0, 0, 1, 1], [], []>} : vector<64x288xbf16>, vector<288x32xbf16>, vector<64x32xf32> -> vector<64x32xf32>
    %c0_13 = arith.constant 0 : index
    %c0_14 = arith.constant 0 : index
    %46 = vector.load %arg4[%c0_13, %c0_14] : memref<1x32xf32, #tpu.memory_space<vmem>>, vector<1x32xf32>
    %47 = vector.broadcast %46 : vector<1x32xf32> to vector<64x32xf32>
    %48 = arith.addf %45, %47 : vector<64x32xf32>
    %cst_15 = arith.constant 0.000000e+00 : f32
    %49 = vector.broadcast %cst_15 : f32 to vector<64x32xf32>
    %50 = arith.maximumf %48, %49 : vector<64x32xf32>
    %51 = arith.truncf %50 : vector<64x32xf32> to vector<64x32xbf16>
    %c0_16 = arith.constant 0 : index
    %c0_17 = arith.constant 0 : index
    %c0_18 = arith.constant 0 : index
    %c0_19 = arith.constant 0 : index
    %52 = vector.load %arg5[%c0_16, %c0_17, %c0_18, %c0_19] : memref<1x1x64x32xbf16, #tpu.memory_space<vmem>>, vector<1x1x64x32xbf16>
    %53 = vector.shape_cast %52 : vector<1x1x64x32xbf16> to vector<64x32xbf16>
    %54 = vector.shape_cast %51 : vector<64x32xbf16> to vector<1x1x64x32xbf16>
    tpu.vector_store %arg5[%c0_16, %c0_17, %c0_18, %c0_19], %54 {strides = array<i32>} : memref<1x1x64x32xbf16, #tpu.memory_space<vmem>>, vector<1x1x64x32xbf16>,
    return
  }
  func.func @transform_0(%arg0: i32, %arg1: i32) -> (i32, i32, i32) {
    %c0_i32 = arith.constant 0 : i32
    %c0_i32_0 = arith.constant 0 : i32
    return %arg0, %arg1, %c0_i32 : i32, i32, i32
  }
  func.func @transform_1(%arg0: i32, %arg1: i32) -> (i32, i32) {
    %c0_i32 = arith.constant 0 : i32
    %c0_i32_0 = arith.constant 0 : i32
    %c0_i32_1 = arith.constant 0 : i32
    return %c0_i32, %c0_i32_0 : i32, i32
  }
  func.func @transform_2(%arg0: i32, %arg1: i32) -> (i32, i32) {
    %c0_i32 = arith.constant 0 : i32
    %c0_i32_0 = arith.constant 0 : i32
    %c0_i32_1 = arith.constant 0 : i32
    return %c0_i32, %c0_i32_0 : i32, i32
  }
  func.func @transform_3(%arg0: i32, %arg1: i32) -> (i32, i32, i32, i32) {
    %c0_i32 = arith.constant 0 : i32
    %c0_i32_0 = arith.constant 0 : i32
    %c0_i32_1 = arith.constant 0 : i32
    return %arg0, %arg1, %c0_i32, %c0_i32_0 : i32, i32, i32, i32
  }
}

module attributes {stable_mosaic.version = 11 : i64} {
  func.func @_conv3x3_s1_kernel(%arg0: i32, %arg1: i32, %arg2: memref<1x16x64xbf16, #tpu.memory_space<vmem>>, %arg3: memref<576x64xbf16, #tpu.memory_space<vmem>>, %arg4: memref<1x64xf32, #tpu.memory_space<vmem>>, %arg5: memref<1x1x16x64xbf16, #tpu.memory_space<vmem>>) attributes {dimension_semantics = [#tpu.dimension_semantics<parallel>, #tpu.dimension_semantics<parallel>], iteration_bounds = array<i64: 2, 1>, scalar_prefetch = 0 : i64, scratch_operands = 0 : i64, tpu.core_type = #tpu.core_type<tc>, window_params = [{transform_indices = @transform_0, window_bounds = array<i64: 1, 16, 64>}, {pipeline_mode = #tpu.pipeline_mode<synchronous>, transform_indices = @transform_1, window_bounds = array<i64: 576, 64>}, {pipeline_mode = #tpu.pipeline_mode<synchronous>, transform_indices = @transform_2, window_bounds = array<i64: 1, 64>}, {transform_indices = @transform_3, window_bounds = array<i64: 1, 1, 16, 64>}]} {
    %c0 = arith.constant 0 : index
    %c0_0 = arith.constant 0 : index
    %c0_1 = arith.constant 0 : index
    %0 = vector.load %arg2[%c0, %c0_0, %c0_1] : memref<1x16x64xbf16, #tpu.memory_space<vmem>>, vector<1x16x64xbf16>
    %1 = vector.shape_cast %0 : vector<1x16x64xbf16> to vector<16x64xbf16>
    %cst = arith.constant 0.000000e+00 : bf16
    %2 = vector.broadcast %cst : bf16 to vector<4x64xbf16>
    %cst_2 = arith.constant 0.000000e+00 : bf16
    %3 = vector.broadcast %cst_2 : bf16 to vector<4x64xbf16>
    %4 = tpu.concatenate %2, %1, %3 in 0 : vector<4x64xbf16>, vector<16x64xbf16>, vector<4x64xbf16> -> vector<24x64xbf16>
    %5 = tpu.iota {dimensions = array<i32: 0>} : vector<24x1xi32>
    %c4_i32 = arith.constant 4 : i32
    %c0_i32 = arith.constant 0 : i32
    %6 = arith.cmpi eq, %c4_i32, %c0_i32 : i32
    %c1_i32 = arith.constant 1 : i32
    %7 = arith.select %6, %c1_i32, %c4_i32 : i32
    %8 = vector.broadcast %7 : i32 to vector<24x1xi32>
    %9 = arith.remsi %5, %8 : vector<24x1xi32>
    %c0_i32_3 = arith.constant 0 : i32
    %10 = vector.broadcast %c0_i32_3 : i32 to vector<24x1xi32>
    %11 = arith.cmpi ne, %9, %10 : vector<24x1xi32>
    %c0_i32_4 = arith.constant 0 : i32
    %12 = vector.broadcast %c0_i32_4 : i32 to vector<24x1xi32>
    %13 = arith.cmpi slt, %9, %12 : vector<24x1xi32>
    %c0_i32_5 = arith.constant 0 : i32
    %14 = arith.cmpi slt, %7, %c0_i32_5 : i32
    %15 = vector.broadcast %14 : i1 to vector<24x1xi1>
    %16 = vector.broadcast %15 : vector<24x1xi1> to vector<24x1xi1>
    %17 = arith.xori %13, %16 : vector<24x1xi1>
    %18 = arith.andi %17, %11 : vector<24x1xi1>
    %19 = vector.broadcast %7 : i32 to vector<24x1xi32>
    %20 = arith.addi %9, %19 : vector<24x1xi32>
    %21 = arith.select %18, %20, %9 : vector<24x1xi1>, vector<24x1xi32>
    %cst_6 = arith.constant 0.000000e+00 : bf16
    %22 = vector.broadcast %cst_6 : bf16 to vector<1x64xbf16>
    %23 = vector.extract_strided_slice %4 {offsets = [0, 0], sizes = [23, 64], strides = [1, 1]} : vector<24x64xbf16> to vector<23x64xbf16>
    %24 = tpu.concatenate %22, %23 in 0 : vector<1x64xbf16>, vector<23x64xbf16> -> vector<24x64xbf16>
    %25 = vector.extract_strided_slice %4 {offsets = [1, 0], sizes = [23, 64], strides = [1, 1]} : vector<24x64xbf16> to vector<23x64xbf16>
    %26 = tpu.concatenate %25, %22 in 0 : vector<23x64xbf16>, vector<1x64xbf16> -> vector<24x64xbf16>
    %c0_i32_7 = arith.constant 0 : i32
    %27 = vector.broadcast %c0_i32_7 : i32 to vector<24x1xi32>
    %28 = arith.cmpi ne, %21, %27 : vector<24x1xi32>
    %cst_8 = arith.constant 0.000000e+00 : bf16
    %29 = vector.broadcast %cst_8 : bf16 to vector<24x64xbf16>
    %30 = vector.shape_cast %28 : vector<24x1xi1> to vector<24x1xi1>
    %31 = vector.broadcast %30 : vector<24x1xi1> to vector<24x64xi1>
    %32 = arith.select %31, %24, %29 : vector<24x64xi1>, vector<24x64xbf16>
    %c3_i32 = arith.constant 3 : i32
    %33 = vector.broadcast %c3_i32 : i32 to vector<24x1xi32>
    %34 = arith.cmpi ne, %21, %33 : vector<24x1xi32>
    %cst_9 = arith.constant 0.000000e+00 : bf16
    %35 = vector.broadcast %cst_9 : bf16 to vector<24x64xbf16>
    %36 = vector.shape_cast %34 : vector<24x1xi1> to vector<24x1xi1>
    %37 = vector.broadcast %36 : vector<24x1xi1> to vector<24x64xi1>
    %38 = arith.select %37, %26, %35 : vector<24x64xi1>, vector<24x64xbf16>
    %39 = tpu.concatenate %32, %4, %38 in 1 : vector<24x64xbf16>, vector<24x64xbf16>, vector<24x64xbf16> -> vector<24x192xbf16>
    %40 = vector.extract_strided_slice %39 {offsets = [0, 0], sizes = [16, 192], strides = [1, 1]} : vector<24x192xbf16> to vector<16x192xbf16>
    %41 = vector.extract_strided_slice %39 {offsets = [4, 0], sizes = [16, 192], strides = [1, 1]} : vector<24x192xbf16> to vector<16x192xbf16>
    %42 = vector.extract_strided_slice %39 {offsets = [8, 0], sizes = [16, 192], strides = [1, 1]} : vector<24x192xbf16> to vector<16x192xbf16>
    %43 = tpu.concatenate %40, %41, %42 in 1 : vector<16x192xbf16>, vector<16x192xbf16>, vector<16x192xbf16> -> vector<16x576xbf16>
    %c0_10 = arith.constant 0 : index
    %c0_11 = arith.constant 0 : index
    %44 = vector.load %arg3[%c0_10, %c0_11] : memref<576x64xbf16, #tpu.memory_space<vmem>>, vector<576x64xbf16>
    %cst_12 = arith.constant dense<0.000000e+00> : vector<16x64xf32>
    %45 = tpu.matmul %43, %44, %cst_12 {dimension_numbers = #tpu.dot_dimension_numbers<[1], [0], [0], [1], [0, 0, 1, 1], [], []>} : vector<16x576xbf16>, vector<576x64xbf16>, vector<16x64xf32> -> vector<16x64xf32>
    %c0_13 = arith.constant 0 : index
    %c0_14 = arith.constant 0 : index
    %46 = vector.load %arg4[%c0_13, %c0_14] : memref<1x64xf32, #tpu.memory_space<vmem>>, vector<1x64xf32>
    %47 = vector.broadcast %46 : vector<1x64xf32> to vector<16x64xf32>
    %48 = arith.addf %45, %47 : vector<16x64xf32>
    %cst_15 = arith.constant 0.000000e+00 : f32
    %49 = vector.broadcast %cst_15 : f32 to vector<16x64xf32>
    %50 = arith.maximumf %48, %49 : vector<16x64xf32>
    %51 = arith.truncf %50 : vector<16x64xf32> to vector<16x64xbf16>
    %c0_16 = arith.constant 0 : index
    %c0_17 = arith.constant 0 : index
    %c0_18 = arith.constant 0 : index
    %c0_19 = arith.constant 0 : index
    %52 = vector.load %arg5[%c0_16, %c0_17, %c0_18, %c0_19] : memref<1x1x16x64xbf16, #tpu.memory_space<vmem>>, vector<1x1x16x64xbf16>
    %53 = vector.shape_cast %52 : vector<1x1x16x64xbf16> to vector<16x64xbf16>
    %54 = vector.shape_cast %51 : vector<16x64xbf16> to vector<1x1x16x64xbf16>
    tpu.vector_store %arg5[%c0_16, %c0_17, %c0_18, %c0_19], %54 {strides = array<i32>} : memref<1x1x16x64xbf16, #tpu.memory_space<vmem>>, vector<1x1x16x64xbf16>,
    return
  }
  func.func @transform_0(%arg0: i32, %arg1: i32) -> (i32, i32, i32) {
    %c0_i32 = arith.constant 0 : i32
    %c0_i32_0 = arith.constant 0 : i32
    return %arg0, %arg1, %c0_i32 : i32, i32, i32
  }
  func.func @transform_1(%arg0: i32, %arg1: i32) -> (i32, i32) {
    %c0_i32 = arith.constant 0 : i32
    %c0_i32_0 = arith.constant 0 : i32
    %c0_i32_1 = arith.constant 0 : i32
    return %c0_i32, %c0_i32_0 : i32, i32
  }
  func.func @transform_2(%arg0: i32, %arg1: i32) -> (i32, i32) {
    %c0_i32 = arith.constant 0 : i32
    %c0_i32_0 = arith.constant 0 : i32
    %c0_i32_1 = arith.constant 0 : i32
    return %c0_i32, %c0_i32_0 : i32, i32
  }
  func.func @transform_3(%arg0: i32, %arg1: i32) -> (i32, i32, i32, i32) {
    %c0_i32 = arith.constant 0 : i32
    %c0_i32_0 = arith.constant 0 : i32
    %c0_i32_1 = arith.constant 0 : i32
    return %arg0, %arg1, %c0_i32, %c0_i32_0 : i32, i32, i32, i32
  }
}

module attributes {stable_mosaic.version = 11 : i64} {
  func.func @_conv3x3_s2_kernel(%arg0: i32, %arg1: i32, %arg2: memref<1x32x72xbf16, #tpu.memory_space<vmem>>, %arg3: memref<324x64xbf16, #tpu.memory_space<vmem>>, %arg4: memref<1x64xf32, #tpu.memory_space<vmem>>, %arg5: memref<1x1x16x64xbf16, #tpu.memory_space<vmem>>) attributes {dimension_semantics = [#tpu.dimension_semantics<parallel>, #tpu.dimension_semantics<parallel>], iteration_bounds = array<i64: 2, 1>, scalar_prefetch = 0 : i64, scratch_operands = 0 : i64, tpu.core_type = #tpu.core_type<tc>, window_params = [{transform_indices = @transform_0, window_bounds = array<i64: 1, 32, 72>}, {pipeline_mode = #tpu.pipeline_mode<synchronous>, transform_indices = @transform_1, window_bounds = array<i64: 324, 64>}, {pipeline_mode = #tpu.pipeline_mode<synchronous>, transform_indices = @transform_2, window_bounds = array<i64: 1, 64>}, {transform_indices = @transform_3, window_bounds = array<i64: 1, 1, 16, 64>}]} {
    %c0 = arith.constant 0 : index
    %c0_0 = arith.constant 0 : index
    %c0_1 = arith.constant 0 : index
    %0 = vector.load %arg2[%c0, %c0_0, %c0_1] : memref<1x32x72xbf16, #tpu.memory_space<vmem>>, vector<1x32x72xbf16>
    %1 = vector.shape_cast %0 : vector<1x32x72xbf16> to vector<32x72xbf16>
    %cst = arith.constant 0.000000e+00 : bf16
    %2 = vector.broadcast %cst : bf16 to vector<4x72xbf16>
    %3 = tpu.concatenate %2, %1 in 0 : vector<4x72xbf16>, vector<32x72xbf16> -> vector<36x72xbf16>
    %4 = vector.extract_strided_slice %3 {offsets = [0, 0], sizes = [4, 72], strides = [1, 1]} : vector<36x72xbf16> to vector<4x72xbf16>
    %5 = vector.extract_strided_slice %3 {offsets = [4, 0], sizes = [4, 72], strides = [1, 1]} : vector<36x72xbf16> to vector<4x72xbf16>
    %6 = vector.extract_strided_slice %3 {offsets = [8, 0], sizes = [4, 72], strides = [1, 1]} : vector<36x72xbf16> to vector<4x72xbf16>
    %7 = vector.extract_strided_slice %3 {offsets = [8, 0], sizes = [4, 72], strides = [1, 1]} : vector<36x72xbf16> to vector<4x72xbf16>
    %8 = vector.extract_strided_slice %3 {offsets = [12, 0], sizes = [4, 72], strides = [1, 1]} : vector<36x72xbf16> to vector<4x72xbf16>
    %9 = vector.extract_strided_slice %3 {offsets = [16, 0], sizes = [4, 72], strides = [1, 1]} : vector<36x72xbf16> to vector<4x72xbf16>
    %10 = vector.extract_strided_slice %3 {offsets = [16, 0], sizes = [4, 72], strides = [1, 1]} : vector<36x72xbf16> to vector<4x72xbf16>
    %11 = vector.extract_strided_slice %3 {offsets = [20, 0], sizes = [4, 72], strides = [1, 1]} : vector<36x72xbf16> to vector<4x72xbf16>
    %12 = vector.extract_strided_slice %3 {offsets = [24, 0], sizes = [4, 72], strides = [1, 1]} : vector<36x72xbf16> to vector<4x72xbf16>
    %13 = vector.extract_strided_slice %3 {offsets = [24, 0], sizes = [4, 72], strides = [1, 1]} : vector<36x72xbf16> to vector<4x72xbf16>
    %14 = vector.extract_strided_slice %3 {offsets = [28, 0], sizes = [4, 72], strides = [1, 1]} : vector<36x72xbf16> to vector<4x72xbf16>
    %15 = vector.extract_strided_slice %3 {offsets = [32, 0], sizes = [4, 72], strides = [1, 1]} : vector<36x72xbf16> to vector<4x72xbf16>
    %16 = tpu.concatenate %4, %7, %10, %13 in 0 : vector<4x72xbf16>, vector<4x72xbf16>, vector<4x72xbf16>, vector<4x72xbf16> -> vector<16x72xbf16>
    %17 = tpu.concatenate %5, %8, %11, %14 in 0 : vector<4x72xbf16>, vector<4x72xbf16>, vector<4x72xbf16>, vector<4x72xbf16> -> vector<16x72xbf16>
    %18 = tpu.concatenate %6, %9, %12, %15 in 0 : vector<4x72xbf16>, vector<4x72xbf16>, vector<4x72xbf16>, vector<4x72xbf16> -> vector<16x72xbf16>
    %19 = tpu.iota {dimensions = array<i32: 0>} : vector<16x1xi32>
    %c4_i32 = arith.constant 4 : i32
    %c0_i32 = arith.constant 0 : i32
    %20 = arith.cmpi eq, %c4_i32, %c0_i32 : i32
    %c1_i32 = arith.constant 1 : i32
    %21 = arith.select %20, %c1_i32, %c4_i32 : i32
    %22 = vector.broadcast %21 : i32 to vector<16x1xi32>
    %23 = arith.remsi %19, %22 : vector<16x1xi32>
    %c0_i32_2 = arith.constant 0 : i32
    %24 = vector.broadcast %c0_i32_2 : i32 to vector<16x1xi32>
    %25 = arith.cmpi ne, %23, %24 : vector<16x1xi32>
    %c0_i32_3 = arith.constant 0 : i32
    %26 = vector.broadcast %c0_i32_3 : i32 to vector<16x1xi32>
    %27 = arith.cmpi slt, %23, %26 : vector<16x1xi32>
    %c0_i32_4 = arith.constant 0 : i32
    %28 = arith.cmpi slt, %21, %c0_i32_4 : i32
    %29 = vector.broadcast %28 : i1 to vector<16x1xi1>
    %30 = vector.broadcast %29 : vector<16x1xi1> to vector<16x1xi1>
    %31 = arith.xori %27, %30 : vector<16x1xi1>
    %32 = arith.andi %31, %25 : vector<16x1xi1>
    %33 = vector.broadcast %21 : i32 to vector<16x1xi32>
    %34 = arith.addi %23, %33 : vector<16x1xi32>
    %35 = arith.select %32, %34, %23 : vector<16x1xi1>, vector<16x1xi32>
    %cst_5 = arith.constant 0.000000e+00 : bf16
    %36 = vector.broadcast %cst_5 : bf16 to vector<1x36xbf16>
    %37 = vector.extract_strided_slice %16 {offsets = [0, 0], sizes = [16, 36], strides = [1, 1]} : vector<16x72xbf16> to vector<16x36xbf16>
    %38 = vector.extract_strided_slice %16 {offsets = [0, 36], sizes = [16, 36], strides = [1, 1]} : vector<16x72xbf16> to vector<16x36xbf16>
    %39 = vector.extract_strided_slice %38 {offsets = [0, 0], sizes = [15, 36], strides = [1, 1]} : vector<16x36xbf16> to vector<15x36xbf16>
    %40 = tpu.concatenate %36, %39 in 0 : vector<1x36xbf16>, vector<15x36xbf16> -> vector<16x36xbf16>
    %c0_i32_6 = arith.constant 0 : i32
    %41 = vector.broadcast %c0_i32_6 : i32 to vector<16x1xi32>
    %42 = arith.cmpi ne, %35, %41 : vector<16x1xi32>
    %cst_7 = arith.constant 0.000000e+00 : bf16
    %43 = vector.broadcast %cst_7 : bf16 to vector<16x36xbf16>
    %44 = vector.shape_cast %42 : vector<16x1xi1> to vector<16x1xi1>
    %45 = vector.broadcast %44 : vector<16x1xi1> to vector<16x36xi1>
    %46 = arith.select %45, %40, %43 : vector<16x36xi1>, vector<16x36xbf16>
    %47 = vector.extract_strided_slice %17 {offsets = [0, 0], sizes = [16, 36], strides = [1, 1]} : vector<16x72xbf16> to vector<16x36xbf16>
    %48 = vector.extract_strided_slice %17 {offsets = [0, 36], sizes = [16, 36], strides = [1, 1]} : vector<16x72xbf16> to vector<16x36xbf16>
    %49 = vector.extract_strided_slice %48 {offsets = [0, 0], sizes = [15, 36], strides = [1, 1]} : vector<16x36xbf16> to vector<15x36xbf16>
    %50 = tpu.concatenate %36, %49 in 0 : vector<1x36xbf16>, vector<15x36xbf16> -> vector<16x36xbf16>
    %c0_i32_8 = arith.constant 0 : i32
    %51 = vector.broadcast %c0_i32_8 : i32 to vector<16x1xi32>
    %52 = arith.cmpi ne, %35, %51 : vector<16x1xi32>
    %cst_9 = arith.constant 0.000000e+00 : bf16
    %53 = vector.broadcast %cst_9 : bf16 to vector<16x36xbf16>
    %54 = vector.shape_cast %52 : vector<16x1xi1> to vector<16x1xi1>
    %55 = vector.broadcast %54 : vector<16x1xi1> to vector<16x36xi1>
    %56 = arith.select %55, %50, %53 : vector<16x36xi1>, vector<16x36xbf16>
    %57 = vector.extract_strided_slice %18 {offsets = [0, 0], sizes = [16, 36], strides = [1, 1]} : vector<16x72xbf16> to vector<16x36xbf16>
    %58 = vector.extract_strided_slice %18 {offsets = [0, 36], sizes = [16, 36], strides = [1, 1]} : vector<16x72xbf16> to vector<16x36xbf16>
    %59 = vector.extract_strided_slice %58 {offsets = [0, 0], sizes = [15, 36], strides = [1, 1]} : vector<16x36xbf16> to vector<15x36xbf16>
    %60 = tpu.concatenate %36, %59 in 0 : vector<1x36xbf16>, vector<15x36xbf16> -> vector<16x36xbf16>
    %c0_i32_10 = arith.constant 0 : i32
    %61 = vector.broadcast %c0_i32_10 : i32 to vector<16x1xi32>
    %62 = arith.cmpi ne, %35, %61 : vector<16x1xi32>
    %cst_11 = arith.constant 0.000000e+00 : bf16
    %63 = vector.broadcast %cst_11 : bf16 to vector<16x36xbf16>
    %64 = vector.shape_cast %62 : vector<16x1xi1> to vector<16x1xi1>
    %65 = vector.broadcast %64 : vector<16x1xi1> to vector<16x36xi1>
    %66 = arith.select %65, %60, %63 : vector<16x36xi1>, vector<16x36xbf16>
    %67 = tpu.concatenate %46, %37, %38, %56, %47, %48, %66, %57, %58 in 1 : vector<16x36xbf16>, vector<16x36xbf16>, vector<16x36xbf16>, vector<16x36xbf16>, vector<16x36xbf16>, vector<16x36xbf16>, vector<16x36xbf16>, vector<16x36xbf16>, vector<16x36xbf16> -> vector<16x324xbf16>
    %c0_12 = arith.constant 0 : index
    %c0_13 = arith.constant 0 : index
    %68 = vector.load %arg3[%c0_12, %c0_13] : memref<324x64xbf16, #tpu.memory_space<vmem>>, vector<324x64xbf16>
    %cst_14 = arith.constant dense<0.000000e+00> : vector<16x64xf32>
    %69 = tpu.matmul %67, %68, %cst_14 {dimension_numbers = #tpu.dot_dimension_numbers<[1], [0], [0], [1], [0, 0, 1, 1], [], []>} : vector<16x324xbf16>, vector<324x64xbf16>, vector<16x64xf32> -> vector<16x64xf32>
    %c0_15 = arith.constant 0 : index
    %c0_16 = arith.constant 0 : index
    %70 = vector.load %arg4[%c0_15, %c0_16] : memref<1x64xf32, #tpu.memory_space<vmem>>, vector<1x64xf32>
    %71 = vector.broadcast %70 : vector<1x64xf32> to vector<16x64xf32>
    %72 = arith.addf %69, %71 : vector<16x64xf32>
    %cst_17 = arith.constant 0.000000e+00 : f32
    %73 = vector.broadcast %cst_17 : f32 to vector<16x64xf32>
    %74 = arith.maximumf %72, %73 : vector<16x64xf32>
    %75 = arith.truncf %74 : vector<16x64xf32> to vector<16x64xbf16>
    %c0_18 = arith.constant 0 : index
    %c0_19 = arith.constant 0 : index
    %c0_20 = arith.constant 0 : index
    %c0_21 = arith.constant 0 : index
    %76 = vector.load %arg5[%c0_18, %c0_19, %c0_20, %c0_21] : memref<1x1x16x64xbf16, #tpu.memory_space<vmem>>, vector<1x1x16x64xbf16>
    %77 = vector.shape_cast %76 : vector<1x1x16x64xbf16> to vector<16x64xbf16>
    %78 = vector.shape_cast %75 : vector<16x64xbf16> to vector<1x1x16x64xbf16>
    tpu.vector_store %arg5[%c0_18, %c0_19, %c0_20, %c0_21], %78 {strides = array<i32>} : memref<1x1x16x64xbf16, #tpu.memory_space<vmem>>, vector<1x1x16x64xbf16>,
    return
  }
  func.func @transform_0(%arg0: i32, %arg1: i32) -> (i32, i32, i32) {
    %c0_i32 = arith.constant 0 : i32
    %c0_i32_0 = arith.constant 0 : i32
    return %arg0, %arg1, %c0_i32 : i32, i32, i32
  }
  func.func @transform_1(%arg0: i32, %arg1: i32) -> (i32, i32) {
    %c0_i32 = arith.constant 0 : i32
    %c0_i32_0 = arith.constant 0 : i32
    %c0_i32_1 = arith.constant 0 : i32
    return %c0_i32, %c0_i32_0 : i32, i32
  }
  func.func @transform_2(%arg0: i32, %arg1: i32) -> (i32, i32) {
    %c0_i32 = arith.constant 0 : i32
    %c0_i32_0 = arith.constant 0 : i32
    %c0_i32_1 = arith.constant 0 : i32
    return %c0_i32, %c0_i32_0 : i32, i32
  }
  func.func @transform_3(%arg0: i32, %arg1: i32) -> (i32, i32, i32, i32) {
    %c0_i32 = arith.constant 0 : i32
    %c0_i32_0 = arith.constant 0 : i32
    %c0_i32_1 = arith.constant 0 : i32
    return %arg0, %arg1, %c0_i32, %c0_i32_0 : i32, i32, i32, i32
  }
}

module attributes {stable_mosaic.version = 11 : i64} {
  func.func @_conv3x3_s2_kernel(%arg0: i32, %arg1: i32, %arg2: memref<1x8x136xbf16, #tpu.memory_space<vmem>>, %arg3: memref<612x96xbf16, #tpu.memory_space<vmem>>, %arg4: memref<1x96xf32, #tpu.memory_space<vmem>>, %arg5: memref<1x1x4x96xbf16, #tpu.memory_space<vmem>>) attributes {dimension_semantics = [#tpu.dimension_semantics<parallel>, #tpu.dimension_semantics<parallel>], iteration_bounds = array<i64: 2, 1>, scalar_prefetch = 0 : i64, scratch_operands = 0 : i64, tpu.core_type = #tpu.core_type<tc>, window_params = [{transform_indices = @transform_0, window_bounds = array<i64: 1, 8, 136>}, {pipeline_mode = #tpu.pipeline_mode<synchronous>, transform_indices = @transform_1, window_bounds = array<i64: 612, 96>}, {pipeline_mode = #tpu.pipeline_mode<synchronous>, transform_indices = @transform_2, window_bounds = array<i64: 1, 96>}, {transform_indices = @transform_3, window_bounds = array<i64: 1, 1, 4, 96>}]} {
    %c0 = arith.constant 0 : index
    %c0_0 = arith.constant 0 : index
    %c0_1 = arith.constant 0 : index
    %0 = vector.load %arg2[%c0, %c0_0, %c0_1] : memref<1x8x136xbf16, #tpu.memory_space<vmem>>, vector<1x8x136xbf16>
    %1 = vector.shape_cast %0 : vector<1x8x136xbf16> to vector<8x136xbf16>
    %cst = arith.constant 0.000000e+00 : bf16
    %2 = vector.broadcast %cst : bf16 to vector<2x136xbf16>
    %3 = tpu.concatenate %2, %1 in 0 : vector<2x136xbf16>, vector<8x136xbf16> -> vector<10x136xbf16>
    %4 = vector.extract_strided_slice %3 {offsets = [0, 0], sizes = [2, 136], strides = [1, 1]} : vector<10x136xbf16> to vector<2x136xbf16>
    %5 = vector.extract_strided_slice %3 {offsets = [2, 0], sizes = [2, 136], strides = [1, 1]} : vector<10x136xbf16> to vector<2x136xbf16>
    %6 = vector.extract_strided_slice %3 {offsets = [4, 0], sizes = [2, 136], strides = [1, 1]} : vector<10x136xbf16> to vector<2x136xbf16>
    %7 = vector.extract_strided_slice %3 {offsets = [4, 0], sizes = [2, 136], strides = [1, 1]} : vector<10x136xbf16> to vector<2x136xbf16>
    %8 = vector.extract_strided_slice %3 {offsets = [6, 0], sizes = [2, 136], strides = [1, 1]} : vector<10x136xbf16> to vector<2x136xbf16>
    %9 = vector.extract_strided_slice %3 {offsets = [8, 0], sizes = [2, 136], strides = [1, 1]} : vector<10x136xbf16> to vector<2x136xbf16>
    %10 = tpu.concatenate %4, %7 in 0 : vector<2x136xbf16>, vector<2x136xbf16> -> vector<4x136xbf16>
    %11 = tpu.concatenate %5, %8 in 0 : vector<2x136xbf16>, vector<2x136xbf16> -> vector<4x136xbf16>
    %12 = tpu.concatenate %6, %9 in 0 : vector<2x136xbf16>, vector<2x136xbf16> -> vector<4x136xbf16>
    %13 = tpu.iota {dimensions = array<i32: 0>} : vector<4x1xi32>
    %c2_i32 = arith.constant 2 : i32
    %c0_i32 = arith.constant 0 : i32
    %14 = arith.cmpi eq, %c2_i32, %c0_i32 : i32
    %c1_i32 = arith.constant 1 : i32
    %15 = arith.select %14, %c1_i32, %c2_i32 : i32
    %16 = vector.broadcast %15 : i32 to vector<4x1xi32>
    %17 = arith.remsi %13, %16 : vector<4x1xi32>
    %c0_i32_2 = arith.constant 0 : i32
    %18 = vector.broadcast %c0_i32_2 : i32 to vector<4x1xi32>
    %19 = arith.cmpi ne, %17, %18 : vector<4x1xi32>
    %c0_i32_3 = arith.constant 0 : i32
    %20 = vector.broadcast %c0_i32_3 : i32 to vector<4x1xi32>
    %21 = arith.cmpi slt, %17, %20 : vector<4x1xi32>
    %c0_i32_4 = arith.constant 0 : i32
    %22 = arith.cmpi slt, %15, %c0_i32_4 : i32
    %23 = vector.broadcast %22 : i1 to vector<4x1xi1>
    %24 = vector.broadcast %23 : vector<4x1xi1> to vector<4x1xi1>
    %25 = arith.xori %21, %24 : vector<4x1xi1>
    %26 = arith.andi %25, %19 : vector<4x1xi1>
    %27 = vector.broadcast %15 : i32 to vector<4x1xi32>
    %28 = arith.addi %17, %27 : vector<4x1xi32>
    %29 = arith.select %26, %28, %17 : vector<4x1xi1>, vector<4x1xi32>
    %cst_5 = arith.constant 0.000000e+00 : bf16
    %30 = vector.broadcast %cst_5 : bf16 to vector<1x68xbf16>
    %31 = vector.extract_strided_slice %10 {offsets = [0, 0], sizes = [4, 68], strides = [1, 1]} : vector<4x136xbf16> to vector<4x68xbf16>
    %32 = vector.extract_strided_slice %10 {offsets = [0, 68], sizes = [4, 68], strides = [1, 1]} : vector<4x136xbf16> to vector<4x68xbf16>
    %33 = vector.extract_strided_slice %32 {offsets = [0, 0], sizes = [3, 68], strides = [1, 1]} : vector<4x68xbf16> to vector<3x68xbf16>
    %34 = tpu.concatenate %30, %33 in 0 : vector<1x68xbf16>, vector<3x68xbf16> -> vector<4x68xbf16>
    %c0_i32_6 = arith.constant 0 : i32
    %35 = vector.broadcast %c0_i32_6 : i32 to vector<4x1xi32>
    %36 = arith.cmpi ne, %29, %35 : vector<4x1xi32>
    %cst_7 = arith.constant 0.000000e+00 : bf16
    %37 = vector.broadcast %cst_7 : bf16 to vector<4x68xbf16>
    %38 = vector.shape_cast %36 : vector<4x1xi1> to vector<4x1xi1>
    %39 = vector.broadcast %38 : vector<4x1xi1> to vector<4x68xi1>
    %40 = arith.select %39, %34, %37 : vector<4x68xi1>, vector<4x68xbf16>
    %41 = vector.extract_strided_slice %11 {offsets = [0, 0], sizes = [4, 68], strides = [1, 1]} : vector<4x136xbf16> to vector<4x68xbf16>
    %42 = vector.extract_strided_slice %11 {offsets = [0, 68], sizes = [4, 68], strides = [1, 1]} : vector<4x136xbf16> to vector<4x68xbf16>
    %43 = vector.extract_strided_slice %42 {offsets = [0, 0], sizes = [3, 68], strides = [1, 1]} : vector<4x68xbf16> to vector<3x68xbf16>
    %44 = tpu.concatenate %30, %43 in 0 : vector<1x68xbf16>, vector<3x68xbf16> -> vector<4x68xbf16>
    %c0_i32_8 = arith.constant 0 : i32
    %45 = vector.broadcast %c0_i32_8 : i32 to vector<4x1xi32>
    %46 = arith.cmpi ne, %29, %45 : vector<4x1xi32>
    %cst_9 = arith.constant 0.000000e+00 : bf16
    %47 = vector.broadcast %cst_9 : bf16 to vector<4x68xbf16>
    %48 = vector.shape_cast %46 : vector<4x1xi1> to vector<4x1xi1>
    %49 = vector.broadcast %48 : vector<4x1xi1> to vector<4x68xi1>
    %50 = arith.select %49, %44, %47 : vector<4x68xi1>, vector<4x68xbf16>
    %51 = vector.extract_strided_slice %12 {offsets = [0, 0], sizes = [4, 68], strides = [1, 1]} : vector<4x136xbf16> to vector<4x68xbf16>
    %52 = vector.extract_strided_slice %12 {offsets = [0, 68], sizes = [4, 68], strides = [1, 1]} : vector<4x136xbf16> to vector<4x68xbf16>
    %53 = vector.extract_strided_slice %52 {offsets = [0, 0], sizes = [3, 68], strides = [1, 1]} : vector<4x68xbf16> to vector<3x68xbf16>
    %54 = tpu.concatenate %30, %53 in 0 : vector<1x68xbf16>, vector<3x68xbf16> -> vector<4x68xbf16>
    %c0_i32_10 = arith.constant 0 : i32
    %55 = vector.broadcast %c0_i32_10 : i32 to vector<4x1xi32>
    %56 = arith.cmpi ne, %29, %55 : vector<4x1xi32>
    %cst_11 = arith.constant 0.000000e+00 : bf16
    %57 = vector.broadcast %cst_11 : bf16 to vector<4x68xbf16>
    %58 = vector.shape_cast %56 : vector<4x1xi1> to vector<4x1xi1>
    %59 = vector.broadcast %58 : vector<4x1xi1> to vector<4x68xi1>
    %60 = arith.select %59, %54, %57 : vector<4x68xi1>, vector<4x68xbf16>
    %61 = tpu.concatenate %40, %31, %32, %50, %41, %42, %60, %51, %52 in 1 : vector<4x68xbf16>, vector<4x68xbf16>, vector<4x68xbf16>, vector<4x68xbf16>, vector<4x68xbf16>, vector<4x68xbf16>, vector<4x68xbf16>, vector<4x68xbf16>, vector<4x68xbf16> -> vector<4x612xbf16>
    %c0_12 = arith.constant 0 : index
    %c0_13 = arith.constant 0 : index
    %62 = vector.load %arg3[%c0_12, %c0_13] : memref<612x96xbf16, #tpu.memory_space<vmem>>, vector<612x96xbf16>
    %cst_14 = arith.constant dense<0.000000e+00> : vector<4x96xf32>
    %63 = tpu.matmul %61, %62, %cst_14 {dimension_numbers = #tpu.dot_dimension_numbers<[1], [0], [0], [1], [0, 0, 1, 1], [], []>} : vector<4x612xbf16>, vector<612x96xbf16>, vector<4x96xf32> -> vector<4x96xf32>
    %c0_15 = arith.constant 0 : index
    %c0_16 = arith.constant 0 : index
    %64 = vector.load %arg4[%c0_15, %c0_16] : memref<1x96xf32, #tpu.memory_space<vmem>>, vector<1x96xf32>
    %65 = vector.broadcast %64 : vector<1x96xf32> to vector<4x96xf32>
    %66 = arith.addf %63, %65 : vector<4x96xf32>
    %cst_17 = arith.constant 0.000000e+00 : f32
    %67 = vector.broadcast %cst_17 : f32 to vector<4x96xf32>
    %68 = arith.maximumf %66, %67 : vector<4x96xf32>
    %69 = arith.truncf %68 : vector<4x96xf32> to vector<4x96xbf16>
    %c0_18 = arith.constant 0 : index
    %c0_19 = arith.constant 0 : index
    %c0_20 = arith.constant 0 : index
    %c0_21 = arith.constant 0 : index
    %70 = vector.load %arg5[%c0_18, %c0_19, %c0_20, %c0_21] : memref<1x1x4x96xbf16, #tpu.memory_space<vmem>>, vector<1x1x4x96xbf16>
    %71 = vector.shape_cast %70 : vector<1x1x4x96xbf16> to vector<4x96xbf16>
    %72 = vector.shape_cast %69 : vector<4x96xbf16> to vector<1x1x4x96xbf16>
    tpu.vector_store %arg5[%c0_18, %c0_19, %c0_20, %c0_21], %72 {strides = array<i32>} : memref<1x1x4x96xbf16, #tpu.memory_space<vmem>>, vector<1x1x4x96xbf16>,
    return
  }
  func.func @transform_0(%arg0: i32, %arg1: i32) -> (i32, i32, i32) {
    %c0_i32 = arith.constant 0 : i32
    %c0_i32_0 = arith.constant 0 : i32
    return %arg0, %arg1, %c0_i32 : i32, i32, i32
  }
  func.func @transform_1(%arg0: i32, %arg1: i32) -> (i32, i32) {
    %c0_i32 = arith.constant 0 : i32
    %c0_i32_0 = arith.constant 0 : i32
    %c0_i32_1 = arith.constant 0 : i32
    return %c0_i32, %c0_i32_0 : i32, i32
  }
  func.func @transform_2(%arg0: i32, %arg1: i32) -> (i32, i32) {
    %c0_i32 = arith.constant 0 : i32
    %c0_i32_0 = arith.constant 0 : i32
    %c0_i32_1 = arith.constant 0 : i32
    return %c0_i32, %c0_i32_0 : i32, i32
  }
  func.func @transform_3(%arg0: i32, %arg1: i32) -> (i32, i32, i32, i32) {
    %c0_i32 = arith.constant 0 : i32
    %c0_i32_0 = arith.constant 0 : i32
    %c0_i32_1 = arith.constant 0 : i32
    return %arg0, %arg1, %c0_i32, %c0_i32_0 : i32, i32, i32, i32
  }
}

module attributes {stable_mosaic.version = 11 : i64} {
  func.func @_conv3x3_s1_kernel(%arg0: i32, %arg1: i32, %arg2: memref<1x4x96xbf16, #tpu.memory_space<vmem>>, %arg3: memref<864x96xbf16, #tpu.memory_space<vmem>>, %arg4: memref<1x96xf32, #tpu.memory_space<vmem>>, %arg5: memref<1x1x4x96xbf16, #tpu.memory_space<vmem>>) attributes {dimension_semantics = [#tpu.dimension_semantics<parallel>, #tpu.dimension_semantics<parallel>], iteration_bounds = array<i64: 2, 1>, scalar_prefetch = 0 : i64, scratch_operands = 0 : i64, tpu.core_type = #tpu.core_type<tc>, window_params = [{transform_indices = @transform_0, window_bounds = array<i64: 1, 4, 96>}, {pipeline_mode = #tpu.pipeline_mode<synchronous>, transform_indices = @transform_1, window_bounds = array<i64: 864, 96>}, {pipeline_mode = #tpu.pipeline_mode<synchronous>, transform_indices = @transform_2, window_bounds = array<i64: 1, 96>}, {transform_indices = @transform_3, window_bounds = array<i64: 1, 1, 4, 96>}]} {
    %c0 = arith.constant 0 : index
    %c0_0 = arith.constant 0 : index
    %c0_1 = arith.constant 0 : index
    %0 = vector.load %arg2[%c0, %c0_0, %c0_1] : memref<1x4x96xbf16, #tpu.memory_space<vmem>>, vector<1x4x96xbf16>
    %1 = vector.shape_cast %0 : vector<1x4x96xbf16> to vector<4x96xbf16>
    %cst = arith.constant 0.000000e+00 : bf16
    %2 = vector.broadcast %cst : bf16 to vector<2x96xbf16>
    %cst_2 = arith.constant 0.000000e+00 : bf16
    %3 = vector.broadcast %cst_2 : bf16 to vector<2x96xbf16>
    %4 = tpu.concatenate %2, %1, %3 in 0 : vector<2x96xbf16>, vector<4x96xbf16>, vector<2x96xbf16> -> vector<8x96xbf16>
    %5 = tpu.iota {dimensions = array<i32: 0>} : vector<8x1xi32>
    %c2_i32 = arith.constant 2 : i32
    %c0_i32 = arith.constant 0 : i32
    %6 = arith.cmpi eq, %c2_i32, %c0_i32 : i32
    %c1_i32 = arith.constant 1 : i32
    %7 = arith.select %6, %c1_i32, %c2_i32 : i32
    %8 = vector.broadcast %7 : i32 to vector<8x1xi32>
    %9 = arith.remsi %5, %8 : vector<8x1xi32>
    %c0_i32_3 = arith.constant 0 : i32
    %10 = vector.broadcast %c0_i32_3 : i32 to vector<8x1xi32>
    %11 = arith.cmpi ne, %9, %10 : vector<8x1xi32>
    %c0_i32_4 = arith.constant 0 : i32
    %12 = vector.broadcast %c0_i32_4 : i32 to vector<8x1xi32>
    %13 = arith.cmpi slt, %9, %12 : vector<8x1xi32>
    %c0_i32_5 = arith.constant 0 : i32
    %14 = arith.cmpi slt, %7, %c0_i32_5 : i32
    %15 = vector.broadcast %14 : i1 to vector<8x1xi1>
    %16 = vector.broadcast %15 : vector<8x1xi1> to vector<8x1xi1>
    %17 = arith.xori %13, %16 : vector<8x1xi1>
    %18 = arith.andi %17, %11 : vector<8x1xi1>
    %19 = vector.broadcast %7 : i32 to vector<8x1xi32>
    %20 = arith.addi %9, %19 : vector<8x1xi32>
    %21 = arith.select %18, %20, %9 : vector<8x1xi1>, vector<8x1xi32>
    %cst_6 = arith.constant 0.000000e+00 : bf16
    %22 = vector.broadcast %cst_6 : bf16 to vector<1x96xbf16>
    %23 = vector.extract_strided_slice %4 {offsets = [0, 0], sizes = [7, 96], strides = [1, 1]} : vector<8x96xbf16> to vector<7x96xbf16>
    %24 = tpu.concatenate %22, %23 in 0 : vector<1x96xbf16>, vector<7x96xbf16> -> vector<8x96xbf16>
    %25 = vector.extract_strided_slice %4 {offsets = [1, 0], sizes = [7, 96], strides = [1, 1]} : vector<8x96xbf16> to vector<7x96xbf16>
    %26 = tpu.concatenate %25, %22 in 0 : vector<7x96xbf16>, vector<1x96xbf16> -> vector<8x96xbf16>
    %c0_i32_7 = arith.constant 0 : i32
    %27 = vector.broadcast %c0_i32_7 : i32 to vector<8x1xi32>
    %28 = arith.cmpi ne, %21, %27 : vector<8x1xi32>
    %cst_8 = arith.constant 0.000000e+00 : bf16
    %29 = vector.broadcast %cst_8 : bf16 to vector<8x96xbf16>
    %30 = vector.shape_cast %28 : vector<8x1xi1> to vector<8x1xi1>
    %31 = vector.broadcast %30 : vector<8x1xi1> to vector<8x96xi1>
    %32 = arith.select %31, %24, %29 : vector<8x96xi1>, vector<8x96xbf16>
    %c1_i32_9 = arith.constant 1 : i32
    %33 = vector.broadcast %c1_i32_9 : i32 to vector<8x1xi32>
    %34 = arith.cmpi ne, %21, %33 : vector<8x1xi32>
    %cst_10 = arith.constant 0.000000e+00 : bf16
    %35 = vector.broadcast %cst_10 : bf16 to vector<8x96xbf16>
    %36 = vector.shape_cast %34 : vector<8x1xi1> to vector<8x1xi1>
    %37 = vector.broadcast %36 : vector<8x1xi1> to vector<8x96xi1>
    %38 = arith.select %37, %26, %35 : vector<8x96xi1>, vector<8x96xbf16>
    %39 = tpu.concatenate %32, %4, %38 in 1 : vector<8x96xbf16>, vector<8x96xbf16>, vector<8x96xbf16> -> vector<8x288xbf16>
    %40 = vector.extract_strided_slice %39 {offsets = [0, 0], sizes = [4, 288], strides = [1, 1]} : vector<8x288xbf16> to vector<4x288xbf16>
    %41 = vector.extract_strided_slice %39 {offsets = [2, 0], sizes = [4, 288], strides = [1, 1]} : vector<8x288xbf16> to vector<4x288xbf16>
    %42 = vector.extract_strided_slice %39 {offsets = [4, 0], sizes = [4, 288], strides = [1, 1]} : vector<8x288xbf16> to vector<4x288xbf16>
    %43 = tpu.concatenate %40, %41, %42 in 1 : vector<4x288xbf16>, vector<4x288xbf16>, vector<4x288xbf16> -> vector<4x864xbf16>
    %c0_11 = arith.constant 0 : index
    %c0_12 = arith.constant 0 : index
    %44 = vector.load %arg3[%c0_11, %c0_12] : memref<864x96xbf16, #tpu.memory_space<vmem>>, vector<864x96xbf16>
    %cst_13 = arith.constant dense<0.000000e+00> : vector<4x96xf32>
    %45 = tpu.matmul %43, %44, %cst_13 {dimension_numbers = #tpu.dot_dimension_numbers<[1], [0], [0], [1], [0, 0, 1, 1], [], []>} : vector<4x864xbf16>, vector<864x96xbf16>, vector<4x96xf32> -> vector<4x96xf32>
    %c0_14 = arith.constant 0 : index
    %c0_15 = arith.constant 0 : index
    %46 = vector.load %arg4[%c0_14, %c0_15] : memref<1x96xf32, #tpu.memory_space<vmem>>, vector<1x96xf32>
    %47 = vector.broadcast %46 : vector<1x96xf32> to vector<4x96xf32>
    %48 = arith.addf %45, %47 : vector<4x96xf32>
    %cst_16 = arith.constant 0.000000e+00 : f32
    %49 = vector.broadcast %cst_16 : f32 to vector<4x96xf32>
    %50 = arith.maximumf %48, %49 : vector<4x96xf32>
    %51 = arith.truncf %50 : vector<4x96xf32> to vector<4x96xbf16>
    %c0_17 = arith.constant 0 : index
    %c0_18 = arith.constant 0 : index
    %c0_19 = arith.constant 0 : index
    %c0_20 = arith.constant 0 : index
    %52 = vector.load %arg5[%c0_17, %c0_18, %c0_19, %c0_20] : memref<1x1x4x96xbf16, #tpu.memory_space<vmem>>, vector<1x1x4x96xbf16>
    %53 = vector.shape_cast %52 : vector<1x1x4x96xbf16> to vector<4x96xbf16>
    %54 = vector.shape_cast %51 : vector<4x96xbf16> to vector<1x1x4x96xbf16>
    tpu.vector_store %arg5[%c0_17, %c0_18, %c0_19, %c0_20], %54 {strides = array<i32>} : memref<1x1x4x96xbf16, #tpu.memory_space<vmem>>, vector<1x1x4x96xbf16>,
    return
  }
  func.func @transform_0(%arg0: i32, %arg1: i32) -> (i32, i32, i32) {
    %c0_i32 = arith.constant 0 : i32
    %c0_i32_0 = arith.constant 0 : i32
    return %arg0, %arg1, %c0_i32 : i32, i32, i32
  }
  func.func @transform_1(%arg0: i32, %arg1: i32) -> (i32, i32) {
    %c0_i32 = arith.constant 0 : i32
    %c0_i32_0 = arith.constant 0 : i32
    %c0_i32_1 = arith.constant 0 : i32
    return %c0_i32, %c0_i32_0 : i32, i32
  }
  func.func @transform_2(%arg0: i32, %arg1: i32) -> (i32, i32) {
    %c0_i32 = arith.constant 0 : i32
    %c0_i32_0 = arith.constant 0 : i32
    %c0_i32_1 = arith.constant 0 : i32
    return %c0_i32, %c0_i32_0 : i32, i32
  }
  func.func @transform_3(%arg0: i32, %arg1: i32) -> (i32, i32, i32, i32) {
    %c0_i32 = arith.constant 0 : i32
    %c0_i32_0 = arith.constant 0 : i32
    %c0_i32_1 = arith.constant 0 : i32
    return %arg0, %arg1, %c0_i32, %c0_i32_0 : i32, i32, i32, i32
  }
}

module attributes {stable_mosaic.version = 11 : i64} {
  func.func @_upsample2x_kernel(%arg0: i32, %arg1: i32, %arg2: memref<1x2x2x96xbf16, #tpu.memory_space<vmem>>, %arg3: memref<1x1x2x96xbf16, #tpu.memory_space<vmem>>, %arg4: memref<1x1x2x96xbf16, #tpu.memory_space<vmem>>, %arg5: memref<1x2x2x2x192xbf16, #tpu.memory_space<vmem>>) attributes {dimension_semantics = [#tpu.dimension_semantics<parallel>, #tpu.dimension_semantics<parallel>], iteration_bounds = array<i64: 2, 1>, scalar_prefetch = 0 : i64, scratch_operands = 0 : i64, tpu.core_type = #tpu.core_type<tc>, window_params = [{transform_indices = @transform_0, window_bounds = array<i64: 1, 2, 2, 96>}, {transform_indices = @transform_1, window_bounds = array<i64: 1, 1, 2, 96>}, {transform_indices = @transform_2, window_bounds = array<i64: 1, 1, 2, 96>}, {transform_indices = @transform_3, window_bounds = array<i64: 1, 2, 2, 2, 192>}]} {
    %c0 = arith.constant 0 : index
    %c0_0 = arith.constant 0 : index
    %c0_1 = arith.constant 0 : index
    %c0_2 = arith.constant 0 : index
    %0 = vector.load %arg2[%c0, %c0_0, %c0_1, %c0_2] : memref<1x2x2x96xbf16, #tpu.memory_space<vmem>>, vector<1x2x2x96xbf16>
    %1 = vector.shape_cast %0 : vector<1x2x2x96xbf16> to vector<2x2x96xbf16>
    %2 = arith.extf %1 : vector<2x2x96xbf16> to vector<2x2x96xf32>
    %c0_3 = arith.constant 0 : index
    %c0_4 = arith.constant 0 : index
    %c0_5 = arith.constant 0 : index
    %c0_6 = arith.constant 0 : index
    %3 = vector.load %arg3[%c0_3, %c0_4, %c0_5, %c0_6] : memref<1x1x2x96xbf16, #tpu.memory_space<vmem>>, vector<1x1x2x96xbf16>
    %4 = vector.shape_cast %3 : vector<1x1x2x96xbf16> to vector<1x2x96xbf16>
    %5 = arith.extf %4 : vector<1x2x96xbf16> to vector<1x2x96xf32>
    %c0_7 = arith.constant 0 : index
    %c0_8 = arith.constant 0 : index
    %c0_9 = arith.constant 0 : index
    %c0_10 = arith.constant 0 : index
    %6 = vector.load %arg4[%c0_7, %c0_8, %c0_9, %c0_10] : memref<1x1x2x96xbf16, #tpu.memory_space<vmem>>, vector<1x1x2x96xbf16>
    %7 = vector.shape_cast %6 : vector<1x1x2x96xbf16> to vector<1x2x96xbf16>
    %8 = arith.extf %7 : vector<1x2x96xbf16> to vector<1x2x96xf32>
    %9 = vector.extract_strided_slice %2 {offsets = [0, 0, 0], sizes = [1, 2, 96], strides = [1, 1, 1]} : vector<2x2x96xf32> to vector<1x2x96xf32>
    %10 = tpu.concatenate %5, %9 in 0 : vector<1x2x96xf32>, vector<1x2x96xf32> -> vector<2x2x96xf32>
    %11 = vector.extract_strided_slice %2 {offsets = [1, 0, 0], sizes = [1, 2, 96], strides = [1, 1, 1]} : vector<2x2x96xf32> to vector<1x2x96xf32>
    %12 = tpu.concatenate %11, %8 in 0 : vector<1x2x96xf32>, vector<1x2x96xf32> -> vector<2x2x96xf32>
    %cst = arith.constant 2.500000e-01 : f32
    %13 = vector.broadcast %cst : f32 to vector<2x2x96xf32>
    %14 = arith.mulf %13, %10 : vector<2x2x96xf32>
    %cst_11 = arith.constant 7.500000e-01 : f32
    %15 = vector.broadcast %cst_11 : f32 to vector<2x2x96xf32>
    %16 = arith.mulf %15, %2 : vector<2x2x96xf32>
    %17 = arith.addf %14, %16 : vector<2x2x96xf32>
    %cst_12 = arith.constant 7.500000e-01 : f32
    %18 = vector.broadcast %cst_12 : f32 to vector<2x2x96xf32>
    %19 = arith.mulf %18, %2 : vector<2x2x96xf32>
    %cst_13 = arith.constant 2.500000e-01 : f32
    %20 = vector.broadcast %cst_13 : f32 to vector<2x2x96xf32>
    %21 = arith.mulf %20, %12 : vector<2x2x96xf32>
    %22 = arith.addf %19, %21 : vector<2x2x96xf32>
    %23 = vector.extract_strided_slice %17 {offsets = [0, 0, 0], sizes = [2, 1, 96], strides = [1, 1, 1]} : vector<2x2x96xf32> to vector<2x1x96xf32>
    %24 = vector.extract_strided_slice %17 {offsets = [0, 0, 0], sizes = [2, 1, 96], strides = [1, 1, 1]} : vector<2x2x96xf32> to vector<2x1x96xf32>
    %25 = tpu.concatenate %23, %24 in 1 : vector<2x1x96xf32>, vector<2x1x96xf32> -> vector<2x2x96xf32>
    %26 = vector.extract_strided_slice %17 {offsets = [0, 1, 0], sizes = [2, 1, 96], strides = [1, 1, 1]} : vector<2x2x96xf32> to vector<2x1x96xf32>
    %27 = vector.extract_strided_slice %17 {offsets = [0, 1, 0], sizes = [2, 1, 96], strides = [1, 1, 1]} : vector<2x2x96xf32> to vector<2x1x96xf32>
    %28 = tpu.concatenate %26, %27 in 1 : vector<2x1x96xf32>, vector<2x1x96xf32> -> vector<2x2x96xf32>
    %cst_14 = arith.constant 2.500000e-01 : f32
    %29 = vector.broadcast %cst_14 : f32 to vector<2x2x96xf32>
    %30 = arith.mulf %29, %25 : vector<2x2x96xf32>
    %cst_15 = arith.constant 7.500000e-01 : f32
    %31 = vector.broadcast %cst_15 : f32 to vector<2x2x96xf32>
    %32 = arith.mulf %31, %17 : vector<2x2x96xf32>
    %33 = arith.addf %30, %32 : vector<2x2x96xf32>
    %cst_16 = arith.constant 7.500000e-01 : f32
    %34 = vector.broadcast %cst_16 : f32 to vector<2x2x96xf32>
    %35 = arith.mulf %34, %17 : vector<2x2x96xf32>
    %cst_17 = arith.constant 2.500000e-01 : f32
    %36 = vector.broadcast %cst_17 : f32 to vector<2x2x96xf32>
    %37 = arith.mulf %36, %28 : vector<2x2x96xf32>
    %38 = arith.addf %35, %37 : vector<2x2x96xf32>
    %39 = vector.extract_strided_slice %22 {offsets = [0, 0, 0], sizes = [2, 1, 96], strides = [1, 1, 1]} : vector<2x2x96xf32> to vector<2x1x96xf32>
    %40 = vector.extract_strided_slice %22 {offsets = [0, 0, 0], sizes = [2, 1, 96], strides = [1, 1, 1]} : vector<2x2x96xf32> to vector<2x1x96xf32>
    %41 = tpu.concatenate %39, %40 in 1 : vector<2x1x96xf32>, vector<2x1x96xf32> -> vector<2x2x96xf32>
    %42 = vector.extract_strided_slice %22 {offsets = [0, 1, 0], sizes = [2, 1, 96], strides = [1, 1, 1]} : vector<2x2x96xf32> to vector<2x1x96xf32>
    %43 = vector.extract_strided_slice %22 {offsets = [0, 1, 0], sizes = [2, 1, 96], strides = [1, 1, 1]} : vector<2x2x96xf32> to vector<2x1x96xf32>
    %44 = tpu.concatenate %42, %43 in 1 : vector<2x1x96xf32>, vector<2x1x96xf32> -> vector<2x2x96xf32>
    %cst_18 = arith.constant 2.500000e-01 : f32
    %45 = vector.broadcast %cst_18 : f32 to vector<2x2x96xf32>
    %46 = arith.mulf %45, %41 : vector<2x2x96xf32>
    %cst_19 = arith.constant 7.500000e-01 : f32
    %47 = vector.broadcast %cst_19 : f32 to vector<2x2x96xf32>
    %48 = arith.mulf %47, %22 : vector<2x2x96xf32>
    %49 = arith.addf %46, %48 : vector<2x2x96xf32>
    %cst_20 = arith.constant 7.500000e-01 : f32
    %50 = vector.broadcast %cst_20 : f32 to vector<2x2x96xf32>
    %51 = arith.mulf %50, %22 : vector<2x2x96xf32>
    %cst_21 = arith.constant 2.500000e-01 : f32
    %52 = vector.broadcast %cst_21 : f32 to vector<2x2x96xf32>
    %53 = arith.mulf %52, %44 : vector<2x2x96xf32>
    %54 = arith.addf %51, %53 : vector<2x2x96xf32>
    %55 = tpu.concatenate %33, %38 in 2 : vector<2x2x96xf32>, vector<2x2x96xf32> -> vector<2x2x192xf32>
    %56 = arith.truncf %55 : vector<2x2x192xf32> to vector<2x2x192xbf16>
    %c0_22 = arith.constant 0 : index
    %c0_23 = arith.constant 0 : index
    %c0_24 = arith.constant 0 : index
    %c0_25 = arith.constant 0 : index
    %c0_26 = arith.constant 0 : index
    %57 = vector.load %arg5[%c0_22, %c0_23, %c0_24, %c0_25, %c0_26] : memref<1x2x2x2x192xbf16, #tpu.memory_space<vmem>>, vector<1x2x1x2x192xbf16>
    %58 = vector.shape_cast %57 : vector<1x2x1x2x192xbf16> to vector<2x2x192xbf16>
    %59 = vector.shape_cast %56 : vector<2x2x192xbf16> to vector<1x2x1x2x192xbf16>
    tpu.vector_store %arg5[%c0_22, %c0_23, %c0_24, %c0_25, %c0_26], %59 {strides = array<i32>} : memref<1x2x2x2x192xbf16, #tpu.memory_space<vmem>>, vector<1x2x1x2x192xbf16>,
    %60 = tpu.concatenate %49, %54 in 2 : vector<2x2x96xf32>, vector<2x2x96xf32> -> vector<2x2x192xf32>
    %61 = arith.truncf %60 : vector<2x2x192xf32> to vector<2x2x192xbf16>
    %c0_27 = arith.constant 0 : index
    %c0_28 = arith.constant 0 : index
    %c1 = arith.constant 1 : index
    %c0_29 = arith.constant 0 : index
    %c0_30 = arith.constant 0 : index
    %62 = vector.load %arg5[%c0_27, %c0_28, %c1, %c0_29, %c0_30] : memref<1x2x2x2x192xbf16, #tpu.memory_space<vmem>>, vector<1x2x1x2x192xbf16>
    %63 = vector.shape_cast %62 : vector<1x2x1x2x192xbf16> to vector<2x2x192xbf16>
    %64 = vector.shape_cast %61 : vector<2x2x192xbf16> to vector<1x2x1x2x192xbf16>
    tpu.vector_store %arg5[%c0_27, %c0_28, %c1, %c0_29, %c0_30], %64 {strides = array<i32>} : memref<1x2x2x2x192xbf16, #tpu.memory_space<vmem>>, vector<1x2x1x2x192xbf16>,
    return
  }
  func.func @transform_0(%arg0: i32, %arg1: i32) -> (i32, i32, i32, i32) {
    %c0_i32 = arith.constant 0 : i32
    %c0_i32_0 = arith.constant 0 : i32
    %c0_i32_1 = arith.constant 0 : i32
    return %arg0, %arg1, %c0_i32, %c0_i32_0 : i32, i32, i32, i32
  }
  func.func @transform_1(%arg0: i32, %arg1: i32) -> (i32, i32, i32, i32) {
    %c2_i32 = arith.constant 2 : i32
    %0 = arith.muli %arg1, %c2_i32 : i32
    %c1_i32 = arith.constant 1 : i32
    %1 = arith.subi %0, %c1_i32 : i32
    %c0_i32 = arith.constant 0 : i32
    %2 = arith.maxsi %1, %c0_i32 : i32
    %c0_i32_0 = arith.constant 0 : i32
    %c0_i32_1 = arith.constant 0 : i32
    %c0_i32_2 = arith.constant 0 : i32
    return %arg0, %2, %c0_i32_0, %c0_i32_1 : i32, i32, i32, i32
  }
  func.func @transform_2(%arg0: i32, %arg1: i32) -> (i32, i32, i32, i32) {
    %c2_i32 = arith.constant 2 : i32
    %0 = arith.muli %arg1, %c2_i32 : i32
    %c2_i32_0 = arith.constant 2 : i32
    %1 = arith.addi %0, %c2_i32_0 : i32
    %c1_i32 = arith.constant 1 : i32
    %2 = arith.minsi %1, %c1_i32 : i32
    %c0_i32 = arith.constant 0 : i32
    %c0_i32_1 = arith.constant 0 : i32
    %c0_i32_2 = arith.constant 0 : i32
    return %arg0, %2, %c0_i32, %c0_i32_1 : i32, i32, i32, i32
  }
  func.func @transform_3(%arg0: i32, %arg1: i32) -> (i32, i32, i32, i32, i32) {
    %c0_i32 = arith.constant 0 : i32
    %c0_i32_0 = arith.constant 0 : i32
    %c0_i32_1 = arith.constant 0 : i32
    %c0_i32_2 = arith.constant 0 : i32
    return %arg0, %arg1, %c0_i32, %c0_i32_0, %c0_i32_1 : i32, i32, i32, i32, i32
  }
}

module attributes {stable_mosaic.version = 11 : i64} {
  func.func @_conv3x3_s1_kernel(%arg0: i32, %arg1: i32, %arg2: memref<1x16x96xbf16, #tpu.memory_space<vmem>>, %arg3: memref<864x64xbf16, #tpu.memory_space<vmem>>, %arg4: memref<1x64xf32, #tpu.memory_space<vmem>>, %arg5: memref<1x1x16x64xbf16, #tpu.memory_space<vmem>>) attributes {dimension_semantics = [#tpu.dimension_semantics<parallel>, #tpu.dimension_semantics<parallel>], iteration_bounds = array<i64: 2, 1>, scalar_prefetch = 0 : i64, scratch_operands = 0 : i64, tpu.core_type = #tpu.core_type<tc>, window_params = [{transform_indices = @transform_0, window_bounds = array<i64: 1, 16, 96>}, {pipeline_mode = #tpu.pipeline_mode<synchronous>, transform_indices = @transform_1, window_bounds = array<i64: 864, 64>}, {pipeline_mode = #tpu.pipeline_mode<synchronous>, transform_indices = @transform_2, window_bounds = array<i64: 1, 64>}, {transform_indices = @transform_3, window_bounds = array<i64: 1, 1, 16, 64>}]} {
    %c0 = arith.constant 0 : index
    %c0_0 = arith.constant 0 : index
    %c0_1 = arith.constant 0 : index
    %0 = vector.load %arg2[%c0, %c0_0, %c0_1] : memref<1x16x96xbf16, #tpu.memory_space<vmem>>, vector<1x16x96xbf16>
    %1 = vector.shape_cast %0 : vector<1x16x96xbf16> to vector<16x96xbf16>
    %cst = arith.constant 0.000000e+00 : bf16
    %2 = vector.broadcast %cst : bf16 to vector<4x96xbf16>
    %cst_2 = arith.constant 0.000000e+00 : bf16
    %3 = vector.broadcast %cst_2 : bf16 to vector<4x96xbf16>
    %4 = tpu.concatenate %2, %1, %3 in 0 : vector<4x96xbf16>, vector<16x96xbf16>, vector<4x96xbf16> -> vector<24x96xbf16>
    %5 = tpu.iota {dimensions = array<i32: 0>} : vector<24x1xi32>
    %c4_i32 = arith.constant 4 : i32
    %c0_i32 = arith.constant 0 : i32
    %6 = arith.cmpi eq, %c4_i32, %c0_i32 : i32
    %c1_i32 = arith.constant 1 : i32
    %7 = arith.select %6, %c1_i32, %c4_i32 : i32
    %8 = vector.broadcast %7 : i32 to vector<24x1xi32>
    %9 = arith.remsi %5, %8 : vector<24x1xi32>
    %c0_i32_3 = arith.constant 0 : i32
    %10 = vector.broadcast %c0_i32_3 : i32 to vector<24x1xi32>
    %11 = arith.cmpi ne, %9, %10 : vector<24x1xi32>
    %c0_i32_4 = arith.constant 0 : i32
    %12 = vector.broadcast %c0_i32_4 : i32 to vector<24x1xi32>
    %13 = arith.cmpi slt, %9, %12 : vector<24x1xi32>
    %c0_i32_5 = arith.constant 0 : i32
    %14 = arith.cmpi slt, %7, %c0_i32_5 : i32
    %15 = vector.broadcast %14 : i1 to vector<24x1xi1>
    %16 = vector.broadcast %15 : vector<24x1xi1> to vector<24x1xi1>
    %17 = arith.xori %13, %16 : vector<24x1xi1>
    %18 = arith.andi %17, %11 : vector<24x1xi1>
    %19 = vector.broadcast %7 : i32 to vector<24x1xi32>
    %20 = arith.addi %9, %19 : vector<24x1xi32>
    %21 = arith.select %18, %20, %9 : vector<24x1xi1>, vector<24x1xi32>
    %cst_6 = arith.constant 0.000000e+00 : bf16
    %22 = vector.broadcast %cst_6 : bf16 to vector<1x96xbf16>
    %23 = vector.extract_strided_slice %4 {offsets = [0, 0], sizes = [23, 96], strides = [1, 1]} : vector<24x96xbf16> to vector<23x96xbf16>
    %24 = tpu.concatenate %22, %23 in 0 : vector<1x96xbf16>, vector<23x96xbf16> -> vector<24x96xbf16>
    %25 = vector.extract_strided_slice %4 {offsets = [1, 0], sizes = [23, 96], strides = [1, 1]} : vector<24x96xbf16> to vector<23x96xbf16>
    %26 = tpu.concatenate %25, %22 in 0 : vector<23x96xbf16>, vector<1x96xbf16> -> vector<24x96xbf16>
    %c0_i32_7 = arith.constant 0 : i32
    %27 = vector.broadcast %c0_i32_7 : i32 to vector<24x1xi32>
    %28 = arith.cmpi ne, %21, %27 : vector<24x1xi32>
    %cst_8 = arith.constant 0.000000e+00 : bf16
    %29 = vector.broadcast %cst_8 : bf16 to vector<24x96xbf16>
    %30 = vector.shape_cast %28 : vector<24x1xi1> to vector<24x1xi1>
    %31 = vector.broadcast %30 : vector<24x1xi1> to vector<24x96xi1>
    %32 = arith.select %31, %24, %29 : vector<24x96xi1>, vector<24x96xbf16>
    %c3_i32 = arith.constant 3 : i32
    %33 = vector.broadcast %c3_i32 : i32 to vector<24x1xi32>
    %34 = arith.cmpi ne, %21, %33 : vector<24x1xi32>
    %cst_9 = arith.constant 0.000000e+00 : bf16
    %35 = vector.broadcast %cst_9 : bf16 to vector<24x96xbf16>
    %36 = vector.shape_cast %34 : vector<24x1xi1> to vector<24x1xi1>
    %37 = vector.broadcast %36 : vector<24x1xi1> to vector<24x96xi1>
    %38 = arith.select %37, %26, %35 : vector<24x96xi1>, vector<24x96xbf16>
    %39 = tpu.concatenate %32, %4, %38 in 1 : vector<24x96xbf16>, vector<24x96xbf16>, vector<24x96xbf16> -> vector<24x288xbf16>
    %40 = vector.extract_strided_slice %39 {offsets = [0, 0], sizes = [16, 288], strides = [1, 1]} : vector<24x288xbf16> to vector<16x288xbf16>
    %41 = vector.extract_strided_slice %39 {offsets = [4, 0], sizes = [16, 288], strides = [1, 1]} : vector<24x288xbf16> to vector<16x288xbf16>
    %42 = vector.extract_strided_slice %39 {offsets = [8, 0], sizes = [16, 288], strides = [1, 1]} : vector<24x288xbf16> to vector<16x288xbf16>
    %43 = tpu.concatenate %40, %41, %42 in 1 : vector<16x288xbf16>, vector<16x288xbf16>, vector<16x288xbf16> -> vector<16x864xbf16>
    %c0_10 = arith.constant 0 : index
    %c0_11 = arith.constant 0 : index
    %44 = vector.load %arg3[%c0_10, %c0_11] : memref<864x64xbf16, #tpu.memory_space<vmem>>, vector<864x64xbf16>
    %cst_12 = arith.constant dense<0.000000e+00> : vector<16x64xf32>
    %45 = tpu.matmul %43, %44, %cst_12 {dimension_numbers = #tpu.dot_dimension_numbers<[1], [0], [0], [1], [0, 0, 1, 1], [], []>} : vector<16x864xbf16>, vector<864x64xbf16>, vector<16x64xf32> -> vector<16x64xf32>
    %c0_13 = arith.constant 0 : index
    %c0_14 = arith.constant 0 : index
    %46 = vector.load %arg4[%c0_13, %c0_14] : memref<1x64xf32, #tpu.memory_space<vmem>>, vector<1x64xf32>
    %47 = vector.broadcast %46 : vector<1x64xf32> to vector<16x64xf32>
    %48 = arith.addf %45, %47 : vector<16x64xf32>
    %cst_15 = arith.constant 0.000000e+00 : f32
    %49 = vector.broadcast %cst_15 : f32 to vector<16x64xf32>
    %50 = arith.maximumf %48, %49 : vector<16x64xf32>
    %51 = arith.truncf %50 : vector<16x64xf32> to vector<16x64xbf16>
    %c0_16 = arith.constant 0 : index
    %c0_17 = arith.constant 0 : index
    %c0_18 = arith.constant 0 : index
    %c0_19 = arith.constant 0 : index
    %52 = vector.load %arg5[%c0_16, %c0_17, %c0_18, %c0_19] : memref<1x1x16x64xbf16, #tpu.memory_space<vmem>>, vector<1x1x16x64xbf16>
    %53 = vector.shape_cast %52 : vector<1x1x16x64xbf16> to vector<16x64xbf16>
    %54 = vector.shape_cast %51 : vector<16x64xbf16> to vector<1x1x16x64xbf16>
    tpu.vector_store %arg5[%c0_16, %c0_17, %c0_18, %c0_19], %54 {strides = array<i32>} : memref<1x1x16x64xbf16, #tpu.memory_space<vmem>>, vector<1x1x16x64xbf16>,
    return
  }
  func.func @transform_0(%arg0: i32, %arg1: i32) -> (i32, i32, i32) {
    %c0_i32 = arith.constant 0 : i32
    %c0_i32_0 = arith.constant 0 : i32
    return %arg0, %arg1, %c0_i32 : i32, i32, i32
  }
  func.func @transform_1(%arg0: i32, %arg1: i32) -> (i32, i32) {
    %c0_i32 = arith.constant 0 : i32
    %c0_i32_0 = arith.constant 0 : i32
    %c0_i32_1 = arith.constant 0 : i32
    return %c0_i32, %c0_i32_0 : i32, i32
  }
  func.func @transform_2(%arg0: i32, %arg1: i32) -> (i32, i32) {
    %c0_i32 = arith.constant 0 : i32
    %c0_i32_0 = arith.constant 0 : i32
    %c0_i32_1 = arith.constant 0 : i32
    return %c0_i32, %c0_i32_0 : i32, i32
  }
  func.func @transform_3(%arg0: i32, %arg1: i32) -> (i32, i32, i32, i32) {
    %c0_i32 = arith.constant 0 : i32
    %c0_i32_0 = arith.constant 0 : i32
    %c0_i32_1 = arith.constant 0 : i32
    return %arg0, %arg1, %c0_i32, %c0_i32_0 : i32, i32, i32, i32
  }
}

module attributes {stable_mosaic.version = 11 : i64} {
  func.func @_upsample2x_kernel(%arg0: i32, %arg1: i32, %arg2: memref<1x4x4x128xbf16, #tpu.memory_space<vmem>>, %arg3: memref<1x1x4x128xbf16, #tpu.memory_space<vmem>>, %arg4: memref<1x1x4x128xbf16, #tpu.memory_space<vmem>>, %arg5: memref<1x4x2x4x256xbf16, #tpu.memory_space<vmem>>) attributes {dimension_semantics = [#tpu.dimension_semantics<parallel>, #tpu.dimension_semantics<parallel>], iteration_bounds = array<i64: 2, 1>, scalar_prefetch = 0 : i64, scratch_operands = 0 : i64, tpu.core_type = #tpu.core_type<tc>, window_params = [{transform_indices = @transform_0, window_bounds = array<i64: 1, 4, 4, 128>}, {transform_indices = @transform_1, window_bounds = array<i64: 1, 1, 4, 128>}, {transform_indices = @transform_2, window_bounds = array<i64: 1, 1, 4, 128>}, {transform_indices = @transform_3, window_bounds = array<i64: 1, 4, 2, 4, 256>}]} {
    %c0 = arith.constant 0 : index
    %c0_0 = arith.constant 0 : index
    %c0_1 = arith.constant 0 : index
    %c0_2 = arith.constant 0 : index
    %0 = vector.load %arg2[%c0, %c0_0, %c0_1, %c0_2] : memref<1x4x4x128xbf16, #tpu.memory_space<vmem>>, vector<1x4x4x128xbf16>
    %1 = vector.shape_cast %0 : vector<1x4x4x128xbf16> to vector<4x4x128xbf16>
    %2 = arith.extf %1 : vector<4x4x128xbf16> to vector<4x4x128xf32>
    %c0_3 = arith.constant 0 : index
    %c0_4 = arith.constant 0 : index
    %c0_5 = arith.constant 0 : index
    %c0_6 = arith.constant 0 : index
    %3 = vector.load %arg3[%c0_3, %c0_4, %c0_5, %c0_6] : memref<1x1x4x128xbf16, #tpu.memory_space<vmem>>, vector<1x1x4x128xbf16>
    %4 = vector.shape_cast %3 : vector<1x1x4x128xbf16> to vector<1x4x128xbf16>
    %5 = arith.extf %4 : vector<1x4x128xbf16> to vector<1x4x128xf32>
    %c0_7 = arith.constant 0 : index
    %c0_8 = arith.constant 0 : index
    %c0_9 = arith.constant 0 : index
    %c0_10 = arith.constant 0 : index
    %6 = vector.load %arg4[%c0_7, %c0_8, %c0_9, %c0_10] : memref<1x1x4x128xbf16, #tpu.memory_space<vmem>>, vector<1x1x4x128xbf16>
    %7 = vector.shape_cast %6 : vector<1x1x4x128xbf16> to vector<1x4x128xbf16>
    %8 = arith.extf %7 : vector<1x4x128xbf16> to vector<1x4x128xf32>
    %9 = vector.extract_strided_slice %2 {offsets = [0, 0, 0], sizes = [3, 4, 128], strides = [1, 1, 1]} : vector<4x4x128xf32> to vector<3x4x128xf32>
    %10 = tpu.concatenate %5, %9 in 0 : vector<1x4x128xf32>, vector<3x4x128xf32> -> vector<4x4x128xf32>
    %11 = vector.extract_strided_slice %2 {offsets = [1, 0, 0], sizes = [3, 4, 128], strides = [1, 1, 1]} : vector<4x4x128xf32> to vector<3x4x128xf32>
    %12 = tpu.concatenate %11, %8 in 0 : vector<3x4x128xf32>, vector<1x4x128xf32> -> vector<4x4x128xf32>
    %cst = arith.constant 2.500000e-01 : f32
    %13 = vector.broadcast %cst : f32 to vector<4x4x128xf32>
    %14 = arith.mulf %13, %10 : vector<4x4x128xf32>
    %cst_11 = arith.constant 7.500000e-01 : f32
    %15 = vector.broadcast %cst_11 : f32 to vector<4x4x128xf32>
    %16 = arith.mulf %15, %2 : vector<4x4x128xf32>
    %17 = arith.addf %14, %16 : vector<4x4x128xf32>
    %cst_12 = arith.constant 7.500000e-01 : f32
    %18 = vector.broadcast %cst_12 : f32 to vector<4x4x128xf32>
    %19 = arith.mulf %18, %2 : vector<4x4x128xf32>
    %cst_13 = arith.constant 2.500000e-01 : f32
    %20 = vector.broadcast %cst_13 : f32 to vector<4x4x128xf32>
    %21 = arith.mulf %20, %12 : vector<4x4x128xf32>
    %22 = arith.addf %19, %21 : vector<4x4x128xf32>
    %23 = vector.extract_strided_slice %17 {offsets = [0, 0, 0], sizes = [4, 1, 128], strides = [1, 1, 1]} : vector<4x4x128xf32> to vector<4x1x128xf32>
    %24 = vector.extract_strided_slice %17 {offsets = [0, 0, 0], sizes = [4, 3, 128], strides = [1, 1, 1]} : vector<4x4x128xf32> to vector<4x3x128xf32>
    %25 = tpu.concatenate %23, %24 in 1 : vector<4x1x128xf32>, vector<4x3x128xf32> -> vector<4x4x128xf32>
    %26 = vector.extract_strided_slice %17 {offsets = [0, 1, 0], sizes = [4, 3, 128], strides = [1, 1, 1]} : vector<4x4x128xf32> to vector<4x3x128xf32>
    %27 = vector.extract_strided_slice %17 {offsets = [0, 3, 0], sizes = [4, 1, 128], strides = [1, 1, 1]} : vector<4x4x128xf32> to vector<4x1x128xf32>
    %28 = tpu.concatenate %26, %27 in 1 : vector<4x3x128xf32>, vector<4x1x128xf32> -> vector<4x4x128xf32>
    %cst_14 = arith.constant 2.500000e-01 : f32
    %29 = vector.broadcast %cst_14 : f32 to vector<4x4x128xf32>
    %30 = arith.mulf %29, %25 : vector<4x4x128xf32>
    %cst_15 = arith.constant 7.500000e-01 : f32
    %31 = vector.broadcast %cst_15 : f32 to vector<4x4x128xf32>
    %32 = arith.mulf %31, %17 : vector<4x4x128xf32>
    %33 = arith.addf %30, %32 : vector<4x4x128xf32>
    %cst_16 = arith.constant 7.500000e-01 : f32
    %34 = vector.broadcast %cst_16 : f32 to vector<4x4x128xf32>
    %35 = arith.mulf %34, %17 : vector<4x4x128xf32>
    %cst_17 = arith.constant 2.500000e-01 : f32
    %36 = vector.broadcast %cst_17 : f32 to vector<4x4x128xf32>
    %37 = arith.mulf %36, %28 : vector<4x4x128xf32>
    %38 = arith.addf %35, %37 : vector<4x4x128xf32>
    %39 = vector.extract_strided_slice %22 {offsets = [0, 0, 0], sizes = [4, 1, 128], strides = [1, 1, 1]} : vector<4x4x128xf32> to vector<4x1x128xf32>
    %40 = vector.extract_strided_slice %22 {offsets = [0, 0, 0], sizes = [4, 3, 128], strides = [1, 1, 1]} : vector<4x4x128xf32> to vector<4x3x128xf32>
    %41 = tpu.concatenate %39, %40 in 1 : vector<4x1x128xf32>, vector<4x3x128xf32> -> vector<4x4x128xf32>
    %42 = vector.extract_strided_slice %22 {offsets = [0, 1, 0], sizes = [4, 3, 128], strides = [1, 1, 1]} : vector<4x4x128xf32> to vector<4x3x128xf32>
    %43 = vector.extract_strided_slice %22 {offsets = [0, 3, 0], sizes = [4, 1, 128], strides = [1, 1, 1]} : vector<4x4x128xf32> to vector<4x1x128xf32>
    %44 = tpu.concatenate %42, %43 in 1 : vector<4x3x128xf32>, vector<4x1x128xf32> -> vector<4x4x128xf32>
    %cst_18 = arith.constant 2.500000e-01 : f32
    %45 = vector.broadcast %cst_18 : f32 to vector<4x4x128xf32>
    %46 = arith.mulf %45, %41 : vector<4x4x128xf32>
    %cst_19 = arith.constant 7.500000e-01 : f32
    %47 = vector.broadcast %cst_19 : f32 to vector<4x4x128xf32>
    %48 = arith.mulf %47, %22 : vector<4x4x128xf32>
    %49 = arith.addf %46, %48 : vector<4x4x128xf32>
    %cst_20 = arith.constant 7.500000e-01 : f32
    %50 = vector.broadcast %cst_20 : f32 to vector<4x4x128xf32>
    %51 = arith.mulf %50, %22 : vector<4x4x128xf32>
    %cst_21 = arith.constant 2.500000e-01 : f32
    %52 = vector.broadcast %cst_21 : f32 to vector<4x4x128xf32>
    %53 = arith.mulf %52, %44 : vector<4x4x128xf32>
    %54 = arith.addf %51, %53 : vector<4x4x128xf32>
    %55 = tpu.concatenate %33, %38 in 2 : vector<4x4x128xf32>, vector<4x4x128xf32> -> vector<4x4x256xf32>
    %56 = arith.truncf %55 : vector<4x4x256xf32> to vector<4x4x256xbf16>
    %c0_22 = arith.constant 0 : index
    %c0_23 = arith.constant 0 : index
    %c0_24 = arith.constant 0 : index
    %c0_25 = arith.constant 0 : index
    %c0_26 = arith.constant 0 : index
    %57 = vector.load %arg5[%c0_22, %c0_23, %c0_24, %c0_25, %c0_26] : memref<1x4x2x4x256xbf16, #tpu.memory_space<vmem>>, vector<1x4x1x4x256xbf16>
    %58 = vector.shape_cast %57 : vector<1x4x1x4x256xbf16> to vector<4x4x256xbf16>
    %59 = vector.shape_cast %56 : vector<4x4x256xbf16> to vector<1x4x1x4x256xbf16>
    tpu.vector_store %arg5[%c0_22, %c0_23, %c0_24, %c0_25, %c0_26], %59 {strides = array<i32>} : memref<1x4x2x4x256xbf16, #tpu.memory_space<vmem>>, vector<1x4x1x4x256xbf16>,
    %60 = tpu.concatenate %49, %54 in 2 : vector<4x4x128xf32>, vector<4x4x128xf32> -> vector<4x4x256xf32>
    %61 = arith.truncf %60 : vector<4x4x256xf32> to vector<4x4x256xbf16>
    %c0_27 = arith.constant 0 : index
    %c0_28 = arith.constant 0 : index
    %c1 = arith.constant 1 : index
    %c0_29 = arith.constant 0 : index
    %c0_30 = arith.constant 0 : index
    %62 = vector.load %arg5[%c0_27, %c0_28, %c1, %c0_29, %c0_30] : memref<1x4x2x4x256xbf16, #tpu.memory_space<vmem>>, vector<1x4x1x4x256xbf16>
    %63 = vector.shape_cast %62 : vector<1x4x1x4x256xbf16> to vector<4x4x256xbf16>
    %64 = vector.shape_cast %61 : vector<4x4x256xbf16> to vector<1x4x1x4x256xbf16>
    tpu.vector_store %arg5[%c0_27, %c0_28, %c1, %c0_29, %c0_30], %64 {strides = array<i32>} : memref<1x4x2x4x256xbf16, #tpu.memory_space<vmem>>, vector<1x4x1x4x256xbf16>,
    return
  }
  func.func @transform_0(%arg0: i32, %arg1: i32) -> (i32, i32, i32, i32) {
    %c0_i32 = arith.constant 0 : i32
    %c0_i32_0 = arith.constant 0 : i32
    %c0_i32_1 = arith.constant 0 : i32
    return %arg0, %arg1, %c0_i32, %c0_i32_0 : i32, i32, i32, i32
  }
  func.func @transform_1(%arg0: i32, %arg1: i32) -> (i32, i32, i32, i32) {
    %c4_i32 = arith.constant 4 : i32
    %0 = arith.muli %arg1, %c4_i32 : i32
    %c1_i32 = arith.constant 1 : i32
    %1 = arith.subi %0, %c1_i32 : i32
    %c0_i32 = arith.constant 0 : i32
    %2 = arith.maxsi %1, %c0_i32 : i32
    %c0_i32_0 = arith.constant 0 : i32
    %c0_i32_1 = arith.constant 0 : i32
    %c0_i32_2 = arith.constant 0 : i32
    return %arg0, %2, %c0_i32_0, %c0_i32_1 : i32, i32, i32, i32
  }
  func.func @transform_2(%arg0: i32, %arg1: i32) -> (i32, i32, i32, i32) {
    %c4_i32 = arith.constant 4 : i32
    %0 = arith.muli %arg1, %c4_i32 : i32
    %c4_i32_0 = arith.constant 4 : i32
    %1 = arith.addi %0, %c4_i32_0 : i32
    %c3_i32 = arith.constant 3 : i32
    %2 = arith.minsi %1, %c3_i32 : i32
    %c0_i32 = arith.constant 0 : i32
    %c0_i32_1 = arith.constant 0 : i32
    %c0_i32_2 = arith.constant 0 : i32
    return %arg0, %2, %c0_i32, %c0_i32_1 : i32, i32, i32, i32
  }
  func.func @transform_3(%arg0: i32, %arg1: i32) -> (i32, i32, i32, i32, i32) {
    %c0_i32 = arith.constant 0 : i32
    %c0_i32_0 = arith.constant 0 : i32
    %c0_i32_1 = arith.constant 0 : i32
    %c0_i32_2 = arith.constant 0 : i32
    return %arg0, %arg1, %c0_i32, %c0_i32_0, %c0_i32_1 : i32, i32, i32, i32, i32
  }
}

module attributes {stable_mosaic.version = 11 : i64} {
  func.func @_conv3x3_s1_kernel(%arg0: i32, %arg1: i32, %arg2: memref<1x64x128xbf16, #tpu.memory_space<vmem>>, %arg3: memref<1152x32xbf16, #tpu.memory_space<vmem>>, %arg4: memref<1x32xf32, #tpu.memory_space<vmem>>, %arg5: memref<1x1x64x32xbf16, #tpu.memory_space<vmem>>) attributes {dimension_semantics = [#tpu.dimension_semantics<parallel>, #tpu.dimension_semantics<parallel>], iteration_bounds = array<i64: 2, 1>, scalar_prefetch = 0 : i64, scratch_operands = 0 : i64, tpu.core_type = #tpu.core_type<tc>, window_params = [{transform_indices = @transform_0, window_bounds = array<i64: 1, 64, 128>}, {pipeline_mode = #tpu.pipeline_mode<synchronous>, transform_indices = @transform_1, window_bounds = array<i64: 1152, 32>}, {pipeline_mode = #tpu.pipeline_mode<synchronous>, transform_indices = @transform_2, window_bounds = array<i64: 1, 32>}, {transform_indices = @transform_3, window_bounds = array<i64: 1, 1, 64, 32>}]} {
    %c0 = arith.constant 0 : index
    %c0_0 = arith.constant 0 : index
    %c0_1 = arith.constant 0 : index
    %0 = vector.load %arg2[%c0, %c0_0, %c0_1] : memref<1x64x128xbf16, #tpu.memory_space<vmem>>, vector<1x64x128xbf16>
    %1 = vector.shape_cast %0 : vector<1x64x128xbf16> to vector<64x128xbf16>
    %cst = arith.constant 0.000000e+00 : bf16
    %2 = vector.broadcast %cst : bf16 to vector<8x128xbf16>
    %cst_2 = arith.constant 0.000000e+00 : bf16
    %3 = vector.broadcast %cst_2 : bf16 to vector<8x128xbf16>
    %4 = tpu.concatenate %2, %1, %3 in 0 : vector<8x128xbf16>, vector<64x128xbf16>, vector<8x128xbf16> -> vector<80x128xbf16>
    %5 = tpu.iota {dimensions = array<i32: 0>} : vector<80x1xi32>
    %c8_i32 = arith.constant 8 : i32
    %c0_i32 = arith.constant 0 : i32
    %6 = arith.cmpi eq, %c8_i32, %c0_i32 : i32
    %c1_i32 = arith.constant 1 : i32
    %7 = arith.select %6, %c1_i32, %c8_i32 : i32
    %8 = vector.broadcast %7 : i32 to vector<80x1xi32>
    %9 = arith.remsi %5, %8 : vector<80x1xi32>
    %c0_i32_3 = arith.constant 0 : i32
    %10 = vector.broadcast %c0_i32_3 : i32 to vector<80x1xi32>
    %11 = arith.cmpi ne, %9, %10 : vector<80x1xi32>
    %c0_i32_4 = arith.constant 0 : i32
    %12 = vector.broadcast %c0_i32_4 : i32 to vector<80x1xi32>
    %13 = arith.cmpi slt, %9, %12 : vector<80x1xi32>
    %c0_i32_5 = arith.constant 0 : i32
    %14 = arith.cmpi slt, %7, %c0_i32_5 : i32
    %15 = vector.broadcast %14 : i1 to vector<80x1xi1>
    %16 = vector.broadcast %15 : vector<80x1xi1> to vector<80x1xi1>
    %17 = arith.xori %13, %16 : vector<80x1xi1>
    %18 = arith.andi %17, %11 : vector<80x1xi1>
    %19 = vector.broadcast %7 : i32 to vector<80x1xi32>
    %20 = arith.addi %9, %19 : vector<80x1xi32>
    %21 = arith.select %18, %20, %9 : vector<80x1xi1>, vector<80x1xi32>
    %cst_6 = arith.constant 0.000000e+00 : bf16
    %22 = vector.broadcast %cst_6 : bf16 to vector<1x128xbf16>
    %23 = vector.extract_strided_slice %4 {offsets = [0, 0], sizes = [79, 128], strides = [1, 1]} : vector<80x128xbf16> to vector<79x128xbf16>
    %24 = tpu.concatenate %22, %23 in 0 : vector<1x128xbf16>, vector<79x128xbf16> -> vector<80x128xbf16>
    %25 = vector.extract_strided_slice %4 {offsets = [1, 0], sizes = [79, 128], strides = [1, 1]} : vector<80x128xbf16> to vector<79x128xbf16>
    %26 = tpu.concatenate %25, %22 in 0 : vector<79x128xbf16>, vector<1x128xbf16> -> vector<80x128xbf16>
    %c0_i32_7 = arith.constant 0 : i32
    %27 = vector.broadcast %c0_i32_7 : i32 to vector<80x1xi32>
    %28 = arith.cmpi ne, %21, %27 : vector<80x1xi32>
    %cst_8 = arith.constant 0.000000e+00 : bf16
    %29 = vector.broadcast %cst_8 : bf16 to vector<80x128xbf16>
    %30 = vector.shape_cast %28 : vector<80x1xi1> to vector<80x1xi1>
    %31 = vector.broadcast %30 : vector<80x1xi1> to vector<80x128xi1>
    %32 = arith.select %31, %24, %29 : vector<80x128xi1>, vector<80x128xbf16>
    %c7_i32 = arith.constant 7 : i32
    %33 = vector.broadcast %c7_i32 : i32 to vector<80x1xi32>
    %34 = arith.cmpi ne, %21, %33 : vector<80x1xi32>
    %cst_9 = arith.constant 0.000000e+00 : bf16
    %35 = vector.broadcast %cst_9 : bf16 to vector<80x128xbf16>
    %36 = vector.shape_cast %34 : vector<80x1xi1> to vector<80x1xi1>
    %37 = vector.broadcast %36 : vector<80x1xi1> to vector<80x128xi1>
    %38 = arith.select %37, %26, %35 : vector<80x128xi1>, vector<80x128xbf16>
    %39 = tpu.concatenate %32, %4, %38 in 1 : vector<80x128xbf16>, vector<80x128xbf16>, vector<80x128xbf16> -> vector<80x384xbf16>
    %40 = vector.extract_strided_slice %39 {offsets = [0, 0], sizes = [64, 384], strides = [1, 1]} : vector<80x384xbf16> to vector<64x384xbf16>
    %41 = vector.extract_strided_slice %39 {offsets = [8, 0], sizes = [64, 384], strides = [1, 1]} : vector<80x384xbf16> to vector<64x384xbf16>
    %42 = vector.extract_strided_slice %39 {offsets = [16, 0], sizes = [64, 384], strides = [1, 1]} : vector<80x384xbf16> to vector<64x384xbf16>
    %43 = tpu.concatenate %40, %41, %42 in 1 : vector<64x384xbf16>, vector<64x384xbf16>, vector<64x384xbf16> -> vector<64x1152xbf16>
    %c0_10 = arith.constant 0 : index
    %c0_11 = arith.constant 0 : index
    %44 = vector.load %arg3[%c0_10, %c0_11] : memref<1152x32xbf16, #tpu.memory_space<vmem>>, vector<1152x32xbf16>
    %cst_12 = arith.constant dense<0.000000e+00> : vector<64x32xf32>
    %45 = tpu.matmul %43, %44, %cst_12 {dimension_numbers = #tpu.dot_dimension_numbers<[1], [0], [0], [1], [0, 0, 1, 1], [], []>} : vector<64x1152xbf16>, vector<1152x32xbf16>, vector<64x32xf32> -> vector<64x32xf32>
    %c0_13 = arith.constant 0 : index
    %c0_14 = arith.constant 0 : index
    %46 = vector.load %arg4[%c0_13, %c0_14] : memref<1x32xf32, #tpu.memory_space<vmem>>, vector<1x32xf32>
    %47 = vector.broadcast %46 : vector<1x32xf32> to vector<64x32xf32>
    %48 = arith.addf %45, %47 : vector<64x32xf32>
    %cst_15 = arith.constant 0.000000e+00 : f32
    %49 = vector.broadcast %cst_15 : f32 to vector<64x32xf32>
    %50 = arith.maximumf %48, %49 : vector<64x32xf32>
    %51 = arith.truncf %50 : vector<64x32xf32> to vector<64x32xbf16>
    %c0_16 = arith.constant 0 : index
    %c0_17 = arith.constant 0 : index
    %c0_18 = arith.constant 0 : index
    %c0_19 = arith.constant 0 : index
    %52 = vector.load %arg5[%c0_16, %c0_17, %c0_18, %c0_19] : memref<1x1x64x32xbf16, #tpu.memory_space<vmem>>, vector<1x1x64x32xbf16>
    %53 = vector.shape_cast %52 : vector<1x1x64x32xbf16> to vector<64x32xbf16>
    %54 = vector.shape_cast %51 : vector<64x32xbf16> to vector<1x1x64x32xbf16>
    tpu.vector_store %arg5[%c0_16, %c0_17, %c0_18, %c0_19], %54 {strides = array<i32>} : memref<1x1x64x32xbf16, #tpu.memory_space<vmem>>, vector<1x1x64x32xbf16>,
    return
  }
  func.func @transform_0(%arg0: i32, %arg1: i32) -> (i32, i32, i32) {
    %c0_i32 = arith.constant 0 : i32
    %c0_i32_0 = arith.constant 0 : i32
    return %arg0, %arg1, %c0_i32 : i32, i32, i32
  }
  func.func @transform_1(%arg0: i32, %arg1: i32) -> (i32, i32) {
    %c0_i32 = arith.constant 0 : i32
    %c0_i32_0 = arith.constant 0 : i32
    %c0_i32_1 = arith.constant 0 : i32
    return %c0_i32, %c0_i32_0 : i32, i32
  }
  func.func @transform_2(%arg0: i32, %arg1: i32) -> (i32, i32) {
    %c0_i32 = arith.constant 0 : i32
    %c0_i32_0 = arith.constant 0 : i32
    %c0_i32_1 = arith.constant 0 : i32
    return %c0_i32, %c0_i32_0 : i32, i32
  }
  func.func @transform_3(%arg0: i32, %arg1: i32) -> (i32, i32, i32, i32) {
    %c0_i32 = arith.constant 0 : i32
    %c0_i32_0 = arith.constant 0 : i32
    %c0_i32_1 = arith.constant 0 : i32
    return %arg0, %arg1, %c0_i32, %c0_i32_0 : i32, i32, i32, i32
  }
}

module attributes {stable_mosaic.version = 11 : i64} {
  func.func @_upsample2x_kernel(%arg0: i32, %arg1: i32, %arg2: memref<1x8x8x64xbf16, #tpu.memory_space<vmem>>, %arg3: memref<1x1x8x64xbf16, #tpu.memory_space<vmem>>, %arg4: memref<1x1x8x64xbf16, #tpu.memory_space<vmem>>, %arg5: memref<1x8x2x8x128xbf16, #tpu.memory_space<vmem>>) attributes {dimension_semantics = [#tpu.dimension_semantics<parallel>, #tpu.dimension_semantics<parallel>], iteration_bounds = array<i64: 2, 1>, scalar_prefetch = 0 : i64, scratch_operands = 0 : i64, tpu.core_type = #tpu.core_type<tc>, window_params = [{transform_indices = @transform_0, window_bounds = array<i64: 1, 8, 8, 64>}, {transform_indices = @transform_1, window_bounds = array<i64: 1, 1, 8, 64>}, {transform_indices = @transform_2, window_bounds = array<i64: 1, 1, 8, 64>}, {transform_indices = @transform_3, window_bounds = array<i64: 1, 8, 2, 8, 128>}]} {
    %c0 = arith.constant 0 : index
    %c0_0 = arith.constant 0 : index
    %c0_1 = arith.constant 0 : index
    %c0_2 = arith.constant 0 : index
    %0 = vector.load %arg2[%c0, %c0_0, %c0_1, %c0_2] : memref<1x8x8x64xbf16, #tpu.memory_space<vmem>>, vector<1x8x8x64xbf16>
    %1 = vector.shape_cast %0 : vector<1x8x8x64xbf16> to vector<8x8x64xbf16>
    %2 = arith.extf %1 : vector<8x8x64xbf16> to vector<8x8x64xf32>
    %c0_3 = arith.constant 0 : index
    %c0_4 = arith.constant 0 : index
    %c0_5 = arith.constant 0 : index
    %c0_6 = arith.constant 0 : index
    %3 = vector.load %arg3[%c0_3, %c0_4, %c0_5, %c0_6] : memref<1x1x8x64xbf16, #tpu.memory_space<vmem>>, vector<1x1x8x64xbf16>
    %4 = vector.shape_cast %3 : vector<1x1x8x64xbf16> to vector<1x8x64xbf16>
    %5 = arith.extf %4 : vector<1x8x64xbf16> to vector<1x8x64xf32>
    %c0_7 = arith.constant 0 : index
    %c0_8 = arith.constant 0 : index
    %c0_9 = arith.constant 0 : index
    %c0_10 = arith.constant 0 : index
    %6 = vector.load %arg4[%c0_7, %c0_8, %c0_9, %c0_10] : memref<1x1x8x64xbf16, #tpu.memory_space<vmem>>, vector<1x1x8x64xbf16>
    %7 = vector.shape_cast %6 : vector<1x1x8x64xbf16> to vector<1x8x64xbf16>
    %8 = arith.extf %7 : vector<1x8x64xbf16> to vector<1x8x64xf32>
    %9 = vector.extract_strided_slice %2 {offsets = [0, 0, 0], sizes = [7, 8, 64], strides = [1, 1, 1]} : vector<8x8x64xf32> to vector<7x8x64xf32>
    %10 = tpu.concatenate %5, %9 in 0 : vector<1x8x64xf32>, vector<7x8x64xf32> -> vector<8x8x64xf32>
    %11 = vector.extract_strided_slice %2 {offsets = [1, 0, 0], sizes = [7, 8, 64], strides = [1, 1, 1]} : vector<8x8x64xf32> to vector<7x8x64xf32>
    %12 = tpu.concatenate %11, %8 in 0 : vector<7x8x64xf32>, vector<1x8x64xf32> -> vector<8x8x64xf32>
    %cst = arith.constant 2.500000e-01 : f32
    %13 = vector.broadcast %cst : f32 to vector<8x8x64xf32>
    %14 = arith.mulf %13, %10 : vector<8x8x64xf32>
    %cst_11 = arith.constant 7.500000e-01 : f32
    %15 = vector.broadcast %cst_11 : f32 to vector<8x8x64xf32>
    %16 = arith.mulf %15, %2 : vector<8x8x64xf32>
    %17 = arith.addf %14, %16 : vector<8x8x64xf32>
    %cst_12 = arith.constant 7.500000e-01 : f32
    %18 = vector.broadcast %cst_12 : f32 to vector<8x8x64xf32>
    %19 = arith.mulf %18, %2 : vector<8x8x64xf32>
    %cst_13 = arith.constant 2.500000e-01 : f32
    %20 = vector.broadcast %cst_13 : f32 to vector<8x8x64xf32>
    %21 = arith.mulf %20, %12 : vector<8x8x64xf32>
    %22 = arith.addf %19, %21 : vector<8x8x64xf32>
    %23 = vector.extract_strided_slice %17 {offsets = [0, 0, 0], sizes = [8, 1, 64], strides = [1, 1, 1]} : vector<8x8x64xf32> to vector<8x1x64xf32>
    %24 = vector.extract_strided_slice %17 {offsets = [0, 0, 0], sizes = [8, 7, 64], strides = [1, 1, 1]} : vector<8x8x64xf32> to vector<8x7x64xf32>
    %25 = tpu.concatenate %23, %24 in 1 : vector<8x1x64xf32>, vector<8x7x64xf32> -> vector<8x8x64xf32>
    %26 = vector.extract_strided_slice %17 {offsets = [0, 1, 0], sizes = [8, 7, 64], strides = [1, 1, 1]} : vector<8x8x64xf32> to vector<8x7x64xf32>
    %27 = vector.extract_strided_slice %17 {offsets = [0, 7, 0], sizes = [8, 1, 64], strides = [1, 1, 1]} : vector<8x8x64xf32> to vector<8x1x64xf32>
    %28 = tpu.concatenate %26, %27 in 1 : vector<8x7x64xf32>, vector<8x1x64xf32> -> vector<8x8x64xf32>
    %cst_14 = arith.constant 2.500000e-01 : f32
    %29 = vector.broadcast %cst_14 : f32 to vector<8x8x64xf32>
    %30 = arith.mulf %29, %25 : vector<8x8x64xf32>
    %cst_15 = arith.constant 7.500000e-01 : f32
    %31 = vector.broadcast %cst_15 : f32 to vector<8x8x64xf32>
    %32 = arith.mulf %31, %17 : vector<8x8x64xf32>
    %33 = arith.addf %30, %32 : vector<8x8x64xf32>
    %cst_16 = arith.constant 7.500000e-01 : f32
    %34 = vector.broadcast %cst_16 : f32 to vector<8x8x64xf32>
    %35 = arith.mulf %34, %17 : vector<8x8x64xf32>
    %cst_17 = arith.constant 2.500000e-01 : f32
    %36 = vector.broadcast %cst_17 : f32 to vector<8x8x64xf32>
    %37 = arith.mulf %36, %28 : vector<8x8x64xf32>
    %38 = arith.addf %35, %37 : vector<8x8x64xf32>
    %39 = vector.extract_strided_slice %22 {offsets = [0, 0, 0], sizes = [8, 1, 64], strides = [1, 1, 1]} : vector<8x8x64xf32> to vector<8x1x64xf32>
    %40 = vector.extract_strided_slice %22 {offsets = [0, 0, 0], sizes = [8, 7, 64], strides = [1, 1, 1]} : vector<8x8x64xf32> to vector<8x7x64xf32>
    %41 = tpu.concatenate %39, %40 in 1 : vector<8x1x64xf32>, vector<8x7x64xf32> -> vector<8x8x64xf32>
    %42 = vector.extract_strided_slice %22 {offsets = [0, 1, 0], sizes = [8, 7, 64], strides = [1, 1, 1]} : vector<8x8x64xf32> to vector<8x7x64xf32>
    %43 = vector.extract_strided_slice %22 {offsets = [0, 7, 0], sizes = [8, 1, 64], strides = [1, 1, 1]} : vector<8x8x64xf32> to vector<8x1x64xf32>
    %44 = tpu.concatenate %42, %43 in 1 : vector<8x7x64xf32>, vector<8x1x64xf32> -> vector<8x8x64xf32>
    %cst_18 = arith.constant 2.500000e-01 : f32
    %45 = vector.broadcast %cst_18 : f32 to vector<8x8x64xf32>
    %46 = arith.mulf %45, %41 : vector<8x8x64xf32>
    %cst_19 = arith.constant 7.500000e-01 : f32
    %47 = vector.broadcast %cst_19 : f32 to vector<8x8x64xf32>
    %48 = arith.mulf %47, %22 : vector<8x8x64xf32>
    %49 = arith.addf %46, %48 : vector<8x8x64xf32>
    %cst_20 = arith.constant 7.500000e-01 : f32
    %50 = vector.broadcast %cst_20 : f32 to vector<8x8x64xf32>
    %51 = arith.mulf %50, %22 : vector<8x8x64xf32>
    %cst_21 = arith.constant 2.500000e-01 : f32
    %52 = vector.broadcast %cst_21 : f32 to vector<8x8x64xf32>
    %53 = arith.mulf %52, %44 : vector<8x8x64xf32>
    %54 = arith.addf %51, %53 : vector<8x8x64xf32>
    %55 = tpu.concatenate %33, %38 in 2 : vector<8x8x64xf32>, vector<8x8x64xf32> -> vector<8x8x128xf32>
    %56 = arith.truncf %55 : vector<8x8x128xf32> to vector<8x8x128xbf16>
    %c0_22 = arith.constant 0 : index
    %c0_23 = arith.constant 0 : index
    %c0_24 = arith.constant 0 : index
    %c0_25 = arith.constant 0 : index
    %c0_26 = arith.constant 0 : index
    %57 = vector.load %arg5[%c0_22, %c0_23, %c0_24, %c0_25, %c0_26] : memref<1x8x2x8x128xbf16, #tpu.memory_space<vmem>>, vector<1x8x1x8x128xbf16>
    %58 = vector.shape_cast %57 : vector<1x8x1x8x128xbf16> to vector<8x8x128xbf16>
    %59 = vector.shape_cast %56 : vector<8x8x128xbf16> to vector<1x8x1x8x128xbf16>
    tpu.vector_store %arg5[%c0_22, %c0_23, %c0_24, %c0_25, %c0_26], %59 {strides = array<i32>} : memref<1x8x2x8x128xbf16, #tpu.memory_space<vmem>>, vector<1x8x1x8x128xbf16>,
    %60 = tpu.concatenate %49, %54 in 2 : vector<8x8x64xf32>, vector<8x8x64xf32> -> vector<8x8x128xf32>
    %61 = arith.truncf %60 : vector<8x8x128xf32> to vector<8x8x128xbf16>
    %c0_27 = arith.constant 0 : index
    %c0_28 = arith.constant 0 : index
    %c1 = arith.constant 1 : index
    %c0_29 = arith.constant 0 : index
    %c0_30 = arith.constant 0 : index
    %62 = vector.load %arg5[%c0_27, %c0_28, %c1, %c0_29, %c0_30] : memref<1x8x2x8x128xbf16, #tpu.memory_space<vmem>>, vector<1x8x1x8x128xbf16>
    %63 = vector.shape_cast %62 : vector<1x8x1x8x128xbf16> to vector<8x8x128xbf16>
    %64 = vector.shape_cast %61 : vector<8x8x128xbf16> to vector<1x8x1x8x128xbf16>
    tpu.vector_store %arg5[%c0_27, %c0_28, %c1, %c0_29, %c0_30], %64 {strides = array<i32>} : memref<1x8x2x8x128xbf16, #tpu.memory_space<vmem>>, vector<1x8x1x8x128xbf16>,
    return
  }
  func.func @transform_0(%arg0: i32, %arg1: i32) -> (i32, i32, i32, i32) {
    %c0_i32 = arith.constant 0 : i32
    %c0_i32_0 = arith.constant 0 : i32
    %c0_i32_1 = arith.constant 0 : i32
    return %arg0, %arg1, %c0_i32, %c0_i32_0 : i32, i32, i32, i32
  }
  func.func @transform_1(%arg0: i32, %arg1: i32) -> (i32, i32, i32, i32) {
    %c8_i32 = arith.constant 8 : i32
    %0 = arith.muli %arg1, %c8_i32 : i32
    %c1_i32 = arith.constant 1 : i32
    %1 = arith.subi %0, %c1_i32 : i32
    %c0_i32 = arith.constant 0 : i32
    %2 = arith.maxsi %1, %c0_i32 : i32
    %c0_i32_0 = arith.constant 0 : i32
    %c0_i32_1 = arith.constant 0 : i32
    %c0_i32_2 = arith.constant 0 : i32
    return %arg0, %2, %c0_i32_0, %c0_i32_1 : i32, i32, i32, i32
  }
  func.func @transform_2(%arg0: i32, %arg1: i32) -> (i32, i32, i32, i32) {
    %c8_i32 = arith.constant 8 : i32
    %0 = arith.muli %arg1, %c8_i32 : i32
    %c8_i32_0 = arith.constant 8 : i32
    %1 = arith.addi %0, %c8_i32_0 : i32
    %c7_i32 = arith.constant 7 : i32
    %2 = arith.minsi %1, %c7_i32 : i32
    %c0_i32 = arith.constant 0 : i32
    %c0_i32_1 = arith.constant 0 : i32
    %c0_i32_2 = arith.constant 0 : i32
    return %arg0, %2, %c0_i32, %c0_i32_1 : i32, i32, i32, i32
  }
  func.func @transform_3(%arg0: i32, %arg1: i32) -> (i32, i32, i32, i32, i32) {
    %c0_i32 = arith.constant 0 : i32
    %c0_i32_0 = arith.constant 0 : i32
    %c0_i32_1 = arith.constant 0 : i32
    %c0_i32_2 = arith.constant 0 : i32
    return %arg0, %arg1, %c0_i32, %c0_i32_0, %c0_i32_1 : i32, i32, i32, i32, i32
  }
}

module attributes {stable_mosaic.version = 11 : i64} {
  func.func @_conv3x3_s1_kernel(%arg0: i32, %arg1: i32, %arg2: memref<1x256x64xbf16, #tpu.memory_space<vmem>>, %arg3: memref<576x10xbf16, #tpu.memory_space<vmem>>, %arg4: memref<1x10xf32, #tpu.memory_space<vmem>>, %arg5: memref<1x1x256x10xbf16, #tpu.memory_space<vmem>>) attributes {dimension_semantics = [#tpu.dimension_semantics<parallel>, #tpu.dimension_semantics<parallel>], iteration_bounds = array<i64: 2, 1>, scalar_prefetch = 0 : i64, scratch_operands = 0 : i64, tpu.core_type = #tpu.core_type<tc>, window_params = [{transform_indices = @transform_0, window_bounds = array<i64: 1, 256, 64>}, {pipeline_mode = #tpu.pipeline_mode<synchronous>, transform_indices = @transform_1, window_bounds = array<i64: 576, 10>}, {pipeline_mode = #tpu.pipeline_mode<synchronous>, transform_indices = @transform_2, window_bounds = array<i64: 1, 10>}, {transform_indices = @transform_3, window_bounds = array<i64: 1, 1, 256, 10>}]} {
    %c0 = arith.constant 0 : index
    %c0_0 = arith.constant 0 : index
    %c0_1 = arith.constant 0 : index
    %0 = vector.load %arg2[%c0, %c0_0, %c0_1] : memref<1x256x64xbf16, #tpu.memory_space<vmem>>, vector<1x256x64xbf16>
    %1 = vector.shape_cast %0 : vector<1x256x64xbf16> to vector<256x64xbf16>
    %cst = arith.constant 0.000000e+00 : bf16
    %2 = vector.broadcast %cst : bf16 to vector<16x64xbf16>
    %cst_2 = arith.constant 0.000000e+00 : bf16
    %3 = vector.broadcast %cst_2 : bf16 to vector<16x64xbf16>
    %4 = tpu.concatenate %2, %1, %3 in 0 : vector<16x64xbf16>, vector<256x64xbf16>, vector<16x64xbf16> -> vector<288x64xbf16>
    %5 = tpu.iota {dimensions = array<i32: 0>} : vector<288x1xi32>
    %c16_i32 = arith.constant 16 : i32
    %c0_i32 = arith.constant 0 : i32
    %6 = arith.cmpi eq, %c16_i32, %c0_i32 : i32
    %c1_i32 = arith.constant 1 : i32
    %7 = arith.select %6, %c1_i32, %c16_i32 : i32
    %8 = vector.broadcast %7 : i32 to vector<288x1xi32>
    %9 = arith.remsi %5, %8 : vector<288x1xi32>
    %c0_i32_3 = arith.constant 0 : i32
    %10 = vector.broadcast %c0_i32_3 : i32 to vector<288x1xi32>
    %11 = arith.cmpi ne, %9, %10 : vector<288x1xi32>
    %c0_i32_4 = arith.constant 0 : i32
    %12 = vector.broadcast %c0_i32_4 : i32 to vector<288x1xi32>
    %13 = arith.cmpi slt, %9, %12 : vector<288x1xi32>
    %c0_i32_5 = arith.constant 0 : i32
    %14 = arith.cmpi slt, %7, %c0_i32_5 : i32
    %15 = vector.broadcast %14 : i1 to vector<288x1xi1>
    %16 = vector.broadcast %15 : vector<288x1xi1> to vector<288x1xi1>
    %17 = arith.xori %13, %16 : vector<288x1xi1>
    %18 = arith.andi %17, %11 : vector<288x1xi1>
    %19 = vector.broadcast %7 : i32 to vector<288x1xi32>
    %20 = arith.addi %9, %19 : vector<288x1xi32>
    %21 = arith.select %18, %20, %9 : vector<288x1xi1>, vector<288x1xi32>
    %cst_6 = arith.constant 0.000000e+00 : bf16
    %22 = vector.broadcast %cst_6 : bf16 to vector<1x64xbf16>
    %23 = vector.extract_strided_slice %4 {offsets = [0, 0], sizes = [287, 64], strides = [1, 1]} : vector<288x64xbf16> to vector<287x64xbf16>
    %24 = tpu.concatenate %22, %23 in 0 : vector<1x64xbf16>, vector<287x64xbf16> -> vector<288x64xbf16>
    %25 = vector.extract_strided_slice %4 {offsets = [1, 0], sizes = [287, 64], strides = [1, 1]} : vector<288x64xbf16> to vector<287x64xbf16>
    %26 = tpu.concatenate %25, %22 in 0 : vector<287x64xbf16>, vector<1x64xbf16> -> vector<288x64xbf16>
    %c0_i32_7 = arith.constant 0 : i32
    %27 = vector.broadcast %c0_i32_7 : i32 to vector<288x1xi32>
    %28 = arith.cmpi ne, %21, %27 : vector<288x1xi32>
    %cst_8 = arith.constant 0.000000e+00 : bf16
    %29 = vector.broadcast %cst_8 : bf16 to vector<288x64xbf16>
    %30 = vector.shape_cast %28 : vector<288x1xi1> to vector<288x1xi1>
    %31 = vector.broadcast %30 : vector<288x1xi1> to vector<288x64xi1>
    %32 = arith.select %31, %24, %29 : vector<288x64xi1>, vector<288x64xbf16>
    %c15_i32 = arith.constant 15 : i32
    %33 = vector.broadcast %c15_i32 : i32 to vector<288x1xi32>
    %34 = arith.cmpi ne, %21, %33 : vector<288x1xi32>
    %cst_9 = arith.constant 0.000000e+00 : bf16
    %35 = vector.broadcast %cst_9 : bf16 to vector<288x64xbf16>
    %36 = vector.shape_cast %34 : vector<288x1xi1> to vector<288x1xi1>
    %37 = vector.broadcast %36 : vector<288x1xi1> to vector<288x64xi1>
    %38 = arith.select %37, %26, %35 : vector<288x64xi1>, vector<288x64xbf16>
    %39 = tpu.concatenate %32, %4, %38 in 1 : vector<288x64xbf16>, vector<288x64xbf16>, vector<288x64xbf16> -> vector<288x192xbf16>
    %40 = vector.extract_strided_slice %39 {offsets = [0, 0], sizes = [256, 192], strides = [1, 1]} : vector<288x192xbf16> to vector<256x192xbf16>
    %41 = vector.extract_strided_slice %39 {offsets = [16, 0], sizes = [256, 192], strides = [1, 1]} : vector<288x192xbf16> to vector<256x192xbf16>
    %42 = vector.extract_strided_slice %39 {offsets = [32, 0], sizes = [256, 192], strides = [1, 1]} : vector<288x192xbf16> to vector<256x192xbf16>
    %43 = tpu.concatenate %40, %41, %42 in 1 : vector<256x192xbf16>, vector<256x192xbf16>, vector<256x192xbf16> -> vector<256x576xbf16>
    %c0_10 = arith.constant 0 : index
    %c0_11 = arith.constant 0 : index
    %44 = vector.load %arg3[%c0_10, %c0_11] : memref<576x10xbf16, #tpu.memory_space<vmem>>, vector<576x10xbf16>
    %cst_12 = arith.constant dense<0.000000e+00> : vector<256x10xf32>
    %45 = tpu.matmul %43, %44, %cst_12 {dimension_numbers = #tpu.dot_dimension_numbers<[1], [0], [0], [1], [0, 0, 1, 1], [], []>} : vector<256x576xbf16>, vector<576x10xbf16>, vector<256x10xf32> -> vector<256x10xf32>
    %c0_13 = arith.constant 0 : index
    %c0_14 = arith.constant 0 : index
    %46 = vector.load %arg4[%c0_13, %c0_14] : memref<1x10xf32, #tpu.memory_space<vmem>>, vector<1x10xf32>
    %47 = vector.broadcast %46 : vector<1x10xf32> to vector<256x10xf32>
    %48 = arith.addf %45, %47 : vector<256x10xf32>
    %cst_15 = arith.constant 0.000000e+00 : f32
    %49 = vector.broadcast %cst_15 : f32 to vector<256x10xf32>
    %50 = arith.maximumf %48, %49 : vector<256x10xf32>
    %51 = arith.truncf %50 : vector<256x10xf32> to vector<256x10xbf16>
    %c0_16 = arith.constant 0 : index
    %c0_17 = arith.constant 0 : index
    %c0_18 = arith.constant 0 : index
    %c0_19 = arith.constant 0 : index
    %52 = vector.load %arg5[%c0_16, %c0_17, %c0_18, %c0_19] : memref<1x1x256x10xbf16, #tpu.memory_space<vmem>>, vector<1x1x256x10xbf16>
    %53 = vector.shape_cast %52 : vector<1x1x256x10xbf16> to vector<256x10xbf16>
    %54 = vector.shape_cast %51 : vector<256x10xbf16> to vector<1x1x256x10xbf16>
    tpu.vector_store %arg5[%c0_16, %c0_17, %c0_18, %c0_19], %54 {strides = array<i32>} : memref<1x1x256x10xbf16, #tpu.memory_space<vmem>>, vector<1x1x256x10xbf16>,
    return
  }
  func.func @transform_0(%arg0: i32, %arg1: i32) -> (i32, i32, i32) {
    %c0_i32 = arith.constant 0 : i32
    %c0_i32_0 = arith.constant 0 : i32
    return %arg0, %arg1, %c0_i32 : i32, i32, i32
  }
  func.func @transform_1(%arg0: i32, %arg1: i32) -> (i32, i32) {
    %c0_i32 = arith.constant 0 : i32
    %c0_i32_0 = arith.constant 0 : i32
    %c0_i32_1 = arith.constant 0 : i32
    return %c0_i32, %c0_i32_0 : i32, i32
  }
  func.func @transform_2(%arg0: i32, %arg1: i32) -> (i32, i32) {
    %c0_i32 = arith.constant 0 : i32
    %c0_i32_0 = arith.constant 0 : i32
    %c0_i32_1 = arith.constant 0 : i32
    return %c0_i32, %c0_i32_0 : i32, i32
  }
  func.func @transform_3(%arg0: i32, %arg1: i32) -> (i32, i32, i32, i32) {
    %c0_i32 = arith.constant 0 : i32
    %c0_i32_0 = arith.constant 0 : i32
    %c0_i32_1 = arith.constant 0 : i32
    return %arg0, %arg1, %c0_i32, %c0_i32_0 : i32, i32, i32, i32
  }
}

module attributes {stable_mosaic.version = 11 : i64} {
  func.func @_conv3x3_s1_kernel(%arg0: i32, %arg1: i32, %arg2: memref<1x256x10xbf16, #tpu.memory_space<vmem>>, %arg3: memref<90x4xbf16, #tpu.memory_space<vmem>>, %arg4: memref<1x4xf32, #tpu.memory_space<vmem>>, %arg5: memref<1x1x256x4xf32, #tpu.memory_space<vmem>>) attributes {dimension_semantics = [#tpu.dimension_semantics<parallel>, #tpu.dimension_semantics<parallel>], iteration_bounds = array<i64: 2, 1>, scalar_prefetch = 0 : i64, scratch_operands = 0 : i64, tpu.core_type = #tpu.core_type<tc>, window_params = [{transform_indices = @transform_0, window_bounds = array<i64: 1, 256, 10>}, {pipeline_mode = #tpu.pipeline_mode<synchronous>, transform_indices = @transform_1, window_bounds = array<i64: 90, 4>}, {pipeline_mode = #tpu.pipeline_mode<synchronous>, transform_indices = @transform_2, window_bounds = array<i64: 1, 4>}, {transform_indices = @transform_3, window_bounds = array<i64: 1, 1, 256, 4>}]} {
    %c0 = arith.constant 0 : index
    %c0_0 = arith.constant 0 : index
    %c0_1 = arith.constant 0 : index
    %0 = vector.load %arg2[%c0, %c0_0, %c0_1] : memref<1x256x10xbf16, #tpu.memory_space<vmem>>, vector<1x256x10xbf16>
    %1 = vector.shape_cast %0 : vector<1x256x10xbf16> to vector<256x10xbf16>
    %cst = arith.constant 0.000000e+00 : bf16
    %2 = vector.broadcast %cst : bf16 to vector<16x10xbf16>
    %cst_2 = arith.constant 0.000000e+00 : bf16
    %3 = vector.broadcast %cst_2 : bf16 to vector<16x10xbf16>
    %4 = tpu.concatenate %2, %1, %3 in 0 : vector<16x10xbf16>, vector<256x10xbf16>, vector<16x10xbf16> -> vector<288x10xbf16>
    %5 = tpu.iota {dimensions = array<i32: 0>} : vector<288x1xi32>
    %c16_i32 = arith.constant 16 : i32
    %c0_i32 = arith.constant 0 : i32
    %6 = arith.cmpi eq, %c16_i32, %c0_i32 : i32
    %c1_i32 = arith.constant 1 : i32
    %7 = arith.select %6, %c1_i32, %c16_i32 : i32
    %8 = vector.broadcast %7 : i32 to vector<288x1xi32>
    %9 = arith.remsi %5, %8 : vector<288x1xi32>
    %c0_i32_3 = arith.constant 0 : i32
    %10 = vector.broadcast %c0_i32_3 : i32 to vector<288x1xi32>
    %11 = arith.cmpi ne, %9, %10 : vector<288x1xi32>
    %c0_i32_4 = arith.constant 0 : i32
    %12 = vector.broadcast %c0_i32_4 : i32 to vector<288x1xi32>
    %13 = arith.cmpi slt, %9, %12 : vector<288x1xi32>
    %c0_i32_5 = arith.constant 0 : i32
    %14 = arith.cmpi slt, %7, %c0_i32_5 : i32
    %15 = vector.broadcast %14 : i1 to vector<288x1xi1>
    %16 = vector.broadcast %15 : vector<288x1xi1> to vector<288x1xi1>
    %17 = arith.xori %13, %16 : vector<288x1xi1>
    %18 = arith.andi %17, %11 : vector<288x1xi1>
    %19 = vector.broadcast %7 : i32 to vector<288x1xi32>
    %20 = arith.addi %9, %19 : vector<288x1xi32>
    %21 = arith.select %18, %20, %9 : vector<288x1xi1>, vector<288x1xi32>
    %cst_6 = arith.constant 0.000000e+00 : bf16
    %22 = vector.broadcast %cst_6 : bf16 to vector<1x10xbf16>
    %23 = vector.extract_strided_slice %4 {offsets = [0, 0], sizes = [287, 10], strides = [1, 1]} : vector<288x10xbf16> to vector<287x10xbf16>
    %24 = tpu.concatenate %22, %23 in 0 : vector<1x10xbf16>, vector<287x10xbf16> -> vector<288x10xbf16>
    %25 = vector.extract_strided_slice %4 {offsets = [1, 0], sizes = [287, 10], strides = [1, 1]} : vector<288x10xbf16> to vector<287x10xbf16>
    %26 = tpu.concatenate %25, %22 in 0 : vector<287x10xbf16>, vector<1x10xbf16> -> vector<288x10xbf16>
    %c0_i32_7 = arith.constant 0 : i32
    %27 = vector.broadcast %c0_i32_7 : i32 to vector<288x1xi32>
    %28 = arith.cmpi ne, %21, %27 : vector<288x1xi32>
    %cst_8 = arith.constant 0.000000e+00 : bf16
    %29 = vector.broadcast %cst_8 : bf16 to vector<288x10xbf16>
    %30 = vector.shape_cast %28 : vector<288x1xi1> to vector<288x1xi1>
    %31 = vector.broadcast %30 : vector<288x1xi1> to vector<288x10xi1>
    %32 = arith.select %31, %24, %29 : vector<288x10xi1>, vector<288x10xbf16>
    %c15_i32 = arith.constant 15 : i32
    %33 = vector.broadcast %c15_i32 : i32 to vector<288x1xi32>
    %34 = arith.cmpi ne, %21, %33 : vector<288x1xi32>
    %cst_9 = arith.constant 0.000000e+00 : bf16
    %35 = vector.broadcast %cst_9 : bf16 to vector<288x10xbf16>
    %36 = vector.shape_cast %34 : vector<288x1xi1> to vector<288x1xi1>
    %37 = vector.broadcast %36 : vector<288x1xi1> to vector<288x10xi1>
    %38 = arith.select %37, %26, %35 : vector<288x10xi1>, vector<288x10xbf16>
    %39 = tpu.concatenate %32, %4, %38 in 1 : vector<288x10xbf16>, vector<288x10xbf16>, vector<288x10xbf16> -> vector<288x30xbf16>
    %40 = vector.extract_strided_slice %39 {offsets = [0, 0], sizes = [256, 30], strides = [1, 1]} : vector<288x30xbf16> to vector<256x30xbf16>
    %41 = vector.extract_strided_slice %39 {offsets = [16, 0], sizes = [256, 30], strides = [1, 1]} : vector<288x30xbf16> to vector<256x30xbf16>
    %42 = vector.extract_strided_slice %39 {offsets = [32, 0], sizes = [256, 30], strides = [1, 1]} : vector<288x30xbf16> to vector<256x30xbf16>
    %43 = tpu.concatenate %40, %41, %42 in 1 : vector<256x30xbf16>, vector<256x30xbf16>, vector<256x30xbf16> -> vector<256x90xbf16>
    %c0_10 = arith.constant 0 : index
    %c0_11 = arith.constant 0 : index
    %44 = vector.load %arg3[%c0_10, %c0_11] : memref<90x4xbf16, #tpu.memory_space<vmem>>, vector<90x4xbf16>
    %cst_12 = arith.constant dense<0.000000e+00> : vector<256x4xf32>
    %45 = tpu.matmul %43, %44, %cst_12 {dimension_numbers = #tpu.dot_dimension_numbers<[1], [0], [0], [1], [0, 0, 1, 1], [], []>} : vector<256x90xbf16>, vector<90x4xbf16>, vector<256x4xf32> -> vector<256x4xf32>
    %c0_13 = arith.constant 0 : index
    %c0_14 = arith.constant 0 : index
    %46 = vector.load %arg4[%c0_13, %c0_14] : memref<1x4xf32, #tpu.memory_space<vmem>>, vector<1x4xf32>
    %47 = vector.broadcast %46 : vector<1x4xf32> to vector<256x4xf32>
    %48 = arith.addf %45, %47 : vector<256x4xf32>
    %c0_15 = arith.constant 0 : index
    %c0_16 = arith.constant 0 : index
    %c0_17 = arith.constant 0 : index
    %c0_18 = arith.constant 0 : index
    %49 = vector.load %arg5[%c0_15, %c0_16, %c0_17, %c0_18] : memref<1x1x256x4xf32, #tpu.memory_space<vmem>>, vector<1x1x256x4xf32>
    %50 = vector.shape_cast %49 : vector<1x1x256x4xf32> to vector<256x4xf32>
    %51 = vector.shape_cast %48 : vector<256x4xf32> to vector<1x1x256x4xf32>
    tpu.vector_store %arg5[%c0_15, %c0_16, %c0_17, %c0_18], %51 {strides = array<i32>} : memref<1x1x256x4xf32, #tpu.memory_space<vmem>>, vector<1x1x256x4xf32>,
    return
  }
  func.func @transform_0(%arg0: i32, %arg1: i32) -> (i32, i32, i32) {
    %c0_i32 = arith.constant 0 : i32
    %c0_i32_0 = arith.constant 0 : i32
    return %arg0, %arg1, %c0_i32 : i32, i32, i32
  }
  func.func @transform_1(%arg0: i32, %arg1: i32) -> (i32, i32) {
    %c0_i32 = arith.constant 0 : i32
    %c0_i32_0 = arith.constant 0 : i32
    %c0_i32_1 = arith.constant 0 : i32
    return %c0_i32, %c0_i32_0 : i32, i32
  }
  func.func @transform_2(%arg0: i32, %arg1: i32) -> (i32, i32) {
    %c0_i32 = arith.constant 0 : i32
    %c0_i32_0 = arith.constant 0 : i32
    %c0_i32_1 = arith.constant 0 : i32
    return %c0_i32, %c0_i32_0 : i32, i32
  }
  func.func @transform_3(%arg0: i32, %arg1: i32) -> (i32, i32, i32, i32) {
    %c0_i32 = arith.constant 0 : i32
    %c0_i32_0 = arith.constant 0 : i32
    %c0_i32_1 = arith.constant 0 : i32
    return %arg0, %arg1, %c0_i32, %c0_i32_0 : i32, i32, i32, i32
  }
}

</mosaic_0001>

<bundles_post_ra>
// kernel: refinement_net_forward.13
= control target key start
LH: loop header
LB: loop body
LE: loop exit
PB: predicated region body
PF: predicated region fallthrough
CT: control target
= control target key end

     0   :  { %s1195_s12 = smov 0   ;;  %s1197_s13 = smov 0   ;;  %s1518_s0 = inlined_call_operand.vmem [shape: bf16[2,128,20], index: 0, kind: input, shape index: {}]   ;;  %s1519_s1 = inlined_call_operand.vmem [shape: bf16[90,32], index: 1, kind: input, shape index: {}]   ;;  %s1520_s2 = inlined_call_operand.vmem [shape: f32[1,32], index: 2, kind: input, shape index: {}]   ;;  %s1521_s3 = inlined_call_operand.vmem [shape: bf16[2,1,64,32], index: 3, kind: output, shape index: {}]  }
   0x1   :  { %s1199_s14 = smov 0  }
   0x2 LB: > { %s25_s15 = sadd.s32 1, %s1162_s13  ;;  %p1005_p0 = scmp.ge.s32.totalorder %s1166_s14, 1  ;;  %s1166_s14 = sphi %s1199_s14, %s13_s14   ;;  %s1162_s13 = sphi %s1197_s13, %s1545_s13   ;;  %s1158_s12 = sphi %s1195_s12, %s1544_s12  }
   0x3   : > { %p27_p1 = scmp.ge.s32.totalorder %s25_s15, 2  ;;  %p158_p2 = scmp.lt.s32.totalorder %s1166_s14, 3 }
   0x5   : > { %s1547_s15 = smov (%p27_p1, %s25_s15), 0  ;;  %p159_p3 = pnand %p1005_p0, %p158_p2 }
   0x6   : > { %p191_p4 = scmp.lt.s32.totalorder (!%p159_p3), %s1158_s12, 1  ;;  %vm269_vm0 = vcmask (!%p159_p3), 1043456   ;;  %vm416_vm1 = vsmask.f32 (!%p159_p3), 256  ;;  %s1168_s20 = smov (!%p159_p3), 118   ;;  %vm456_vm10 = vcmask (!%p159_p3), 1040384  }
   0x7   : > { %162 = sbr.rel (%p159_p3) target bundleno = 515 (0x203), region = 32  ;;  %s1169_s21 = smov (!%p159_p3), 10   ;;  %vm1345_vm11 = vmand (!%p159_p3), %vm456_vm10, %vm416_vm1  ;;  %vm680_vm10 = vcmask (!%p159_p3), 162816  }
   0x8   : > { %s1170_s22 = smov (!%p159_p3), 40   ;;  %s1172_s4 = smov (!%p159_p3), 30  }
   0x9   : > { %s1173_s7 = smov (!%p159_p3), 60   ;;  %s1174_s10 = smov (!%p159_p3), 70  }
   0xe   : > { %s1549_s12 = smov (!%p191_p4, %s1158_s12), 1 }
   0xf   : > { %s1044_s16 = sshll.u32 %s1549_s12, 6  ;;  %s1045_s17 = sshll.u32 %s1549_s12, 5 }
  0x10   : > { %s1219_s19 = scalar_lea.vmem %s1518_s0, %s1044_s16 }
  0x11   : > { %v1129_v0 = vld [vmem:[%s1219_s19 + $0x4] sm:$0xff]   ;;  %v1223_v1 = vld [vmem:[%s1219_s19 + $0xc] sm:$0xff]   ;;  %v1131_v3 = vld [vmem:[%s1219_s19] ss:$0 sps:$4 sm:$0xff]  }
  0x12   : > { %v290_v2 = vrot.slane %v1223_v1, 4  ;;  %v1132_v4 = vld [vmem:[%s1219_s19 + $0x14] sm:$0xff]   ;;  %v272_v6 = vsel %vm269_vm0, 0, %v1131_v3  ;;  %v1236_v8 = vld [vmem:[%s1219_s19 + $0x1c] sm:$0xff]   ;;  %v1243_v14 = vld [vmem:[%s1219_s19 + $0x24] sm:$0xff]   ;;  %v273_v21 = vrot.slane %v1129_v0, 4 }
  0x13   : > { %v289_v11 = vrot.slane %v272_v6, 4  ;;  %v1246_v15 = vld [vmem:[%s1219_s19 + $0x2c] sm:$0xff]   ;;  %v291_v16 = vrot.slane %v1236_v8, 4  ;;  %v1136_v20 = vld [vmem:[%s1219_s19 + $0x34] sm:$0xff]   ;;  %v1137_v30 = vld [vmem:[%s1219_s19 + $0x3c] ss:$0 sps:$4 sm:$0xff]  }
  0x14   : > { %v1229_v5 = vsel %vm269_vm0, %v1129_v0, %v290_v2  ;;  %v1233_v7 = vsel %vm269_vm0, %v290_v2, %v1132_v4  ;;  %v292_v24 = vrot.slane %v1246_v15, 4  ;;  %v1283_v48 = vsel %vm269_vm0, %v1136_v20, %v1137_v30 }
  0x15   : > { %v563_v9 = vshrl.u32 %v1229_v5, 16  ;;  %v566_v10 = vshll.u32 %v1229_v5, 16  ;;  %v525_v12 = vshrl.u32 %v1233_v7, 16  ;;  %v528_v13 = vshll.u32 %v1233_v7, 16 }
  0x16   : > { %v1250_v18 = vsel %vm269_vm0, %v289_v11, %v1129_v0  ;;  %v1258_v25 = vsel %vm269_vm0, %v291_v16, %v1243_v14  ;;  %v1264_v32 = vsel %vm269_vm0, %v292_v24, %v1136_v20  ;;  %v1267_v33 = vsel %vm269_vm0, %v1132_v4, %v291_v16 }
  0x17   : > { %v565_v17 = vrot.slane %v563_v9, 7  ;;  %v527_v19 = vrot.slane %v525_v12, 7  ;;  %v519_v22 = vshrl.u32 %v1250_v18, 16  ;;  %v522_v23 = vshll.u32 %v1250_v18, 16 }
  0x18   : > { %v532_v28 = vshrl.u32 %v1258_v25, 16  ;;  %v535_v29 = vshll.u32 %v1258_v25, 16  ;;  %v1271_v34 = vsel %vm269_vm0, %v1243_v14, %v292_v24  ;;  %v539_v36 = vshrl.u32 %v1264_v32, 16 }
  0x19   : > { %v568_v26 = vor.u32 %v566_v10, %v565_v17  ;;  %v530_v27 = vor.u32 %v528_v13, %v527_v19  ;;  %v521_v31 = vrot.slane %v519_v22, 7  ;;  %v542_v37 = vshll.u32 %v1264_v32, 16 }
  0x1a   : > { %v534_v35 = vrot.slane %v532_v28, 7  ;;  %v569_v38 = vshrl.u32 %v1267_v33, 16  ;;  %v576_v41 = vshrl.u32 %v1271_v34, 16  ;;  %v579_v42 = vshll.u32 %v1271_v34, 16 }
  0x1b   : > { %590 = vrot.lane.b32.xlu0 %v568_v26, %s1168_s20  ;;  %v531_v39 = vsel %vm416_vm1, %v521_v31, %v530_v27  ;;  %v524_v40 = vor.u32 %v522_v23, %v521_v31  ;;  %v541_v43 = vrot.slane %v539_v36, 7  ;;  %v572_v46 = vshll.u32 %v1267_v33, 16 }
  0x1c   : > { %548 = vrot.lane.b32.xlu1 %v531_v39, %s1168_s20  ;;  %v537_v44 = vor.u32 %v535_v29, %v534_v35  ;;  %v571_v45 = vrot.slane %v569_v38, 7  ;;  %v578_v47 = vrot.slane %v576_v41, 7  ;;  %v278_v49 = vsel %vm269_vm0, %v272_v6, %v273_v21 }
  0x1d   : > { %v274_v50 = vrot.slane %v1132_v4, 4  ;;  %v544_v51 = vor.u32 %v542_v37, %v541_v43  ;;  %v583_v53 = vshrl.u32 %v1283_v48, 16  ;;  %v586_v56 = vshll.u32 %v1283_v48, 16 }
  0x1e   : > { %v538_v52 = vsel %vm416_vm1, %v527_v19, %v537_v44  ;;  %v581_v54 = vor.u32 %v579_v42, %v578_v47  ;;  %v574_v55 = vor.u32 %v572_v46, %v571_v45  ;;  %v417_v57 = vshrl.u32 %v278_v49, 16 }
  0x1f   : > { %546 = vrot.lane.b32.xlu0 %v524_v40, %s1168_s20  ;;  %v545_v58 = vsel %vm416_vm1, %v534_v35, %v544_v51  ;;  %v585_v59 = vrot.slane %v583_v53, 7  ;;  %v281_v60 = vsel %vm269_vm0, %v1223_v1, %v274_v50  ;;  %v420_v62 = vshll.u32 %v278_v49, 16 }
  0x20   : > { %552 = vrot.lane.b32.xlu1 %v545_v58, %s1168_s20  ;;  %v582_v61 = vsel %vm416_vm1, %v571_v45, %v581_v54  ;;  %v423_v63 = vshrl.u32 %v281_v60, 16  ;;  %v419_v2 = vrot.slane %v417_v57, 7  ;;  %v275_v3 = vrot.slane %v1243_v14, 4 }
  0x21   : > { %v588_v0 = vor.u32 %v586_v56, %v585_v59  ;;  %v276_v4 = vrot.slane %v1136_v20, 4  ;;  %v575_v6 = vsel %vm416_vm1, %v565_v17, %v574_v55  ;;  %v426_v10 = vshll.u32 %v281_v60, 16 }
  0x22   : > { %v425_v9 = vrot.slane %v423_v63, 7  ;;  %v284_v1 = vsel %vm269_vm0, %v1236_v8, %v275_v3  ;;  %v422_v19 = vor.u32 %v420_v62, %v419_v2  ;;  %v311_v27 = vlaneseq  ;;  %v1141_v3 = vld [vmem:[%s1519_s1 + $0x18] sm:$0xff]  }
  0x23   : > { %550 = vrot.lane.b32.xlu0 %v538_v52, %s1168_s20  ;;  %v287_v11 = vsel %vm269_vm0, %v1246_v15, %v276_v4  ;;  %v430_v12 = vshrl.u32 %v284_v1, 16  ;;  %v433_v13 = vshll.u32 %v284_v1, 16  ;;  %v589_v14 = vsel %vm416_vm1, %v578_v47, %v588_v0  ;;  %v1140_v47 = vld [vmem:[%s1519_s1 + $0x10] sm:$0xff]  }
  0x24   : > { %594 = vrot.lane.b32.xlu1 %v582_v61, %s1168_s20  ;;  %v437_v16 = vshrl.u32 %v287_v11, 16  ;;  %v440_v20 = vshll.u32 %v287_v11, 16  ;;  %v428_v17 = vor.u32 %v426_v10, %v425_v9  ;;  %v312_v28 = vshrl.u32 %v311_v27, 7 }
  0x25   : > { %v432_v21 = vrot.slane %v430_v12, 7 }
  0x26   : > { %v439_v22 = vrot.slane %v437_v16, 7  ;;  %v429_v23 = vsel %vm416_vm1, %v419_v2, %v428_v17  ;;  %v314_v29 = vadd.s32 16, %v312_v28  ;;  %v315_v30 = vadd.s32 24, %v312_v28  ;;  %v1143_v17 = vld [vmem:[%s1519_s1 + $0x28] sm:$0x1f]  }
  0x27   : > { %592 = vrot.lane.b32.xlu0 %v575_v6, %s1168_s20  ;;  %v435_v8 = vor.u32 %v433_v13, %v432_v21  ;;  %v313_v31 = vadd.s32 8, %v312_v28  ;;  %v324_v37 = vand.u32 7, %v312_v28  ;;  %v318_v42 = vadd.s32 48, %v312_v28 }
  0x28   : > { %596 = vrot.lane.b32.xlu1 %v589_v14, %s1168_s20  ;;  %v442_v15 = vor.u32 %v440_v20, %v439_v22  ;;  %v338_v35 = vand.u32 7, %v314_v29  ;;  %v345_v36 = vand.u32 7, %v315_v30  ;;  %v319_v43 = vadd.s32 56, %v312_v28  ;;  %v1023_v30 = vld [vmem:[%s1520_s2] ss:$0 sm:$0xff] }
  0x29   : > { %v436_v24 = vsel %vm416_vm1, %v425_v9, %v435_v8  ;;  %v331_v38 = vand.u32 7, %v313_v31  ;;  %vm1317_vm4 = vcmp.ne.s32.totalorder %v324_v37, 0  ;;  %v316_v46 = vadd.s32 32, %v312_v28 }
  0x2a   : > { %v443_v26 = vsel %vm416_vm1, %v432_v21, %v442_v15  ;;  %vm461_vm2 = vcmp.ne.s32.totalorder %v338_v35, 0  ;;  %vm462_vm3 = vcmp.ne.s32.totalorder %v345_v36, 0  ;;  %vm483_vm8 = vmpackc.low %vm1317_vm4, %vm1317_vm4  ;;  %v317_v50 = vadd.s32 40, %v312_v28 }
  0x2b   : > { %444 = vrot.lane.b32.xlu0 %v422_v19, %s1168_s20  ;;  %vm1321_vm5 = vcmp.ne.s32.totalorder %v331_v38, 0  ;;  %vm485_vm6 = vmpackc.low %vm461_vm2, %vm461_vm2  ;;  %v366_v51 = vand.u32 7, %v318_v42  ;;  %v373_v53 = vand.u32 7, %v319_v43  ;;  %v352_v55 = vand.u32 7, %v316_v46 }
  0x2c   : > { %448 = vrot.lane.b32.xlu1 %v436_v24, %s1168_s20  ;;  %vm486_vm7 = vmpackc.low %vm462_vm3, %vm462_vm3  ;;  %v359_v58 = vand.u32 7, %v317_v50 }
  0x2d   : > { %vm484_vm9 = vmpackc.low %vm1321_vm5, %vm1321_vm5  ;;  %vm1353_vm13 = vcmp.ne.s32.totalorder %v366_v51, 0  ;;  %vm1363_vm15 = vcmp.ne.s32.totalorder %v373_v53, 0  ;;  %vm1369_vm0 = vcmp.ne.s32.totalorder %v352_v55, 0 }
  0x2e   : > { %vm489_vm1 = vmpackc.low %vm1353_vm13, %vm1353_vm13  ;;  %vm1380_vm2 = vcmp.ne.s32.totalorder %v359_v58, 0  ;;  %vm694_vm13 = vcmask 326656  }
  0x2f   : > { %446 = vrot.lane.b32.xlu0 %v429_v23, %s1168_s20  ;;  %vm490_vm3 = vmpackc.low %vm1363_vm15, %vm1363_vm15  ;;  %vm708_vm15 = vcmask 490496  }
  0x30   : > { %450 = vrot.lane.b32.xlu1 %v443_v26, %s1168_s20  ;;  %vm487_vm4 = vmpackc.low %vm1369_vm0, %vm1369_vm0  ;;  %vm726_vm0 = vcmask 654336   ;;  %s1491_s20 = scalar_lea.vmem %s1521_s3, %s1045_s17 }
  0x31   : > { %vm488_vm5 = vmpackc.low %vm1380_vm2, %vm1380_vm2  ;;  %vm903_vm2 = vcmask 257024  }
  0x33   : > { %611 = vrot.lane.b32.xlu0 %v278_v49, %s1169_s21 }
  0x34   : > { %615 = vrot.lane.b32.xlu1 %v284_v1, %s1169_s21  ;;  %v1142_v1 = vld [vmem:[%s1519_s1 + $0x20] sm:$0xff]  }
  0x37   : > { %613 = vrot.lane.b32.xlu0 %v281_v60, %s1169_s21 }
  0x38   : > { %617 = vrot.lane.b32.xlu1 %v287_v11, %s1169_s21 }
  0x3b   : > { %635 = vrot.lane.b32.xlu0 %v1250_v18, %s1170_s22 }
  0x3c   : > { %639 = vrot.lane.b32.xlu1 %v1258_v25, %s1170_s22  ;;  %v1139_v25 = vld [vmem:[%s1519_s1 + $0x8] sm:$0xff]  }
  0x3f   : > { %637 = vrot.lane.b32.xlu0 %v1233_v7, %s1170_s22  ;;  %v1138_v7 = vld [vmem:[%s1519_s1] sm:$0xff]  }
  0x40   : > { %641 = vrot.lane.b32.xlu1 %v1264_v32, %s1170_s22  ;;  %v1171_v32 = vmov 0   ;;  %1064 = vmatprep.subr.bf16.mxu0 %v1138_v7 }
  0x41   : > { %v493_v40 = vsel %vm485_vm6, 65537, %v1171_v32  ;;  %v494_v41 = vsel %vm486_vm7, 65537, %v1171_v32  ;;  %1084 = vmatprep.subr.bf16.mxu1 %v1138_v7  ;;  %1065 = vmatpush3.bf16.msra.mxu0 %v1138_v7  ;;  %v491_v44 = vsel %vm483_vm8, 65537, %v1171_v32  ;;  %v492_v45 = vsel %vm484_vm9, 65537, %v1171_v32 }
  0x42   : > { %1090 = vmatpush3.bf16.msra.mxu1 %v1138_v7  ;;  %1066 = vmatprep.subr.bf16.mxu0 %v1139_v25  ;;  %v1020_v49 = vcombine.low %v493_v40, %v494_v41  ;;  %v1019_v52 = vcombine.low %v491_v44, %v492_v45  ;;  %v497_v11 = vsel %vm489_vm1, 65537, %v1171_v32  ;;  %v498_v12 = vsel %vm490_vm3, 65537, %v1171_v32 }
  0x43   : > { %1085 = vmatprep.subr.bf16.mxu1 %v1139_v25  ;;  %v495_v16 = vsel %vm487_vm4, 65537, %v1171_v32  ;;  %v496_v14 = vsel %vm488_vm5, 65537, %v1171_v32  ;;  %v1022_v19 = vcombine.low %v497_v11, %v498_v12  ;;  %vm794_vm6 = vcmask 1044480  }
  0x44   : > { %vm1349_vm12 = vcmp.ne.s16.totalorder %v1020_v49, 0  ;;  %vm1357_vm14 = vcmp.ne.s16.totalorder %v1019_v52, 0  ;;  %v1021_v22 = vcombine.low %v495_v16, %v496_v14  ;;  %v796_v15 = vsel %vm794_vm6, %v1143_v17, 0 }
  0x45   : > { %1067 = vmatpush3.bf16.msra.mxu0 %v1139_v25  ;;  %vm1411_vm7 = vcmp.ne.s16.totalorder %v1022_v19, 0  ;;  %vm667_vm9 = vcmask 80896   ;;  %vm785_vm1 = vcmask 736256  }
  0x46   : > { %1091 = vmatpush3.bf16.msra.mxu1 %v1139_v25  ;;  %1068 = vmatprep.subr.bf16.mxu0 %v1140_v47  ;;  %vm1419_vm8 = vcmp.ne.s16.totalorder %v1021_v22, 0 }
  0x47   : > { %1086 = vmatprep.subr.bf16.mxu1 %v1140_v47 }
  0x49   : > { %1069 = vmatpush3.bf16.msra.mxu0 %v1140_v47 }
  0x4a   : > { %1092 = vmatpush3.bf16.msra.mxu1 %v1140_v47  ;;  %1070 = vmatprep.subr.bf16.mxu0 %v1141_v3 }
  0x4b   : > { %1087 = vmatprep.subr.bf16.mxu1 %v1141_v3 }
  0x4d   : > { %1071 = vmatpush3.bf16.msra.mxu0 %v1141_v3 }
  0x4e   : > { %1093 = vmatpush3.bf16.msra.mxu1 %v1141_v3  ;;  %1072 = vmatprep.subr.bf16.mxu0 %v1142_v1 }
  0x4f   : > { %1088 = vmatprep.subr.bf16.mxu1 %v1142_v1 }
  0x51   : > { %1073 = vmatpush3.bf16.msra.mxu0 %v1142_v1 }
  0x52   : > { %1094 = vmatpush3.bf16.msra.mxu1 %v1142_v1  ;;  %1096 = vmatprep.subr.msk.bf16.mxu0 %vm794_vm6, %v1143_v17 }
  0x53   : > { %1097 = vmatprep.subr.msk.bf16.mxu1 %vm794_vm6, %v1143_v17 }
  0x55   : > { %1075 = vmatpush3.bf16.msra.mxu0 %v796_v15 }
  0x56   : > { %1095 = vmatpush3.bf16.msra.mxu1 %v796_v15 }
  0x8d   : > { %v591_v56 = vpop.permute.xlu0 %590 }
  0x8e   : > { %v602_v61 = vsel %vm1345_vm11, 0, %v591_v56  ;;  %v549_v62 = vpop.permute.xlu1 %548 }
  0x8f   : > { %v560_v0 = vsel %vm1349_vm12, %v549_v62, 0  ;;  %v603_v9 = vsel %vm1357_vm14, %v602_v61, 0 }
  0x90   : > { %625 = vrot.lane.b32.xlu0 %v560_v0, %s1172_s4 }
  0x91   : > { %v547_v4 = vpop.permute.xlu0 %546 }
  0x92   : > { %v553_v10 = vpop.permute.xlu1 %552  ;;  %v558_v23 = vsel %vm1345_vm11, 0, %v547_v4 }
  0x93   : > { %v559_v29 = vsel %vm1357_vm14, %v558_v23, 0  ;;  %v562_v37 = vsel %vm1411_vm7, %v553_v10, 0 }
  0x94   : > { %647 = vrot.lane.b32.xlu0 %v603_v9, %s1173_s7 }
  0x95   : > { %v551_v13 = vpop.permute.xlu0 %550 }
  0x96   : > { %v595_v20 = vpop.permute.xlu1 %594  ;;  %v561_v35 = vsel %vm1419_vm8, %v551_v13, 0 }
  0x97   : > { %v605_v38 = vsel %vm1419_vm8, %v595_v20, 0 }
  0x99   : > { %v593_v21 = vpop.permute.xlu0 %592 }
  0x9a   : > { %v604_v8 = vsel %vm1349_vm12, %v593_v21, 0  ;;  %v597_v26 = vpop.permute.xlu1 %596 }
  0x9b   : > { %649 = vrot.lane.b32.xlu0 %v604_v8, %s1173_s7  ;;  %v606_v27 = vsel %vm1411_vm7, %v597_v26, 0 }
  0x9c   : > { %653 = vrot.lane.b32.xlu1 %v606_v27, %s1173_s7 }
  0x9d   : > { %v445_v28 = vpop.permute.xlu0 %444 }
  0x9e   : > { %v458_v31 = vsel %vm1345_vm11, 0, %v445_v28  ;;  %v449_v7 = vpop.permute.xlu1 %448  ;;  %vm685_vm11 = vcmask 244736  }
  0x9f   : > { %623 = vrot.lane.b32.xlu0 %v559_v29, %s1172_s4  ;;  %v515_v36 = vsel %vm1357_vm14, %v458_v31, 0  ;;  %v517_v53 = vsel %vm1419_vm8, %v449_v7, 0  ;;  %vm717_vm14 = vcmask 572416  }
  0xa0   : > { %627 = vrot.lane.b32.xlu1 %v561_v35, %s1172_s4 }
  0xa1   : > { %v447_v39 = vpop.permute.xlu0 %446 }
  0xa2   : > { %v451_v25 = vpop.permute.xlu1 %450  ;;  %v516_v46 = vsel %vm1349_vm12, %v447_v39, 0  ;;  %vm703_vm12 = vcmask 408576  }
  0xa3   : > { %659 = vrot.lane.b32.xlu0 %v1229_v5, %s1174_s10  ;;  %v518_v57 = vsel %vm1411_vm7, %v451_v25, 0 }
  0xa4   : > { %629 = vrot.lane.b32.xlu1 %v562_v37, %s1172_s4 }
  0xa5   : > { %v612_v18 = vpop.permute.xlu0 %611 }
  0xa6   : > { %v616_v40 = vpop.permute.xlu1 %615 }
  0xa7   : > { %661 = vrot.lane.b32.xlu0 %v1267_v33, %s1174_s10  ;;  %v676_v60 = vsel %vm667_vm9, %v517_v53, %v616_v40 }
  0xa8   : > { %651 = vrot.lane.b32.xlu1 %v605_v38, %s1173_s7  ;;  %v683_v4 = vsel %vm680_vm10, %v676_v60, %v616_v40 }
  0xa9   : > { %v614_v5 = vpop.permute.xlu0 %613 }
  0xaa   : > { %v618_v42 = vpop.permute.xlu1 %617  ;;  %v673_v47 = vsel %vm667_vm9, %v516_v46, %v614_v5 }
  0xab   : > { %v682_v51 = vsel %vm680_vm10, %v673_v47, %v614_v5  ;;  %v679_v2 = vsel %vm667_vm9, %v518_v57, %v618_v42 }
  0xac   : > { %663 = vrot.lane.b32.xlu1 %v1271_v34, %s1174_s10  ;;  %v684_v12 = vsel %vm680_vm10, %v679_v2, %v618_v42 }
  0xad   : > { %v636_v32 = vpop.permute.xlu0 %635 }
  0xae   : > { %v640_v33 = vpop.permute.xlu1 %639 }
  0xb0   : > { %665 = vrot.lane.b32.xlu1 %v1283_v48, %s1174_s10  ;;  %v670_v48 = vsel %vm667_vm9, %v515_v36, %v612_v18 }
  0xb1   : > { %v638_v41 = vpop.permute.xlu0 %637  ;;  %v681_v50 = vsel %vm680_vm10, %v670_v48, %v612_v18 }
  0xb2   : > { %v642_v45 = vpop.permute.xlu1 %641 }
 0x102   : > { %v626_v43 = vpop.permute.xlu0 %625 }
 0x103   : > { %v689_v54 = vsel %vm685_vm11, %v682_v51, %v626_v43 }
 0x104   : > { %v698_v61 = vsel %vm694_vm13, %v689_v54, %v638_v41 }
 0x105   : > { %v705_v6 = vsel %vm703_vm12, %v698_v61, %v638_v41 }
 0x106   : > { %v648_v44 = vpop.permute.xlu0 %647 }
 0x10d   : > { %v650_v34 = vpop.permute.xlu0 %649 }
 0x10e   : > { %v654_v49 = vpop.permute.xlu1 %653  ;;  %v712_v10 = vsel %vm708_vm15, %v705_v6, %v650_v34 }
 0x111   : > { %v624_v52 = vpop.permute.xlu0 %623 }
 0x112   : > { %v687_v55 = vsel %vm685_vm11, %v681_v50, %v624_v52  ;;  %v628_v58 = vpop.permute.xlu1 %627 }
 0x113   : > { %v696_v56 = vsel %vm694_vm13, %v687_v55, %v636_v32  ;;  %v691_v1 = vsel %vm685_vm11, %v683_v4, %v628_v58 }
 0x114   : > { %v704_v59 = vsel %vm703_vm12, %v696_v56, %v636_v32  ;;  %v700_v19 = vsel %vm694_vm13, %v691_v1, %v640_v33 }
 0x115   : > { %v710_v62 = vsel %vm708_vm15, %v704_v59, %v648_v44  ;;  %v660_v63 = vpop.permute.xlu0 %659  ;;  %v706_v21 = vsel %vm703_vm12, %v700_v19, %v640_v33 }
 0x116   : > { %v719_v0 = vsel %vm717_vm14, %v710_v62, %v660_v63  ;;  %v630_v9 = vpop.permute.xlu1 %629 }
 0x117   : > { %v727_v3 = vsel %vm726_vm0, %v719_v0, %v660_v63  ;;  %v693_v16 = vsel %vm685_vm11, %v684_v12, %v630_v9 }
 0x118   : > { %1076 = vmatprep.mubr.msk.bf16.mxu0 %vm785_vm1, %v727_v3  ;;  %v702_v17 = vsel %vm694_vm13, %v693_v16, %v642_v45 }
 0x119   : > { %v662_v11 = vpop.permute.xlu0 %661  ;;  %v707_v23 = vsel %vm703_vm12, %v702_v17, %v642_v45 }
 0x11a   : > { %v721_v13 = vsel %vm717_vm14, %v712_v10, %v662_v11  ;;  %v652_v20 = vpop.permute.xlu1 %651  ;;  %v716_v26 = vsel %vm708_vm15, %v707_v23, %v654_v49 }
 0x11b   : > { %v728_v14 = vsel %vm726_vm0, %v721_v13, %v662_v11  ;;  %v714_v22 = vsel %vm708_vm15, %v706_v21, %v652_v20 }
 0x11c   : > { %1077 = vmatmul.mubr.msk.bf16.vlgmr.msra.gmra.mrb[0].mxu0 %vm785_vm1, %v728_v14 }
 0x11e   : > { %v664_v8 = vpop.permute.xlu1 %663 }
 0x11f   : > { %v723_v15 = vsel %vm717_vm14, %v714_v22, %v664_v8 }
 0x120   : > { %v729_v24 = vsel %vm726_vm0, %v723_v15, %v664_v8 }
 0x121   : > { %1080 = vmatprep.mubr.msk.bf16.mxu1 %vm785_vm1, %v729_v24 }
 0x122   : > { %v666_v27 = vpop.permute.xlu1 %665 }
 0x123   : > { %v725_v28 = vsel %vm717_vm14, %v716_v26, %v666_v27 }
 0x124   : > { %v730_v29 = vsel %vm726_vm0, %v725_v28, %v666_v27 }
 0x125   : > { %1081 = vmatmul.mubr.msk.bf16.vlgmr.msra.gmra.mrb[0].mxu1 %vm785_vm1, %v730_v29 }
 0x1ef   : > { %v1078_v31 = vpop.f32.mrb[0].mxu0 }
 0x1f0   : > { %v841_v35 = vadd.f32 %v1078_v31, %v1023_v30  ;;  %v832_v36 = vpop.f32.mrb[1].mxu0 }
 0x1f1   : > { %v833_v37 = vadd.f32 %v1023_v30, %v832_v36  ;;  %v1079_v38 = vpop.f32.mrb[2].mxu0 }
 0x1f2   : > { %v865_v39 = vmax.f32 %v841_v35, 0.0  ;;  %v844_v18 = vadd.f32 %v1079_v38, %v1023_v30  ;;  %v835_v7 = vpop.f32.mrb[3].mxu0 }
 0x1f3   : > { %v863_v5 = vmax.f32 %v833_v37, 0.0  ;;  %v836_v25 = vadd.f32 %v1023_v30, %v835_v7 }
 0x1f4   : > { %v1048_v32 = vpack.c.bf16 %v865_v39, %v865_v39  ;;  %v866_v40 = vmax.f32 %v844_v18, 0.0 }
 0x1f5   : > { %v1046_v41 = vpack.c.bf16 %v863_v5, %v863_v5  ;;  %v864_v42 = vmax.f32 %v836_v25, 0.0 }
 0x1f6   : > { %906 = vst.msk [vmem:[%s1491_s20 + $0x8] sm:$0xf] %vm903_vm2, %v1048_v32  ;;  %v1049_v43 = vpack.c.bf16 %v866_v40, %v866_v40 }
 0x1f7   : > { %904 = vst.msk [vmem:[%s1491_s20] sm:$0xf] %vm903_vm2, %v1046_v41  ;;  %v1047_v33 = vpack.c.bf16 %v864_v42, %v864_v42 }
 0x1f8   : > { %907 = vst.msk [vmem:[%s1491_s20 + $0xc] sm:$0xf] %vm903_vm2, %v1049_v43  ;;  %v1082_v44 = vpop.f32.mrb[0].mxu1 }
 0x1f9   : > { %905 = vst.msk [vmem:[%s1491_s20 + $0x4] sm:$0xf] %vm903_vm2, %v1047_v33  ;;  %v857_v45 = vadd.f32 %v1082_v44, %v1023_v30  ;;  %v848_v46 = vpop.f32.mrb[1].mxu1 }
 0x1fa   : > { %v849_v34 = vadd.f32 %v1023_v30, %v848_v46  ;;  %v1083_v48 = vpop.f32.mrb[2].mxu1 }
 0x1fb   : > { %v869_v47 = vmax.f32 %v857_v45, 0.0  ;;  %v860_v49 = vadd.f32 %v1083_v48, %v1023_v30  ;;  %v851_v50 = vpop.f32.mrb[3].mxu1 }
 0x1fc   : > { %v867_v51 = vmax.f32 %v849_v34, 0.0  ;;  %v852_v52 = vadd.f32 %v1023_v30, %v851_v50 }
 0x1fd   : > { %v1052_v53 = vpack.c.bf16 %v869_v47, %v869_v47  ;;  %v870_v54 = vmax.f32 %v860_v49, 0.0 }
 0x1fe   : > { %v1050_v55 = vpack.c.bf16 %v867_v51, %v867_v51  ;;  %v868_v56 = vmax.f32 %v852_v52, 0.0 }
 0x1ff   : > { %910 = vst.msk [vmem:[%s1491_s20 + $0x18] sm:$0xf] %vm903_vm2, %v1052_v53  ;;  %v1053_v57 = vpack.c.bf16 %v870_v54, %v870_v54 }
 0x200   : > { %908 = vst.msk [vmem:[%s1491_s20 + $0x10] sm:$0xf] %vm903_vm2, %v1050_v55  ;;  %v1051_v58 = vpack.c.bf16 %v868_v56, %v868_v56 }
 0x201   : > { %911 = vst.msk [vmem:[%s1491_s20 + $0x1c] sm:$0xf] %vm903_vm2, %v1053_v57 }
 0x202   : > { %909 = vst.msk [vmem:[%s1491_s20 + $0x14] sm:$0xf] %vm903_vm2, %v1051_v58 }
 0x203 PF: > { %s13_s14 = sadd.s32 1, %s1166_s14   ;;  %s1544_s12 = smov %s1162_s13 }
 0x204   : > { %p10_p5 = scmp.ge.s32.totalorder %s13_s14, 4   ;;  %s1545_s13 = smov %s1547_s15 }
 0x206   :  { %12 = sbr.rel (!%p10_p5) target bundleno = 2 (0x2), region = 62 }

// kernel: refinement_net_forward.14
= control target key start
LH: loop header
LB: loop body
LE: loop exit
PB: predicated region body
PF: predicated region fallthrough
CT: control target
= control target key end

     0   :  { %s1374_s12 = smov 0   ;;  %s1376_s13 = smov 0   ;;  %s1817_s0 = inlined_call_operand.vmem [shape: bf16[2,64,32], index: 0, kind: input, shape index: {}]   ;;  %s1818_s1 = inlined_call_operand.vmem [shape: bf16[288,32], index: 1, kind: input, shape index: {}]   ;;  %s1819_s2 = inlined_call_operand.vmem [shape: f32[1,32], index: 2, kind: input, shape index: {}]   ;;  %s1820_s3 = inlined_call_operand.vmem [shape: bf16[2,1,64,32], index: 3, kind: output, shape index: {}]  }
   0x1   :  { %s1378_s14 = smov 0  }
   0x2 LB: > { %s25_s15 = sadd.s32 1, %s1344_s13  ;;  %p1138_p0 = scmp.ge.s32.totalorder %s1348_s14, 1  ;;  %s1348_s14 = sphi %s1378_s14, %s13_s14   ;;  %s1344_s13 = sphi %s1376_s13, %s1854_s13   ;;  %s1340_s12 = sphi %s1374_s12, %s1853_s12  }
   0x3   : > { %p27_p1 = scmp.ge.s32.totalorder %s25_s15, 2  ;;  %p158_p2 = scmp.lt.s32.totalorder %s1348_s14, 3 }
   0x5   : > { %s1856_s15 = smov (%p27_p1, %s25_s15), 0  ;;  %p159_p3 = pnand %p1138_p0, %p158_p2 }
   0x6   : > { %p191_p4 = scmp.lt.s32.totalorder (!%p159_p3), %s1340_s12, 1  ;;  %v247_v0 = vlaneseq (!%p159_p3)  ;;  %vm241_vm0 = vcmask (!%p159_p3), 1043456   ;;  %vm424_vm1 = vsmask.f32 (!%p159_p3), 7424  ;;  %vm444_vm2 = vcmask (!%p159_p3), 1047552   ;;  %s1350_s20 = smov (!%p159_p3), 32  }
   0x7   : > { %162 = sbr.rel (%p159_p3) target bundleno = 508 (0x1fc), region = 32  ;;  %v1351_v32 = vmov (!%p159_p3), 0   ;;  %vm1481_vm8 = vmand (!%p159_p3), %vm444_vm2, %vm424_vm1  ;;  %vm378_vm13 = vsmask.f32 (!%p159_p3), 256  ;;  %s1352_s21 = smov (!%p159_p3), 64  }
   0x8   : > { %v1394_v1 = vshrl.u32 (!%p159_p3), %v247_v0, 7  ;;  %s1353_s8 = smov (!%p159_p3), 96  }
   0xa   : > { %v1398_v2 = vadd.s32 (!%p159_p3), 16, %v1394_v1  ;;  %v1401_v3 = vadd.s32 (!%p159_p3), 24, %v1394_v1  ;;  %v1404_v4 = vadd.s32 (!%p159_p3), 48, %v1394_v1  ;;  %v1407_v5 = vadd.s32 (!%p159_p3), 56, %v1394_v1 }
   0xb   : > { %v1415_v6 = vadd.s32 (!%p159_p3), 8, %v1394_v1  ;;  %v262_v7 = vand.u32 (!%p159_p3), 7, %v1394_v1  ;;  %v1419_v8 = vadd.s32 (!%p159_p3), 64, %v1394_v1  ;;  %v1422_v9 = vadd.s32 (!%p159_p3), 72, %v1394_v1 }
   0xc   : > { %v276_v11 = vand.u32 (!%p159_p3), 7, %v1398_v2  ;;  %v283_v18 = vand.u32 (!%p159_p3), 7, %v1401_v3  ;;  %v304_v29 = vand.u32 (!%p159_p3), 7, %v1404_v4  ;;  %v311_v41 = vand.u32 (!%p159_p3), 7, %v1407_v5 }
   0xd   : > { %v269_v45 = vand.u32 (!%p159_p3), 7, %v1415_v6  ;;  %vm1492_vm12 = vcmp.ne.s32.totalorder (!%p159_p3), %v262_v7, 7  ;;  %v318_v55 = vand.u32 (!%p159_p3), 7, %v1419_v8  ;;  %v325_v59 = vand.u32 (!%p159_p3), 7, %v1422_v9 }
   0xe   : > { %s1858_s12 = smov (!%p191_p4, %s1340_s12), 1  ;;  %vm524_vm3 = vcmp.ne.s32.totalorder %v276_v11, 7  ;;  %vm525_vm4 = vcmp.ne.s32.totalorder %v283_v18, 7  ;;  %vm528_vm7 = vcmp.ne.s32.totalorder %v304_v29, 7  ;;  %vm529_vm10 = vcmp.ne.s32.totalorder %v311_v41, 7  ;;  %vm552_vm2 = vmpackc.low %vm1492_vm12, %vm1492_vm12 }
   0xf   : > { %s1191_s16 = sshll.u32 %s1858_s12, 5  ;;  %vm554_vm5 = vmpackc.low %vm524_vm3, %vm524_vm3  ;;  %vm523_vm15 = vcmp.ne.s32.totalorder %v269_v45, 7  ;;  %v562_v58 = vsel %vm552_vm2, 65537, %v1351_v32  ;;  %v1514_v62 = vadd.s32 32, %v1394_v1  ;;  %v1517_v0 = vadd.s32 40, %v1394_v1 }
  0x10   : > { %s198_s19 = scalar_lea.vmem %s1817_s0, %s1191_s16  ;;  %vm555_vm6 = vmpackc.low %vm525_vm4, %vm525_vm4  ;;  %v564_v33 = vsel %vm554_vm5, 65537, %v1351_v32  ;;  %vm530_vm4 = vcmp.ne.s32.totalorder %v318_v55, 7 }
  0x11   : > { %v1424_v10 = vld [vmem:[%s198_s19 + $0x4] sm:$0xff]   ;;  %v1304_v12 = vld [vmem:[%s198_s19 + $0x1c] ss:$0 sps:$4 sm:$0xff]   ;;  %v1431_v15 = vld [vmem:[%s198_s19 + $0x14] sm:$0xff]   ;;  %v565_v36 = vsel %vm555_vm6, 65537, %v1351_v32  ;;  %vm531_vm6 = vcmp.ne.s32.totalorder %v325_v59, 7 }
  0x12   : > { %601 = vrot.lane.b32.xlu0 %v1424_v10, %s1350_s20  ;;  %v386_v13 = vshrl.u32 %v1424_v10, 16  ;;  %v389_v14 = vshll.u32 %v1424_v10, 16  ;;  %v1433_v16 = vld [vmem:[%s198_s19 + $0xc] sm:$0xff]   ;;  %v1436_v17 = vsel %vm241_vm0, %v1304_v12, 0  ;;  %v402_v22 = vshrl.u32 %v1431_v15, 16  ;;  %vm558_vm11 = vmpackc.low %vm528_vm7, %vm528_vm7 }
  0x13   : > { %607 = vrot.lane.b32.xlu1 %v1436_v17, %s1350_s20  ;;  %v409_v20 = vshrl.u32 %v1436_v17, 16  ;;  %v412_v21 = vshll.u32 %v1436_v17, 16  ;;  %v405_v23 = vshll.u32 %v1431_v15, 16  ;;  %v397_v24 = vshll.u32 %v1433_v16, 16  ;;  %v1307_v26 = vld [vmem:[%s198_s19] ss:$0 sps:$4 sm:$0xff]   ;;  %vm559_vm14 = vmpackc.low %vm529_vm10, %vm529_vm10  ;;  %s1790_s19 = scalar_lea.vmem %s1820_s3, %s1191_s16 }
  0x14   : > { %v1439_v19 = vrot.slane %v386_v13, 7  ;;  %v427_v25 = vrot.slane %v389_v14, 1  ;;  %v244_v34 = vsel %vm241_vm0, 0, %v1307_v26  ;;  %v1154_v40 = vcombine.low %v564_v33, %v565_v36  ;;  %vm553_vm3 = vmpackc.low %vm523_vm15, %vm523_vm15 }
  0x15   : > { %v411_v27 = vrot.slane %v409_v20, 7  ;;  %v436_v28 = vrot.slane %v412_v21, 1  ;;  %v1459_v31 = vrot.slane %v397_v24, 1  ;;  %v379_v37 = vshrl.u32 %v244_v34, 16  ;;  %vm560_vm7 = vmpackc.low %vm530_vm4, %vm530_vm4 }
  0x16   : > { %605 = vrot.lane.b32.xlu0 %v1431_v15, %s1350_s20  ;;  %v429_v30 = vor.u32 %v427_v25, %v386_v13  ;;  %v382_v38 = vshll.u32 %v244_v34, 16  ;;  %v1471_v42 = vrot.slane %v405_v23, 1  ;;  %vm588_vm9 = vcmp.ne.s16.totalorder %v1154_v40, 0  ;;  %v1309_v40 = vld [vmem:[%s1818_s1] sm:$0xff]  }
  0x17   : > { %v1463_v35 = vor.u32 %v412_v21, %v411_v27  ;;  %v1474_v43 = vrot.slane %v379_v37, 7  ;;  %v568_v52 = vsel %vm558_vm11, 65537, %v1351_v32  ;;  %v569_v54 = vsel %vm559_vm14, 65537, %v1351_v32  ;;  %v1321_v27 = vld [vmem:[%s1818_s1 + $0x30] sm:$0xff]  }
  0x18   : > { %v431_v39 = vsel %vm424_vm1, %v429_v30, %v1459_v31  ;;  %v425_v44 = vrot.slane %v382_v38, 1  ;;  %v435_v47 = vor.u32 %v1471_v42, %v402_v22  ;;  %v1156_v56 = vcombine.low %v568_v52, %v569_v54  ;;  %v1313_v54 = vld [vmem:[%s1818_s1 + $0x10] sm:$0xff]  }
  0x19   : > { %v593_v49 = vsel %vm588_vm9, %v431_v39, 0  ;;  %v1497_v50 = vor.u32 %v382_v38, %v1474_v43  ;;  %v563_v60 = vsel %vm553_vm3, 65537, %v1351_v32  ;;  %v438_v61 = vor.u32 %v436_v28, %v409_v20  ;;  %vm561_vm9 = vmpackc.low %vm531_vm6, %vm531_vm6  ;;  %v1308_v39 = vld [vmem:[%s1818_s1 + $0x40] sm:$0xff]  }
  0x1a   : > { %599 = vrot.lane.b32.xlu0 %v244_v34, %s1350_s20  ;;  %v426_v51 = vor.u32 %v425_v44, %v379_v37  ;;  %616 = vrot.lane.b32.xlu1 %v593_v49, %s1352_s21  ;;  %v437_v53 = vsel %vm424_vm1, %v435_v47, %v436_v28  ;;  %vm590_vm5 = vcmp.ne.s16.totalorder %v1156_v56, 0  ;;  %v1153_v63 = vcombine.low %v562_v58, %v563_v60  ;;  %v1310_v44 = vld [vmem:[%s1818_s1 + $0x48] sm:$0xff]  }
  0x1b   : > { %v595_v8 = vsel %vm590_vm5, %v437_v53, 0  ;;  %v446_v12 = vsel %vm1481_vm8, %v438_v61, 0  ;;  %v570_v9 = vsel %vm560_vm7, 65537, %v1351_v32  ;;  %v290_v13 = vand.u32 7, %v1514_v62  ;;  %1201 = vmatprep.subr.bf16.mxu0 %v1308_v39  ;;  %1259 = vmatprep.subr.bf16.mxu1 %v1308_v39 }
  0x1c   : > { %v428_v57 = vsel %vm424_vm1, %v426_v51, %v427_v25  ;;  %vm587_vm10 = vcmp.ne.s16.totalorder %v1153_v63, 0  ;;  %v571_v17 = vsel %vm561_vm9, 65537, %v1351_v32  ;;  %v297_v20 = vand.u32 7, %v1517_v0  ;;  %1202 = vmatpush3.bf16.msra.mxu0 %v1309_v40  ;;  %1267 = vmatpush3.bf16.msra.mxu1 %v1309_v40 }
  0x1d   : > { %v394_v21 = vshrl.u32 %v1433_v16, 16  ;;  %v592_v25 = vsel %vm587_vm10, %v428_v57, 0  ;;  %v1157_v26 = vcombine.low %v570_v9, %v571_v17  ;;  %vm526_vm11 = vcmp.ne.s32.totalorder %v290_v13, 7  ;;  %1203 = vmatprep.subr.bf16.mxu0 %v1310_v44  ;;  %1260 = vmatprep.subr.bf16.mxu1 %v1310_v44 }
  0x1e   : > { %620 = vrot.lane.b32.xlu0 %v595_v8, %s1352_s21  ;;  %vm1531_vm8 = vcmp.ne.s32.totalorder %v276_v11, 0  ;;  %614 = vrot.lane.b32.xlu1 %v592_v25, %s1352_s21  ;;  %vm527_vm12 = vcmp.ne.s32.totalorder %v297_v20, 7  ;;  %vm556_vm14 = vmpackc.low %vm526_vm11, %vm526_vm11  ;;  %vm1541_vm15 = vcmp.ne.s32.totalorder %v283_v18, 0  ;;  %v391_v2 = vor.u32 %v389_v14, %v1439_v19  ;;  %v1319_v25 = vld [vmem:[%s1818_s1 + $0x28] sm:$0xff]  }
  0x1f   : > { %v432_v28 = vor.u32 %v1459_v31, %v394_v21  ;;  %vm591_vm2 = vcmp.ne.s16.totalorder %v1157_v26, 0  ;;  %vm557_vm3 = vmpackc.low %vm527_vm12, %vm527_vm12  ;;  %v566_v11 = vsel %vm556_vm14, 65537, %v1351_v32  ;;  %vm1549_vm4 = vcmp.ne.s32.totalorder %v318_v55, 0  ;;  %v1320_v26 = vld [vmem:[%s1818_s1 + $0x70] sm:$0xff]  }
  0x20   : > { %vm1553_vm5 = vcmp.ne.s32.totalorder %v325_v59, 0  ;;  %v596_v3 = vsel %vm591_vm2, %v446_v12, 0  ;;  %v567_v14 = vsel %vm557_vm3, 65537, %v1351_v32  ;;  %vm479_vm6 = vmpackc.low %vm1531_vm8, %vm1531_vm8  ;;  %v1567_v18 = vsel %vm378_vm13, %v1474_v43, %v391_v2  ;;  %v1314_v59 = vld [vmem:[%s1818_s1 + $0x58] sm:$0xff]  }
  0x21   : > { %v434_v10 = vsel %vm424_vm1, %v432_v28, %v1471_v42  ;;  %v1155_v34 = vcombine.low %v566_v11, %v567_v14  ;;  %vm480_vm7 = vmpackc.low %vm1541_vm15, %vm1541_vm15  ;;  %v489_v36 = vsel %vm479_vm6, 65537, %v1351_v32  ;;  %v404_v37 = vrot.slane %v402_v22, 7  ;;  %v1322_v28 = vld [vmem:[%s1818_s1 + $0x78] sm:$0xff]  }
  0x22   : > { %603 = vrot.lane.b32.xlu0 %v1433_v16, %s1350_s20  ;;  %v396_v38 = vrot.slane %v394_v21, 7  ;;  %622 = vrot.lane.b32.xlu1 %v596_v3, %s1352_s21  ;;  %v490_v42 = vsel %vm480_vm7, 65537, %v1351_v32  ;;  %vm485_vm1 = vmpackc.low %vm1549_vm4, %vm1549_vm4  ;;  %vm1588_vm9 = vcmp.ne.s32.totalorder %v304_v29, 0  ;;  %vm1594_vm10 = vcmp.ne.s32.totalorder %v311_v41, 0  ;;  %v1318_v21 = vld [vmem:[%s1818_s1 + $0x68] sm:$0xff]   ;;  %v1323_v2 = vld [vmem:[%s1818_s1 + $0x38] sm:$0xff]  }
  0x23   : > { %vm421_vm11 = vcmask 1040384   ;;  %vm1601_vm8 = vcmp.ne.s16.totalorder %v1155_v34, 0  ;;  %v1149_v4 = vcombine.low %v489_v36, %v490_v42  ;;  %vm486_vm12 = vmpackc.low %vm1553_vm5, %vm1553_vm5  ;;  %v495_v5 = vsel %vm485_vm1, 65537, %v1351_v32  ;;  %v1324_v34 = vld [vmem:[%s1818_s1 + $0x80] sm:$0xff]  }
  0x24   : > { %v1611_v29 = vsel %vm378_vm13, %v404_v37, %v1463_v35  ;;  %v594_v41 = vsel %vm1601_vm8, %v434_v10, 0  ;;  %v496_v47 = vsel %vm486_vm12, 65537, %v1351_v32  ;;  %v407_v48 = vor.u32 %v405_v23, %v404_v37  ;;  %vm483_vm14 = vmpackc.low %vm1588_vm9, %vm1588_vm9  ;;  %v1311_v35 = vld [vmem:[%s1818_s1 + $0x8] sm:$0xff]   ;;  %v1312_v23 = vld [vmem:[%s1818_s1 + $0x50] sm:$0xff]  }
  0x25   : > { %vm1623_vm15 = vcmp.ne.s32.totalorder %v262_v7, 0  ;;  %vm1630_vm2 = vcmp.ne.s16.totalorder %v1149_v4, 0  ;;  %v1152_v15 = vcombine.low %v495_v5, %v496_v47  ;;  %vm484_vm3 = vmpackc.low %vm1594_vm10, %vm1594_vm10  ;;  %v493_v1 = vsel %vm483_vm14, 65537, %v1351_v32  ;;  %1204 = vmatpush3.bf16.msra.mxu0 %v1311_v35  ;;  %1268 = vmatpush3.bf16.msra.mxu1 %v1311_v35 }
  0x26   : > { %vm1640_vm4 = vcmp.ne.s32.totalorder %v269_v45, 0  ;;  %618 = vrot.lane.b32.xlu1 %v594_v41, %s1352_s21  ;;  %v518_v52 = vsel %vm1630_vm2, %v1567_v18, 0  ;;  %v1652_v53 = vsel %vm378_vm13, %v396_v38, %v407_v48  ;;  %v494_v6 = vsel %vm484_vm3, 65537, %v1351_v32  ;;  %vm1657_vm5 = vmand %vm421_vm11, %vm378_vm13  ;;  %1205 = vmatprep.subr.bf16.mxu0 %v1312_v23 }
  0x27   : > { %vm1664_vm6 = vcmp.ne.s16.totalorder %v1152_v15, 0  ;;  %v1151_v56 = vcombine.low %v493_v1, %v494_v6  ;;  %vm477_vm7 = vmpackc.low %vm1623_vm15, %vm1623_vm15  ;;  %v423_v57 = vsel %vm1657_vm5, 0, %v1497_v50  ;;  %v399_v58 = vor.u32 %v397_v24, %v396_v38  ;;  %1261 = vmatprep.subr.bf16.mxu1 %v1312_v23 }
  0x28   : > { %v521_v60 = vsel %vm1664_vm6, %v1611_v29, 0  ;;  %vm478_vm1 = vmpackc.low %vm1640_vm4, %vm1640_vm4  ;;  %v487_v61 = vsel %vm477_vm7, 65537, %v1351_v32  ;;  %vm451_vm9 = vcmp.ne.s32.totalorder %v290_v13, 0  ;;  %vm452_vm10 = vcmp.ne.s32.totalorder %v297_v20, 0  ;;  %v1316_v13 = vld [vmem:[%s1818_s1 + $0x60] sm:$0xff]  }
  0x29   : > { %vm1690_vm11 = vcmp.ne.s16.totalorder %v1151_v56, 0  ;;  %v488_v24 = vsel %vm478_vm1, 65537, %v1351_v32  ;;  %v1697_v50 = vsel %vm378_vm13, %v1439_v19, %v399_v58  ;;  %vm481_vm8 = vmpackc.low %vm451_vm9, %vm451_vm9  ;;  %1206 = vmatpush3.bf16.msra.mxu0 %v1313_v54  ;;  %1269 = vmatpush3.bf16.msra.mxu1 %v1313_v54  ;;  %v1315_v19 = vld [vmem:[%s1818_s1 + $0x18] sm:$0xff]   ;;  %v1317_v20 = vld [vmem:[%s1818_s1 + $0x20] sm:$0xff]   ;;  %vm624_vm15 = vcmask 261120  }
  0x2a   : > { %v520_v62 = vsel %vm1690_vm11, %v1652_v53, 0  ;;  %v1148_v63 = vcombine.low %v487_v61, %v488_v24  ;;  %vm482_vm12 = vmpackc.low %vm452_vm10, %vm452_vm10  ;;  %v491_v0 = vsel %vm481_vm8, 65537, %v1351_v32  ;;  %1207 = vmatprep.subr.bf16.mxu0 %v1314_v59  ;;  %1262 = vmatprep.subr.bf16.mxu1 %v1314_v59  ;;  %vm640_vm3 = vcmask 523264   ;;  %v1325_v56 = vld [vmem:[%s1818_s1 + $0x88] sm:$0xff]  }
  0x2b   : > { %v492_v8 = vsel %vm482_vm12, 65537, %v1351_v32  ;;  %vm682_vm2 = vcmask 785408  }
  0x2c   : > { %vm512_vm14 = vcmp.ne.s16.totalorder %v1148_v63, 0  ;;  %v1150_v12 = vcombine.low %v491_v0, %v492_v8 }
  0x2d   : > { %v517_v9 = vsel %vm512_vm14, %v423_v57, 0  ;;  %1208 = vmatpush3.bf16.msra.mxu0 %v1315_v19  ;;  %1270 = vmatpush3.bf16.msra.mxu1 %v1315_v19 }
  0x2e   : > { %vm1710_vm13 = vcmp.ne.s16.totalorder %v1150_v12, 0  ;;  %1209 = vmatprep.subr.bf16.mxu0 %v1316_v13  ;;  %1263 = vmatprep.subr.bf16.mxu1 %v1316_v13 }
  0x2f   : > { %v519_v32 = vsel %vm1710_vm13, %v1697_v50, 0 }
  0x31   : > { %1210 = vmatpush3.bf16.msra.mxu0 %v1317_v20  ;;  %1271 = vmatpush3.bf16.msra.mxu1 %v1317_v20 }
  0x32   : > { %1211 = vmatprep.subr.bf16.mxu0 %v1318_v21  ;;  %1264 = vmatprep.subr.bf16.mxu1 %v1318_v21 }
  0x35   : > { %1212 = vmatpush3.bf16.msra.mxu0 %v1319_v25  ;;  %1272 = vmatpush3.bf16.msra.mxu1 %v1319_v25 }
  0x36   : > { %1213 = vmatprep.subr.bf16.mxu0 %v1320_v26  ;;  %1265 = vmatprep.subr.bf16.mxu1 %v1320_v26 }
  0x39   : > { %1214 = vmatpush3.bf16.msra.mxu0 %v1321_v27  ;;  %1273 = vmatpush3.bf16.msra.mxu1 %v1321_v27  ;;  %v1158_v27 = vld [vmem:[%s1819_s2] ss:$0 sm:$0xff] }
  0x3a   : > { %1215 = vmatprep.subr.bf16.mxu0 %v1322_v28  ;;  %1266 = vmatprep.subr.bf16.mxu1 %v1322_v28 }
  0x3d   : > { %1216 = vmatpush3.bf16.msra.mxu0 %v1323_v2  ;;  %1274 = vmatpush3.bf16.msra.mxu1 %v1323_v2 }
  0x3e   : > { %1247 = vmatprep.subr.bf16.mxu1 %v1324_v34 }
  0x84   : > { %v602_v30 = vpop.permute.xlu0 %601 }
  0x85   : > { %v608_v11 = vpop.permute.xlu1 %607  ;;  %v630_v33 = vsel %vm624_vm15, %v518_v52, %v602_v30 }
  0x86   : > { %v639_v44 = vsel %vm624_vm15, %v521_v60, %v608_v11 }
  0x88   : > { %v606_v31 = vpop.permute.xlu0 %605 }
  0x89   : > { %v636_v18 = vsel %vm624_vm15, %v520_v62, %v606_v31 }
  0x8c   : > { %v617_v3 = vpop.permute.xlu1 %616  ;;  %v600_v10 = vpop.permute.xlu0 %599 }
  0x8d   : > { %v644_v14 = vsel %vm640_vm3, %v630_v33, %v617_v3  ;;  %v627_v36 = vsel %vm624_vm15, %v517_v9, %v600_v10 }
  0x8e   : > { %674 = vrot.lane.b32.xlu1 %v644_v14, %s1352_s21  ;;  %v658_v40 = vrot.slane %v644_v14, 4 }
  0x90   : > { %v621_v37 = vpop.permute.xlu0 %620  ;;  %v615_v38 = vpop.permute.xlu1 %614 }
  0x91   : > { %v642_v39 = vsel %vm640_vm3, %v627_v36, %v615_v38  ;;  %v648_v22 = vsel %vm640_vm3, %v636_v18, %v621_v37 }
  0x92   : > { %v657_v42 = vrot.slane %v642_v39, 4  ;;  %v662_v41 = vrot.slane %v648_v22, 4 }
  0x94   : > { %v604_v43 = vpop.permute.xlu0 %603  ;;  %v623_v46 = vpop.permute.xlu1 %622  ;;  %v659_v4 = vsel %vm241_vm0, %v657_v42, %v658_v40 }
  0x95   : > { %666 = vrot.lane.b32.xlu0 %v659_v4, %s1353_s8  ;;  %v650_v5 = vsel %vm640_vm3, %v639_v44, %v623_v46  ;;  %v633_v48 = vsel %vm624_vm15, %v519_v32, %v604_v43 }
  0x96   : > { %v664_v47 = vrot.slane %v650_v5, 4  ;;  %680 = vrot.lane.b32.xlu1 %v650_v5, %s1352_s21 }
  0x98   : > { %v619_v49 = vpop.permute.xlu1 %618  ;;  %v665_v35 = vsel %vm241_vm0, %v662_v41, %v664_v47 }
  0x99   : > { %672 = vrot.lane.b32.xlu0 %v665_v35, %s1353_s8  ;;  %v646_v29 = vsel %vm640_vm3, %v633_v48, %v619_v49 }
  0x9a   : > { %v660_v51 = vrot.slane %v646_v29, 4  ;;  %676 = vrot.lane.b32.xlu1 %v646_v29, %s1352_s21 }
  0x9c   : > { %v661_v15 = vsel %vm241_vm0, %v658_v40, %v660_v51  ;;  %v663_v1 = vsel %vm241_vm0, %v660_v51, %v662_v41  ;;  %vm1036_vm0 = vcmask 257024  }
  0x9d   : > { %668 = vrot.lane.b32.xlu0 %v661_v15, %s1353_s8 }
  0x9e   : > { %678 = vrot.lane.b32.xlu1 %v648_v22, %s1352_s21 }
  0xa1   : > { %670 = vrot.lane.b32.xlu0 %v663_v1, %s1353_s8 }
 0x100   : > { %v675_v7 = vpop.permute.xlu1 %674 }
 0x107   : > { %v667_v23 = vpop.permute.xlu0 %666 }
 0x108   : > { %v681_v52 = vpop.permute.xlu1 %680  ;;  %v696_v53 = vsel %vm640_vm3, %v667_v23, %v675_v7  ;;  %v684_v6 = vsel %vm682_vm2, %v642_v39, %v667_v23 }
 0x109   : > { %898 = vmatprep.mubr.bf16.mxu0 %v696_v53 }
 0x10a   : > { %899 = vmatmul.mubr.bf16.vlgmr.msra.gmra.mrb[0].mxu0 %v684_v6 }
 0x10b   : > { %v673_v45 = vpop.permute.xlu0 %672 }
 0x10c   : > { %v705_v54 = vsel %vm640_vm3, %v673_v45, %v681_v52  ;;  %v693_v55 = vsel %vm682_vm2, %v648_v22, %v673_v45  ;;  %v677_v57 = vpop.permute.xlu1 %676 }
 0x10d   : > { %922 = vmatprep.mubr.bf16.mxu1 %v705_v54 }
 0x10e   : > { %923 = vmatmul.mubr.bf16.vlgmr.msra.gmra.mrb[0].mxu1 %v693_v55 }
 0x10f   : > { %1248 = vmatpush3.bf16.msra.mxu1 %v1324_v34  ;;  %1251 = vmatprep.mubr.msk.bf16.mxu1 %vm624_vm15, %v675_v7  ;;  %v669_v58 = vpop.permute.xlu0 %668 }
 0x110   : > { %v699_v59 = vsel %vm640_vm3, %v669_v58, %v677_v57  ;;  %1249 = vmatprep.subr.bf16.mxu1 %v1325_v56  ;;  %v687_v60 = vsel %vm682_vm2, %v644_v14, %v669_v58  ;;  %v679_v61 = vpop.permute.xlu1 %678 }
 0x111   : > { %906 = vmatprep.mubr.bf16.mxu0 %v699_v59 }
 0x112   : > { %907 = vmatmul.mubr.bf16.gmra.mrb[4].mxu0 %v687_v60 }
 0x113   : > { %1250 = vmatpush3.bf16.msra.mxu1 %v1325_v56  ;;  %v671_v16 = vpop.permute.xlu0 %670 }
 0x114   : > { %v702_v24 = vsel %vm640_vm3, %v671_v16, %v679_v61  ;;  %v690_v50 = vsel %vm682_vm2, %v646_v29, %v671_v16 }
 0x115   : > { %914 = vmatprep.mubr.bf16.mxu0 %v702_v24 }
 0x116   : > { %1252 = vmatmul.mubr.msk.bf16.vlgmr.msra.gmra.mrb[4].mxu1 %vm624_vm15, %v677_v57 }
 0x117   : > { %1255 = vmatprep.mubr.msk.bf16.mxu1 %vm624_vm15, %v679_v61 }
 0x11a   : > { %915 = vmatmul.mubr.bf16.gmra.mrb[8].mxu0 %v690_v50 }
 0x11e   : > { %1256 = vmatmul.mubr.msk.bf16.gmra.mrb[8].mxu1 %vm624_vm15, %v681_v52 }
 0x1dd   : > { %v1217_v62 = vpop.f32.mrb[0].mxu0 }
 0x1de   : > { %v1218_v63 = vpop.f32.mrb[1].mxu0 }
 0x1df   : > { %v1219_v0 = vadd.f32 %v1218_v63, %v1217_v62  ;;  %v1220_v8 = vpop.f32.mrb[2].mxu0 }
 0x1e0   : > { %v1221_v12 = vpop.f32.mrb[3].mxu0 }
 0x1e1   : > { %v1222_v19 = vadd.f32 %v1221_v12, %v1220_v8  ;;  %v1235_v9 = vpop.f32.mrb[0].mxu1  ;;  %v901_v3 = vadd.f32 %v1219_v0, %v1158_v27 }
 0x1e2   : > { %v1236_v13 = vpop.f32.mrb[1].mxu1 }
 0x1e3   : > { %v1237_v17 = vadd.f32 %v1236_v13, %v1235_v9  ;;  %v1238_v32 = vpop.f32.mrb[2].mxu1  ;;  %v904_v38 = vadd.f32 %v1222_v19, %v1158_v27 }
 0x1e4   : > { %v1239_v20 = vpop.f32.mrb[3].mxu1 }
 0x1e5   : > { %v1240_v21 = vadd.f32 %v1239_v20, %v1238_v32  ;;  %v1223_v25 = vpop.f32.mrb[4].mxu0  ;;  %v925_v35 = vadd.f32 %v1237_v17, %v1158_v27 }
 0x1e6   : > { %v1224_v26 = vpop.f32.mrb[5].mxu0 }
 0x1e7   : > { %v1225_v28 = vadd.f32 %v1224_v26, %v1223_v25  ;;  %v1226_v30 = vpop.f32.mrb[6].mxu0  ;;  %v928_v53 = vadd.f32 %v1240_v21, %v1158_v27 }
 0x1e8   : > { %v1227_v2 = vpop.f32.mrb[7].mxu0 }
 0x1e9   : > { %v1228_v11 = vadd.f32 %v1227_v2, %v1226_v30  ;;  %v909_v31 = vadd.f32 %v1225_v28, %v1158_v27  ;;  %v1253_v33 = vpop.f32.mrb[4].mxu1 }
 0x1ea   : > { %v965_v10 = vpop.f32.mrb[5].mxu1 }
 0x1eb   : > { %v974_v14 = vadd.f32 %v1253_v33, %v909_v31  ;;  %v966_v34 = vadd.f32 %v965_v10, %v901_v3  ;;  %v912_v36 = vadd.f32 %v1228_v11, %v1158_v27  ;;  %v1254_v37 = vpop.f32.mrb[6].mxu1 }
 0x1ec   : > { %v968_v39 = vpop.f32.mrb[7].mxu1 }
 0x1ed   : > { %v998_v18 = vmax.f32 %v974_v14, 0.0  ;;  %v996_v40 = vmax.f32 %v966_v34, 0.0  ;;  %v977_v42 = vadd.f32 %v1254_v37, %v912_v36  ;;  %v969_v22 = vadd.f32 %v968_v39, %v904_v38  ;;  %v1229_v43 = vpop.f32.mrb[8].mxu0 }
 0x1ee   : > { %v1230_v44 = vpop.f32.mrb[9].mxu0 }
 0x1ef   : > { %v1195_v46 = vpack.c.bf16 %v998_v18, %v998_v18  ;;  %v1193_v4 = vpack.c.bf16 %v996_v40, %v996_v40  ;;  %v999_v5 = vmax.f32 %v977_v42, 0.0  ;;  %v997_v41 = vmax.f32 %v969_v22, 0.0  ;;  %v1232_v47 = vpop.f32.mrb[10].mxu0 }
 0x1f0   : > { %v1231_v48 = vadd.f32 %v1230_v44, %v1229_v43  ;;  %v1233_v49 = vpop.f32.mrb[11].mxu0 }
 0x1f1   : > { %1039 = vst.msk [vmem:[%s1790_s19 + $0x8] sm:$0xf] %vm1036_vm0, %v1195_v46  ;;  %1037 = vst.msk [vmem:[%s1790_s19] sm:$0xf] %vm1036_vm0, %v1193_v4  ;;  %v1196_v29 = vpack.c.bf16 %v999_v5, %v999_v5  ;;  %v1194_v51 = vpack.c.bf16 %v997_v41, %v997_v41  ;;  %v1234_v15 = vadd.f32 %v1233_v49, %v1232_v47  ;;  %v1257_v1 = vpop.f32.mrb[8].mxu1 }
 0x1f2   : > { %v990_v7 = vadd.f32 %v1257_v1, %v925_v35  ;;  %v917_v23 = vadd.f32 %v1231_v48, %v1158_v27  ;;  %v981_v52 = vpop.f32.mrb[9].mxu1 }
 0x1f3   : > { %1040 = vst.msk [vmem:[%s1790_s19 + $0xc] sm:$0xf] %vm1036_vm0, %v1196_v29  ;;  %1038 = vst.msk [vmem:[%s1790_s19 + $0x4] sm:$0xf] %vm1036_vm0, %v1194_v51  ;;  %v1258_v6 = vpop.f32.mrb[10].mxu1  ;;  %v920_v45 = vadd.f32 %v1234_v15, %v1158_v27 }
 0x1f4   : > { %v1002_v54 = vmax.f32 %v990_v7, 0.0  ;;  %v982_v55 = vadd.f32 %v981_v52, %v917_v23  ;;  %v993_v56 = vadd.f32 %v1258_v6, %v928_v53  ;;  %v984_v57 = vpop.f32.mrb[11].mxu1 }
 0x1f5   : > { %v985_v58 = vadd.f32 %v984_v57, %v920_v45 }
 0x1f6   : > { %v1199_v59 = vpack.c.bf16 %v1002_v54, %v1002_v54  ;;  %v1000_v60 = vmax.f32 %v982_v55, 0.0  ;;  %v1003_v61 = vmax.f32 %v993_v56, 0.0 }
 0x1f7   : > { %v1001_v16 = vmax.f32 %v985_v58, 0.0 }
 0x1f8   : > { %1043 = vst.msk [vmem:[%s1790_s19 + $0x18] sm:$0xf] %vm1036_vm0, %v1199_v59  ;;  %v1197_v24 = vpack.c.bf16 %v1000_v60, %v1000_v60  ;;  %v1200_v50 = vpack.c.bf16 %v1003_v61, %v1003_v61 }
 0x1f9   : > { %v1198_v62 = vpack.c.bf16 %v1001_v16, %v1001_v16 }
 0x1fa   : > { %1041 = vst.msk [vmem:[%s1790_s19 + $0x10] sm:$0xf] %vm1036_vm0, %v1197_v24  ;;  %1044 = vst.msk [vmem:[%s1790_s19 + $0x1c] sm:$0xf] %vm1036_vm0, %v1200_v50 }
 0x1fb   : > { %1042 = vst.msk [vmem:[%s1790_s19 + $0x14] sm:$0xf] %vm1036_vm0, %v1198_v62 }
 0x1fc PF: > { %s13_s14 = sadd.s32 1, %s1348_s14   ;;  %s1853_s12 = smov %s1344_s13 }
 0x1fd   : > { %p10_p5 = scmp.ge.s32.totalorder %s13_s14, 4   ;;  %s1854_s13 = smov %s1856_s15 }
 0x1ff   :  { %12 = sbr.rel (!%p10_p5) target bundleno = 2 (0x2), region = 62 }

// kernel: refinement_net_forward.16
= control target key start
LH: loop header
LB: loop body
LE: loop exit
PB: predicated region body
PF: predicated region fallthrough
CT: control target
= control target key end

     0   :  { %s1144_s12 = smov 0   ;;  %s1146_s13 = smov 0   ;;  %s1354_s0 = inlined_call_operand.vmem [shape: bf16[2,16,64], index: 0, kind: input, shape index: {}]   ;;  %s1355_s1 = inlined_call_operand.vmem [shape: bf16[576,64], index: 1, kind: input, shape index: {}]   ;;  %s1356_s2 = inlined_call_operand.vmem [shape: f32[1,64], index: 2, kind: input, shape index: {}]   ;;  %s1357_s3 = inlined_call_operand.vmem [shape: bf16[2,1,16,64], index: 3, kind: output, shape index: {}]  }
   0x1   :  { %s1148_s14 = smov 0  }
   0x2 LB: > { %s25_s15 = sadd.s32 1, %s1114_s13  ;;  %p914_p0 = scmp.ge.s32.totalorder %s1118_s14, 1  ;;  %s1118_s14 = sphi %s1148_s14, %s13_s14   ;;  %s1114_s13 = sphi %s1146_s13, %s1363_s13   ;;  %s1110_s12 = sphi %s1144_s12, %s1362_s12  }
   0x3   : > { %p27_p1 = scmp.ge.s32.totalorder %s25_s15, 2  ;;  %p158_p2 = scmp.lt.s32.totalorder %s1118_s14, 3 }
   0x5   : > { %s1365_s15 = smov (%p27_p1, %s25_s15), 0  ;;  %p159_p3 = pnand %p914_p0, %p158_p2 }
   0x6   : > { %p191_p4 = scmp.lt.s32.totalorder (!%p159_p3), %s1110_s12, 1  ;;  %vm220_vm0 = vcmask (!%p159_p3), 1041408   ;;  %v1060_v4 = vld [vmem:[%s1355_s1 + $0x40] sm:$0xff] (!%p159_p3)   ;;  %s1120_s24 = smov (!%p159_p3), 64   ;;  %v1062_v10 = vld [vmem:[%s1355_s1 + $0x48] sm:$0xff] (!%p159_p3)   ;;  %v1066_v20 = vld [vmem:[%s1355_s1 + $0x50] sm:$0xff] (!%p159_p3)   ;;  %v225_v46 = vlaneseq (!%p159_p3) }
   0x7   : > { %162 = sbr.rel (%p159_p3) target bundleno = 498 (0x1f2), region = 32  ;;  %v1061_v5 = vld [vmem:[%s1355_s1] sm:$0xff] (!%p159_p3)   ;;  %vm284_vm1 = vsmask.f32 (!%p159_p3), 7424  ;;  %970 = vmatprep.subr.bf16.mxu0 (!%p159_p3), %v1060_v4  ;;  %v1064_v14 = vld [vmem:[%s1355_s1 + $0x8] sm:$0xff] (!%p159_p3)   ;;  %v1068_v24 = vld [vmem:[%s1355_s1 + $0x10] sm:$0xff] (!%p159_p3)  }
   0x8   : > { %v1063_v11 = vld [vmem:[%s1355_s1 + $0xc0] sm:$0xff] (!%p159_p3)   ;;  %971 = vmatpush3.bf16.msra.mxu0 (!%p159_p3), %v1061_v5  ;;  %vm265_vm2 = vsmask.f32 (!%p159_p3), 256  ;;  %v1067_v21 = vld [vmem:[%s1355_s1 + $0xc8] sm:$0xff] (!%p159_p3)   ;;  %v1070_v26 = vld [vmem:[%s1355_s1 + $0x58] sm:$0xff] (!%p159_p3)   ;;  %v226_v47 = vshrl.u32 (!%p159_p3), %v225_v46, 7 }
   0x9   : > { %992 = vmatprep.subr.bf16.mxu1 (!%p159_p3), %v1063_v11  ;;  %972 = vmatprep.subr.bf16.mxu0 (!%p159_p3), %v1062_v10  ;;  %v1065_v16 = vld [vmem:[%s1355_s1 + $0x80] sm:$0xff] (!%p159_p3)   ;;  %v1069_v25 = vld [vmem:[%s1355_s1 + $0x88] sm:$0xff] (!%p159_p3)   ;;  %v1071_v27 = vld [vmem:[%s1355_s1 + $0xd0] sm:$0xff] (!%p159_p3)   ;;  %v1121_v53 = vmov (!%p159_p3), 0   ;;  %vm281_vm15 = vcmask (!%p159_p3), 1040384  }
   0xa   : > { %993 = vmatpush3.bf16.msra.mxu1 (!%p159_p3), %v1065_v16  ;;  %v1072_v28 = vld [vmem:[%s1355_s1 + $0x18] sm:$0xff] (!%p159_p3)   ;;  %v1073_v29 = vld [vmem:[%s1355_s1 + $0x90] sm:$0xff] (!%p159_p3)   ;;  %v1074_v30 = vld [vmem:[%s1355_s1 + $0x60] sm:$0xff] (!%p159_p3)   ;;  %v227_v48 = vadd.s32 (!%p159_p3), 8, %v226_v47  ;;  %v233_v49 = vand.u32 (!%p159_p3), 3, %v226_v47  ;;  %v228_v50 = vadd.s32 (!%p159_p3), 16, %v226_v47 }
   0xb   : > { %994 = vmatprep.subr.bf16.mxu1 (!%p159_p3), %v1067_v21  ;;  %v1075_v31 = vld [vmem:[%s1355_s1 + $0xd8] sm:$0xff] (!%p159_p3)   ;;  %v1076_v32 = vld [vmem:[%s1355_s1 + $0x20] sm:$0xff] (!%p159_p3)   ;;  %v1078_v34 = vld [vmem:[%s1355_s1 + $0x68] sm:$0xff] (!%p159_p3)  }
   0xc   : > { %973 = vmatpush3.bf16.msra.mxu0 (!%p159_p3), %v1064_v14  ;;  %v1077_v33 = vld [vmem:[%s1355_s1 + $0x98] sm:$0xff] (!%p159_p3)   ;;  %v1079_v35 = vld [vmem:[%s1355_s1 + $0xe0] sm:$0xff] (!%p159_p3)   ;;  %v1080_v36 = vld [vmem:[%s1355_s1 + $0x28] sm:$0xff] (!%p159_p3)   ;;  %v240_v51 = vand.u32 (!%p159_p3), 3, %v227_v48  ;;  %vm296_vm3 = vcmp.ne.s32.totalorder (!%p159_p3), %v233_v49, 0  ;;  %v247_v52 = vand.u32 (!%p159_p3), 3, %v228_v50 }
   0xd   : > { %974 = vmatprep.subr.bf16.mxu0 (!%p159_p3), %v1066_v20  ;;  %v1081_v37 = vld [vmem:[%s1355_s1 + $0xa0] sm:$0xff] (!%p159_p3)   ;;  %v1082_v38 = vld [vmem:[%s1355_s1 + $0x70] sm:$0xff] (!%p159_p3)   ;;  %v1083_v39 = vld [vmem:[%s1355_s1 + $0xe8] sm:$0xff] (!%p159_p3)   ;;  %vm320_vm5 = vcmp.ne.s32.totalorder (!%p159_p3), %v233_v49, 3 }
   0xe   : > { %s1367_s12 = smov (!%p191_p4, %s1110_s12), 1  ;;  %995 = vmatpush3.bf16.msra.mxu1 %v1069_v25  ;;  %v1084_v40 = vld [vmem:[%s1355_s1 + $0x30] sm:$0xff]   ;;  %v1085_v41 = vld [vmem:[%s1355_s1 + $0xa8] sm:$0xff]   ;;  %v1086_v42 = vld [vmem:[%s1355_s1 + $0x78] sm:$0xff]   ;;  %vm297_vm4 = vcmp.ne.s32.totalorder %v240_v51, 0  ;;  %vm321_vm7 = vcmp.ne.s32.totalorder %v240_v51, 3 }
   0xf   : > { %s966_s16 = sshll.u32 %s1367_s12, 3  ;;  %996 = vmatprep.subr.bf16.mxu1 %v1071_v27  ;;  %v1087_v43 = vld [vmem:[%s1355_s1 + $0xf0] sm:$0xff]   ;;  %v1088_v44 = vld [vmem:[%s1355_s1 + $0x38] sm:$0xff]   ;;  %vm305_vm6 = vmpackc.low %vm296_vm3, %vm296_vm3  ;;  %vm298_vm9 = vcmp.ne.s32.totalorder %v247_v52, 0  ;;  %vm322_vm11 = vcmp.ne.s32.totalorder %v247_v52, 3 }
  0x10   : > { %s198_s19 = scalar_lea.vmem %s1354_s0, %s966_s16  ;;  %975 = vmatpush3.bf16.msra.mxu0 %v1068_v24  ;;  %v1089_v45 = vld [vmem:[%s1355_s1 + $0xb0] sm:$0xff]   ;;  %vm306_vm8 = vmpackc.low %vm297_vm4, %vm297_vm4  ;;  %v308_v54 = vsel %vm305_vm6, 65537, %v1121_v53  ;;  %v1092_v27 = vld [vmem:[%s1355_s1 + $0x100] sm:$0xff]   ;;  %s208_s6 = scalar_lea.vmem %s1357_s3, %s966_s16 }
  0x11   : > { %v1059_v0 = vld [vmem:[%s198_s19] sm:$0xff]   ;;  %976 = vmatprep.subr.bf16.mxu0 %v1070_v26  ;;  %vm329_vm10 = vmpackc.low %vm320_vm5, %vm320_vm5  ;;  %v309_v55 = vsel %vm306_vm8, 65537, %v1121_v53  ;;  %vm350_vm8 = vcmask 523264  }
  0x12   : > { %v219_v1 = vrot.slane %v1059_v0, 6  ;;  %997 = vmatpush3.bf16.msra.mxu1 %v1073_v29  ;;  %vm330_vm12 = vmpackc.low %vm321_vm7, %vm321_vm7  ;;  %v332_v56 = vsel %vm329_vm10, 65537, %v1121_v53  ;;  %v920_v61 = vcombine.low %v308_v54, %v309_v55  ;;  %vm1123_vm10 = vmmov 0  }
  0x13   : > { %998 = vmatprep.subr.bf16.mxu1 %v1075_v31  ;;  %vm307_vm13 = vmpackc.low %vm298_vm9, %vm298_vm9  ;;  %v333_v57 = vsel %vm330_vm12, 65537, %v1121_v53  ;;  %vm362_vm9 = vcmask 1045504  }
  0x14   : > { %v1170_v2 = vsel %vm220_vm0, 0, %v219_v1  ;;  %v1172_v3 = vsel %vm220_vm0, %v219_v1, 0  ;;  %977 = vmatpush3.bf16.msra.mxu0 %v1072_v28  ;;  %vm331_vm14 = vmpackc.low %vm322_vm11, %vm322_vm11  ;;  %v310_v58 = vsel %vm307_vm13, 65537, %v1121_v53  ;;  %vm292_vm0 = vcmask 1043456  }
  0x15   : > { %346 = vrot.lane.b32.xlu0 %v1170_v2, %s1120_s24  ;;  %v266_v6 = vshrl.u32 %v1170_v2, 16  ;;  %v269_v7 = vshll.u32 %v1170_v2, 16  ;;  %v272_v8 = vshrl.u32 %v1172_v3, 16  ;;  %v275_v9 = vshll.u32 %v1172_v3, 16  ;;  %978 = vmatprep.subr.bf16.mxu0 %v1074_v30  ;;  %vm1292_vm3 = vmand %vm281_vm15, %vm265_vm2  ;;  %v1090_v2 = vld [vmem:[%s1355_s1 + $0xf8] sm:$0xff]   ;;  %v1093_v30 = vld [vmem:[%s1355_s1 + $0x108] sm:$0xff]  }
  0x16   : > { %999 = vmatpush3.bf16.msra.mxu1 %v1077_v33  ;;  %v334_v59 = vsel %vm331_vm14, 65537, %v1121_v53  ;;  %v921_v0 = vcombine.low %v310_v58, %v310_v58  ;;  %v922_v1 = vcombine.low %v332_v56, %v333_v57  ;;  %vm818_vm11 = vcmask 519168  }
  0x17   : > { %v285_v12 = vrot.slane %v269_v7, 1  ;;  %v274_v13 = vrot.slane %v272_v8, 7  ;;  %v1199_v15 = vrot.slane %v266_v6, 7  ;;  %v1204_v19 = vrot.slane %v275_v9, 1  ;;  %1000 = vmatprep.subr.bf16.mxu1 %v1079_v35  ;;  %v1095_v35 = vld [vmem:[%s1355_s1 + $0x118] sm:$0xff]  }
  0x18   : > { %979 = vmatpush3.bf16.msra.mxu0 %v1076_v32  ;;  %v923_v4 = vcombine.low %v334_v59, %v334_v59  ;;  %vm317_vm5 = vcmp.ne.s16.totalorder %v921_v0, 0  ;;  %vm340_vm6 = vcmp.ne.s16.totalorder %v922_v1, 0  ;;  %v1094_v32 = vld [vmem:[%s1355_s1 + $0x110] sm:$0xff]  }
  0x19   : > { %v286_v17 = vor.u32 %v285_v12, %v266_v6  ;;  %v277_v18 = vor.u32 %v275_v9, %v274_v13  ;;  %348 = vrot.lane.b32.xlu0 %v1172_v3, %s1120_s24  ;;  %980 = vmatprep.subr.bf16.mxu0 %v1078_v34  ;;  %v271_v60 = vor.u32 %v269_v7, %v1199_v15  ;;  %v1091_v6 = vld [vmem:[%s1355_s1 + $0xb8] sm:$0xff]   ;;  %v1122_v7 = vmov 0.0  }
  0x1a   : > { %1001 = vmatpush3.bf16.msra.mxu1 %v1081_v37  ;;  %v289_v63 = vor.u32 %v1204_v19, %v272_v8  ;;  %vm341_vm7 = vcmp.ne.s16.totalorder %v923_v4, 0 }
  0x1b   : > { %v1216_v22 = vsel %vm284_vm1, %v286_v17, %v1204_v19  ;;  %v1220_v23 = vsel %vm265_vm2, %v1199_v15, %v277_v18  ;;  %1002 = vmatprep.subr.bf16.mxu1 %v1083_v39  ;;  %vm293_vm1 = vsmask.f32 3328  ;;  %vm316_vm2 = vcmp.ne.s16.totalorder %v920_v61, 0 }
  0x1c   : > { %981 = vmatpush3.bf16.msra.mxu0 %v1080_v36  ;;  %vm1303_vm4 = vmand %vm292_vm0, %vm293_vm1  ;;  %v283_v3 = vsel %vm1292_vm3, 0, %v271_v60  ;;  %v319_v11 = vsel %vm317_vm5, %v1220_v23, 0  ;;  %v342_v12 = vsel %vm340_vm6, %v1216_v22, 0 }
  0x1d   : > { %982 = vmatprep.subr.bf16.mxu0 %v1082_v38  ;;  %v295_v8 = vsel %vm1303_vm4, %v289_v63, 0  ;;  %v318_v10 = vsel %vm316_vm2, %v283_v3, 0  ;;  %v366_v17 = vrot.slane %v342_v12, 2  ;;  %v379_v33 = vrot.slane %v342_v12, 4  ;;  %v924_v38 = vld [vmem:[%s1356_s2] ss:$0 sm:$0xff] }
  0x1e   : > { %1003 = vmatpush3.bf16.msra.mxu1 %v1085_v41  ;;  %v343_v13 = vsel %vm341_vm7, %v295_v8, 0 }
  0x1f   : > { %1004 = vmatprep.subr.bf16.mxu1 %v1087_v43  ;;  %v367_v18 = vrot.slane %v343_v13, 2  ;;  %v380_v34 = vrot.slane %v343_v13, 4 }
  0x20   : > { %983 = vmatpush3.bf16.msra.mxu0 %v1084_v40 }
  0x21   : > { %984 = vmatprep.subr.bf16.mxu0 %v1086_v42  ;;  %v368_v22 = vsel %vm362_vm9, %v366_v17, %v367_v18  ;;  %v381_v36 = vsel %vm292_vm0, %v379_v33, %v380_v34 }
  0x22   : > { %1005 = vmatpush3.bf16.msra.mxu1 %v1089_v45 }
  0x23   : > { %1006 = vmatprep.subr.bf16.mxu1 %v1090_v2 }
  0x24   : > { %985 = vmatpush3.bf16.msra.mxu0 %v1088_v44 }
  0x25   : > { %1019 = vmatprep.subr.bf16.mxu0 %v1122_v7 }
  0x26   : > { %1007 = vmatpush3.bf16.msra.mxu1 %v1091_v6 }
  0x87   : > { %v347_v9 = vpop.permute.xlu0 %346 }
  0x88   : > { %v353_v14 = vsel %vm350_vm8, %v318_v10, %v347_v9 }
  0x89   : > { %v363_v19 = vrot.slane %v353_v14, 2  ;;  %v376_v20 = vrot.slane %v353_v14, 4 }
  0x8b   : > { %v349_v15 = vpop.permute.xlu0 %348 }
  0x8c   : > { %v357_v16 = vsel %vm350_vm8, %v319_v11, %v349_v15 }
  0x8d   : > { %v364_v21 = vrot.slane %v357_v16, 2  ;;  %v377_v24 = vrot.slane %v357_v16, 4 }
  0x8f   : > { %v378_v25 = vsel %vm292_vm0, %v376_v20, %v377_v24  ;;  %v365_v26 = vsel %vm362_vm9, %v363_v19, %v364_v21 }
  0x90   : > { %758 = vmatprep.mubr.bf16.mxu1 %v378_v25  ;;  %369 = vrot.lane.b32.xlu1 %v365_v26, %s1120_s24 }
  0x94   : > { %371 = vrot.lane.b32.xlu1 %v368_v22, %s1120_s24 }
 0x102   : > { %v370_v23 = vpop.permute.xlu1 %369 }
 0x103   : > { %v385_v28 = vsel %vm350_vm8, %v342_v12, %v370_v23 }
 0x104   : > { %717 = vmatprep.mubr.bf16.mxu0 %v385_v28 }
 0x105   : > { %718 = vmatmul.mubr.bf16.vlgmr.msra.gmra.mrb[0].mxu0 %v353_v14 }
 0x106   : > { %1020 = vmatpush3.bf16.msra.mxu0 %v1092_v27  ;;  %v372_v29 = vpop.permute.xlu1 %371  ;;  %1027 = vmatprep.mubr.msk.bf16.mxu0 %vm1123_vm10, %v1122_v7 }
 0x107   : > { %v374_v31 = vsel %vm350_vm8, %v370_v23, %v372_v29  ;;  %1021 = vmatprep.subr.bf16.mxu0 %v1122_v7 }
 0x108   : > { %759 = vmatmul.mubr.bf16.vlgmr.msra.gmra.mrb[0].mxu1 %v374_v31 }
 0x10a   : > { %1022 = vmatpush3.bf16.msra.mxu0 %v1093_v30 }
 0x10b   : > { %1023 = vmatprep.subr.bf16.mxu0 %v1122_v7 }
 0x10e   : > { %1024 = vmatpush3.bf16.msra.mxu0 %v1094_v32 }
 0x10f   : > { %1025 = vmatprep.subr.bf16.mxu0 %v1122_v7 }
 0x112   : > { %1026 = vmatpush3.bf16.msra.mxu0 %v1095_v35 }
 0x115   : > { %1028 = vmatmul.mubr.msk.bf16.vlgmr.msra.gmra.mrb[4].mxu0 %vm350_vm8, %v381_v36 }
 0x1d8   : > { %v986_v37 = vpop.f32.mrb[0].mxu0 }
 0x1d9   : > { %v987_v39 = vpop.f32.mrb[1].mxu0 }
 0x1da   : > { %v988_v40 = vadd.f32 %v987_v39, %v986_v37  ;;  %v989_v41 = vpop.f32.mrb[2].mxu0 }
 0x1db   : > { %v990_v42 = vpop.f32.mrb[3].mxu0  ;;  %v1008_v43 = vpop.f32.mrb[0].mxu1 }
 0x1dc   : > { %v720_v44 = vadd.f32 %v988_v40, %v924_v38  ;;  %v991_v45 = vadd.f32 %v990_v42, %v989_v41  ;;  %v1009_v46 = vpop.f32.mrb[1].mxu1 }
 0x1dd   : > { %v1010_v47 = vadd.f32 %v1009_v46, %v1008_v43  ;;  %v1011_v48 = vpop.f32.mrb[2].mxu1 }
 0x1de   : > { %v723_v49 = vadd.f32 %v991_v45, %v924_v38  ;;  %v1012_v50 = vpop.f32.mrb[3].mxu1 }
 0x1df   : > { %v1013_v51 = vadd.f32 %v1012_v50, %v1011_v48  ;;  %v761_v52 = vadd.f32 %v1010_v47, %v720_v44 }
 0x1e1   : > { %v764_v53 = vadd.f32 %v1013_v51, %v723_v49 }
 0x1e8   : > { %v801_v54 = vpop.f32.mrb[4].mxu0 }
 0x1e9   : > { %v802_v55 = vadd.f32 %v801_v54, %v761_v52  ;;  %v1029_v56 = vpop.f32.mrb[5].mxu0 }
 0x1ea   : > { %v804_v57 = vpop.f32.mrb[6].mxu0 }
 0x1eb   : > { %v808_v58 = vmax.f32 %v802_v55, 0.0  ;;  %v805_v59 = vadd.f32 %v804_v57, %v764_v53  ;;  %v1030_v60 = vpop.f32.mrb[7].mxu0 }
 0x1ed   : > { %v968_v61 = vpack.c.bf16 %v808_v58, %v808_v58  ;;  %v809_v62 = vmax.f32 %v805_v59, 0.0 }
 0x1ef   : > { %819 = vst.msk [vmem:[%s208_s6] sm:$0xf] %vm818_vm11, %v968_v61  ;;  %v969_v63 = vpack.c.bf16 %v809_v62, %v809_v62 }
 0x1f1   : > { %820 = vst.msk [vmem:[%s208_s6 + $0x4] sm:$0xf] %vm818_vm11, %v969_v63 }
 0x1f2 PF: > { %s13_s14 = sadd.s32 1, %s1118_s14   ;;  %s1362_s12 = smov %s1114_s13 }
 0x1f3   : > { %p10_p5 = scmp.ge.s32.totalorder %s13_s14, 4   ;;  %s1363_s13 = smov %s1365_s15 }
 0x1f5   :  { %12 = sbr.rel (!%p10_p5) target bundleno = 2 (0x2), region = 62 }

// kernel: refinement_net_forward.15
= control target key start
LH: loop header
LB: loop body
LE: loop exit
PB: predicated region body
PF: predicated region fallthrough
CT: control target
= control target key end

     0   :  { %s926_s12 = smov 0   ;;  %s928_s13 = smov 0   ;;  %s1046_s0 = inlined_call_operand.vmem [shape: bf16[2,32,72], index: 0, kind: input, shape index: {}]   ;;  %s1047_s1 = inlined_call_operand.vmem [shape: bf16[324,64], index: 1, kind: input, shape index: {}]   ;;  %s1048_s2 = inlined_call_operand.vmem [shape: f32[1,64], index: 2, kind: input, shape index: {}]   ;;  %s1049_s3 = inlined_call_operand.vmem [shape: bf16[2,1,16,64], index: 3, kind: output, shape index: {}]  }
   0x1   :  { %s930_s14 = smov 0  }
   0x2 LB: > { %s25_s15 = sadd.s32 1, %s891_s13  ;;  %p736_p0 = scmp.ge.s32.totalorder %s895_s14, 1  ;;  %s895_s14 = sphi %s930_s14, %s13_s14   ;;  %s891_s13 = sphi %s928_s13, %s1051_s13   ;;  %s887_s12 = sphi %s926_s12, %s1050_s12  }
   0x3   : > { %p27_p1 = scmp.ge.s32.totalorder %s25_s15, 2  ;;  %p158_p2 = scmp.lt.s32.totalorder %s895_s14, 3 }
   0x5   : > { %s1053_s15 = smov (%p27_p1, %s25_s15), 0  ;;  %p159_p3 = pnand %p736_p0, %p158_p2 }
   0x6   : > { %p191_p4 = scmp.lt.s32.totalorder (!%p159_p3), %s887_s12, 1  ;;  %vm226_vm0 = vcmask (!%p159_p3), 1041408   ;;  %vm240_vm1 = vcmask (!%p159_p3), 1043456   ;;  %vm243_vm2 = vcmask (!%p159_p3), 1045504   ;;  %v852_v20 = vld [vmem:[%s1047_s1 + $0x40] sm:$0xff] (!%p159_p3)   ;;  %v854_v22 = vld [vmem:[%s1047_s1 + $0x48] sm:$0xff] (!%p159_p3)   ;;  %v257_v50 = vlaneseq (!%p159_p3) }
   0x7   : > { %162 = sbr.rel (%p159_p3) target bundleno = 497 (0x1f1), region = 32  ;;  %v853_v21 = vld [vmem:[%s1047_s1] sm:$0xff] (!%p159_p3)   ;;  %s897_s26 = smov (!%p159_p3), 36   ;;  %v898_v26 = vmov (!%p159_p3), 0.0   ;;  %775 = vmatprep.subr.bf16.mxu0 (!%p159_p3), %v852_v20  ;;  %v855_v33 = vld [vmem:[%s1047_s1 + $0x8] sm:$0xff] (!%p159_p3)   ;;  %v856_v35 = vld [vmem:[%s1047_s1 + $0x50] sm:$0xff] (!%p159_p3)  }
   0x8   : > { %803 = vmatprep.subr.bf16.mxu1 (!%p159_p3), %v898_v26  ;;  %v858_v29 = vld [vmem:[%s1047_s1 + $0x80] sm:$0xff] (!%p159_p3)   ;;  %776 = vmatpush3.bf16.msra.mxu0 (!%p159_p3), %v853_v21  ;;  %v861_v37 = vld [vmem:[%s1047_s1 + $0x88] sm:$0xff] (!%p159_p3)   ;;  %s899_s8 = smov (!%p159_p3), 92   ;;  %v857_v40 = vld [vmem:[%s1047_s1 + $0x10] sm:$0xff] (!%p159_p3)   ;;  %s900_s25 = smov (!%p159_p3), 16   ;;  %v258_v51 = vshrl.u32 (!%p159_p3), %v257_v50, 7 }
   0x9   : > { %777 = vmatprep.subr.bf16.mxu0 (!%p159_p3), %v854_v22  ;;  %804 = vmatpush3.bf16.msra.mxu1 (!%p159_p3), %v858_v29  ;;  %v859_v41 = vld [vmem:[%s1047_s1 + $0x58] sm:$0xff] (!%p159_p3)   ;;  %v864_v43 = vld [vmem:[%s1047_s1 + $0x90] sm:$0xff] (!%p159_p3)   ;;  %v862_v44 = vld [vmem:[%s1047_s1 + $0x60] sm:$0xff] (!%p159_p3)   ;;  %vm901_vm7 = vmmov (!%p159_p3), 0   ;;  %v902_v59 = vmov (!%p159_p3), 0   ;;  %vm293_vm8 = vcmask (!%p159_p3), 1040384  }
   0xa   : > { %805 = vmatprep.subr.bf16.mxu1 (!%p159_p3), %v898_v26  ;;  %v860_v42 = vld [vmem:[%s1047_s1 + $0x18] sm:$0xff] (!%p159_p3)   ;;  %v863_v46 = vld [vmem:[%s1047_s1 + $0x20] sm:$0xff] (!%p159_p3)   ;;  %v865_v47 = vld [vmem:[%s1047_s1 + $0x68] sm:$0xff] (!%p159_p3)   ;;  %v259_v52 = vadd.s32 (!%p159_p3), 8, %v258_v51  ;;  %v264_v53 = vand.u32 (!%p159_p3), 3, %v258_v51  ;;  %813 = vmatprep.mubr.msk.bf16.mxu1 (!%p159_p3), %vm901_vm7, %v898_v26  ;;  %s904_s20 = smov (!%p159_p3), 88  }
   0xb   : > { %v867_v45 = vld [vmem:[%s1047_s1 + $0x98] sm:$0xff] (!%p159_p3)   ;;  %v866_v48 = vld [vmem:[%s1047_s1 + $0x28] sm:$0xff] (!%p159_p3)   ;;  %v868_v49 = vld [vmem:[%s1047_s1 + $0x70] sm:$0xff] (!%p159_p3)   ;;  %vm294_vm9 = vsmask.f32 (!%p159_p3), 256  ;;  %s905_s21 = smov (!%p159_p3), 124  }
   0xc   : > { %778 = vmatpush3.bf16.msra.mxu0 (!%p159_p3), %v855_v33  ;;  %v271_v54 = vand.u32 (!%p159_p3), 3, %v259_v52  ;;  %vm297_vm3 = vcmp.ne.s32.totalorder (!%p159_p3), %v264_v53, 0  ;;  %v869_v55 = vld [vmem:[%s1047_s1 + $0x30] sm:$0xff] (!%p159_p3)   ;;  %v870_v56 = vld [vmem:[%s1047_s1 + $0xa0] ss:$0 sps:$4 sm:$0x33] (!%p159_p3)   ;;  %vm295_vm10 = vmand (!%p159_p3), %vm293_vm8, %vm294_vm9 }
   0xd   : > { %779 = vmatprep.subr.bf16.mxu0 (!%p159_p3), %v856_v35  ;;  %806 = vmatpush3.bf16.msra.mxu1 (!%p159_p3), %v861_v37  ;;  %vm303_vm5 = vmpackc.low (!%p159_p3), %vm297_vm3, %vm297_vm3  ;;  %v546_v57 = vsel (!%p159_p3), %vm226_vm0, %v870_v56, 0  ;;  %v871_v58 = vld [vmem:[%s1047_s1 + $0x78] sm:$0xff] (!%p159_p3)   ;;  %vm359_vm12 = vcmask (!%p159_p3), 130048   ;;  %vm349_vm13 = vcmask (!%p159_p3), 293888   ;;  %vm362_vm14 = vcmask (!%p159_p3), 424960  }
   0xe   : > { %s1055_s12 = smov (!%p191_p4, %s887_s12), 1  ;;  %807 = vmatprep.subr.bf16.mxu1 %v898_v26  ;;  %vm298_vm4 = vcmp.ne.s32.totalorder %v271_v54, 0  ;;  %v305_v60 = vsel %vm303_vm5, 65537, %v902_v59  ;;  %v872_v62 = vld [vmem:[%s1047_s1 + $0x38] sm:$0xff]   ;;  %vm364_vm15 = vcmask 719872   ;;  %vm355_vm3 = vcmask 883712  }
   0xf   : > { %s771_s16 = sshll.u32 %s1055_s12, 4  ;;  %vm304_vm6 = vmpackc.low %vm298_vm4, %vm298_vm4  ;;  %s772_s24 = sshll.u32 %s1055_s12, 3  ;;  %vm640_vm4 = vcmask 519168  }
  0x10   : > { %s198_s19 = scalar_lea.vmem %s1046_s0, %s771_s16  ;;  %780 = vmatpush3.bf16.msra.mxu0 %v857_v40  ;;  %v306_v61 = vsel %vm304_vm6, 65537, %v902_v59  ;;  %s208_s27 = scalar_lea.vmem %s1049_s3, %s772_s24 }
  0x11   : > { %v850_v0 = vld [vmem:[%s198_s19] sm:$0xff]   ;;  %v851_v1 = vld [vmem:[%s198_s19 + $0x8] sm:$0xff]   ;;  %781 = vmatprep.subr.bf16.mxu0 %v859_v41  ;;  %808 = vmatpush3.bf16.msra.mxu1 %v864_v43  ;;  %v743_v63 = vcombine.low %v305_v60, %v306_v61  ;;  %s903_s19 = smov 108  }
  0x12   : > { %v227_v2 = vrot.slane %v850_v0, 6  ;;  %v228_v3 = vrot.slane %v851_v1, 6  ;;  %809 = vmatprep.subr.bf16.mxu1 %v898_v26 }
  0x13   : > { %vm310_vm11 = vcmp.ne.s16.totalorder %v743_v63, 0 }
  0x14   : > { %v229_v4 = vsel %vm226_vm0, %v227_v2, %v228_v3  ;;  %v233_v5 = vsel %vm226_vm0, 0, %v227_v2  ;;  %v252_v6 = vrot.slane %v228_v3, 2  ;;  %782 = vmatpush3.bf16.msra.mxu0 %v860_v42 }
  0x15   : > { %v235_v7 = vrot.slane %v233_v5, 2  ;;  %v237_v8 = vrot.slane %v229_v4, 6  ;;  %v246_v9 = vrot.slane %v233_v5, 4  ;;  %v236_v10 = vrot.slane %v229_v4, 4  ;;  %783 = vmatprep.subr.bf16.mxu0 %v862_v44  ;;  %810 = vmatpush3.bf16.msra.mxu1 %v867_v45 }
  0x16   : > { %811 = vmatprep.subr.bf16.mxu1 %v898_v26  ;;  %v744_v26 = vld [vmem:[%s1048_s2] ss:$0 sm:$0xff] }
  0x17   : > { %v248_v11 = vsel %vm226_vm0, %v235_v7, %v246_v9  ;;  %v253_v12 = vsel %vm226_vm0, %v246_v9, %v237_v8  ;;  %v239_v13 = vsel %vm226_vm0, %v233_v5, %v235_v7  ;;  %vm542_vm0 = vcmask 556032  }
  0x18   : > { %v249_v14 = vsel %vm240_vm1, %v248_v11, %v237_v8  ;;  %v254_v15 = vsel %vm240_vm1, %v253_v12, %v229_v4  ;;  %v242_v16 = vsel %vm240_vm1, %v239_v13, %v236_v10  ;;  %784 = vmatpush3.bf16.msra.mxu0 %v863_v46  ;;  %vm367_vm1 = vcmask 1014784  }
  0x19   : > { %v251_v17 = vsel %vm243_vm2, %v249_v14, %v229_v4  ;;  %v955_v18 = vsel %vm243_vm2, %v254_v15, %v252_v6  ;;  %v245_v19 = vsel %vm243_vm2, %v242_v16, %v237_v8  ;;  %785 = vmatprep.subr.bf16.mxu0 %v865_v47  ;;  %812 = vmatpush3.bf16.msra.mxu1 %v546_v57  ;;  %vm353_vm2 = vcmask 588800  }
  0x1a   : > { %v312_v23 = vshrl.u32 %v251_v17, 16  ;;  %v315_v24 = vshll.u32 %v251_v17, 16  ;;  %v323_v25 = vshrl.u32 %v955_v18, 16  ;;  %335 = vrot.lane.b32.xlu1 %v245_v19, %s897_s26  ;;  %v284_v27 = vshrl.u32 %v245_v19, 16 }
  0x1b   : > { %v287_v28 = vshll.u32 %v245_v19, 16  ;;  %v326_v32 = vshll.u32 %v955_v18, 16 }
  0x1c   : > { %v314_v30 = vrot.slane %v312_v23, 7  ;;  %v325_v31 = vrot.slane %v323_v25, 7  ;;  %v286_v34 = vrot.slane %v284_v27, 7  ;;  %786 = vmatpush3.bf16.msra.mxu0 %v866_v48 }
  0x1d   : > { %787 = vmatprep.subr.bf16.mxu0 %v868_v49 }
  0x1e   : > { %v317_v36 = vor.u32 %v315_v24, %v314_v30  ;;  %v289_v38 = vor.u32 %v287_v28, %v286_v34  ;;  %v328_v39 = vor.u32 %v326_v32, %v325_v31 }
  0x20   : > { %318 = vrot.lane.b32.xlu0 %v317_v36, %s899_s8  ;;  %290 = vrot.lane.b32.xlu1 %v289_v38, %s899_s8 }
  0x21   : > { %788 = vmatpush3.bf16.msra.mxu0 %v869_v55 }
  0x22   : > { %789 = vmatprep.subr.bf16.mxu0 %v871_v58 }
  0x24   : > { %329 = vrot.lane.b32.xlu0 %v328_v39, %s899_s8 }
  0x25   : > { %790 = vmatpush3.bf16.msra.mxu0 %v872_v62 }
  0x28   : > { %341 = vrot.lane.b32.xlu0 %v251_v17, %s900_s25 }
  0x8c   : > { %v336_v0 = vpop.permute.xlu1 %335 }
  0x92   : > { %v319_v1 = vpop.permute.xlu0 %318  ;;  %v291_v3 = vpop.permute.xlu1 %290 }
  0x93   : > { %v321_v2 = vsel %vm295_vm10, 0, %v319_v1  ;;  %v296_v5 = vsel %vm295_vm10, 0, %v291_v3 }
  0x94   : > { %v322_v4 = vsel %vm310_vm11, %v321_v2, 0  ;;  %v311_v6 = vsel %vm310_vm11, %v296_v5, 0 }
  0x95   : > { %338 = vrot.lane.b32.xlu1 %v322_v4, %s903_s19  ;;  %v352_v13 = vsel %vm349_vm13, %v311_v6, %v336_v0 }
  0x96   : > { %v330_v7 = vpop.permute.xlu0 %329  ;;  %v354_v20 = vsel %vm353_vm2, %v352_v13, %v336_v0 }
  0x97   : > { %v332_v8 = vsel %vm295_vm10, 0, %v330_v7 }
  0x98   : > { %v333_v9 = vsel %vm310_vm11, %v332_v8, 0 }
  0x99   : > { %344 = vrot.lane.b32.xlu0 %v333_v9, %s904_s20  ;;  %347 = vrot.lane.b32.xlu1 %v955_v18, %s905_s21 }
  0x9a   : > { %v342_v10 = vpop.permute.xlu0 %341 }
 0x107   : > { %v339_v11 = vpop.permute.xlu1 %338 }
 0x108   : > { %v361_v12 = vsel %vm359_vm12, %v339_v11, %v342_v10  ;;  %v357_v18 = vsel %vm355_vm3, %v354_v20, %v339_v11 }
 0x109   : > { %v363_v15 = vsel %vm362_vm14, %v361_v12, %v342_v10 }
 0x10b   : > { %v345_v14 = vpop.permute.xlu0 %344  ;;  %v348_v16 = vpop.permute.xlu1 %347 }
 0x10c   : > { %v366_v17 = vsel %vm364_vm15, %v363_v15, %v345_v14  ;;  %814 = vmatmul.mubr.msk.bf16.vlgmr.msra.gmra.mrb[0].mxu1 %vm542_vm0, %v348_v16 }
 0x10d   : > { %v369_v19 = vsel %vm367_vm1, %v366_v17, %v348_v16 }
 0x10e   : > { %580 = vmatprep.mubr.bf16.mxu0 %v369_v19 }
 0x10f   : > { %581 = vmatmul.mubr.bf16.vlgmr.msra.gmra.mrb[0].mxu0 %v357_v18 }
 0x1df   : > { %v623_v21 = vpop.f32.mrb[0].mxu1 }
 0x1e0   : > { %v815_v22 = vpop.f32.mrb[1].mxu1 }
 0x1e1   : > { %v626_v23 = vpop.f32.mrb[2].mxu1 }
 0x1e2   : > { %v791_v24 = vpop.f32.mrb[0].mxu0  ;;  %v816_v25 = vpop.f32.mrb[3].mxu1 }
 0x1e3   : > { %v792_v27 = vpop.f32.mrb[1].mxu0 }
 0x1e4   : > { %v793_v28 = vadd.f32 %v792_v27, %v791_v24  ;;  %v794_v29 = vpop.f32.mrb[2].mxu0 }
 0x1e5   : > { %v795_v30 = vpop.f32.mrb[3].mxu0 }
 0x1e6   : > { %v583_v31 = vadd.f32 %v793_v28, %v744_v26  ;;  %v796_v32 = vadd.f32 %v795_v30, %v794_v29 }
 0x1e8   : > { %v624_v33 = vadd.f32 %v623_v21, %v583_v31  ;;  %v586_v34 = vadd.f32 %v796_v32, %v744_v26 }
 0x1ea   : > { %v630_v35 = vmax.f32 %v624_v33, 0.0  ;;  %v627_v36 = vadd.f32 %v626_v23, %v586_v34 }
 0x1ec   : > { %v773_v37 = vpack.c.bf16 %v630_v35, %v630_v35  ;;  %v631_v38 = vmax.f32 %v627_v36, 0.0 }
 0x1ee   : > { %641 = vst.msk [vmem:[%s208_s27] sm:$0xf] %vm640_vm4, %v773_v37  ;;  %v774_v39 = vpack.c.bf16 %v631_v38, %v631_v38 }
 0x1f0   : > { %642 = vst.msk [vmem:[%s208_s27 + $0x4] sm:$0xf] %vm640_vm4, %v774_v39 }
 0x1f1 PF: > { %s13_s14 = sadd.s32 1, %s895_s14   ;;  %s1050_s12 = smov %s891_s13 }
 0x1f2   : > { %p10_p5 = scmp.ge.s32.totalorder %s13_s14, 4   ;;  %s1051_s13 = smov %s1053_s15 }
 0x1f4   :  { %12 = sbr.rel (!%p10_p5) target bundleno = 2 (0x2), region = 62 }

// kernel: refinement_net_forward.17
= control target key start
LH: loop header
LB: loop body
LE: loop exit
PB: predicated region body
PF: predicated region fallthrough
CT: control target
= control target key end

     0   :  { %s1154_s12 = smov 0   ;;  %s1156_s13 = smov 0   ;;  %s1381_s0 = inlined_call_operand.vmem [shape: bf16[2,8,136], index: 0, kind: input, shape index: {}]   ;;  %s1382_s1 = inlined_call_operand.vmem [shape: bf16[612,96], index: 1, kind: input, shape index: {}]   ;;  %s1383_s2 = inlined_call_operand.vmem [shape: f32[1,96], index: 2, kind: input, shape index: {}]   ;;  %s1384_s3 = inlined_call_operand.vmem [shape: bf16[2,1,4,96], index: 3, kind: output, shape index: {}]  }
   0x1   :  { %s1158_s14 = smov 0  }
   0x2 LB: > { %s25_s15 = sadd.s32 1, %s1120_s13  ;;  %p909_p0 = scmp.ge.s32.totalorder %s1124_s14, 1  ;;  %s1124_s14 = sphi %s1158_s14, %s13_s14   ;;  %s1120_s13 = sphi %s1156_s13, %s1390_s13   ;;  %s1116_s12 = sphi %s1154_s12, %s1389_s12  }
   0x3   : > { %p27_p1 = scmp.ge.s32.totalorder %s25_s15, 2  ;;  %p157_p2 = scmp.lt.s32.totalorder %s1124_s14, 3 }
   0x5   : > { %s1392_s15 = smov (%p27_p1, %s25_s15), 0  ;;  %p158_p3 = pnand %p909_p0, %p157_p2 }
   0x6   : > { %p187_p4 = scmp.lt.s32.totalorder (!%p158_p3), %s1116_s12, 1  ;;  %vm212_vm0 = vcmask (!%p158_p3), 1040384   ;;  %s1126_s20 = smov (!%p158_p3), 60   ;;  %v1063_v39 = vld [vmem:[%s1382_s1 + $0x40] sm:$0xff] (!%p158_p3)   ;;  %v1065_v41 = vld [vmem:[%s1382_s1 + $0x48] sm:$0xff] (!%p158_p3)   ;;  %v1067_v49 = vld [vmem:[%s1382_s1 + $0x50] sm:$0xff] (!%p158_p3)  }
   0x7   : > { %161 = sbr.rel (%p158_p3) target bundleno = 518 (0x206), region = 32  ;;  %v1064_v40 = vld [vmem:[%s1382_s1] sm:$0xff] (!%p158_p3)   ;;  %959 = vmatprep.subr.bf16.mxu0 (!%p158_p3), %v1063_v39  ;;  %v1066_v46 = vld [vmem:[%s1382_s1 + $0x8] sm:$0xff] (!%p158_p3)   ;;  %s1127_s10 = smov (!%p158_p3), 68   ;;  %v1068_v51 = vld [vmem:[%s1382_s1 + $0x10] sm:$0xff] (!%p158_p3)   ;;  %vm268_vm3 = vcmask (!%p158_p3), 490496  }
   0x8   : > { %v1069_v44 = vld [vmem:[%s1382_s1 + $0xc0] sm:$0xff] (!%p158_p3)   ;;  %960 = vmatpush3.bf16.msra.mxu0 (!%p158_p3), %v1064_v40  ;;  %v1073_v47 = vld [vmem:[%s1382_s1 + $0xc8] sm:$0xff] (!%p158_p3)   ;;  %v1077_v53 = vld [vmem:[%s1382_s1 + $0xd0] sm:$0xff] (!%p158_p3)   ;;  %vm272_vm1 = vsmask.f32 (!%p158_p3), 256  ;;  %s1131_s21 = smov (!%p158_p3), 24  }
   0x9   : > { %v1070_v45 = vld [vmem:[%s1382_s1 + $0x80] sm:$0xff] (!%p158_p3)   ;;  %961 = vmatprep.subr.bf16.mxu0 (!%p158_p3), %v1065_v41  ;;  %981 = vmatprep.subr.bf16.mxu1 (!%p158_p3), %v1069_v44  ;;  %v1074_v52 = vld [vmem:[%s1382_s1 + $0x88] sm:$0xff] (!%p158_p3)   ;;  %v1071_v54 = vld [vmem:[%s1382_s1 + $0x58] sm:$0xff] (!%p158_p3)   ;;  %s1132_s22 = smov (!%p158_p3), 92   ;;  %vm326_vm6 = vcmask (!%p158_p3), 556032   ;;  %vm355_vm7 = vcmask (!%p158_p3), 64512  }
   0xa   : > { %982 = vmatpush3.bf16.msra.mxu1 (!%p158_p3), %v1070_v45  ;;  %v1072_v55 = vld [vmem:[%s1382_s1 + $0x18] sm:$0xff] (!%p158_p3)   ;;  %v1078_v56 = vld [vmem:[%s1382_s1 + $0x90] sm:$0xff] (!%p158_p3)   ;;  %v1075_v58 = vld [vmem:[%s1382_s1 + $0x60] sm:$0xff] (!%p158_p3)   ;;  %vm358_vm8 = vcmask (!%p158_p3), 621568   ;;  %vm368_vm9 = vcmask (!%p158_p3), 195584   ;;  %vm337_vm10 = vcmask (!%p158_p3), 130048  }
   0xb   : > { %983 = vmatprep.subr.bf16.mxu1 (!%p158_p3), %v1073_v47  ;;  %v1081_v57 = vld [vmem:[%s1382_s1 + $0xd8] sm:$0xff] (!%p158_p3)   ;;  %v1076_v59 = vld [vmem:[%s1382_s1 + $0x20] sm:$0xff] (!%p158_p3)   ;;  %v1079_v61 = vld [vmem:[%s1382_s1 + $0x68] sm:$0xff] (!%p158_p3)   ;;  %vm1133_vm11 = vmmov (!%p158_p3), 0   ;;  %vm348_vm12 = vcmask (!%p158_p3), 752640   ;;  %vm365_vm13 = vcmask (!%p158_p3), 687104  }
   0xc   : > { %962 = vmatpush3.bf16.msra.mxu0 (!%p158_p3), %v1066_v46  ;;  %v1082_v60 = vld [vmem:[%s1382_s1 + $0x98] sm:$0xff] (!%p158_p3)   ;;  %v1085_v62 = vld [vmem:[%s1382_s1 + $0xe0] sm:$0xff] (!%p158_p3)   ;;  %vm1308_vm4 = vmand (!%p158_p3), %vm212_vm0, %vm272_vm1  ;;  %vm697_vm14 = vcmask (!%p158_p3), 1041408   ;;  %vm376_vm15 = vcmask (!%p158_p3), 261120   ;;  %vm823_vm1 = vcmask (!%p158_p3), 779264  }
   0xd   : > { %963 = vmatprep.subr.bf16.mxu0 (!%p158_p3), %v1067_v49  ;;  %v1086_v63 = vld [vmem:[%s1382_s1 + $0xa0] sm:$0xff] (!%p158_p3)  }
   0xe   : > { %s1394_s12 = smov (!%p187_p4, %s1116_s12), 1  ;;  %984 = vmatpush3.bf16.msra.mxu1 %v1074_v52  ;;  %v1099_v52 = vld [vmem:[%s1382_s1 + $0x120] sm:$0xff]  }
   0xf   : > { %s958_s16 = sshll.u32 %s1394_s12, 3  ;;  %985 = vmatprep.subr.bf16.mxu1 %v1077_v53  ;;  %v1100_v53 = vld [vmem:[%s1382_s1 + $0x128] sm:$0xff]   ;;  %s912_s11 = sshll.u32 %s1394_s12, 1 }
  0x10   : > { %s195_s19 = scalar_lea.vmem %s1381_s0, %s958_s16  ;;  %964 = vmatpush3.bf16.msra.mxu0 %v1068_v51  ;;  %s1128_s16 = smov 16   ;;  %v1098_v51 = vld [vmem:[%s1382_s1 + $0x118] sm:$0xff]  }
  0x11   : > { %v204_v0 = vld [vmem:[%s195_s19] sm:$0xff]  ;;  %965 = vmatprep.subr.bf16.mxu0 %v1071_v54  ;;  %s1130_s19 = smov 76   ;;  %v1101_v54 = vld [vmem:[%s1382_s1 + $0x130] ss:$0 sps:$4 sm:$0x33]   ;;  %s202_s18 = scalar_lea.vmem %s1384_s3, %s912_s11 }
  0x12   : > { %v913_v1 = vcombine.low %v204_v0, %v204_v0  ;;  %v914_v2 = vcombine.high %v204_v0, %v204_v0  ;;  %986 = vmatpush3.bf16.msra.mxu1 %v1078_v56  ;;  %v1080_v0 = vld [vmem:[%s1382_s1 + $0x28] sm:$0xff]   ;;  %v699_v56 = vsel %vm697_vm14, %v1101_v54, 0 }
  0x13   : > { %987 = vmatprep.subr.bf16.mxu1 %v1081_v57 }
  0x14   : > { %v210_v3 = vrot.slane %v913_v1, 7  ;;  %v211_v4 = vrot.slane %v914_v2, 7  ;;  %966 = vmatpush3.bf16.msra.mxu0 %v1072_v55  ;;  %v1089_v1 = vld [vmem:[%s1382_s1 + $0xe8] sm:$0xff]   ;;  %v1083_v2 = vld [vmem:[%s1382_s1 + $0x70] sm:$0xff]  }
  0x15   : > { %967 = vmatprep.subr.bf16.mxu0 %v1075_v58 }
  0x16   : > { %v215_v5 = vsel %vm212_vm0, 0, %v210_v3  ;;  %v217_v6 = vsel %vm212_vm0, 0, %v211_v4  ;;  %988 = vmatpush3.bf16.msra.mxu1 %v1082_v60  ;;  %v1090_v3 = vld [vmem:[%s1382_s1 + $0xa8] sm:$0xff]   ;;  %v1084_v4 = vld [vmem:[%s1382_s1 + $0x30] sm:$0xff]  }
  0x17   : > { %v220_v7 = vrot.slane %v215_v5, 1  ;;  %v226_v8 = vrot.slane %v215_v5, 2  ;;  %v221_v9 = vrot.slane %v217_v6, 1  ;;  %v227_v10 = vrot.slane %v217_v6, 2  ;;  %989 = vmatprep.subr.bf16.mxu1 %v1085_v62 }
  0x18   : > { %v232_v11 = vrot.slane %v215_v5, 3  ;;  %v233_v12 = vrot.slane %v217_v6, 3  ;;  %968 = vmatpush3.bf16.msra.mxu0 %v1076_v59 }
  0x19   : > { %v1181_v13 = vsel %vm212_vm0, %v220_v7, %v226_v8  ;;  %v1184_v14 = vsel %vm212_vm0, %v221_v9, %v227_v10  ;;  %v223_v18 = vsel %vm212_vm0, %v215_v5, %v220_v7  ;;  %v225_v22 = vsel %vm212_vm0, %v217_v6, %v221_v9  ;;  %969 = vmatprep.subr.bf16.mxu0 %v1079_v61  ;;  %v1087_v5 = vld [vmem:[%s1382_s1 + $0x78] sm:$0xff]   ;;  %v1091_v9 = vld [vmem:[%s1382_s1 + $0xf0] sm:$0xff]  }
  0x1a   : > { %v280_v15 = vshrl.u32 %v1181_v13, 16  ;;  %v283_v16 = vshll.u32 %v1181_v13, 16  ;;  %v286_v17 = vshrl.u32 %v1184_v14, 16  ;;  %v289_v19 = vshll.u32 %v1184_v14, 16  ;;  %990 = vmatpush3.bf16.msra.mxu1 %v1086_v63  ;;  %v1088_v6 = vld [vmem:[%s1382_s1 + $0x38] sm:$0xff]  }
  0x1b   : > { %v1192_v20 = vsel %vm212_vm0, %v226_v8, %v232_v11  ;;  %v1195_v21 = vsel %vm212_vm0, %v227_v10, %v233_v12  ;;  %v258_v31 = vshrl.u32 %v225_v22, 16  ;;  %v252_v33 = vshrl.u32 %v223_v18, 16  ;;  %991 = vmatprep.subr.bf16.mxu1 %v1089_v1  ;;  %v1093_v12 = vld [vmem:[%s1382_s1 + $0xb0] sm:$0xff]  }
  0x1c   : > { %v282_v23 = vrot.slane %v280_v15, 7  ;;  %v288_v24 = vrot.slane %v286_v17, 7  ;;  %v300_v25 = vshrl.u32 %v1192_v20, 16  ;;  %v303_v26 = vshll.u32 %v1192_v20, 16  ;;  %970 = vmatpush3.bf16.msra.mxu0 %v1080_v0  ;;  %v915_v0 = vld [vmem:[%s1383_s2] ss:$0 sm:$0xff] }
  0x1d   : > { %v306_v27 = vshrl.u32 %v1195_v21, 16  ;;  %v309_v30 = vshll.u32 %v1195_v21, 16  ;;  %v260_v37 = vrot.slane %v258_v31, 7  ;;  %v261_v38 = vshll.u32 %v225_v22, 16  ;;  %971 = vmatprep.subr.bf16.mxu0 %v1083_v2 }
  0x1e   : > { %v285_v28 = vor.u32 %v283_v16, %v282_v23  ;;  %v302_v29 = vrot.slane %v300_v25, 7  ;;  %v291_v34 = vor.u32 %v289_v19, %v288_v24  ;;  %v254_v42 = vrot.slane %v252_v33, 7  ;;  %992 = vmatpush3.bf16.msra.mxu1 %v1090_v3  ;;  %v1096_v16 = vld [vmem:[%s1382_s1 + $0xb8] sm:$0xff]  }
  0x1f   : > { %v308_v32 = vrot.slane %v306_v27, 7  ;;  %v255_v43 = vshll.u32 %v223_v18, 16  ;;  %v263_v48 = vor.u32 %v261_v38, %v260_v37  ;;  %v238_v7 = vlaneseq  ;;  %993 = vmatprep.subr.bf16.mxu1 %v1091_v9 }
  0x20   : > { %292 = vrot.lane.b32.xlu0 %v285_v28, %s1126_s20  ;;  %v305_v35 = vor.u32 %v303_v26, %v302_v29  ;;  %972 = vmatpush3.bf16.msra.mxu0 %v1084_v4  ;;  %v1129_v10 = vmov 0.0   ;;  %vm694_vm0 = vcmask 818176  }
  0x21   : > { %v311_v36 = vor.u32 %v309_v30, %v308_v32  ;;  %v257_v50 = vor.u32 %v255_v43, %v254_v42  ;;  %973 = vmatprep.subr.bf16.mxu0 %v1087_v5  ;;  %v239_v8 = vshrl.u32 %v238_v7, 7  ;;  %v1095_v43 = vld [vmem:[%s1382_s1 + $0x108] sm:$0xff]  }
  0x22   : > { %312 = vrot.lane.b32.xlu1 %v305_v35, %s1126_s20  ;;  %994 = vmatpush3.bf16.msra.mxu1 %v1093_v12 }
  0x23   : > { %v244_v11 = vand.u32 1, %v239_v8 }
  0x24   : > { %294 = vrot.lane.b32.xlu0 %v291_v34, %s1126_s20  ;;  %974 = vmatpush3.bf16.msra.mxu0 %v1088_v6 }
  0x25   : > { %1011 = vmatprep.subr.bf16.mxu0 %v1129_v10  ;;  %vm275_vm2 = vcmp.ne.s32.totalorder %v244_v11, 0 }
  0x26   : > { %314 = vrot.lane.b32.xlu1 %v311_v36, %s1126_s20  ;;  %vm1312_vm5 = vmpackc.low %vm275_vm2, %vm275_vm2 }
  0x28   : > { %321 = vrot.lane.b32.xlu0 %v223_v18, %s1127_s10 }
  0x2a   : > { %266 = vrot.lane.b32.xlu1 %v263_v48, %s1126_s20  ;;  %v1097_v48 = vld [vmem:[%s1382_s1 + $0x110] sm:$0xff]  }
  0x2c   : > { %264 = vrot.lane.b32.xlu0 %v257_v50, %s1126_s20 }
  0x2e   : > { %324 = vrot.lane.b32.xlu1 %v225_v22, %s1127_s10 }
  0x32   : > { %332 = vrot.lane.b32.xlu1 %v1181_v13, %s1128_s16  ;;  %v1094_v13 = vld [vmem:[%s1382_s1 + $0xf8] sm:$0xff]  }
  0x33   : > { %995 = vmatprep.subr.bf16.mxu1 %v1094_v13 }
  0x34   : > { %996 = vmatpush3.bf16.msra.mxu1 %v1096_v16 }
  0x92   : > { %v293_v15 = vpop.permute.xlu0 %292 }
  0x94   : > { %v313_v17 = vpop.permute.xlu1 %312 }
  0x96   : > { %v295_v19 = vpop.permute.xlu0 %294 }
  0x97   : > { %v296_v23 = vsel %vm268_vm3, %v293_v15, %v295_v19 }
  0x98   : > { %v298_v24 = vsel %vm1308_vm4, 0, %v296_v23  ;;  %v315_v25 = vpop.permute.xlu1 %314 }
  0x99   : > { %v299_v26 = vsel %vm1312_vm5, %v298_v24, 0  ;;  %v316_v27 = vsel %vm268_vm3, %v313_v17, %v315_v25 }
  0x9a   : > { %329 = vrot.lane.b32.xlu0 %v299_v26, %s1130_s19  ;;  %v318_v28 = vsel %vm1308_vm4, 0, %v316_v27  ;;  %v322_v29 = vpop.permute.xlu0 %321 }
  0x9b   : > { %v319_v30 = vsel %vm1312_vm5, %v318_v28, 0 }
  0x9c   : > { %340 = vrot.lane.b32.xlu1 %v319_v30, %s1131_s21  ;;  %v267_v31 = vpop.permute.xlu1 %266 }
  0x9e   : > { %335 = vrot.lane.b32.xlu0 %v1184_v14, %s1128_s16  ;;  %v265_v32 = vpop.permute.xlu0 %264 }
  0x9f   : > { %v269_v33 = vsel %vm268_vm3, %v265_v32, %v267_v31 }
  0xa0   : > { %346 = vrot.lane.b32.xlu1 %v1195_v21, %s1132_s22  ;;  %v274_v34 = vsel %vm1308_vm4, 0, %v269_v33  ;;  %v325_v36 = vpop.permute.xlu1 %324  ;;  %v1092_v21 = vld [vmem:[%s1382_s1 + $0x100] sm:$0xff]  }
  0xa1   : > { %v279_v35 = vsel %vm1312_vm5, %v274_v34, 0  ;;  %v327_v37 = vsel %vm326_vm6, %v322_v29, %v325_v36 }
  0xa2   : > { %343 = vrot.lane.b32.xlu0 %v1192_v20, %s1132_s22  ;;  %v357_v39 = vsel %vm355_vm7, %v322_v29, %v327_v37  ;;  %v353_v41 = vsel %vm326_vm6, %v279_v35, %v322_v29 }
  0xa4   : > { %v333_v14 = vpop.permute.xlu1 %332 }
 0x10c   : > { %v330_v38 = vpop.permute.xlu0 %329 }
 0x10d   : > { %v360_v40 = vsel %vm358_vm8, %v357_v39, %v330_v38  ;;  %v364_v46 = vsel %vm337_vm10, %v330_v38, %v333_v14 }
 0x10e   : > { %733 = vmatprep.mubr.bf16.mxu0 %v360_v40  ;;  %v341_v42 = vpop.permute.xlu1 %340  ;;  %v366_v50 = vsel %vm365_vm13, %v364_v46, %v333_v14 }
 0x10f   : > { %734 = vmatmul.mubr.bf16.vlgmr.msra.gmra.mrb[0].mxu0 %v353_v41 }
 0x110   : > { %1012 = vmatpush3.bf16.msra.mxu0 %v1092_v21  ;;  %v336_v20 = vpop.permute.xlu0 %335  ;;  %1025 = vmatprep.mubr.msk.bf16.mxu0 %vm1133_vm11, %v1129_v10 }
 0x111   : > { %v338_v44 = vsel %vm337_vm10, %v333_v14, %v336_v20  ;;  %1013 = vmatprep.subr.bf16.mxu0 %v1129_v10 }
 0x112   : > { %v371_v45 = vsel %vm368_vm9, %v338_v44, %v341_v42  ;;  %v347_v55 = vpop.permute.xlu1 %346 }
 0x114   : > { %1014 = vmatpush3.bf16.msra.mxu0 %v1095_v43  ;;  %v344_v47 = vpop.permute.xlu0 %343 }
 0x115   : > { %v374_v49 = vsel %vm348_vm12, %v371_v45, %v344_v47  ;;  %1015 = vmatprep.subr.bf16.mxu0 %v1129_v10  ;;  %v349_v57 = vsel %vm348_vm12, %v344_v47, %v347_v55 }
 0x116   : > { %773 = vmatprep.mubr.bf16.mxu1 %v374_v49  ;;  %v378_v58 = vsel %vm376_vm15, %v344_v47, %v349_v57 }
 0x117   : > { %774 = vmatmul.mubr.bf16.vlgmr.msra.gmra.mrb[0].mxu1 %v366_v50 }
 0x118   : > { %1016 = vmatpush3.bf16.msra.mxu0 %v1097_v48 }
 0x119   : > { %1017 = vmatprep.subr.bf16.mxu0 %v1129_v10 }
 0x11c   : > { %1018 = vmatpush3.bf16.msra.mxu0 %v1098_v51 }
 0x11d   : > { %1019 = vmatprep.subr.bf16.mxu0 %v1129_v10 }
 0x120   : > { %1020 = vmatpush3.bf16.msra.mxu0 %v1099_v52 }
 0x121   : > { %1021 = vmatprep.subr.bf16.mxu0 %v1129_v10 }
 0x124   : > { %1022 = vmatpush3.bf16.msra.mxu0 %v1100_v53 }
 0x125   : > { %1023 = vmatprep.subr.bf16.mxu0 %v1129_v10 }
 0x128   : > { %1024 = vmatpush3.bf16.msra.mxu0 %v699_v56 }
 0x12b   : > { %1026 = vmatmul.mubr.msk.bf16.vlgmr.msra.gmra.mrb[4].mxu0 %vm694_vm0, %v378_v58 }
 0x1e2   : > { %v975_v59 = vpop.f32.mrb[0].mxu0 }
 0x1e3   : > { %v976_v60 = vpop.f32.mrb[1].mxu0 }
 0x1e4   : > { %v977_v61 = vadd.f32 %v976_v60, %v975_v59  ;;  %v978_v62 = vpop.f32.mrb[2].mxu0 }
 0x1e5   : > { %v979_v63 = vpop.f32.mrb[3].mxu0 }
 0x1e6   : > { %v736_v3 = vadd.f32 %v977_v61, %v915_v0 }
 0x1ea   : > { %v997_v1 = vpop.f32.mrb[0].mxu1 }
 0x1eb   : > { %v998_v2 = vpop.f32.mrb[1].mxu1 }
 0x1ec   : > { %v999_v4 = vadd.f32 %v998_v2, %v997_v1  ;;  %v1000_v5 = vpop.f32.mrb[2].mxu1 }
 0x1ed   : > { %v1001_v6 = vpop.f32.mrb[3].mxu1 }
 0x1ee   : > { %v776_v7 = vadd.f32 %v999_v4, %v736_v3 }
 0x1fe   : > { %v815_v8 = vpop.f32.mrb[4].mxu0 }
 0x1ff   : > { %v816_v9 = vadd.f32 %v815_v8, %v776_v7  ;;  %v1027_v10 = vpop.f32.mrb[5].mxu0 }
 0x200   : > { %v818_v11 = vpop.f32.mrb[6].mxu0 }
 0x201   : > { %v821_v12 = vmax.f32 %v816_v9, 0.0  ;;  %v1028_v13 = vpop.f32.mrb[7].mxu0 }
 0x203   : > { %v822_v15 = vpack.c.bf16 %v821_v12, %v821_v12 }
 0x205   : > { %824 = vst.msk [vmem:[%s202_s18] sm:$0x3] %vm823_vm1, %v822_v15 }
 0x206 PF: > { %s13_s14 = sadd.s32 1, %s1124_s14   ;;  %s1389_s12 = smov %s1120_s13 }
 0x207   : > { %p10_p5 = scmp.ge.s32.totalorder %s13_s14, 4   ;;  %s1390_s13 = smov %s1392_s15 }
 0x209   :  { %12 = sbr.rel (!%p10_p5) target bundleno = 2 (0x2), region = 62 }

// kernel: refinement_net_forward.19
= control target key start
LH: loop header
LB: loop body
LE: loop exit
PB: predicated region body
PF: predicated region fallthrough
CT: control target
= control target key end

     0   :  { %s761_s12 = smov 0   ;;  %s763_s13 = smov 0   ;;  %s823_s0 = inlined_call_operand.vmem [shape: bf16[2,2,2,96], index: 0, kind: input, shape index: {}, may-alias: {0,1,2}]   ;;  %s824_s1 = inlined_call_operand.vmem [shape: bf16[2,2,2,96], index: 1, kind: input, shape index: {}, may-alias: {0,1,2}]   ;;  %s825_s2 = inlined_call_operand.vmem [shape: bf16[2,2,2,96], index: 2, kind: input, shape index: {}, may-alias: {0,1,2}]   ;;  %s826_s3 = inlined_call_operand.vmem [shape: bf16[2,2,2,2,192], index: 3, kind: output, shape index: {}]  }
   0x1   :  { %s765_s14 = smov 0  }
   0x2 LB: > { %s25_s15 = sadd.s32 1, %s732_s13  ;;  %p664_p0 = scmp.ge.s32.totalorder %s736_s14, 1  ;;  %s736_s14 = sphi %s765_s14, %s13_s14   ;;  %s732_s13 = sphi %s763_s13, %s828_s13   ;;  %s728_s12 = sphi %s761_s12, %s827_s12  }
   0x3   : > { %p27_p1 = scmp.ge.s32.totalorder %s25_s15, 2  ;;  %p217_p2 = scmp.lt.s32.totalorder %s736_s14, 3 }
   0x5   : > { %s830_s15 = smov (%p27_p1, %s25_s15), 0  ;;  %p218_p3 = pnand %p664_p0, %p217_p2 }
   0x6   : > { %p271_p4 = scmp.lt.s32.totalorder (!%p218_p3), %s728_s12, 1  ;;  %v339_v0 = vlaneseq (!%p218_p3)  ;;  %v738_v2 = vmov (!%p218_p3), 1983009808   ;;  %vm349_vm0 = vcmask (!%p218_p3), 1040384   ;;  %s739_s27 = smov (!%p218_p3), 96   ;;  %vm432_vm1 = vcmask (!%p218_p3), 785408  }
   0x7   : > { %221 = sbr.rel (%p218_p3) target bundleno = 165 (0xa5), region = 32  ;;  %v413_v3 = vunpack.c.l.s4 (!%p218_p3), %v738_v2  ;;  %vm475_vm2 = vcmask (!%p218_p3), 517121  }
   0x8   : > { %v782_v1 = vshrl.u32 (!%p218_p3), %v339_v0, 7  ;;  %vm476_vm3 = vmor (!%p218_p3), %vm475_vm2, %vm349_vm0 }
   0x9   : > { %v414_v11 = vunpack.c.0.s8 (!%p218_p3), %v413_v3 }
   0xa   : > { %v354_v10 = vsub.s32 (!%p218_p3), 1, %v782_v1  ;;  %v341_v19 = vsub.s32 (!%p218_p3), 0, %v782_v1 }
   0xb   : > { %v417_v22 = vsub.s32 (!%p218_p3), %v414_v11, %v782_v1 }
   0xe   : > { %s832_s12 = smov (!%p271_p4, %s728_s12), 1 }
   0xf   : > { %s665_s16 = sshll.u32 %s832_s12, 1  ;;  %s668_s28 = sshll.u32 %s832_s12, 3 }
  0x10   : > { %s277_s19 = scalar_lea.vmem %s823_s0, %s665_s16  ;;  %s289_s22 = scalar_lea.vmem %s824_s1, %s665_s16 }
  0x11   : > { %v319_v4 = vld [vmem:[%s277_s19] sm:$0x1]  ;;  %v320_v5 = vld [vmem:[%s277_s19 + $0x1] sm:$0x1]  ;;  %s303_s23 = sadd.s32 1, %s665_s16  ;;  %s317_s4 = scalar_lea.vmem %s826_s3, %s668_s28 }
  0x12   : > { %v323_v6 = vld [vmem:[%s289_s22] sm:$0x1]  ;;  %v321_v7 = vunpack.c.l.bf16 %v319_v4  ;;  %v322_v8 = vunpack.c.l.bf16 %v320_v5  ;;  %s304_s26 = scalar_lea.vmem %s825_s2, %s303_s23  ;;  %v740_v5 = vmov 1966171168  }
  0x13   : > { %v324_v9 = vunpack.c.l.bf16 %v323_v6  ;;  %v325_v16 = vld [vmem:[%s304_s26] sm:$0x1]  ;;  %v445_v6 = vunpack.c.l.s4 %v740_v5 }
  0x14   : > { %v328_v13 = vmul.f32 0.25, %v321_v7  ;;  %v329_v14 = vmul.f32 0.75, %v321_v7  ;;  %v330_v15 = vmul.f32 0.75, %v322_v8  ;;  %v326_v17 = vunpack.c.l.bf16 %v325_v16 }
  0x15   : > { %v327_v12 = vmul.f32 0.25, %v324_v9  ;;  %v333_v18 = vmul.f32 0.25, %v322_v8  ;;  %v446_v7 = vunpack.c.0.s8 %v445_v6 }
  0x16   : > { %v332_v21 = vadd.f32 %v330_v15, %v328_v13  ;;  %v334_v23 = vmul.f32 0.25, %v326_v17 }
  0x17   : > { %v331_v20 = vadd.f32 %v329_v14, %v327_v12  ;;  %v335_v24 = vadd.f32 %v333_v18, %v329_v14  ;;  %v449_v11 = vsub.s32 %v446_v7, %v782_v1 }
  0x18   : > { %v359_v26 = vrot.slane %v332_v21, %v354_v10  ;;  %v367_v28 = vmul.f32 0.75, %v332_v21  ;;  %v336_v29 = vadd.f32 %v334_v23, %v330_v15  ;;  %v346_v35 = vrot.slane %v332_v21, %v341_v19 }
  0x19   : > { %v355_v25 = vrot.slane %v331_v20, %v354_v10  ;;  %v366_v27 = vmul.f32 0.75, %v331_v20  ;;  %v391_v30 = vrot.slane %v335_v24, %v354_v10  ;;  %v402_v31 = vmul.f32 0.75, %v335_v24 }
  0x1a   : > { %v342_v32 = vrot.slane %v331_v20, %v341_v19  ;;  %v363_v34 = vsel %vm349_vm0, %v359_v26, %v332_v21  ;;  %v379_v36 = vrot.slane %v335_v24, %v341_v19  ;;  %v395_v39 = vrot.slane %v336_v29, %v354_v10 }
  0x1b   : > { %v362_v33 = vsel %vm349_vm0, %v355_v25, %v331_v20  ;;  %v371_v38 = vmul.f32 0.25, %v363_v34  ;;  %v398_v40 = vsel %vm349_vm0, %v391_v30, %v335_v24  ;;  %v403_v41 = vmul.f32 0.75, %v336_v29 }
  0x1c   : > { %v370_v37 = vmul.f32 0.25, %v362_v33  ;;  %v406_v42 = vmul.f32 0.25, %v398_v40  ;;  %v350_v43 = vsel %vm349_vm0, %v331_v20, %v342_v32  ;;  %v351_v44 = vsel %vm349_vm0, %v332_v21, %v346_v35 }
  0x1d   : > { %v373_v46 = vadd.f32 %v371_v38, %v367_v28  ;;  %v399_v47 = vsel %vm349_vm0, %v395_v39, %v336_v29  ;;  %v364_v48 = vmul.f32 0.25, %v350_v43  ;;  %v365_v51 = vmul.f32 0.25, %v351_v44 }
  0x1e   : > { %v372_v45 = vadd.f32 %v370_v37, %v366_v27  ;;  %v407_v49 = vmul.f32 0.25, %v399_v47  ;;  %v408_v50 = vadd.f32 %v406_v42, %v402_v31  ;;  %v383_v52 = vrot.slane %v336_v29, %v341_v19 }
  0x1f   : > { %v425_v54 = vrot.slane %v373_v46, %v417_v22  ;;  %v368_v55 = vadd.f32 %v366_v27, %v364_v48  ;;  %v386_v56 = vsel %vm349_vm0, %v335_v24, %v379_v36  ;;  %v369_v59 = vadd.f32 %v367_v28, %v365_v51 }
  0x20   : > { %v418_v53 = vrot.slane %v372_v45, %v417_v22  ;;  %v409_v57 = vadd.f32 %v407_v49, %v403_v41  ;;  %v487_v58 = vrot.slane %v408_v50, %v417_v22  ;;  %v387_v60 = vsel %vm349_vm0, %v336_v29, %v383_v52 }
  0x21   : > { %v400_v62 = vmul.f32 0.25, %v386_v56  ;;  %v401_v63 = vmul.f32 0.25, %v387_v60 }
  0x22   : > { %v704_v61 = vpack.i.bf16 %v425_v54, %v418_v53  ;;  %v494_v0 = vrot.slane %v409_v57, %v417_v22 }
  0x23   : > { %v404_v2 = vadd.f32 %v402_v31, %v400_v62  ;;  %v405_v3 = vadd.f32 %v403_v41, %v401_v63 }
  0x24   : > { %705 = vrot.lane.b32.xlu0 %v704_v61, %s739_s27  ;;  %v709_v4 = vpack.i.bf16 %v494_v0, %v487_v58 }
  0x28   : > { %710 = vrot.lane.b32.xlu0 %v709_v4, %s739_s27 }
  0x96   : > { %v706_v8 = vpop.permute.xlu0 %705 }
  0x97   : > { %v708_v9 = vunpack.i.h.bf16 %v706_v8  ;;  %v707_v10 = vunpack.i.l.bf16 %v706_v8 }
  0x99   : > { %v433_v12 = vsel %vm432_vm1, %v368_v55, %v707_v10  ;;  %v434_v13 = vsel %vm432_vm1, %v369_v59, %v708_v9 }
  0x9a   : > { %v669_v14 = vpack.c.bf16 %v707_v10, %v433_v12  ;;  %v670_v15 = vpack.c.bf16 %v708_v9, %v434_v13  ;;  %v711_v16 = vpop.permute.xlu0 %710 }
  0x9b   : > { %v713_v17 = vunpack.i.h.bf16 %v711_v16  ;;  %v712_v18 = vunpack.i.l.bf16 %v711_v16 }
  0x9c   : > { %v450_v19 = vrot.slane %v669_v14, %v449_v11  ;;  %v465_v20 = vrot.slane %v670_v15, %v449_v11 }
  0x9d   : > { %v502_v1 = vsel %vm432_vm1, %v405_v3, %v713_v17  ;;  %v501_v21 = vsel %vm432_vm1, %v404_v2, %v712_v18 }
  0x9e   : > { %v457_v22 = vrot.slane %v450_v19, %v449_v11  ;;  %v472_v23 = vrot.slane %v465_v20, %v449_v11  ;;  %v672_v24 = vpack.c.bf16 %v713_v17, %v502_v1  ;;  %v671_v25 = vpack.c.bf16 %v712_v18, %v501_v21 }
  0xa0   : > { %477 = vst.msk [vmem:[%s317_s4] sm:$0x3] %vm476_vm3, %v457_v22  ;;  %478 = vst.msk [vmem:[%s317_s4 + $0x4] sm:$0x3] %vm476_vm3, %v472_v23  ;;  %v533_v26 = vrot.slane %v672_v24, %v449_v11  ;;  %v518_v27 = vrot.slane %v671_v25, %v449_v11 }
  0xa2   : > { %v540_v28 = vrot.slane %v533_v26, %v449_v11  ;;  %v525_v29 = vrot.slane %v518_v27, %v449_v11 }
  0xa4   : > { %674 = vst.msk [vmem:[%s317_s4 + $0x6] sm:$0x3] %vm476_vm3, %v540_v28  ;;  %673 = vst.msk [vmem:[%s317_s4 + $0x2] sm:$0x3] %vm476_vm3, %v525_v29 }
  0xa5 PF: > { %s13_s14 = sadd.s32 1, %s736_s14   ;;  %s827_s12 = smov %s732_s13 }
  0xa6   : > { %p10_p5 = scmp.ge.s32.totalorder %s13_s14, 4   ;;  %s828_s13 = smov %s830_s15 }
  0xa8   :  { %12 = sbr.rel (!%p10_p5) target bundleno = 2 (0x2), region = 69 }

// kernel: refinement_net_forward.18
= control target key start
LH: loop header
LB: loop body
LE: loop exit
PB: predicated region body
PF: predicated region fallthrough
CT: control target
= control target key end

     0   :  { %s1274_s12 = smov 0   ;;  %s1276_s13 = smov 0   ;;  %s1529_s0 = inlined_call_operand.vmem [shape: bf16[2,4,96], index: 0, kind: input, shape index: {}]   ;;  %s1530_s1 = inlined_call_operand.vmem [shape: bf16[864,96], index: 1, kind: input, shape index: {}]   ;;  %s1531_s2 = inlined_call_operand.vmem [shape: f32[1,96], index: 2, kind: input, shape index: {}]   ;;  %s1532_s3 = inlined_call_operand.vmem [shape: bf16[2,1,4,96], index: 3, kind: output, shape index: {}]  }
   0x1   :  { %s1278_s14 = smov 0  }
   0x2 LB: > { %s25_s15 = sadd.s32 1, %s1243_s13  ;;  %p991_p0 = scmp.ge.s32.totalorder %s1247_s14, 1  ;;  %s1247_s14 = sphi %s1278_s14, %s13_s14   ;;  %s1243_s13 = sphi %s1276_s13, %s1542_s13   ;;  %s1239_s12 = sphi %s1274_s12, %s1541_s12  }
   0x3   : > { %p27_p1 = scmp.ge.s32.totalorder %s25_s15, 2  ;;  %p155_p2 = scmp.lt.s32.totalorder %s1247_s14, 3 }
   0x5   : > { %s1544_s15 = smov (%p27_p1, %s25_s15), 0  ;;  %p156_p3 = pnand %p991_p0, %p155_p2 }
   0x6   : > { %p183_p4 = scmp.lt.s32.totalorder (!%p156_p3), %s1239_s12, 1  ;;  %v214_v0 = vlaneseq (!%p156_p3)  ;;  %vm236_vm0 = vsmask.f32 (!%p156_p3), 256  ;;  %vm243_vm1 = vsmask.f32 (!%p156_p3), 3328  ;;  %v1171_v2 = vld [vmem:[%s1530_s1 + $0x40] sm:$0xff] (!%p156_p3)  }
   0x7   : > { %159 = sbr.rel (%p156_p3) target bundleno = 508 (0x1fc), region = 32  ;;  %vm242_vm2 = vcmask (!%p156_p3), 1043456   ;;  %v1172_v3 = vld [vmem:[%s1530_s1] sm:$0xff] (!%p156_p3)   ;;  %1053 = vmatprep.subr.bf16.mxu0 (!%p156_p3), %v1171_v2  ;;  %vm208_vm3 = vcmask (!%p156_p3), 1040384   ;;  %v1173_v5 = vld [vmem:[%s1530_s1 + $0x48] sm:$0xff] (!%p156_p3)   ;;  %vm212_vm4 = vcmask (!%p156_p3), 1042432  }
   0x8   : > { %v215_v1 = vshrl.u32 (!%p156_p3), %v214_v0, 7  ;;  %1054 = vmatpush3.bf16.msra.mxu0 (!%p156_p3), %v1172_v3  ;;  %vm1310_vm5 = vmand (!%p156_p3), %vm208_vm3, %vm236_vm0  ;;  %v1174_v8 = vld [vmem:[%s1530_s1 + $0x8] sm:$0xff] (!%p156_p3)   ;;  %v1175_v12 = vld [vmem:[%s1530_s1 + $0x50] sm:$0xff] (!%p156_p3)   ;;  %s1249_s7 = smov (!%p156_p3), 96   ;;  %s1250_s21 = smov (!%p156_p3), 64   ;;  %vm262_vm11 = vcmask (!%p156_p3), 785408  }
   0x9   : > { %vm1318_vm6 = vmand (!%p156_p3), %vm242_vm2, %vm243_vm1  ;;  %1055 = vmatprep.subr.bf16.mxu0 (!%p156_p3), %v1173_v5  ;;  %v1176_v14 = vld [vmem:[%s1530_s1 + $0x10] sm:$0xff] (!%p156_p3)   ;;  %v1177_v16 = vld [vmem:[%s1530_s1 + $0x58] sm:$0xff] (!%p156_p3)   ;;  %v1251_v55 = vmov (!%p156_p3), 0.0   ;;  %s1252_s24 = smov (!%p156_p3), 32   ;;  %vm267_vm12 = vcmask (!%p156_p3), 523264   ;;  %vm282_vm13 = vcmask (!%p156_p3), 261120  }
   0xa   : > { %v220_v4 = vand.u32 (!%p156_p3), 1, %v215_v1  ;;  %v1178_v22 = vld [vmem:[%s1530_s1 + $0x18] sm:$0xff] (!%p156_p3)   ;;  %v1179_v23 = vld [vmem:[%s1530_s1 + $0x60] sm:$0xff] (!%p156_p3)   ;;  %v1181_v28 = vld [vmem:[%s1530_s1 + $0x68] sm:$0xff] (!%p156_p3)   ;;  %vm1253_vm14 = vmmov (!%p156_p3), 0   ;;  %vm911_vm15 = vcmask (!%p156_p3), 779264  }
   0xb   : > { %v1180_v27 = vld [vmem:[%s1530_s1 + $0x20] sm:$0xff] (!%p156_p3)   ;;  %v1182_v32 = vld [vmem:[%s1530_s1 + $0x28] sm:$0xff] (!%p156_p3)   ;;  %v1183_v33 = vld [vmem:[%s1530_s1 + $0x70] sm:$0xff] (!%p156_p3)  }
   0xc   : > { %vm1322_vm7 = vcmp.ne.s32.totalorder (!%p156_p3), %v220_v4, 1  ;;  %1056 = vmatpush3.bf16.msra.mxu0 (!%p156_p3), %v1174_v8  ;;  %vm1338_vm9 = vcmp.ne.s32.totalorder (!%p156_p3), %v220_v4, 0  ;;  %v1187_v34 = vld [vmem:[%s1530_s1 + $0xc0] sm:$0xff] (!%p156_p3)   ;;  %v1189_v36 = vld [vmem:[%s1530_s1 + $0xc8] sm:$0xff] (!%p156_p3)   ;;  %v1184_v38 = vld [vmem:[%s1530_s1 + $0x30] sm:$0xff] (!%p156_p3)  }
   0xd   : > { %1057 = vmatprep.subr.bf16.mxu0 (!%p156_p3), %v1175_v12  ;;  %vm254_vm8 = vmpackc.low (!%p156_p3), %vm1322_vm7, %vm1322_vm7  ;;  %v1188_v35 = vld [vmem:[%s1530_s1 + $0x80] sm:$0xff] (!%p156_p3)   ;;  %1075 = vmatprep.subr.bf16.mxu1 (!%p156_p3), %v1187_v34  ;;  %v1190_v37 = vld [vmem:[%s1530_s1 + $0x88] sm:$0xff] (!%p156_p3)  }
   0xe   : > { %s1546_s12 = smov (!%p183_p4, %s1239_s12), 1  ;;  %vm249_vm10 = vmpackc.low %vm1338_vm9, %vm1338_vm9  ;;  %1076 = vmatpush3.bf16.msra.mxu1 %v1188_v35  ;;  %v1185_v39 = vld [vmem:[%s1530_s1 + $0x78] sm:$0xff]   ;;  %v1193_v40 = vld [vmem:[%s1530_s1 + $0xd0] sm:$0xff]  }
   0xf   : > { %s992_s20 = sshll.u32 %s1546_s12, 1  ;;  %1077 = vmatprep.subr.bf16.mxu1 %v1189_v36  ;;  %v1194_v41 = vld [vmem:[%s1530_s1 + $0x90] sm:$0xff]   ;;  %v1186_v42 = vld [vmem:[%s1530_s1 + $0x38] sm:$0xff]   ;;  %v1191_v43 = vld [vmem:[%s1530_s1 + $0x140] sm:$0xff]  }
  0x10   : > { %s189_s23 = scalar_lea.vmem %s1529_s0, %s992_s20  ;;  %1058 = vmatpush3.bf16.msra.mxu0 %v1176_v14  ;;  %v1197_v44 = vld [vmem:[%s1530_s1 + $0xd8] sm:$0xff]   ;;  %v1201_v46 = vld [vmem:[%s1530_s1 + $0xe0] sm:$0xff]   ;;  %v1205_v48 = vld [vmem:[%s1530_s1 + $0xe8] sm:$0xff]   ;;  %s196_s27 = scalar_lea.vmem %s1532_s3, %s992_s20 }
  0x11   : > { %v994_v6 = vld.sshfl [vmem:[%s189_s23] sm:$0x3 pattern:$0x76325410]  ;;  %1059 = vmatprep.subr.bf16.mxu0 %v1177_v16  ;;  %v1198_v45 = vld [vmem:[%s1530_s1 + $0x98] sm:$0xff]   ;;  %v1206_v49 = vld [vmem:[%s1530_s1 + $0xa8] sm:$0xff]  }
  0x12   : > { %v207_v9 = vrot.slane %v994_v6, 7  ;;  %1078 = vmatpush3.bf16.msra.mxu1 %v1190_v37  ;;  %v1202_v47 = vld [vmem:[%s1530_s1 + $0xa0] sm:$0xff]   ;;  %v1209_v50 = vld [vmem:[%s1530_s1 + $0xf0] sm:$0xff]   ;;  %v1213_v52 = vld [vmem:[%s1530_s1 + $0xf8] sm:$0xff]  }
  0x13   : > { %1079 = vmatprep.subr.bf16.mxu1 %v1193_v40  ;;  %v1210_v51 = vld [vmem:[%s1530_s1 + $0xb0] sm:$0xff]   ;;  %v1214_v53 = vld [vmem:[%s1530_s1 + $0xb8] sm:$0xff]   ;;  %v1192_v59 = vld [vmem:[%s1530_s1 + $0x100] sm:$0xff]  }
  0x14   : > { %v211_v13 = vsel %vm208_vm3, 0, %v207_v9  ;;  %1060 = vmatpush3.bf16.msra.mxu0 %v1178_v22  ;;  %v1195_v62 = vld [vmem:[%s1530_s1 + $0x148] sm:$0xff]   ;;  %v1199_v2 = vld [vmem:[%s1530_s1 + $0x150] sm:$0xff]   ;;  %v1203_v5 = vld [vmem:[%s1530_s1 + $0x158] sm:$0xff]  }
  0x15   : > { %v213_v15 = vsel %vm212_vm4, %v211_v13, 0  ;;  %1061 = vmatprep.subr.bf16.mxu0 %v1179_v23  ;;  %v1196_v0 = vld [vmem:[%s1530_s1 + $0x108] sm:$0xff]   ;;  %v1200_v4 = vld [vmem:[%s1530_s1 + $0x110] sm:$0xff]   ;;  %v1204_v7 = vld [vmem:[%s1530_s1 + $0x118] sm:$0xff]  }
  0x16   : > { %257 = vrot.lane.b32.xlu0 %v213_v15, %s1249_s7  ;;  %v228_v17 = vshrl.u32 %v213_v15, 16  ;;  %v231_v18 = vshll.u32 %v213_v15, 16  ;;  %1080 = vmatpush3.bf16.msra.mxu1 %v1194_v41  ;;  %v1207_v8 = vld [vmem:[%s1530_s1 + $0x160] sm:$0xff]   ;;  %v1211_v10 = vld [vmem:[%s1530_s1 + $0x168] sm:$0xff]   ;;  %v1215_v12 = vld [vmem:[%s1530_s1 + $0x170] sm:$0xff]  }
  0x17   : > { %1081 = vmatprep.subr.bf16.mxu1 %v1197_v44  ;;  %v1208_v9 = vld [vmem:[%s1530_s1 + $0x120] sm:$0xff]   ;;  %v1212_v11 = vld [vmem:[%s1530_s1 + $0x128] sm:$0xff]   ;;  %v1216_v13 = vld [vmem:[%s1530_s1 + $0x130] sm:$0xff]  }
  0x18   : > { %v230_v20 = vrot.slane %v228_v17, 7  ;;  %v239_v21 = vrot.slane %v231_v18, 1  ;;  %1062 = vmatpush3.bf16.msra.mxu0 %v1180_v27  ;;  %v1217_v14 = vld [vmem:[%s1530_s1 + $0x178] sm:$0xff]   ;;  %v1218_v19 = vld [vmem:[%s1530_s1 + $0x180] sm:$0xff]  }
  0x19   : > { %1063 = vmatprep.subr.bf16.mxu0 %v1181_v28  ;;  %v1219_v15 = vld [vmem:[%s1530_s1 + $0x138] sm:$0xff]   ;;  %v1221_v28 = vld [vmem:[%s1530_s1 + $0x190] sm:$0xff]  }
  0x1a   : > { %v233_v24 = vor.u32 %v231_v18, %v230_v20  ;;  %v240_v25 = vor.u32 %v239_v21, %v228_v17  ;;  %1082 = vmatpush3.bf16.msra.mxu1 %v1198_v45 }
  0x1b   : > { %1083 = vmatprep.subr.bf16.mxu1 %v1201_v46 }
  0x1c   : > { %v245_v26 = vsel %vm1318_vm6, %v240_v25, 0  ;;  %v238_v29 = vsel %vm1310_vm5, 0, %v233_v24  ;;  %1064 = vmatpush3.bf16.msra.mxu0 %v1182_v32  ;;  %v1220_v25 = vld [vmem:[%s1530_s1 + $0x188] sm:$0xff]  }
  0x1d   : > { %v255_v30 = vsel %vm254_vm8, %v245_v26, 0  ;;  %v250_v31 = vsel %vm249_vm10, %v238_v29, 0  ;;  %1065 = vmatprep.subr.bf16.mxu0 %v1183_v33  ;;  %v1222_v29 = vld [vmem:[%s1530_s1 + $0x198] sm:$0xff]  }
  0x1e   : > { %260 = vrot.lane.b32.xlu0 %v255_v30, %s1250_s21  ;;  %1084 = vmatpush3.bf16.msra.mxu1 %v1202_v47  ;;  %v1223_v30 = vld [vmem:[%s1530_s1 + $0x1a0] sm:$0xff]  }
  0x1f   : > { %1085 = vmatprep.subr.bf16.mxu1 %v1205_v48 }
  0x20   : > { %1066 = vmatpush3.bf16.msra.mxu0 %v1184_v38 }
  0x21   : > { %1067 = vmatprep.subr.bf16.mxu0 %v1185_v39  ;;  %v995_v39 = vld [vmem:[%s1531_s2] ss:$0 sm:$0xff] }
  0x22   : > { %1086 = vmatpush3.bf16.msra.mxu1 %v1206_v49 }
  0x23   : > { %1087 = vmatprep.subr.bf16.mxu1 %v1209_v50 }
  0x24   : > { %1068 = vmatpush3.bf16.msra.mxu0 %v1186_v42 }
  0x25   : > { %1097 = vmatprep.subr.bf16.mxu0 %v1191_v43 }
  0x26   : > { %1088 = vmatpush3.bf16.msra.mxu1 %v1210_v51 }
  0x27   : > { %1089 = vmatprep.subr.bf16.mxu1 %v1213_v52 }
  0x2a   : > { %1090 = vmatpush3.bf16.msra.mxu1 %v1214_v53 }
  0x2b   : > { %1126 = vmatprep.subr.bf16.mxu1 %v1251_v55 }
  0x88   : > { %v258_v54 = vpop.permute.xlu0 %257 }
  0x89   : > { %v265_v56 = vsel %vm262_vm11, %v250_v31, %v258_v54  ;;  %v1224_v31 = vld [vmem:[%s1530_s1 + $0x1a8] sm:$0xff]  }
  0x8a   : > { %v273_v57 = vrot.slane %v265_v56, 1  ;;  %v286_v3 = vrot.slane %v265_v56, 2 }
  0x8c   : > { %276 = vrot.lane.b32.xlu1 %v273_v57, %s1252_s24 }
  0x90   : > { %v261_v58 = vpop.permute.xlu0 %260 }
  0x91   : > { %v269_v60 = vsel %vm267_vm12, %v258_v54, %v261_v58  ;;  %v275_v61 = vrot.slane %v261_v58, 1  ;;  %v288_v6 = vrot.slane %v261_v58, 2 }
  0x92   : > { %781 = vmatprep.mubr.bf16.mxu0 %v269_v60  ;;  %v274_v63 = vrot.slane %v269_v60, 1  ;;  %v287_v1 = vrot.slane %v269_v60, 2 }
  0x93   : > { %280 = vrot.lane.b32.xlu0 %v275_v61, %s1252_s24  ;;  %782 = vmatmul.mubr.bf16.vlgmr.msra.gmra.mrb[0].mxu0 %v265_v56 }
  0x94   : > { %278 = vrot.lane.b32.xlu1 %v274_v63, %s1252_s24  ;;  %1098 = vmatpush3.bf16.msra.mxu0 %v1192_v59 }
  0x95   : > { %1099 = vmatprep.subr.bf16.mxu0 %v1195_v62 }
  0x97   : > { %291 = vrot.lane.b32.xlu0 %v287_v1, %s1250_s21 }
  0x98   : > { %289 = vrot.lane.b32.xlu1 %v286_v3, %s1250_s21  ;;  %1100 = vmatpush3.bf16.msra.mxu0 %v1196_v0 }
  0x99   : > { %1101 = vmatprep.subr.bf16.mxu0 %v1199_v2 }
  0x9c   : > { %293 = vrot.lane.b32.xlu1 %v288_v6, %s1250_s21  ;;  %1102 = vmatpush3.bf16.msra.mxu0 %v1200_v4 }
  0x9d   : > { %1103 = vmatprep.subr.bf16.mxu0 %v1203_v5 }
  0xa0   : > { %1104 = vmatpush3.bf16.msra.mxu0 %v1204_v7 }
  0xa1   : > { %1105 = vmatprep.subr.bf16.mxu0 %v1207_v8 }
  0xa4   : > { %1106 = vmatpush3.bf16.msra.mxu0 %v1208_v9 }
  0xa5   : > { %1107 = vmatprep.subr.bf16.mxu0 %v1211_v10 }
  0xa8   : > { %1108 = vmatpush3.bf16.msra.mxu0 %v1212_v11 }
  0xa9   : > { %1109 = vmatprep.subr.bf16.mxu0 %v1215_v12 }
  0xac   : > { %1110 = vmatpush3.bf16.msra.mxu0 %v1216_v13 }
  0xad   : > { %1111 = vmatprep.subr.bf16.mxu0 %v1217_v14 }
  0xb0   : > { %1112 = vmatpush3.bf16.msra.mxu0 %v1219_v15 }
  0xfe   : > { %v277_v16 = vpop.permute.xlu1 %276 }
  0xff   : > { %v301_v21 = vsel %vm282_vm13, %v261_v58, %v277_v16 }
 0x105   : > { %v281_v17 = vpop.permute.xlu0 %280 }
 0x106   : > { %v279_v18 = vpop.permute.xlu1 %278 }
 0x107   : > { %v283_v20 = vsel %vm282_vm13, %v277_v16, %v279_v18  ;;  %v284_v23 = vsel %vm282_vm13, %v279_v18, %v281_v17 }
 0x108   : > { %821 = vmatprep.mubr.bf16.mxu1 %v283_v20 }
 0x109   : > { %v292_v22 = vpop.permute.xlu0 %291  ;;  %822 = vmatmul.mubr.bf16.vlgmr.msra.gmra.mrb[0].mxu1 %v301_v21 }
 0x10a   : > { %1127 = vmatpush3.bf16.msra.mxu1 %v1218_v19  ;;  %v290_v24 = vpop.permute.xlu1 %289  ;;  %1138 = vmatprep.mubr.msk.bf16.mxu1 %vm1253_vm14, %v1251_v55 }
 0x10b   : > { %v305_v26 = vsel %vm267_vm12, %v284_v23, %v290_v24  ;;  %v296_v27 = vsel %vm267_vm12, %v290_v24, %v292_v22  ;;  %1128 = vmatprep.subr.bf16.mxu1 %v1251_v55 }
 0x10c   : > { %861 = vmatprep.mubr.bf16.mxu0 %v296_v27 }
 0x10d   : > { %862 = vmatmul.mubr.bf16.vlgmr.msra.gmra.mrb[4].mxu0 %v305_v26 }
 0x10e   : > { %1129 = vmatpush3.bf16.msra.mxu1 %v1220_v25  ;;  %v294_v32 = vpop.permute.xlu1 %293 }
 0x10f   : > { %1130 = vmatprep.subr.bf16.mxu1 %v1251_v55  ;;  %v297_v33 = vsel %vm267_vm12, %v292_v22, %v294_v32 }
 0x112   : > { %1131 = vmatpush3.bf16.msra.mxu1 %v1221_v28 }
 0x113   : > { %1132 = vmatprep.subr.bf16.mxu1 %v1251_v55 }
 0x116   : > { %1133 = vmatpush3.bf16.msra.mxu1 %v1222_v29 }
 0x117   : > { %1134 = vmatprep.subr.bf16.mxu1 %v1251_v55 }
 0x11a   : > { %1135 = vmatpush3.bf16.msra.mxu1 %v1223_v30 }
 0x11b   : > { %1136 = vmatprep.subr.bf16.mxu1 %v1251_v55 }
 0x11e   : > { %1137 = vmatpush3.bf16.msra.mxu1 %v1224_v31 }
 0x121   : > { %1139 = vmatmul.mubr.msk.bf16.vlgmr.msra.gmra.mrb[4].mxu1 %vm262_vm11, %v297_v33 }
 0x166   : > { %v1069_v34 = vpop.f32.mrb[0].mxu0 }
 0x167   : > { %v1070_v35 = vpop.f32.mrb[1].mxu0 }
 0x168   : > { %v1071_v36 = vadd.f32 %v1070_v35, %v1069_v34  ;;  %v1072_v37 = vpop.f32.mrb[2].mxu0 }
 0x169   : > { %v1073_v38 = vpop.f32.mrb[3].mxu0 }
 0x16a   : > { %v784_v42 = vadd.f32 %v1071_v36, %v995_v39 }
 0x1dc   : > { %v1091_v40 = vpop.f32.mrb[0].mxu1 }
 0x1dd   : > { %v1092_v41 = vpop.f32.mrb[1].mxu1 }
 0x1de   : > { %v1093_v43 = vadd.f32 %v1092_v41, %v1091_v40  ;;  %v1094_v44 = vpop.f32.mrb[2].mxu1 }
 0x1df   : > { %v1095_v45 = vpop.f32.mrb[3].mxu1 }
 0x1e0   : > { %v824_v46 = vadd.f32 %v1093_v43, %v784_v42  ;;  %v1113_v47 = vpop.f32.mrb[4].mxu0 }
 0x1e1   : > { %v1114_v48 = vpop.f32.mrb[5].mxu0 }
 0x1e2   : > { %v1115_v49 = vadd.f32 %v1114_v48, %v1113_v47  ;;  %v1116_v50 = vpop.f32.mrb[6].mxu0 }
 0x1e3   : > { %v1117_v51 = vpop.f32.mrb[7].mxu0 }
 0x1e4   : > { %v864_v52 = vadd.f32 %v1115_v49, %v824_v46 }
 0x1f4   : > { %v903_v53 = vpop.f32.mrb[4].mxu1 }
 0x1f5   : > { %v904_v54 = vadd.f32 %v903_v53, %v864_v52  ;;  %v1140_v55 = vpop.f32.mrb[5].mxu1 }
 0x1f6   : > { %v906_v56 = vpop.f32.mrb[6].mxu1 }
 0x1f7   : > { %v909_v57 = vmax.f32 %v904_v54, 0.0  ;;  %v1141_v58 = vpop.f32.mrb[7].mxu1 }
 0x1f9   : > { %v910_v59 = vpack.c.bf16 %v909_v57, %v909_v57 }
 0x1fb   : > { %912 = vst.msk [vmem:[%s196_s27] sm:$0x3] %vm911_vm15, %v910_v59 }
 0x1fc PF: > { %s13_s14 = sadd.s32 1, %s1247_s14   ;;  %s1541_s12 = smov %s1243_s13 }
 0x1fd   : > { %p10_p5 = scmp.ge.s32.totalorder %s13_s14, 4   ;;  %s1542_s13 = smov %s1544_s15 }
 0x1ff   :  { %12 = sbr.rel (!%p10_p5) target bundleno = 2 (0x2), region = 62 }

// kernel: refinement_net_forward.21
= control target key start
LH: loop header
LB: loop body
LE: loop exit
PB: predicated region body
PF: predicated region fallthrough
CT: control target
= control target key end

     0   :  { %s809_s12 = smov 0   ;;  %s811_s13 = smov 0   ;;  %s894_s0 = inlined_call_operand.vmem [shape: bf16[2,4,4,128], index: 0, kind: input, shape index: {}, may-alias: {0,1,2}]   ;;  %s895_s1 = inlined_call_operand.vmem [shape: bf16[2,4,4,128], index: 1, kind: input, shape index: {}, may-alias: {0,1,2}]   ;;  %s896_s2 = inlined_call_operand.vmem [shape: bf16[2,4,4,128], index: 2, kind: input, shape index: {}, may-alias: {0,1,2}]   ;;  %s897_s3 = inlined_call_operand.vmem [shape: bf16[2,4,2,4,256], index: 3, kind: output, shape index: {}]  }
   0x1   :  { %s813_s14 = smov 0  }
   0x2 LB: > { %s25_s15 = sadd.s32 1, %s783_s13  ;;  %p704_p0 = scmp.ge.s32.totalorder %s787_s14, 1  ;;  %s787_s14 = sphi %s813_s14, %s13_s14   ;;  %s783_s13 = sphi %s811_s13, %s899_s13   ;;  %s779_s12 = sphi %s809_s12, %s898_s12  }
   0x3   : > { %p27_p1 = scmp.ge.s32.totalorder %s25_s15, 2  ;;  %p220_p2 = scmp.lt.s32.totalorder %s787_s14, 3 }
   0x5   : > { %s901_s15 = smov (%p27_p1, %s25_s15), 0  ;;  %p221_p3 = pnand %p704_p0, %p220_p2 }
   0x6   : > { %p278_p4 = scmp.lt.s32.totalorder (!%p221_p3), %s779_s12, 1  ;;  %vm372_vm0 = vcmask (!%p221_p3), 1040384   ;;  %vm385_vm1 = vcmask (!%p221_p3), 1042432  }
   0x7   : > { %224 = sbr.rel (%p221_p3) target bundleno = 53 (0x35), region = 32 }
   0xe   : > { %s903_s12 = smov (!%p278_p4, %s779_s12), 1 }
   0xf   : > { %s731_s16 = sshll.u32 %s903_s12, 3  ;;  %s735_s27 = sshll.u32 %s903_s12, 5 }
  0x10   : > { %s285_s19 = scalar_lea.vmem %s894_s0, %s731_s16  ;;  %s298_s22 = scalar_lea.vmem %s895_s1, %s731_s16 }
  0x11   : > { %v330_v0 = vld [vmem:[%s285_s19] sm:$0x3]  ;;  %v331_v2 = vld [vmem:[%s285_s19 + $0x2] sm:$0x3]  ;;  %v332_v6 = vld [vmem:[%s285_s19 + $0x4] sm:$0x3]  ;;  %s860_s30 = scalar_lea.vmem %s897_s3, %s735_s27 }
  0x12   : > { %v338_v1 = vld [vmem:[%s298_s22] sm:$0x3]  ;;  %v334_v3 = vunpack.c.l.bf16 %v330_v0  ;;  %v335_v5 = vunpack.c.l.bf16 %v331_v2  ;;  %v333_v7 = vld [vmem:[%s285_s19 + $0x6] sm:$0x3]  ;;  %s734_s23 = sadd.s32 6, %s731_s16  ;;  %v336_v8 = vunpack.c.l.bf16 %v332_v6 }
  0x13   : > { %v339_v4 = vunpack.c.l.bf16 %v338_v1  ;;  %v337_v9 = vunpack.c.l.bf16 %v333_v7  ;;  %s314_s26 = scalar_lea.vmem %s896_s2, %s734_s23 }
  0x14   : > { %v346_v11 = vmul.f32 0.75, %v334_v3  ;;  %v343_v12 = vmul.f32 0.25, %v334_v3  ;;  %v347_v13 = vmul.f32 0.75, %v335_v5  ;;  %v839_v14 = vld [vmem:[%s314_s26] sm:$0x3]  ;;  %v344_v15 = vmul.f32 0.25, %v335_v5 }
  0x15   : > { %v342_v10 = vmul.f32 0.25, %v339_v4  ;;  %v841_v16 = vmul.f32 0.75, %v336_v8  ;;  %v345_v17 = vmul.f32 0.25, %v336_v8  ;;  %v843_v18 = vmul.f32 0.75, %v337_v9 }
  0x16   : > { %v351_v20 = vadd.f32 %v347_v13, %v343_v12  ;;  %v845_v21 = vmul.f32 0.25, %v337_v9  ;;  %v341_v22 = vunpack.c.l.bf16 %v839_v14  ;;  %v356_v25 = vadd.f32 %v346_v11, %v344_v15 }
  0x17   : > { %v350_v19 = vadd.f32 %v346_v11, %v342_v10  ;;  %v352_v23 = vadd.f32 %v841_v16, %v344_v15  ;;  %v353_v24 = vadd.f32 %v843_v18, %v345_v17  ;;  %v357_v26 = vadd.f32 %v347_v13, %v345_v17 }
  0x18   : > { %v365_v30 = vrot.slane %v351_v20, 7  ;;  %v378_v31 = vrot.slane %v351_v20, 1  ;;  %v395_v32 = vmul.f32 0.75, %v351_v20  ;;  %v414_v62 = vrot.slane %v356_v25, 7 }
  0x19   : > { %v364_v27 = vrot.slane %v350_v19, 7  ;;  %v377_v28 = vrot.slane %v350_v19, 1  ;;  %v394_v29 = vmul.f32 0.75, %v350_v19  ;;  %v366_v33 = vrot.slane %v352_v23, 7 }
  0x1a   : > { %v379_v34 = vrot.slane %v352_v23, 1  ;;  %v374_v37 = vsel %vm372_vm0, %v351_v20, %v365_v30  ;;  %v396_v38 = vmul.f32 0.75, %v352_v23  ;;  %v387_v41 = vsel %vm385_vm1, %v378_v31, %v351_v20 }
  0x1b   : > { %v373_v35 = vsel %vm372_vm0, %v350_v19, %v364_v27  ;;  %v386_v36 = vsel %vm385_vm1, %v377_v28, %v350_v19  ;;  %v391_v42 = vmul.f32 0.25, %v374_v37  ;;  %v403_v43 = vmul.f32 0.25, %v387_v41 }
  0x1c   : > { %v390_v39 = vmul.f32 0.25, %v373_v35  ;;  %v402_v40 = vmul.f32 0.25, %v386_v36  ;;  %v375_v44 = vsel %vm372_vm0, %v352_v23, %v366_v33  ;;  %v388_v45 = vsel %vm385_vm1, %v379_v34, %v352_v23 }
  0x1d   : > { %v367_v46 = vrot.slane %v353_v24, 7  ;;  %v399_v49 = vadd.f32 %v395_v32, %v391_v42  ;;  %v392_v50 = vmul.f32 0.25, %v375_v44  ;;  %v407_v51 = vadd.f32 %v403_v43, %v395_v32 }
  0x1e   : > { %v398_v47 = vadd.f32 %v394_v29, %v390_v39  ;;  %v406_v48 = vadd.f32 %v402_v40, %v394_v29  ;;  %v404_v52 = vmul.f32 0.25, %v388_v45  ;;  %v380_v54 = vrot.slane %v353_v24, 1 }
  0x1f   : > { %v376_v53 = vsel %vm372_vm0, %v353_v24, %v367_v46  ;;  %v400_v56 = vadd.f32 %v396_v38, %v392_v50  ;;  %v397_v58 = vmul.f32 0.75, %v353_v24  ;;  %v714_v59 = vpack.c.bf16 %v407_v51, %v399_v49 }
  0x20   : > { %v713_v55 = vpack.c.bf16 %v406_v48, %v398_v47  ;;  %v393_v57 = vmul.f32 0.25, %v376_v53  ;;  %v408_v60 = vadd.f32 %v404_v52, %v396_v38  ;;  %v389_v61 = vsel %vm385_vm1, %v380_v54, %v353_v24 }
  0x21   : > { %v405_v0 = vmul.f32 0.25, %v389_v61  ;;  %v426_v1 = vrot.slane %v356_v25, 1  ;;  %v442_v2 = vmul.f32 0.75, %v356_v25  ;;  %v422_v4 = vsel %vm372_vm0, %v356_v25, %v414_v62 }
  0x22   : > { %717 = vst.sshfl [vmem:[%s860_s30] sm:$0x33 pattern:$0x76325410] %v713_v55  ;;  %v401_v63 = vadd.f32 %v397_v58, %v393_v57  ;;  %v715_v3 = vpack.c.bf16 %v408_v60, %v400_v56  ;;  %v415_v5 = vrot.slane %v357_v26, 7  ;;  %v427_v6 = vrot.slane %v357_v26, 1 }
  0x23   : > { %718 = vst.sshfl [vmem:[%s860_s30 + $0x8] sm:$0x33 pattern:$0x76325410] %v714_v59  ;;  %v409_v7 = vadd.f32 %v405_v0, %v397_v58  ;;  %v434_v8 = vsel %vm385_vm1, %v426_v1, %v356_v25  ;;  %v438_v9 = vmul.f32 0.25, %v422_v4  ;;  %v443_v10 = vmul.f32 0.75, %v357_v26 }
  0x24   : > { %719 = vst.sshfl [vmem:[%s860_s30 + $0x10] sm:$0x33 pattern:$0x76325410] %v715_v3  ;;  %v450_v11 = vmul.f32 0.25, %v434_v8  ;;  %v423_v12 = vsel %vm372_vm0, %v357_v26, %v415_v5  ;;  %v435_v13 = vsel %vm385_vm1, %v427_v6, %v357_v26  ;;  %v358_v15 = vadd.f32 %v845_v21, %v841_v16 }
  0x25   : > { %v716_v17 = vpack.c.bf16 %v409_v7, %v401_v63  ;;  %v446_v19 = vadd.f32 %v442_v2, %v438_v9  ;;  %v439_v20 = vmul.f32 0.25, %v423_v12  ;;  %v451_v23 = vmul.f32 0.25, %v435_v13 }
  0x26   : > { %v454_v24 = vadd.f32 %v450_v11, %v442_v2  ;;  %v416_v27 = vrot.slane %v358_v15, 7  ;;  %v428_v25 = vrot.slane %v358_v15, 1  ;;  %v444_v30 = vmul.f32 0.75, %v358_v15 }
  0x27   : > { %720 = vst.sshfl [vmem:[%s860_s30 + $0x18] sm:$0x33 pattern:$0x76325410] %v716_v17  ;;  %v447_v28 = vadd.f32 %v443_v10, %v439_v20  ;;  %v455_v29 = vadd.f32 %v451_v23, %v443_v10  ;;  %v355_v31 = vmul.f32 0.25, %v341_v22 }
  0x28   : > { %v721_v26 = vpack.c.bf16 %v454_v24, %v446_v19  ;;  %v424_v32 = vsel %vm372_vm0, %v358_v15, %v416_v27  ;;  %v436_v16 = vsel %vm385_vm1, %v428_v25, %v358_v15 }
  0x29   : > { %v722_v21 = vpack.c.bf16 %v455_v29, %v447_v28  ;;  %v440_v33 = vmul.f32 0.25, %v424_v32  ;;  %v452_v34 = vmul.f32 0.25, %v436_v16  ;;  %v359_v35 = vadd.f32 %v355_v31, %v843_v18 }
  0x2a   : > { %736 = vst.sshfl [vmem:[%s860_s30 + $0x4] sm:$0x33 pattern:$0x76325410] %v721_v26 }
  0x2b   : > { %737 = vst.sshfl [vmem:[%s860_s30 + $0xc] sm:$0x33 pattern:$0x76325410] %v722_v21  ;;  %v448_v36 = vadd.f32 %v444_v30, %v440_v33  ;;  %v456_v37 = vadd.f32 %v452_v34, %v444_v30  ;;  %v417_v38 = vrot.slane %v359_v35, 7  ;;  %v429_v39 = vrot.slane %v359_v35, 1 }
  0x2c   : > { %v445_v14 = vmul.f32 0.75, %v359_v35 }
  0x2d   : > { %v723_v22 = vpack.c.bf16 %v456_v37, %v448_v36  ;;  %v425_v40 = vsel %vm372_vm0, %v359_v35, %v417_v38  ;;  %v437_v41 = vsel %vm385_vm1, %v429_v39, %v359_v35 }
  0x2e   : > { %v441_v42 = vmul.f32 0.25, %v425_v40  ;;  %v453_v43 = vmul.f32 0.25, %v437_v41 }
  0x2f   : > { %738 = vst.sshfl [vmem:[%s860_s30 + $0x14] sm:$0x33 pattern:$0x76325410] %v723_v22 }
  0x30   : > { %v449_v44 = vadd.f32 %v445_v14, %v441_v42  ;;  %v457_v45 = vadd.f32 %v453_v43, %v445_v14 }
  0x32   : > { %v724_v46 = vpack.c.bf16 %v457_v45, %v449_v44 }
  0x34   : > { %739 = vst.sshfl [vmem:[%s860_s30 + $0x1c] sm:$0x33 pattern:$0x76325410] %v724_v46 }
  0x35 PF: > { %s13_s14 = sadd.s32 1, %s787_s14   ;;  %s898_s12 = smov %s783_s13 }
  0x36   : > { %p10_p5 = scmp.ge.s32.totalorder %s13_s14, 4   ;;  %s899_s13 = smov %s901_s15 }
  0x38   :  { %12 = sbr.rel (!%p10_p5) target bundleno = 2 (0x2), region = 69 }

// kernel: refinement_net_forward.20
= control target key start
LH: loop header
LB: loop body
LE: loop exit
PB: predicated region body
PF: predicated region fallthrough
CT: control target
= control target key end

     0   :  { %s1431_s12 = smov 0   ;;  %s1433_s13 = smov 0   ;;  %s1729_s0 = inlined_call_operand.vmem [shape: bf16[2,16,96], index: 0, kind: input, shape index: {}]   ;;  %s1730_s1 = inlined_call_operand.vmem [shape: bf16[864,64], index: 1, kind: input, shape index: {}]   ;;  %s1731_s2 = inlined_call_operand.vmem [shape: f32[1,64], index: 2, kind: input, shape index: {}]   ;;  %s1732_s3 = inlined_call_operand.vmem [shape: bf16[2,1,16,64], index: 3, kind: output, shape index: {}]  }
   0x1   :  { %s1435_s14 = smov 0  }
   0x2 LB: > { %s25_s15 = sadd.s32 1, %s1399_s13  ;;  %p1133_p0 = scmp.ge.s32.totalorder %s1403_s14, 1  ;;  %s1403_s14 = sphi %s1435_s14, %s13_s14   ;;  %s1399_s13 = sphi %s1433_s13, %s1744_s13   ;;  %s1395_s12 = sphi %s1431_s12, %s1743_s12  }
   0x3   : > { %p27_p1 = scmp.ge.s32.totalorder %s25_s15, 2  ;;  %p158_p2 = scmp.lt.s32.totalorder %s1403_s14, 3 }
   0x5   : > { %s1746_s15 = smov (%p27_p1, %s25_s15), 0  ;;  %p159_p3 = pnand %p1133_p0, %p158_p2 }
   0x6   : > { %p191_p4 = scmp.lt.s32.totalorder (!%p159_p3), %s1395_s12, 1  ;;  %v225_v0 = vlaneseq (!%p159_p3)  ;;  %vm220_vm0 = vcmask (!%p159_p3), 1041408   ;;  %vm293_vm1 = vsmask.f32 (!%p159_p3), 3328  ;;  %v1327_v2 = vld [vmem:[%s1730_s1 + $0x40] sm:$0xff] (!%p159_p3)   ;;  %vm292_vm2 = vcmask (!%p159_p3), 1043456  }
   0x7   : > { %162 = sbr.rel (%p159_p3) target bundleno = 514 (0x202), region = 32  ;;  %v1328_v3 = vld [vmem:[%s1730_s1] sm:$0xff] (!%p159_p3)   ;;  %1207 = vmatprep.subr.bf16.mxu0 (!%p159_p3), %v1327_v2  ;;  %v1329_v7 = vld [vmem:[%s1730_s1 + $0x48] sm:$0xff] (!%p159_p3)   ;;  %vm284_vm3 = vsmask.f32 (!%p159_p3), 7424  ;;  %v1331_v12 = vld [vmem:[%s1730_s1 + $0x50] sm:$0xff] (!%p159_p3)  }
   0x8   : > { %v1451_v1 = vshrl.u32 (!%p159_p3), %v225_v0, 7  ;;  %1208 = vmatpush3.bf16.msra.mxu0 (!%p159_p3), %v1328_v3  ;;  %v1330_v11 = vld [vmem:[%s1730_s1 + $0x8] sm:$0xff] (!%p159_p3)   ;;  %vm281_vm5 = vcmask (!%p159_p3), 1040384   ;;  %v1405_v14 = vmov (!%p159_p3), 0   ;;  %v1332_v20 = vld [vmem:[%s1730_s1 + $0x10] sm:$0xff] (!%p159_p3)   ;;  %s1406_s5 = smov (!%p159_p3), 96   ;;  %vm1505_vm11 = vmand (!%p159_p3), %vm292_vm2, %vm293_vm1 }
   0x9   : > { %1209 = vmatprep.subr.bf16.mxu0 (!%p159_p3), %v1329_v7  ;;  %v1333_v27 = vld [vmem:[%s1730_s1 + $0x58] sm:$0xff] (!%p159_p3)   ;;  %v1335_v36 = vld [vmem:[%s1730_s1 + $0x60] sm:$0xff] (!%p159_p3)   ;;  %vm265_vm14 = vsmask.f32 (!%p159_p3), 256  ;;  %v1337_v45 = vld [vmem:[%s1730_s1 + $0x68] sm:$0xff] (!%p159_p3)   ;;  %s1407_s21 = smov (!%p159_p3), 64  }
   0xa   : > { %v1461_v4 = vadd.s32 (!%p159_p3), 8, %v1451_v1  ;;  %v233_v5 = vand.u32 (!%p159_p3), 3, %v1451_v1  ;;  %v1465_v6 = vadd.s32 (!%p159_p3), 16, %v1451_v1  ;;  %v1334_v33 = vld [vmem:[%s1730_s1 + $0x18] sm:$0xff] (!%p159_p3)   ;;  %v1336_v41 = vld [vmem:[%s1730_s1 + $0x20] sm:$0xff] (!%p159_p3)   ;;  %vm1531_vm15 = vmand (!%p159_p3), %vm281_vm5, %vm265_vm14  ;;  %s1409_s26 = smov (!%p159_p3), 32  }
   0xb   : > { %v1338_v50 = vld [vmem:[%s1730_s1 + $0x28] sm:$0xff] (!%p159_p3)   ;;  %v1339_v54 = vld [vmem:[%s1730_s1 + $0x70] sm:$0xff] (!%p159_p3)   ;;  %v1341_v58 = vld [vmem:[%s1730_s1 + $0x78] sm:$0xff] (!%p159_p3)  }
   0xc   : > { %v240_v9 = vand.u32 (!%p159_p3), 3, %v1461_v4  ;;  %vm320_vm4 = vcmp.ne.s32.totalorder (!%p159_p3), %v233_v5, 3  ;;  %v247_v10 = vand.u32 (!%p159_p3), 3, %v1465_v6  ;;  %1210 = vmatpush3.bf16.msra.mxu0 (!%p159_p3), %v1330_v11  ;;  %v1340_v56 = vld [vmem:[%s1730_s1 + $0x30] sm:$0xff] (!%p159_p3)   ;;  %v1343_v59 = vld [vmem:[%s1730_s1 + $0xc0] sm:$0xff] (!%p159_p3)   ;;  %v1345_v63 = vld [vmem:[%s1730_s1 + $0xc8] sm:$0xff] (!%p159_p3)  }
   0xd   : > { %vm329_vm7 = vmpackc.low (!%p159_p3), %vm320_vm4, %vm320_vm4  ;;  %1211 = vmatprep.subr.bf16.mxu0 (!%p159_p3), %v1331_v12  ;;  %v1344_v62 = vld [vmem:[%s1730_s1 + $0x80] sm:$0xff] (!%p159_p3)   ;;  %1229 = vmatprep.subr.bf16.mxu1 (!%p159_p3), %v1343_v59  ;;  %v1346_v1 = vld [vmem:[%s1730_s1 + $0x88] sm:$0xff] (!%p159_p3)  }
   0xe   : > { %s1748_s12 = smov (!%p191_p4, %s1395_s12), 1  ;;  %vm321_vm6 = vcmp.ne.s32.totalorder %v240_v9, 3  ;;  %v332_v15 = vsel %vm329_vm7, 65537, %v1405_v14  ;;  %vm1486_vm9 = vcmp.ne.s32.totalorder %v247_v10, 3  ;;  %vm297_vm1 = vcmp.ne.s32.totalorder %v240_v9, 0  ;;  %1230 = vmatpush3.bf16.msra.mxu1 %v1344_v62  ;;  %v1342_v2 = vld [vmem:[%s1730_s1 + $0x38] sm:$0xff]  }
   0xf   : > { %s1203_s20 = sshll.u32 %s1748_s12, 3  ;;  %vm330_vm8 = vmpackc.low %vm321_vm6, %vm321_vm6  ;;  %vm298_vm4 = vcmp.ne.s32.totalorder %v247_v10, 0  ;;  %1231 = vmatprep.subr.bf16.mxu1 %v1345_v63  ;;  %v1347_v3 = vld [vmem:[%s1730_s1 + $0x140] sm:$0xff]   ;;  %v1349_v4 = vld [vmem:[%s1730_s1 + $0xd0] sm:$0xff]  }
  0x10   : > { %s198_s23 = scalar_lea.vmem %s1729_s0, %s1203_s20  ;;  %v333_v19 = vsel %vm330_vm8, 65537, %v1405_v14  ;;  %vm331_vm10 = vmpackc.low %vm1486_vm9, %vm1486_vm9  ;;  %1212 = vmatpush3.bf16.msra.mxu0 %v1332_v20  ;;  %v1353_v6 = vld [vmem:[%s1730_s1 + $0xd8] sm:$0xff]   ;;  %v1358_v9 = vld [vmem:[%s1730_s1 + $0xa0] sm:$0xff]   ;;  %vm356_vm9 = vcmask 785408   ;;  %s208_s28 = scalar_lea.vmem %s1732_s3, %s1203_s20 }
  0x11   : > { %v1326_v8 = vld [vmem:[%s198_s23] sm:$0xff]   ;;  %v1141_v25 = vcombine.low %v332_v15, %v333_v19  ;;  %v334_v26 = vsel %vm331_vm10, 65537, %v1405_v14  ;;  %1213 = vmatprep.subr.bf16.mxu0 %v1333_v27  ;;  %vm306_vm6 = vmpackc.low %vm297_vm1, %vm297_vm1  ;;  %v1354_v7 = vld [vmem:[%s1730_s1 + $0x98] sm:$0xff]   ;;  %vm374_vm10 = vcmask 1045504  }
  0x12   : > { %v219_v13 = vrot.slane %v1326_v8, 6  ;;  %v1142_v35 = vcombine.low %v334_v26, %v334_v26  ;;  %v309_v51 = vsel %vm306_vm6, 65537, %v1405_v14  ;;  %vm307_vm5 = vmpackc.low %vm298_vm4, %vm298_vm4  ;;  %1232 = vmatpush3.bf16.msra.mxu1 %v1346_v1  ;;  %v1357_v8 = vld [vmem:[%s1730_s1 + $0xe0] sm:$0xff]   ;;  %v1361_v10 = vld [vmem:[%s1730_s1 + $0xe8] sm:$0xff]  }
  0x13   : > { %vm1512_vm12 = vcmp.ne.s16.totalorder %v1141_v25, 0  ;;  %v310_v55 = vsel %vm307_vm5, 65537, %v1405_v14  ;;  %1233 = vmatprep.subr.bf16.mxu1 %v1349_v4  ;;  %v1362_v11 = vld [vmem:[%s1730_s1 + $0xa8] sm:$0xff]   ;;  %v1365_v12 = vld [vmem:[%s1730_s1 + $0xf0] sm:$0xff]   ;;  %v1370_v15 = vld [vmem:[%s1730_s1 + $0xb8] sm:$0xff]  }
  0x14   : > { %v223_v17 = vsel %vm220_vm0, 0, %v219_v13  ;;  %v224_v18 = vsel %vm220_vm0, %v219_v13, 0  ;;  %vm341_vm13 = vcmp.ne.s16.totalorder %v1142_v35, 0  ;;  %1214 = vmatpush3.bf16.msra.mxu0 %v1334_v33  ;;  %vm296_vm0 = vcmp.ne.s32.totalorder %v233_v5, 0  ;;  %v1350_v5 = vld [vmem:[%s1730_s1 + $0x90] sm:$0xff]   ;;  %v1352_v32 = vld [vmem:[%s1730_s1 + $0x108] sm:$0xff]  }
  0x15   : > { %346 = vrot.lane.b32.xlu0 %v223_v17, %s1406_s5  ;;  %v266_v21 = vshrl.u32 %v223_v17, 16  ;;  %v269_v22 = vshll.u32 %v223_v17, 16  ;;  %v272_v23 = vshrl.u32 %v224_v18, 16  ;;  %v275_v24 = vshll.u32 %v224_v18, 16  ;;  %1215 = vmatprep.subr.bf16.mxu0 %v1335_v36  ;;  %v1366_v13 = vld [vmem:[%s1730_s1 + $0xb0] sm:$0xff]   ;;  %v1374_v61 = vld [vmem:[%s1730_s1 + $0x180] sm:$0xff]  }
  0x16   : > { %v1140_v57 = vcombine.low %v310_v55, %v310_v55  ;;  %1234 = vmatpush3.bf16.msra.mxu1 %v1350_v5  ;;  %v1355_v36 = vld [vmem:[%s1730_s1 + $0x150] sm:$0xff]  }
  0x17   : > { %v268_v28 = vrot.slane %v266_v21, 7  ;;  %v285_v29 = vrot.slane %v269_v22, 1  ;;  %v274_v30 = vrot.slane %v272_v23, 7  ;;  %v287_v31 = vrot.slane %v275_v24, 1  ;;  %1235 = vmatprep.subr.bf16.mxu1 %v1353_v6  ;;  %v1372_v55 = vld [vmem:[%s1730_s1 + $0x130] sm:$0xff]  }
  0x18   : > { %1216 = vmatpush3.bf16.msra.mxu0 %v1336_v41  ;;  %vm1561_vm8 = vcmp.ne.s16.totalorder %v1140_v57, 0  ;;  %v1375_v57 = vld [vmem:[%s1730_s1 + $0x138] sm:$0xff]   ;;  %v1377_v6 = vld [vmem:[%s1730_s1 + $0x190] sm:$0xff]  }
  0x19   : > { %v271_v37 = vor.u32 %v269_v22, %v268_v28  ;;  %v277_v38 = vor.u32 %v275_v24, %v274_v30  ;;  %348 = vrot.lane.b32.xlu0 %v224_v18, %s1406_s5  ;;  %v286_v39 = vor.u32 %v285_v29, %v266_v21  ;;  %v289_v40 = vor.u32 %v287_v31, %v272_v23  ;;  %v1351_v30 = vld [vmem:[%s1730_s1 + $0x148] sm:$0xff]  }
  0x1a   : > { %1217 = vmatprep.subr.bf16.mxu0 %v1337_v45  ;;  %1236 = vmatpush3.bf16.msra.mxu1 %v1354_v7  ;;  %v1408_v22 = vmov 0.0   ;;  %v1378_v7 = vld [vmem:[%s1730_s1 + $0x198] sm:$0xff]  }
  0x1b   : > { %v288_v42 = vsel %vm284_vm3, %v286_v39, %v287_v31  ;;  %v295_v43 = vsel %vm1505_vm11, %v289_v40, 0  ;;  %vm305_vm3 = vmpackc.low %vm296_vm0, %vm296_vm0  ;;  %v1538_v47 = vsel %vm265_vm14, %v268_v28, %v277_v38  ;;  %v283_v52 = vsel %vm1531_vm15, 0, %v271_v37  ;;  %1237 = vmatprep.subr.bf16.mxu1 %v1357_v8  ;;  %v1348_v28 = vld [vmem:[%s1730_s1 + $0x100] sm:$0xff]  }
  0x1c   : > { %v342_v44 = vsel %vm1512_vm12, %v288_v42, 0  ;;  %v343_v48 = vsel %vm341_vm13, %v295_v43, 0  ;;  %v308_v49 = vsel %vm305_vm3, 65537, %v1405_v14  ;;  %1218 = vmatpush3.bf16.msra.mxu0 %v1338_v50  ;;  %v319_v0 = vsel %vm1561_vm8, %v1538_v47, 0  ;;  %v1369_v14 = vld [vmem:[%s1730_s1 + $0xf8] sm:$0xff]   ;;  %v1356_v42 = vld [vmem:[%s1730_s1 + $0x110] sm:$0xff]  }
  0x1d   : > { %352 = vrot.lane.b32.xlu1 %v342_v44, %s1407_s21  ;;  %v1139_v53 = vcombine.low %v308_v49, %v309_v51  ;;  %1219 = vmatprep.subr.bf16.mxu0 %v1339_v54  ;;  %vm364_vm11 = vcmask 523264   ;;  %v1359_v44 = vld [vmem:[%s1730_s1 + $0x158] sm:$0xff]   ;;  %v1364_v51 = vld [vmem:[%s1730_s1 + $0x120] sm:$0xff]   ;;  %v1371_v54 = vld [vmem:[%s1730_s1 + $0x170] sm:$0xff]   ;;  %vm1410_vm12 = vmmov 0   ;;  %vm1037_vm13 = vcmask 519168  }
  0x1e   : > { %1238 = vmatpush3.bf16.msra.mxu1 %v1358_v9  ;;  %v1360_v47 = vld [vmem:[%s1730_s1 + $0x118] sm:$0xff]   ;;  %v1379_v8 = vld [vmem:[%s1730_s1 + $0x1a0] sm:$0xff]   ;;  %v1380_v9 = vld [vmem:[%s1730_s1 + $0x1a8] sm:$0xff]  }
  0x1f   : > { %vm316_vm7 = vcmp.ne.s16.totalorder %v1139_v53, 0  ;;  %1239 = vmatprep.subr.bf16.mxu1 %v1361_v10  ;;  %v1368_v53 = vld [vmem:[%s1730_s1 + $0x128] sm:$0xff]  }
  0x20   : > { %v318_v60 = vsel %vm316_vm7, %v283_v52, 0  ;;  %1220 = vmatpush3.bf16.msra.mxu0 %v1340_v56  ;;  %v1367_v52 = vld [vmem:[%s1730_s1 + $0x168] sm:$0xff]   ;;  %v1373_v56 = vld [vmem:[%s1730_s1 + $0x178] sm:$0xff]  }
  0x21   : > { %354 = vrot.lane.b32.xlu1 %v343_v48, %s1407_s21  ;;  %1221 = vmatprep.subr.bf16.mxu0 %v1341_v58  ;;  %v1363_v48 = vld [vmem:[%s1730_s1 + $0x160] sm:$0xff]  }
  0x22   : > { %1240 = vmatpush3.bf16.msra.mxu1 %v1362_v11 }
  0x23   : > { %1241 = vmatprep.subr.bf16.mxu1 %v1365_v12 }
  0x24   : > { %1222 = vmatpush3.bf16.msra.mxu0 %v1342_v2 }
  0x25   : > { %1251 = vmatprep.subr.bf16.mxu0 %v1347_v3  ;;  %v1376_v3 = vld [vmem:[%s1730_s1 + $0x188] sm:$0xff]  }
  0x26   : > { %1242 = vmatpush3.bf16.msra.mxu1 %v1366_v13 }
  0x27   : > { %1243 = vmatprep.subr.bf16.mxu1 %v1369_v14 }
  0x2a   : > { %1244 = vmatpush3.bf16.msra.mxu1 %v1370_v15 }
  0x2b   : > { %1280 = vmatprep.subr.bf16.mxu1 %v1408_v22 }
  0x87   : > { %v347_v16 = vpop.permute.xlu0 %346 }
  0x88   : > { %v359_v17 = vsel %vm356_vm9, %v318_v60, %v347_v16 }
  0x89   : > { %v375_v18 = vrot.slane %v359_v17, 2  ;;  %v394_v19 = vrot.slane %v359_v17, 4 }
  0x8b   : > { %v349_v20 = vpop.permute.xlu0 %348 }
  0x8c   : > { %v363_v21 = vsel %vm356_vm9, %v319_v0, %v349_v20 }
  0x8d   : > { %v376_v23 = vrot.slane %v363_v21, 2  ;;  %v395_v24 = vrot.slane %v363_v21, 4 }
  0x8f   : > { %v1622_v25 = vpop.permute.xlu1 %352  ;;  %v377_v26 = vsel %vm374_vm10, %v375_v18, %v376_v23  ;;  %v396_v27 = vsel %vm292_vm2, %v394_v19, %v395_v24  ;;  %v1143_v18 = vld [vmem:[%s1731_s2] ss:$0 sm:$0xff] }
  0x90   : > { %384 = vrot.lane.b32.xlu0 %v377_v26, %s1409_s26  ;;  %v366_v29 = vsel %vm364_vm11, %v347_v16, %v1622_v25  ;;  %v381_v33 = vrot.slane %v1622_v25, 2  ;;  %v400_v49 = vrot.slane %v1622_v25, 4 }
  0x91   : > { %895 = vmatprep.mubr.bf16.mxu0 %v366_v29  ;;  %v378_v37 = vrot.slane %v366_v29, 2  ;;  %v397_v43 = vrot.slane %v366_v29, 4 }
  0x92   : > { %896 = vmatmul.mubr.bf16.vlgmr.msra.gmra.mrb[0].mxu0 %v359_v17 }
  0x93   : > { %v355_v31 = vpop.permute.xlu1 %354  ;;  %1252 = vmatpush3.bf16.msra.mxu0 %v1348_v28 }
  0x94   : > { %v369_v34 = vsel %vm364_vm11, %v349_v20, %v355_v31  ;;  %v382_v35 = vrot.slane %v355_v31, 2  ;;  %1253 = vmatprep.subr.bf16.mxu0 %v1351_v30  ;;  %v401_v46 = vrot.slane %v355_v31, 4 }
  0x95   : > { %v379_v38 = vrot.slane %v369_v34, 2  ;;  %v398_v39 = vrot.slane %v369_v34, 4 }
  0x96   : > { %v383_v40 = vsel %vm374_vm10, %v381_v33, %v382_v35  ;;  %v402_v50 = vsel %vm292_vm2, %v400_v49, %v401_v46 }
  0x97   : > { %388 = vrot.lane.b32.xlu0 %v383_v40, %s1409_s26  ;;  %v380_v41 = vsel %vm374_vm10, %v378_v37, %v379_v38  ;;  %1254 = vmatpush3.bf16.msra.mxu0 %v1352_v32  ;;  %v399_v45 = vsel %vm292_vm2, %v397_v43, %v398_v39  ;;  %vm390_vm2 = vcmask 261120  }
  0x98   : > { %386 = vrot.lane.b32.xlu1 %v380_v41, %s1409_s26  ;;  %1255 = vmatprep.subr.bf16.mxu0 %v1355_v36 }
  0x9b   : > { %405 = vrot.lane.b32.xlu0 %v399_v45, %s1407_s21  ;;  %1256 = vmatpush3.bf16.msra.mxu0 %v1356_v42 }
  0x9c   : > { %403 = vrot.lane.b32.xlu1 %v396_v27, %s1407_s21  ;;  %1257 = vmatprep.subr.bf16.mxu0 %v1359_v44 }
  0x9f   : > { %1258 = vmatpush3.bf16.msra.mxu0 %v1360_v47 }
  0xa0   : > { %407 = vrot.lane.b32.xlu1 %v402_v50, %s1407_s21  ;;  %1259 = vmatprep.subr.bf16.mxu0 %v1363_v48 }
  0xa3   : > { %1260 = vmatpush3.bf16.msra.mxu0 %v1364_v51 }
  0xa4   : > { %1261 = vmatprep.subr.bf16.mxu0 %v1367_v52 }
  0xa7   : > { %1262 = vmatpush3.bf16.msra.mxu0 %v1368_v53 }
  0xa8   : > { %1263 = vmatprep.subr.bf16.mxu0 %v1371_v54 }
  0xab   : > { %1264 = vmatpush3.bf16.msra.mxu0 %v1372_v55 }
  0xac   : > { %1265 = vmatprep.subr.bf16.mxu0 %v1373_v56 }
  0xaf   : > { %1266 = vmatpush3.bf16.msra.mxu0 %v1375_v57 }
 0x102   : > { %v385_v58 = vpop.permute.xlu0 %384 }
 0x103   : > { %v415_v63 = vsel %vm390_vm2, %v1622_v25, %v385_v58 }
 0x109   : > { %v389_v59 = vpop.permute.xlu0 %388 }
 0x10a   : > { %v387_v60 = vpop.permute.xlu1 %386 }
 0x10b   : > { %v391_v62 = vsel %vm390_vm2, %v385_v58, %v387_v60  ;;  %v392_v1 = vsel %vm390_vm2, %v387_v60, %v389_v59 }
 0x10c   : > { %936 = vmatprep.mubr.bf16.mxu1 %v391_v62 }
 0x10d   : > { %937 = vmatmul.mubr.bf16.vlgmr.msra.gmra.mrb[0].mxu1 %v415_v63  ;;  %v406_v0 = vpop.permute.xlu0 %405 }
 0x10e   : > { %1281 = vmatpush3.bf16.msra.mxu1 %v1374_v61  ;;  %v404_v2 = vpop.permute.xlu1 %403  ;;  %1292 = vmatprep.mubr.msk.bf16.mxu1 %vm1410_vm12, %v1408_v22 }
 0x10f   : > { %v419_v4 = vsel %vm364_vm11, %v392_v1, %v404_v2  ;;  %v410_v5 = vsel %vm364_vm11, %v404_v2, %v406_v0  ;;  %1282 = vmatprep.subr.bf16.mxu1 %v1408_v22 }
 0x110   : > { %977 = vmatprep.mubr.bf16.mxu0 %v410_v5 }
 0x111   : > { %978 = vmatmul.mubr.bf16.vlgmr.msra.gmra.mrb[4].mxu0 %v419_v4 }
 0x112   : > { %1283 = vmatpush3.bf16.msra.mxu1 %v1376_v3  ;;  %v408_v10 = vpop.permute.xlu1 %407 }
 0x113   : > { %1284 = vmatprep.subr.bf16.mxu1 %v1408_v22  ;;  %v411_v11 = vsel %vm364_vm11, %v406_v0, %v408_v10 }
 0x116   : > { %1285 = vmatpush3.bf16.msra.mxu1 %v1377_v6 }
 0x117   : > { %1286 = vmatprep.subr.bf16.mxu1 %v1408_v22 }
 0x11a   : > { %1287 = vmatpush3.bf16.msra.mxu1 %v1378_v7 }
 0x11b   : > { %1288 = vmatprep.subr.bf16.mxu1 %v1408_v22 }
 0x11e   : > { %1289 = vmatpush3.bf16.msra.mxu1 %v1379_v8 }
 0x11f   : > { %1290 = vmatprep.subr.bf16.mxu1 %v1408_v22 }
 0x122   : > { %1291 = vmatpush3.bf16.msra.mxu1 %v1380_v9 }
 0x125   : > { %1293 = vmatmul.mubr.msk.bf16.vlgmr.msra.gmra.mrb[4].mxu1 %vm356_vm9, %v411_v11 }
 0x165   : > { %v1223_v12 = vpop.f32.mrb[0].mxu0 }
 0x166   : > { %v1224_v13 = vpop.f32.mrb[1].mxu0 }
 0x167   : > { %v1225_v14 = vadd.f32 %v1224_v13, %v1223_v12  ;;  %v1226_v15 = vpop.f32.mrb[2].mxu0 }
 0x168   : > { %v1227_v16 = vpop.f32.mrb[3].mxu0 }
 0x169   : > { %v1228_v17 = vadd.f32 %v1227_v16, %v1226_v15  ;;  %v898_v21 = vadd.f32 %v1225_v14, %v1143_v18 }
 0x16b   : > { %v901_v25 = vadd.f32 %v1228_v17, %v1143_v18 }
 0x1e0   : > { %v1245_v19 = vpop.f32.mrb[0].mxu1 }
 0x1e1   : > { %v1246_v20 = vpop.f32.mrb[1].mxu1 }
 0x1e2   : > { %v1247_v22 = vadd.f32 %v1246_v20, %v1245_v19  ;;  %v1248_v23 = vpop.f32.mrb[2].mxu1 }
 0x1e3   : > { %v1249_v24 = vpop.f32.mrb[3].mxu1 }
 0x1e4   : > { %v939_v26 = vadd.f32 %v1247_v22, %v898_v21  ;;  %v1250_v27 = vadd.f32 %v1249_v24, %v1248_v23  ;;  %v1267_v28 = vpop.f32.mrb[4].mxu0 }
 0x1e5   : > { %v1268_v29 = vpop.f32.mrb[5].mxu0 }
 0x1e6   : > { %v942_v30 = vadd.f32 %v1250_v27, %v901_v25  ;;  %v1269_v31 = vadd.f32 %v1268_v29, %v1267_v28  ;;  %v1270_v32 = vpop.f32.mrb[6].mxu0 }
 0x1e7   : > { %v1271_v33 = vpop.f32.mrb[7].mxu0 }
 0x1e8   : > { %v1272_v34 = vadd.f32 %v1271_v33, %v1270_v32  ;;  %v980_v35 = vadd.f32 %v1269_v31, %v939_v26 }
 0x1ea   : > { %v983_v36 = vadd.f32 %v1272_v34, %v942_v30 }
 0x1f8   : > { %v1020_v37 = vpop.f32.mrb[4].mxu1 }
 0x1f9   : > { %v1021_v38 = vadd.f32 %v1020_v37, %v980_v35  ;;  %v1294_v39 = vpop.f32.mrb[5].mxu1 }
 0x1fa   : > { %v1023_v40 = vpop.f32.mrb[6].mxu1 }
 0x1fb   : > { %v1027_v41 = vmax.f32 %v1021_v38, 0.0  ;;  %v1024_v42 = vadd.f32 %v1023_v40, %v983_v36  ;;  %v1295_v43 = vpop.f32.mrb[7].mxu1 }
 0x1fd   : > { %v1205_v44 = vpack.c.bf16 %v1027_v41, %v1027_v41  ;;  %v1028_v45 = vmax.f32 %v1024_v42, 0.0 }
 0x1ff   : > { %1038 = vst.msk [vmem:[%s208_s28] sm:$0xf] %vm1037_vm13, %v1205_v44  ;;  %v1206_v46 = vpack.c.bf16 %v1028_v45, %v1028_v45 }
 0x201   : > { %1039 = vst.msk [vmem:[%s208_s28 + $0x4] sm:$0xf] %vm1037_vm13, %v1206_v46 }
 0x202 PF: > { %s13_s14 = sadd.s32 1, %s1403_s14   ;;  %s1743_s12 = smov %s1399_s13 }
 0x203   : > { %p10_p5 = scmp.ge.s32.totalorder %s13_s14, 4   ;;  %s1744_s13 = smov %s1746_s15 }
 0x205   :  { %12 = sbr.rel (!%p10_p5) target bundleno = 2 (0x2), region = 62 }

// kernel: refinement_net_forward.23
= control target key start
LH: loop header
LB: loop body
LE: loop exit
PB: predicated region body
PF: predicated region fallthrough
CT: control target
= control target key end

     0   :  { %s979_s12 = smov 0   ;;  %s981_s13 = smov 0   ;;  %s1220_s0 = inlined_call_operand.vmem [shape: bf16[2,8,8,64], index: 0, kind: input, shape index: {}, may-alias: {0,1,2}]   ;;  %s1221_s1 = inlined_call_operand.vmem [shape: bf16[2,8,8,64], index: 1, kind: input, shape index: {}, may-alias: {0,1,2}]   ;;  %s1222_s2 = inlined_call_operand.vmem [shape: bf16[2,8,8,64], index: 2, kind: input, shape index: {}, may-alias: {0,1,2}]   ;;  %s1223_s3 = inlined_call_operand.vmem [shape: bf16[2,8,2,8,128], index: 3, kind: output, shape index: {}]  }
   0x1   :  { %s983_s14 = smov 0  }
   0x2 LB: > { %s25_s15 = sadd.s32 1, %s952_s13  ;;  %p825_p0 = scmp.ge.s32.totalorder %s956_s14, 1  ;;  %s956_s14 = sphi %s983_s14, %s13_s14   ;;  %s952_s13 = sphi %s981_s13, %s1225_s13   ;;  %s948_s12 = sphi %s979_s12, %s1224_s12  }
   0x3   : > { %p27_p1 = scmp.ge.s32.totalorder %s25_s15, 2  ;;  %p220_p2 = scmp.lt.s32.totalorder %s956_s14, 3 }
   0x5   : > { %s1227_s15 = smov (%p27_p1, %s25_s15), 0  ;;  %p221_p3 = pnand %p825_p0, %p220_p2 }
   0x6   : > { %p278_p4 = scmp.lt.s32.totalorder (!%p221_p3), %s948_s12, 1  ;;  %vm408_vm0 = vcmask (!%p221_p3), 1040384   ;;  %vm433_vm1 = vcmask (!%p221_p3), 1046528   ;;  %s958_s23 = smov (!%p221_p3), 64   ;;  %vm610_vm2 = vcmask (!%p221_p3), 523264  }
   0x7   : > { %224 = sbr.rel (%p221_p3) target bundleno = 189 (0xbd), region = 32 }
   0xe   : > { %s1229_s12 = smov (!%p278_p4, %s948_s12), 1 }
   0xf   : > { %s1000_s16 = sshll.u32 %s1229_s12, 5  ;;  %s848_s28 = sshll.u32 %s1229_s12, 6 }
  0x10   : > { %s285_s19 = scalar_lea.vmem %s1220_s0, %s1000_s16  ;;  %s298_s22 = scalar_lea.vmem %s1221_s1, %s1000_s16 }
  0x11   : > { %v1006_v0 = vld [vmem:[%s285_s19 + $0x8] sm:$0xff]   ;;  %v867_v1 = vld [vmem:[%s285_s19 + $0x10] sm:$0xff]   ;;  %v850_v2 = vld [vmem:[%s285_s19] sm:$0xff]   ;;  %s847_s24 = sadd.s32 28, %s1000_s16  ;;  %s1161_s4 = scalar_lea.vmem %s1223_s3, %s848_s28 }
  0x12   : > { %v856_v3 = vunpack.c.h.bf16 %v1006_v0  ;;  %v859_v4 = vunpack.c.l.bf16 %v867_v1  ;;  %v860_v5 = vunpack.c.h.bf16 %v867_v1  ;;  %v855_v6 = vunpack.c.l.bf16 %v1006_v0  ;;  %v346_v7 = vld [vmem:[%s298_s22] sm:$0xf]  ;;  %v1014_v8 = vld [vmem:[%s285_s19 + $0x18] sm:$0xff]   ;;  %s314_s27 = scalar_lea.vmem %s1222_s2, %s847_s24 }
  0x13   : > { %v851_v9 = vunpack.c.l.bf16 %v850_v2  ;;  %v852_v10 = vunpack.c.h.bf16 %v850_v2  ;;  %v347_v11 = vunpack.c.l.bf16 %v346_v7  ;;  %v863_v12 = vunpack.c.l.bf16 %v1014_v8 }
  0x14   : > { %v1019_v13 = vmul.f32 0.25, %v856_v3  ;;  %v1021_v14 = vmul.f32 0.25, %v859_v4  ;;  %v1023_v15 = vmul.f32 0.75, %v859_v4  ;;  %v1025_v16 = vmul.f32 0.75, %v860_v5 }
  0x15   : > { %v350_v17 = vmul.f32 0.25, %v347_v11  ;;  %v351_v18 = vmul.f32 0.25, %v851_v9  ;;  %v1027_v19 = vmul.f32 0.75, %v851_v9  ;;  %v1029_v20 = vmul.f32 0.75, %v852_v10 }
  0x16   : > { %v370_v21 = vadd.f32 %v1023_v15, %v1019_v13  ;;  %v371_v22 = vadd.f32 %v1025_v16, %v1021_v14  ;;  %v864_v23 = vunpack.c.h.bf16 %v1014_v8  ;;  %v1036_v24 = vmul.f32 0.25, %v860_v5 }
  0x17   : > { %v366_v25 = vadd.f32 %v1027_v19, %v350_v17  ;;  %v367_v26 = vadd.f32 %v1029_v20, %v351_v18  ;;  %v1040_v27 = vmul.f32 0.25, %v863_v12  ;;  %v1042_v28 = vmul.f32 0.75, %v863_v12 }
  0x18   : > { %v397_v29 = vrot.slane %v371_v22, 7  ;;  %v421_v30 = vrot.slane %v370_v21, 1  ;;  %v422_v31 = vrot.slane %v371_v22, 1  ;;  %v454_v32 = vmul.f32 0.75, %v370_v21 }
  0x19   : > { %v455_v33 = vmul.f32 0.75, %v371_v22  ;;  %v396_v34 = vrot.slane %v370_v21, 7  ;;  %v392_v35 = vrot.slane %v366_v25, 7  ;;  %v417_v36 = vrot.slane %v366_v25, 1 }
  0x1a   : > { %v414_v37 = vsel %vm408_vm0, %v371_v22, %v397_v29  ;;  %v438_v38 = vsel %vm433_vm1, %v421_v30, %v370_v21  ;;  %v439_v39 = vsel %vm433_vm1, %v422_v31, %v371_v22  ;;  %v418_v40 = vrot.slane %v367_v26, 1 }
  0x1b   : > { %v447_v41 = vmul.f32 0.25, %v414_v37  ;;  %v470_v42 = vmul.f32 0.25, %v438_v38  ;;  %v471_v43 = vmul.f32 0.25, %v439_v39  ;;  %v413_v44 = vsel %vm408_vm0, %v370_v21, %v396_v34 }
  0x1c   : > { %v446_v45 = vmul.f32 0.25, %v413_v44  ;;  %v409_v46 = vsel %vm408_vm0, %v366_v25, %v392_v35  ;;  %v434_v47 = vsel %vm433_vm1, %v417_v36, %v366_v25  ;;  %v435_v48 = vsel %vm433_vm1, %v418_v40, %v367_v26 }
  0x1d   : > { %v1051_v49 = vadd.f32 %v455_v33, %v447_v41  ;;  %v478_v50 = vadd.f32 %v470_v42, %v454_v32  ;;  %v479_v51 = vadd.f32 %v471_v43, %v455_v33  ;;  %v442_v52 = vmul.f32 0.25, %v409_v46 }
  0x1e   : > { %v1053_v53 = vadd.f32 %v454_v32, %v446_v45  ;;  %v450_v54 = vmul.f32 0.75, %v366_v25  ;;  %v451_v55 = vmul.f32 0.75, %v367_v26  ;;  %v466_v56 = vmul.f32 0.25, %v434_v47 }
  0x1f   : > { %v904_v57 = vpack.i.bf16 %v479_v51, %v478_v50  ;;  %v467_v58 = vmul.f32 0.25, %v435_v48  ;;  %v393_v59 = vrot.slane %v367_v26, 7  ;;  %v1057_v60 = vmul.f32 0.75, %v864_v23 }
  0x20   : > { %v1059_v61 = vadd.f32 %v450_v54, %v442_v52  ;;  %v474_v62 = vadd.f32 %v466_v56, %v450_v54  ;;  %v372_v63 = vadd.f32 %v1042_v28, %v1036_v24  ;;  %v352_v1 = vmul.f32 0.25, %v852_v10 }
  0x21   : > { %905 = vrot.lane.b32.xlu1 %v904_v57, %s958_s23  ;;  %v475_v2 = vadd.f32 %v467_v58, %v451_v55  ;;  %v410_v4 = vsel %vm408_vm0, %v367_v26, %v393_v59  ;;  %v373_v5 = vadd.f32 %v1057_v60, %v1040_v27  ;;  %v1069_v7 = vmul.f32 0.25, %v855_v6 }
  0x22   : > { %v443_v9 = vmul.f32 0.25, %v410_v4  ;;  %v423_v11 = vrot.slane %v372_v63, 1  ;;  %v456_v12 = vmul.f32 0.75, %v372_v63  ;;  %v398_v17 = vrot.slane %v372_v63, 7 }
  0x23   : > { %v894_v18 = vpack.i.bf16 %v475_v2, %v474_v62  ;;  %v399_v21 = vrot.slane %v373_v5, 7  ;;  %v424_v10 = vrot.slane %v373_v5, 1  ;;  %v457_v22 = vmul.f32 0.75, %v373_v5 }
  0x24   : > { %v1071_v25 = vadd.f32 %v451_v55, %v443_v9  ;;  %v440_v29 = vsel %vm433_vm1, %v423_v11, %v372_v63  ;;  %v415_v26 = vsel %vm408_vm0, %v372_v63, %v398_v17  ;;  %v360_v30 = vmul.f32 0.75, %v855_v6 }
  0x25   : > { %895 = vrot.lane.b32.xlu0 %v894_v18, %s958_s23  ;;  %v416_v31 = vsel %vm408_vm0, %v373_v5, %v399_v21  ;;  %v441_v32 = vsel %vm433_vm1, %v424_v10, %v373_v5  ;;  %v472_v33 = vmul.f32 0.25, %v440_v29  ;;  %v448_v34 = vmul.f32 0.25, %v415_v26 }
  0x26   : > { %v449_v35 = vmul.f32 0.25, %v416_v31  ;;  %v473_v36 = vmul.f32 0.25, %v441_v32  ;;  %v361_v37 = vmul.f32 0.75, %v856_v3  ;;  %v368_v38 = vadd.f32 %v360_v30, %v352_v1 }
  0x27   : > { %v480_v39 = vadd.f32 %v472_v33, %v456_v12  ;;  %v1082_v40 = vadd.f32 %v456_v12, %v448_v34  ;;  %v378_v41 = vadd.f32 %v360_v30, %v1019_v13  ;;  %v1086_v6 = vadd.f32 %v1027_v19, %v352_v1 }
  0x28   : > { %v1088_v42 = vadd.f32 %v457_v22, %v449_v35  ;;  %v481_v43 = vadd.f32 %v473_v36, %v457_v22  ;;  %v369_v44 = vadd.f32 %v361_v37, %v1069_v7  ;;  %v419_v45 = vrot.slane %v368_v38, 1 }
  0x29   : > { %v452_v46 = vmul.f32 0.75, %v368_v38  ;;  %v394_v47 = vrot.slane %v368_v38, 7  ;;  %v379_v0 = vadd.f32 %v361_v37, %v1021_v14  ;;  %v516_v3 = vrot.slane %v378_v41, 1  ;;  %v348_v37 = vld [vmem:[%s314_s27] sm:$0xf] }
  0x2a   : > { %v909_v48 = vpack.i.bf16 %v481_v43, %v480_v39  ;;  %v395_v50 = vrot.slane %v369_v44, 7  ;;  %v420_v51 = vrot.slane %v369_v44, 1  ;;  %v436_v13 = vsel %vm433_vm1, %v419_v45, %v368_v38 }
  0x2b   : > { %v453_v52 = vmul.f32 0.75, %v369_v44  ;;  %v468_v19 = vmul.f32 0.25, %v436_v13  ;;  %v411_v54 = vsel %vm408_vm0, %v368_v38, %v394_v47  ;;  %v493_v55 = vrot.slane %v379_v0, 7 }
  0x2c   : > { %910 = vrot.lane.b32.xlu1 %v909_v48, %s958_s23  ;;  %v412_v56 = vsel %vm408_vm0, %v369_v44, %v395_v50  ;;  %v437_v57 = vsel %vm433_vm1, %v420_v51, %v369_v44  ;;  %v444_v58 = vmul.f32 0.25, %v411_v54  ;;  %v517_v59 = vrot.slane %v379_v0, 1 }
  0x2d   : > { %v445_v14 = vmul.f32 0.25, %v412_v56  ;;  %v469_v62 = vmul.f32 0.25, %v437_v57  ;;  %v476_v63 = vadd.f32 %v468_v19, %v452_v46  ;;  %v509_v1 = vsel %vm408_vm0, %v379_v0, %v493_v55 }
  0x2e   : > { %v1099_v2 = vadd.f32 %v452_v46, %v444_v58  ;;  %v532_v4 = vsel %vm433_vm1, %v516_v3, %v378_v41  ;;  %v533_v5 = vsel %vm433_vm1, %v517_v59, %v379_v0  ;;  %v541_v9 = vmul.f32 0.25, %v509_v1 }
  0x2f   : > { %v1103_v11 = vadd.f32 %v453_v52, %v445_v14  ;;  %v477_v12 = vadd.f32 %v469_v62, %v453_v52  ;;  %v548_v17 = vmul.f32 0.75, %v378_v41  ;;  %v549_v18 = vmul.f32 0.75, %v379_v0 }
  0x30   : > { %v564_v21 = vmul.f32 0.25, %v532_v4  ;;  %v565_v10 = vmul.f32 0.25, %v533_v5  ;;  %v492_v22 = vrot.slane %v378_v41, 7  ;;  %v377_v29 = vadd.f32 %v1029_v20, %v1069_v7 }
  0x31   : > { %v899_v26 = vpack.i.bf16 %v477_v12, %v476_v63  ;;  %v1110_v30 = vadd.f32 %v549_v18, %v541_v9  ;;  %v514_v31 = vrot.slane %v1086_v6, 1  ;;  %v546_v32 = vmul.f32 0.75, %v1086_v6 }
  0x32   : > { %v572_v33 = vadd.f32 %v564_v21, %v548_v17  ;;  %v573_v34 = vadd.f32 %v565_v10, %v549_v18  ;;  %v508_v35 = vsel %vm408_vm0, %v378_v41, %v492_v22  ;;  %v491_v36 = vrot.slane %v377_v29, 7 }
  0x33   : > { %900 = vrot.lane.b32.xlu0 %v899_v26, %s958_s23  ;;  %v540_v38 = vmul.f32 0.25, %v508_v35  ;;  %v515_v39 = vrot.slane %v377_v29, 1  ;;  %v530_v20 = vsel %vm433_vm1, %v514_v31, %v1086_v6  ;;  %v547_v7 = vmul.f32 0.75, %v377_v29 }
  0x34   : > { %v919_v43 = vpack.i.bf16 %v573_v34, %v572_v33  ;;  %v507_v44 = vsel %vm408_vm0, %v377_v29, %v491_v36  ;;  %v562_v45 = vmul.f32 0.25, %v530_v20  ;;  %v490_v46 = vrot.slane %v1086_v6, 7 }
  0x35   : > { %v1120_v47 = vadd.f32 %v548_v17, %v540_v38  ;;  %v531_v41 = vsel %vm433_vm1, %v515_v39, %v377_v29  ;;  %v539_v0 = vmul.f32 0.25, %v507_v44  ;;  %v349_v3 = vunpack.c.l.bf16 %v348_v37 }
  0x36   : > { %920 = vrot.lane.b32.xlu1 %v919_v43, %s958_s23  ;;  %v563_v48 = vmul.f32 0.25, %v531_v41  ;;  %v570_v50 = vadd.f32 %v562_v45, %v546_v32  ;;  %v506_v51 = vsel %vm408_vm0, %v1086_v6, %v490_v46  ;;  %v374_v13 = vmul.f32 0.25, %v864_v23 }
  0x37   : > { %v1128_v52 = vadd.f32 %v547_v7, %v539_v0  ;;  %v538_v19 = vmul.f32 0.25, %v506_v51  ;;  %v375_v54 = vmul.f32 0.25, %v349_v3  ;;  %v380_v55 = vadd.f32 %v1023_v15, %v1036_v24 }
  0x38   : > { %v571_v56 = vadd.f32 %v563_v48, %v547_v7  ;;  %v382_v57 = vadd.f32 %v374_v13, %v1042_v28  ;;  %v381_v58 = vadd.f32 %v1025_v16, %v1040_v27 }
  0x39   : > { %v1135_v59 = vadd.f32 %v546_v32, %v538_v19  ;;  %v383_v6 = vadd.f32 %v375_v54, %v1057_v60  ;;  %v518_v14 = vrot.slane %v380_v55, 1  ;;  %v550_v8 = vmul.f32 0.75, %v380_v55 }
  0x3a   : > { %v914_v23 = vpack.i.bf16 %v571_v56, %v570_v50  ;;  %v520_v62 = vrot.slane %v382_v57, 1  ;;  %v552_v63 = vmul.f32 0.75, %v382_v57  ;;  %v519_v1 = vrot.slane %v381_v58, 1 }
  0x3b   : > { %v521_v4 = vrot.slane %v383_v6, 1  ;;  %v553_v5 = vmul.f32 0.75, %v383_v6  ;;  %v534_v15 = vsel %vm433_vm1, %v518_v14, %v380_v55  ;;  %v551_v24 = vmul.f32 0.75, %v381_v58 }
  0x3c   : > { %915 = vrot.lane.b32.xlu0 %v914_v23, %s958_s23  ;;  %v536_v28 = vsel %vm433_vm1, %v520_v62, %v382_v57  ;;  %v535_v16 = vsel %vm433_vm1, %v519_v1, %v381_v58  ;;  %v566_v27 = vmul.f32 0.25, %v534_v15  ;;  %v496_v9 = vrot.slane %v382_v57, 7 }
  0x3d   : > { %v537_v60 = vsel %vm433_vm1, %v521_v4, %v383_v6  ;;  %v568_v12 = vmul.f32 0.25, %v536_v28  ;;  %v567_v17 = vmul.f32 0.25, %v535_v16  ;;  %v497_v18 = vrot.slane %v383_v6, 7 }
  0x3e   : > { %v569_v21 = vmul.f32 0.25, %v537_v60  ;;  %v574_v10 = vadd.f32 %v566_v27, %v550_v8  ;;  %v512_v22 = vsel %vm408_vm0, %v382_v57, %v496_v9  ;;  %v494_v29 = vrot.slane %v380_v55, 7 }
  0x3f   : > { %v576_v26 = vadd.f32 %v568_v12, %v552_v63  ;;  %v575_v31 = vadd.f32 %v567_v17, %v551_v24  ;;  %v513_v32 = vsel %vm408_vm0, %v383_v6, %v497_v18  ;;  %v544_v33 = vmul.f32 0.25, %v512_v22 }
  0x40   : > { %v577_v34 = vadd.f32 %v569_v21, %v553_v5  ;;  %v545_v35 = vmul.f32 0.25, %v513_v32  ;;  %v495_v36 = vrot.slane %v381_v58, 7  ;;  %v510_v37 = vsel %vm408_vm0, %v380_v55, %v494_v29 }
  0x41   : > { %v924_v38 = vpack.i.bf16 %v575_v31, %v574_v10  ;;  %v1146_v39 = vadd.f32 %v552_v63, %v544_v33  ;;  %v542_v20 = vmul.f32 0.25, %v510_v37 }
  0x42   : > { %v929_v7 = vpack.i.bf16 %v577_v34, %v576_v26  ;;  %v1148_v43 = vadd.f32 %v553_v5, %v545_v35  ;;  %v511_v44 = vsel %vm408_vm0, %v381_v58, %v495_v36 }
  0x43   : > { %925 = vrot.lane.b32.xlu0 %v924_v38, %s958_s23  ;;  %v543_v45 = vmul.f32 0.25, %v511_v44  ;;  %v1152_v46 = vadd.f32 %v550_v8, %v542_v20 }
  0x44   : > { %930 = vrot.lane.b32.xlu1 %v929_v7, %s958_s23 }
  0x45   : > { %v1155_v41 = vadd.f32 %v551_v24, %v543_v45 }
  0x93   : > { %v906_v0 = vpop.permute.xlu1 %905 }
  0x94   : > { %v908_v3 = vunpack.i.h.bf16 %v906_v0  ;;  %v907_v48 = vunpack.i.l.bf16 %v906_v0 }
  0x96   : > { %v616_v50 = vsel %vm610_vm2, %v1051_v49, %v908_v3  ;;  %v615_v51 = vsel %vm610_vm2, %v1053_v53, %v907_v48 }
  0x97   : > { %v624_v13 = vpack.c.bf16 %v616_v50, %v616_v50  ;;  %v623_v19 = vpack.c.bf16 %v615_v51, %v615_v51  ;;  %v896_v54 = vpop.permute.xlu0 %895 }
  0x98   : > { %v898_v55 = vunpack.i.h.bf16 %v896_v54  ;;  %v897_v56 = vunpack.i.l.bf16 %v896_v54 }
  0x99   : > { %632 = vst [vmem:[%s1161_s4 + $0x28] sm:$0xf] %v624_v13  ;;  %631 = vst [vmem:[%s1161_s4 + $0x20] sm:$0xf] %v623_v19 }
  0x9a   : > { %v611_v57 = vsel %vm610_vm2, %v1059_v61, %v897_v56  ;;  %v612_v58 = vsel %vm610_vm2, %v1071_v25, %v898_v55 }
  0x9b   : > { %v619_v6 = vpack.c.bf16 %v611_v57, %v611_v57  ;;  %v620_v49 = vpack.c.bf16 %v612_v58, %v612_v58 }
  0x9d   : > { %627 = vst [vmem:[%s1161_s4] sm:$0xf] %v619_v6  ;;  %628 = vst [vmem:[%s1161_s4 + $0x8] sm:$0xf] %v620_v49 }
  0x9e   : > { %v911_v53 = vpop.permute.xlu1 %910 }
  0x9f   : > { %v913_v14 = vunpack.i.h.bf16 %v911_v53  ;;  %v912_v8 = vunpack.i.l.bf16 %v911_v53 }
  0xa1   : > { %v618_v23 = vsel %vm610_vm2, %v1088_v42, %v913_v14  ;;  %v617_v62 = vsel %vm610_vm2, %v1082_v40, %v912_v8 }
  0xa2   : > { %v626_v63 = vpack.c.bf16 %v618_v23, %v618_v23  ;;  %v625_v61 = vpack.c.bf16 %v617_v62, %v617_v62 }
  0xa4   : > { %634 = vst [vmem:[%s1161_s4 + $0x38] sm:$0xf] %v626_v63  ;;  %633 = vst [vmem:[%s1161_s4 + $0x30] sm:$0xf] %v625_v61 }
  0xa5   : > { %v901_v25 = vpop.permute.xlu0 %900 }
  0xa6   : > { %v903_v1 = vunpack.i.h.bf16 %v901_v25  ;;  %v902_v4 = vunpack.i.l.bf16 %v901_v25 }
  0xa8   : > { %v614_v5 = vsel %vm610_vm2, %v1103_v11, %v903_v1  ;;  %v613_v42 = vsel %vm610_vm2, %v1099_v2, %v902_v4  ;;  %v921_v15 = vpop.permute.xlu1 %920 }
  0xa9   : > { %v622_v24 = vpack.c.bf16 %v614_v5, %v614_v5  ;;  %v621_v28 = vpack.c.bf16 %v613_v42, %v613_v42  ;;  %v923_v40 = vunpack.i.h.bf16 %v921_v15  ;;  %v922_v16 = vunpack.i.l.bf16 %v921_v15 }
  0xab   : > { %630 = vst [vmem:[%s1161_s4 + $0x18] sm:$0xf] %v622_v24  ;;  %629 = vst [vmem:[%s1161_s4 + $0x10] sm:$0xf] %v621_v28  ;;  %v670_v27 = vsel %vm610_vm2, %v1110_v30, %v923_v40  ;;  %v669_v9 = vsel %vm610_vm2, %v1120_v47, %v922_v16 }
  0xac   : > { %v678_v60 = vpack.c.bf16 %v670_v27, %v670_v27  ;;  %v677_v11 = vpack.c.bf16 %v669_v9, %v669_v9 }
  0xae   : > { %837 = vst [vmem:[%s1161_s4 + $0x1c] sm:$0xf] %v678_v60  ;;  %836 = vst [vmem:[%s1161_s4 + $0x14] sm:$0xf] %v677_v11  ;;  %v916_v2 = vpop.permute.xlu0 %915 }
  0xaf   : > { %v918_v12 = vunpack.i.h.bf16 %v916_v2  ;;  %v917_v17 = vunpack.i.l.bf16 %v916_v2 }
  0xb1   : > { %v668_v18 = vsel %vm610_vm2, %v1128_v52, %v918_v12  ;;  %v667_v21 = vsel %vm610_vm2, %v1135_v59, %v917_v17 }
  0xb2   : > { %v676_v10 = vpack.c.bf16 %v668_v18, %v668_v18  ;;  %v675_v22 = vpack.c.bf16 %v667_v21, %v667_v21 }
  0xb4   : > { %835 = vst [vmem:[%s1161_s4 + $0xc] sm:$0xf] %v676_v10  ;;  %834 = vst [vmem:[%s1161_s4 + $0x4] sm:$0xf] %v675_v22 }
  0xb5   : > { %v926_v30 = vpop.permute.xlu0 %925 }
  0xb6   : > { %v931_v47 = vpop.permute.xlu1 %930  ;;  %v928_v29 = vunpack.i.h.bf16 %v926_v30  ;;  %v927_v26 = vunpack.i.l.bf16 %v926_v30 }
  0xb7   : > { %v933_v31 = vunpack.i.h.bf16 %v931_v47  ;;  %v932_v32 = vunpack.i.l.bf16 %v931_v47 }
  0xb8   : > { %v672_v52 = vsel %vm610_vm2, %v1155_v41, %v928_v29  ;;  %v671_v59 = vsel %vm610_vm2, %v1152_v46, %v927_v26 }
  0xb9   : > { %v674_v33 = vsel %vm610_vm2, %v1148_v43, %v933_v31  ;;  %v673_v34 = vsel %vm610_vm2, %v1146_v39, %v932_v32  ;;  %v680_v35 = vpack.c.bf16 %v672_v52, %v672_v52  ;;  %v679_v36 = vpack.c.bf16 %v671_v59, %v671_v59 }
  0xba   : > { %v682_v37 = vpack.c.bf16 %v674_v33, %v674_v33  ;;  %v681_v38 = vpack.c.bf16 %v673_v34, %v673_v34 }
  0xbb   : > { %839 = vst [vmem:[%s1161_s4 + $0x2c] sm:$0xf] %v680_v35  ;;  %838 = vst [vmem:[%s1161_s4 + $0x24] sm:$0xf] %v679_v36 }
  0xbc   : > { %841 = vst [vmem:[%s1161_s4 + $0x3c] sm:$0xf] %v682_v37  ;;  %840 = vst [vmem:[%s1161_s4 + $0x34] sm:$0xf] %v681_v38 }
  0xbd PF: > { %s13_s14 = sadd.s32 1, %s956_s14   ;;  %s1224_s12 = smov %s952_s13 }
  0xbe   : > { %p10_p5 = scmp.ge.s32.totalorder %s13_s14, 4   ;;  %s1225_s13 = smov %s1227_s15 }
  0xc0   :  { %12 = sbr.rel (!%p10_p5) target bundleno = 2 (0x2), region = 69 }

// kernel: refinement_net_forward.22
= control target key start
LH: loop header
LB: loop body
LE: loop exit
PB: predicated region body
PF: predicated region fallthrough
CT: control target
= control target key end

     0   :  { %s2195_s12 = smov 0   ;;  %s2197_s13 = smov 0   ;;  %s2898_s0 = inlined_call_operand.vmem [shape: bf16[2,64,128], index: 0, kind: input, shape index: {}]   ;;  %s2899_s1 = inlined_call_operand.vmem [shape: bf16[1152,32], index: 1, kind: input, shape index: {}]   ;;  %s2900_s2 = inlined_call_operand.vmem [shape: f32[1,32], index: 2, kind: input, shape index: {}]   ;;  %s2901_s3 = inlined_call_operand.vmem [shape: bf16[2,1,64,32], index: 3, kind: output, shape index: {}]  }
   0x1   :  { %s2199_s14 = smov 0  }
   0x2 LB: > { %s25_s15 = sadd.s32 1, %s2168_s13  ;;  %p1704_p0 = scmp.ge.s32.totalorder %s2172_s14, 1  ;;  %s2172_s14 = sphi %s2199_s14, %s13_s14   ;;  %s2168_s13 = sphi %s2197_s13, %s2953_s13   ;;  %s2164_s12 = sphi %s2195_s12, %s2952_s12  }
   0x3   : > { %p27_p1 = scmp.ge.s32.totalorder %s25_s15, 2  ;;  %p158_p2 = scmp.lt.s32.totalorder %s2172_s14, 3 }
   0x5   : > { %s2955_s15 = smov (%p27_p1, %s25_s15), 0  ;;  %p159_p3 = pnand %p1704_p0, %p158_p2 }
   0x6   : > { %v2073_v0 = vld [vmem:[%s2899_s1 + $0x40] sm:$0xff] (!%p159_p3)   ;;  %v2077_v4 = vld [vmem:[%s2899_s1 + $0x48] sm:$0xff] (!%p159_p3)   ;;  %p191_p4 = scmp.lt.s32.totalorder (!%p159_p3), %s2164_s12, 1  ;;  %v2081_v8 = vld [vmem:[%s2899_s1 + $0x50] sm:$0xff] (!%p159_p3)   ;;  %v252_v9 = vlaneseq (!%p159_p3)  ;;  %vm244_vm0 = vcmask (!%p159_p3), 1043456   ;;  %vm426_vm1 = vcmask (!%p159_p3), 1040384  }
   0x7   : > { %162 = sbr.rel (%p159_p3) target bundleno = 331 (0x14b), region = 32  ;;  %v2074_v1 = vld [vmem:[%s2899_s1 + $0xc0] sm:$0xff] (!%p159_p3)   ;;  %1836 = vmatprep.subr.bf16.mxu0 (!%p159_p3), %v2073_v0  ;;  %v2078_v5 = vld [vmem:[%s2899_s1 + $0xc8] sm:$0xff] (!%p159_p3)   ;;  %v2082_v10 = vld [vmem:[%s2899_s1 + $0xd0] sm:$0xff] (!%p159_p3)   ;;  %vm383_vm10 = vsmask.f32 (!%p159_p3), 256 }
   0x8   : > { %v2075_v2 = vld [vmem:[%s2899_s1] sm:$0xff] (!%p159_p3)   ;;  %1876 = vmatprep.subr.bf16.mxu1 (!%p159_p3), %v2074_v1  ;;  %v2079_v6 = vld [vmem:[%s2899_s1 + $0x8] sm:$0xff] (!%p159_p3)   ;;  %v2083_v11 = vld [vmem:[%s2899_s1 + $0x10] sm:$0xff] (!%p159_p3)   ;;  %v2258_v14 = vshrl.u32 (!%p159_p3), %v252_v9, 7  ;;  %vm429_vm13 = vsmask.f32 (!%p159_p3), 7424 }
   0x9   : > { %v2076_v3 = vld [vmem:[%s2899_s1 + $0x80] sm:$0xff] (!%p159_p3)   ;;  %1837 = vmatpush3.bf16.msra.mxu0 (!%p159_p3), %v2075_v2  ;;  %v2080_v7 = vld [vmem:[%s2899_s1 + $0x88] sm:$0xff] (!%p159_p3)   ;;  %v2084_v12 = vld [vmem:[%s2899_s1 + $0x90] sm:$0xff] (!%p159_p3)   ;;  %v2174_v0 = vmov (!%p159_p3), 0  }
   0xa   : > { %1877 = vmatpush3.bf16.msra.mxu1 (!%p159_p3), %v2076_v3  ;;  %1838 = vmatprep.subr.bf16.mxu0 (!%p159_p3), %v2077_v4  ;;  %v2085_v13 = vld [vmem:[%s2899_s1 + $0x58] sm:$0xff] (!%p159_p3)   ;;  %v2089_v18 = vld [vmem:[%s2899_s1 + $0x60] sm:$0xff] (!%p159_p3)   ;;  %v254_v19 = vadd.s32 (!%p159_p3), 8, %v2258_v14  ;;  %v2278_v21 = vadd.s32 (!%p159_p3), 16, %v2258_v14  ;;  %v2284_v23 = vadd.s32 (!%p159_p3), 24, %v2258_v14  ;;  %v267_v25 = vand.u32 (!%p159_p3), 7, %v2258_v14  ;;  %vm1797_vm9 = vmneg (!%p159_p3), %vm244_vm0 }
   0xb   : > { %1878 = vmatprep.subr.bf16.mxu1 (!%p159_p3), %v2078_v5  ;;  %v2086_v15 = vld [vmem:[%s2899_s1 + $0xd8] sm:$0xff] (!%p159_p3)   ;;  %v2090_v20 = vld [vmem:[%s2899_s1 + $0xe0] sm:$0xff] (!%p159_p3)   ;;  %v2093_v26 = vld [vmem:[%s2899_s1 + $0x68] sm:$0xff] (!%p159_p3)   ;;  %v2305_v33 = vadd.s32 (!%p159_p3), 32, %v2258_v14  ;;  %v2322_v38 = vadd.s32 (!%p159_p3), 40, %v2258_v14  ;;  %v2407_v62 = vadd.s32 (!%p159_p3), 48, %v2258_v14 }
   0xc   : > { %v2087_v16 = vld [vmem:[%s2899_s1 + $0x18] sm:$0xff] (!%p159_p3)   ;;  %v2091_v22 = vld [vmem:[%s2899_s1 + $0x20] sm:$0xff] (!%p159_p3)   ;;  %v274_v27 = vand.u32 (!%p159_p3), 7, %v254_v19  ;;  %v2094_v28 = vld [vmem:[%s2899_s1 + $0xe8] sm:$0xff] (!%p159_p3)   ;;  %v281_v29 = vand.u32 (!%p159_p3), 7, %v2278_v21  ;;  %v288_v31 = vand.u32 (!%p159_p3), 7, %v2284_v23 }
   0xd   : > { %1839 = vmatpush3.bf16.msra.mxu0 (!%p159_p3), %v2079_v6  ;;  %v2088_v17 = vld [vmem:[%s2899_s1 + $0x98] sm:$0xff] (!%p159_p3)   ;;  %v2092_v24 = vld [vmem:[%s2899_s1 + $0xa0] sm:$0xff] (!%p159_p3)   ;;  %v2095_v30 = vld [vmem:[%s2899_s1 + $0x28] sm:$0xff] (!%p159_p3)   ;;  %vm2310_vm2 = vcmp.ne.s32.totalorder (!%p159_p3), %v267_v25, 0  ;;  %v295_v43 = vand.u32 (!%p159_p3), 7, %v2305_v33  ;;  %vm2342_vm6 = vcmp.ne.s32.totalorder (!%p159_p3), %v267_v25, 7 }
   0xe   : > { %1879 = vmatpush3.bf16.msra.mxu1 %v2080_v7  ;;  %1840 = vmatprep.subr.bf16.mxu0 %v2081_v8  ;;  %s2957_s12 = smov (!%p191_p4, %s2164_s12), 1  ;;  %v2096_v32 = vld [vmem:[%s2899_s1 + $0xa8] sm:$0xff]   ;;  %v2097_v34 = vld [vmem:[%s2899_s1 + $0x70] sm:$0xff]   ;;  %vm2317_vm3 = vcmp.ne.s32.totalorder %v274_v27, 0  ;;  %vm2327_vm4 = vcmp.ne.s32.totalorder %v281_v29, 0  ;;  %vm2334_vm5 = vcmp.ne.s32.totalorder %v288_v31, 0  ;;  %vm2389_vm12 = vmand %vm426_vm1, %vm383_vm10 }
   0xf   : > { %1880 = vmatprep.subr.bf16.mxu1 %v2082_v10  ;;  %s1826_s25 = sshll.u32 %s2957_s12, 5  ;;  %v2098_v36 = vld [vmem:[%s2899_s1 + $0xf0] sm:$0xff]   ;;  %v2101_v44 = vld [vmem:[%s2899_s1 + $0x78] sm:$0xff]   ;;  %v302_v47 = vand.u32 7, %v2322_v38  ;;  %vm2360_vm7 = vcmp.ne.s32.totalorder %v274_v27, 7  ;;  %vm2369_vm8 = vcmp.ne.s32.totalorder %v295_v43, 0  ;;  %vm482_vm14 = vmpackc.low %vm2310_vm2, %vm2310_vm2 }
  0x10   : > { %v2099_v39 = vld [vmem:[%s2899_s1 + $0x30] sm:$0xff]   ;;  %v2102_v46 = vld [vmem:[%s2899_s1 + $0xf8] sm:$0xff]   ;;  %s2354_s7 = scalar_lea.vmem %s2898_s0, %s1826_s25  ;;  %v2107_v57 = vld [vmem:[%s2899_s1 + $0x140] sm:$0xff]   ;;  %vm2402_vm15 = vcmp.ne.s32.totalorder %v281_v29, 7  ;;  %v492_v1 = vsel %vm482_vm14, 65537, %v2174_v0  ;;  %s2871_s10 = scalar_lea.vmem %s2901_s3, %s1826_s25 }
  0x11   : > { %1841 = vmatpush3.bf16.msra.mxu0 %v2083_v11  ;;  %v2100_v41 = vld [vmem:[%s2899_s1 + $0xb0] sm:$0xff]   ;;  %v2103_v48 = vld [vmem:[%s2899_s1 + $0x38] sm:$0xff]   ;;  %v2105_v52 = vld [vmem:[%s2354_s7] ss:$0 sps:$4 sm:$0xff]   ;;  %vm2380_vm11 = vcmp.ne.s32.totalorder %v302_v47, 0  ;;  %v2437_v11 = vadd.s32 56, %v2258_v14 }
  0x12   : > { %1881 = vmatpush3.bf16.msra.mxu1 %v2084_v12  ;;  %1842 = vmatprep.subr.bf16.mxu0 %v2085_v13  ;;  %v2104_v50 = vld [vmem:[%s2899_s1 + $0xb8] sm:$0xff]   ;;  %v2376_v53 = vld [vmem:[%s2354_s7 + $0x4] sm:$0xff]   ;;  %v2385_v55 = vsel %vm244_vm0, 0, %v2105_v52  ;;  %vm483_vm1 = vmpackc.low %vm2317_vm3, %vm2317_vm3 }
  0x13   : > { %1882 = vmatprep.subr.bf16.mxu1 %v2086_v15  ;;  %1798 = vmatprep.mubr.msk.bf16.mxu0 %vm1797_vm9, %v2105_v52  ;;  %v384_v58 = vshrl.u32 %v2385_v55, 16  ;;  %v387_v59 = vshll.u32 %v2385_v55, 16  ;;  %v391_v60 = vshrl.u32 %v2376_v53, 16  ;;  %v394_v63 = vshll.u32 %v2376_v53, 16  ;;  %vm484_vm2 = vmpackc.low %vm2327_vm4, %vm2327_vm4  ;;  %v2108_v7 = vld [vmem:[%s2899_s1 + $0x1c0] sm:$0xff]   ;;  %v2118_v56 = vld [vmem:[%s2899_s1 + $0x110] sm:$0xff]  }
  0x14   : > { %vm2414_vm9 = vcmp.ne.s32.totalorder %v288_v31, 7  ;;  %v493_v6 = vsel %vm483_vm1, 65537, %v2174_v0  ;;  %v2109_v8 = vld [vmem:[%s2899_s1 + $0x100] sm:$0xff]   ;;  %vm485_vm3 = vmpackc.low %vm2334_vm5, %vm2334_vm5  ;;  %v494_v9 = vsel %vm484_vm2, 65537, %v2174_v0  ;;  %v316_v35 = vand.u32 7, %v2437_v11  ;;  %v2119_v2 = vld [vmem:[%s2899_s1 + $0x190] sm:$0xff]  }
  0x15   : > { %1843 = vmatpush3.bf16.msra.mxu0 %v2087_v16  ;;  %v386_v3 = vrot.slane %v384_v58, 7  ;;  %v430_v4 = vrot.slane %v387_v59, 1  ;;  %v2420_v5 = vrot.slane %v391_v60, 7  ;;  %v1714_v10 = vcombine.low %v492_v1, %v493_v6  ;;  %vm557_vm4 = vmpackc.low %vm2342_vm6, %vm2342_vm6  ;;  %v2125_v38 = vld [vmem:[%s2899_s1 + $0x160] sm:$0xff]   ;;  %v2130_v45 = vld [vmem:[%s2899_s1 + $0x1e8] sm:$0xff]  }
  0x16   : > { %1883 = vmatpush3.bf16.msra.mxu1 %v2088_v17  ;;  %1844 = vmatprep.subr.bf16.mxu0 %v2089_v18  ;;  %v495_v15 = vsel %vm485_vm3, 65537, %v2174_v0  ;;  %v309_v16 = vand.u32 7, %v2407_v62  ;;  %v432_v18 = vrot.slane %v394_v63, 1  ;;  %vm558_vm14 = vmpackc.low %vm2360_vm7, %vm2360_vm7  ;;  %v567_v19 = vsel %vm557_vm4, 65537, %v2174_v0  ;;  %v2149_v1 = vld [vmem:[%s2899_s1 + $0x238] sm:$0xff]  }
  0x17   : > { %1884 = vmatprep.subr.bf16.mxu1 %v2090_v20  ;;  %v389_v12 = vor.u32 %v387_v59, %v386_v3  ;;  %v396_v13 = vor.u32 %v394_v63, %v2420_v5  ;;  %v1715_v17 = vcombine.low %v494_v9, %v495_v15  ;;  %vm517_vm5 = vcmp.ne.s16.totalorder %v1714_v10, 0  ;;  %vm486_vm7 = vmpackc.low %vm2369_vm8, %vm2369_vm8  ;;  %v2122_v10 = vld [vmem:[%s2899_s1 + $0x118] sm:$0xff]  }
  0x18   : > { %v431_v20 = vor.u32 %v430_v4, %v384_v58  ;;  %v568_v23 = vsel %vm558_vm14, 65537, %v2174_v0  ;;  %vm2506_vm2 = vcmp.ne.s32.totalorder %v309_v16, 0  ;;  %vm560_vm8 = vmpackc.low %vm2414_vm9, %vm2414_vm9  ;;  %v434_v52 = vor.u32 %v432_v18, %v391_v60  ;;  %v2117_v60 = vld [vmem:[%s2899_s1 + $0x1d0] sm:$0xff]   ;;  %v2123_v15 = vld [vmem:[%s2899_s1 + $0x198] sm:$0xff]  }
  0x19   : > { %1845 = vmatpush3.bf16.msra.mxu0 %v2091_v22  ;;  %v2450_v21 = vsel %vm383_vm10, %v386_v3, %v396_v13  ;;  %v428_v22 = vsel %vm2389_vm12, 0, %v389_v12  ;;  %vm2458_vm6 = vcmp.ne.s16.totalorder %v1715_v17, 0  ;;  %v1719_v27 = vcombine.low %v567_v19, %v568_v23  ;;  %vm487_vm12 = vmpackc.low %vm2380_vm11, %vm2380_vm11  ;;  %v2120_v3 = vld [vmem:[%s2899_s1 + $0x158] sm:$0xff]  }
  0x1a   : > { %1885 = vmatpush3.bf16.msra.mxu1 %v2092_v24  ;;  %1846 = vmatprep.subr.bf16.mxu0 %v2093_v26  ;;  %v2111_v24 = vld [vmem:[%s2899_s1 + $0x148] sm:$0xff]   ;;  %v522_v26 = vsel %vm517_vm5, %v428_v22, 0  ;;  %v497_v42 = vsel %vm487_vm12, 65537, %v2174_v0  ;;  %vm559_vm11 = vmpackc.low %vm2402_vm15, %vm2402_vm15  ;;  %v570_v54 = vsel %vm560_vm8, 65537, %v2174_v0  ;;  %v2121_v13 = vld [vmem:[%s2899_s1 + $0x1d8] sm:$0xff]   ;;  %vm459_vm4 = vcmp.ne.s32.totalorder %v316_v35, 0 }
  0x1b   : > { %1886 = vmatprep.subr.bf16.mxu1 %v2094_v28  ;;  %v523_v28 = vsel %vm2458_vm6, %v2450_v21, 0  ;;  %v615_v29 = vrot.slane %v522_v26, 4  ;;  %vm2483_vm1 = vcmp.ne.s16.totalorder %v1719_v27, 0  ;;  %v569_v51 = vsel %vm559_vm11, 65537, %v2174_v0  ;;  %vm488_vm3 = vmpackc.low %vm2506_vm2, %vm2506_vm2  ;;  %v2583_v17 = vld [vmem:[%s2354_s7 + $0x14] sm:$0xff]  }
  0x1c   : > { %v616_v31 = vrot.slane %v523_v28, 4  ;;  %v1720_v61 = vcombine.low %v569_v51, %v570_v54  ;;  %vm2596_vm14 = vcmp.ne.s32.totalorder %v302_v47, 7  ;;  %v407_v23 = vshrl.u32 %v2583_v17, 16  ;;  %v2131_v51 = vld [vmem:[%s2899_s1 + $0x128] sm:$0xff]  }
  0x1d   : > { %1847 = vmatpush3.bf16.msra.mxu0 %v2095_v30  ;;  %v2110_v30 = vld [vmem:[%s2899_s1 + $0x180] sm:$0xff]   ;;  %v2613_v47 = vadd.s32 64, %v2258_v14  ;;  %v618_v11 = vrot.slane %v2385_v55, 4  ;;  %v2136_v55 = vld [vmem:[%s2899_s1 + $0x130] sm:$0xff]  }
  0x1e   : > { %1887 = vmatpush3.bf16.msra.mxu1 %v2096_v32  ;;  %1848 = vmatprep.subr.bf16.mxu0 %v2097_v34  ;;  %v2112_v32 = vld [vmem:[%s2899_s1 + $0x1c8] sm:$0xff]   ;;  %v617_v40 = vsel %vm244_vm0, %v615_v29, %v616_v31  ;;  %vm2556_vm9 = vcmp.ne.s16.totalorder %v1720_v61, 0  ;;  %v2620_v26 = vrot.slane %v407_v23, 7  ;;  %v2126_v29 = vld [vmem:[%s2899_s1 + $0x1e0] sm:$0xff]   ;;  %v632_v61 = vrot.slane %v2583_v17, 4 }
  0x1f   : > { %1888 = vmatprep.subr.bf16.mxu1 %v2098_v36  ;;  %v2113_v34 = vld [vmem:[%s2899_s1 + $0x108] sm:$0xff]   ;;  %v433_v36 = vsel %vm429_vm13, %v431_v20, %v432_v18  ;;  %1334 = vmatprep.mubr.bf16.mxu1 %v617_v40  ;;  %v498_v18 = vsel %vm488_vm3, 65537, %v2174_v0  ;;  %vm2692_vm3 = vcmp.ne.s32.totalorder %v309_v16, 7 }
  0x21   : > { %1849 = vmatpush3.bf16.msra.mxu0 %v2099_v39  ;;  %v2488_v39 = vld [vmem:[%s2354_s7 + $0xc] sm:$0xff]  }
  0x22   : > { %1889 = vmatpush3.bf16.msra.mxu1 %v2100_v41  ;;  %1850 = vmatprep.subr.bf16.mxu0 %v2101_v44  ;;  %v496_v41 = vsel %vm486_vm7, 65537, %v2174_v0  ;;  %v2116_v44 = vld [vmem:[%s2899_s1 + $0x150] sm:$0xff]   ;;  %v402_v49 = vshll.u32 %v2488_v39, 16  ;;  %vm489_vm7 = vmpackc.low %vm459_vm4, %vm459_vm4 }
  0x23   : > { %1890 = vmatprep.subr.bf16.mxu1 %v2102_v46  ;;  %v2114_v46 = vld [vmem:[%s2899_s1 + $0x188] sm:$0xff]  }
  0x24   : > { %v435_v59 = vrot.slane %v402_v49, 1 }
  0x25   : > { %1851 = vmatpush3.bf16.msra.mxu0 %v2103_v48  ;;  %v399_v48 = vshrl.u32 %v2488_v39, 16 }
  0x26   : > { %1891 = vmatpush3.bf16.msra.mxu1 %v2104_v50  ;;  %1916 = vmatprep.subr.bf16.mxu0 %v2107_v57  ;;  %v1716_v50 = vcombine.low %v496_v41, %v497_v42  ;;  %v597_v57 = vsel %vm2483_vm1, %v433_v36, 0  ;;  %v2554_v6 = vsel %vm429_vm13, %v434_v52, %v435_v59  ;;  %v2129_v42 = vld [vmem:[%s2899_s1 + $0x168] sm:$0xff]  }
  0x27   : > { %1956 = vmatprep.subr.bf16.mxu1 %v2108_v7  ;;  %v2531_v58 = vrot.slane %v399_v48, 7  ;;  %v2551_v4 = vrot.slane %v597_v57, 4  ;;  %v598_v9 = vsel %vm2556_vm9, %v2554_v6, 0  ;;  %v437_v40 = vor.u32 %v435_v59, %v399_v48  ;;  %v2132_v52 = vld [vmem:[%s2899_s1 + $0x1a8] sm:$0xff]  }
  0x28   : > { %1799 = vmatmul.mubr.msk.bf16.vlgmr.msra.gmra.mrb[0].mxu0 %vm517_vm5, %v428_v22  ;;  %vm2540_vm15 = vcmp.ne.s16.totalorder %v1716_v50, 0  ;;  %vm2590_vm5 = vcmp.ne.s32.totalorder %v295_v43, 7  ;;  %v2603_v33 = vrot.slane %v598_v9, 4  ;;  %v499_v43 = vsel %vm489_vm7, 65537, %v2174_v0  ;;  %vm563_vm7 = vmpackc.low %vm2692_vm3, %vm2692_vm3  ;;  %v2135_v9 = vld [vmem:[%s2899_s1 + $0x1f0] sm:$0xff]  }
  0x29   : > { %1917 = vmatpush3.bf16.msra.mxu0 %v2109_v8  ;;  %1277 = vmatprep.mubr.bf16.mxu0 %v2376_v53  ;;  %v404_v63 = vor.u32 %v402_v49, %v2531_v58  ;;  %vm561_vm12 = vmpackc.low %vm2590_vm5, %vm2590_vm5  ;;  %v1717_v27 = vcombine.low %v498_v18, %v499_v43  ;;  %vm2708_vm5 = vcmp.ne.s32.totalorder %v316_v35, 7  ;;  %v2137_v18 = vld [vmem:[%s2899_s1 + $0x1b0] sm:$0xff]  }
  0x2a   : > { %1918 = vmatprep.subr.bf16.mxu0 %v2111_v24  ;;  %1803 = vmatmul.mubr.msk.bf16.vlgmr.msra.gmra.mrb[0].mxu1 %vm2483_vm1, %v433_v36  ;;  %v410_v24 = vshll.u32 %v2583_v17, 16  ;;  %vm562_vm1 = vmpackc.low %vm2596_vm14, %vm2596_vm14  ;;  %v571_v28 = vsel %vm561_vm12, 65537, %v2174_v0  ;;  %v623_v57 = vsel %vm244_vm0, %v2551_v4, %v2603_v33  ;;  %v573_v4 = vsel %vm563_vm7, 65537, %v2174_v0  ;;  %v1724_v36 = vld [vmem:[%s2900_s2] ss:$0 sm:$0xff] }
  0x2b   : > { %1957 = vmatpush3.bf16.msra.mxu1 %v2110_v30  ;;  %v2565_v8 = vsel %vm383_vm10, %v2420_v5, %v404_v63  ;;  %v2633_v30 = vadd.s32 72, %v2258_v14  ;;  %vm2641_vm11 = vcmp.ne.s16.totalorder %v1717_v27, 0  ;;  %v2128_v14 = vld [vmem:[%s2899_s1 + $0x1a0] sm:$0xff]   ;;  %v2139_v27 = vld [vmem:[%s2899_s1 + $0x1f8] sm:$0xff]  }
  0x2c   : > { %1958 = vmatprep.subr.bf16.mxu1 %v2112_v32  ;;  %v524_v12 = vsel %vm2540_vm15, %v2565_v8, 0  ;;  %v2127_v32 = vld [vmem:[%s2899_s1 + $0x120] sm:$0xff]   ;;  %v438_v41 = vrot.slane %v410_v24, 1 }
  0x2d   : > { %1919 = vmatpush3.bf16.msra.mxu0 %v2113_v34  ;;  %v624_v5 = vrot.slane %v524_v12, 4  ;;  %v412_v34 = vor.u32 %v410_v24, %v2620_v26  ;;  %v330_v59 = vand.u32 7, %v2633_v30  ;;  %v2138_v24 = vld [vmem:[%s2899_s1 + $0x178] sm:$0xff]  }
  0x2e   : > { %1920 = vmatprep.subr.bf16.mxu0 %v2116_v44  ;;  %v2677_v54 = vsel %vm429_vm13, %v437_v40, %v438_v41 }
  0x2f   : > { %1959 = vmatpush3.bf16.msra.mxu1 %v2114_v46  ;;  %v625_v22 = vsel %vm244_vm0, %v616_v31, %v624_v5  ;;  %v572_v31 = vsel %vm562_vm1, 65537, %v2174_v0  ;;  %v2655_v44 = vsel %vm383_vm10, %v2531_v58, %v412_v34  ;;  %v323_v46 = vand.u32 7, %v2613_v47  ;;  %vm564_vm1 = vmpackc.low %vm2708_vm5, %vm2708_vm5 }
  0x30   : > { %1800 = vmatmul.mubr.msk.bf16.gmra.mrb[4].mxu0 %vm2458_vm6, %v2450_v21  ;;  %1960 = vmatprep.subr.bf16.mxu1 %v2117_v60  ;;  %v1721_v37 = vcombine.low %v571_v28, %v572_v31  ;;  %v525_v48 = vsel %vm2641_vm11, %v2655_v44, 0  ;;  %v2134_v60 = vld [vmem:[%s2899_s1 + $0x170] sm:$0xff]   ;;  %vm461_vm14 = vcmp.ne.s32.totalorder %v330_v59, 0  ;;  %vm536_vm5 = vcmp.ne.s32.totalorder %v330_v59, 7  ;;  %v2145_v59 = vld [vmem:[%s2899_s1 + $0x218] sm:$0xff]  }
  0x31   : > { %1921 = vmatpush3.bf16.msra.mxu0 %v2118_v56  ;;  %1285 = vmatprep.mubr.bf16.mxu0 %v2488_v39  ;;  %v2664_v49 = vrot.slane %v525_v48, 4  ;;  %v2680_v56 = vld [vmem:[%s2354_s7 + $0x1c] ss:$0 sps:$4 sm:$0xff]   ;;  %vm460_vm8 = vcmp.ne.s32.totalorder %v323_v46, 0  ;;  %vm491_vm12 = vmpackc.low %vm461_vm14, %vm461_vm14 }
  0x32   : > { %1922 = vmatprep.subr.bf16.mxu0 %v2120_v3  ;;  %1342 = vmatprep.mubr.bf16.mxu1 %v625_v22  ;;  %vm2666_vm2 = vcmp.ne.s16.totalorder %v1721_v37, 0  ;;  %v2701_v63 = vsel %vm244_vm0, %v2680_v56, 0  ;;  %vm490_vm4 = vmpackc.low %vm460_vm8, %vm460_vm8  ;;  %v501_v12 = vsel %vm491_vm12, 65537, %v2174_v0 }
  0x33   : > { %1961 = vmatpush3.bf16.msra.mxu1 %v2119_v2  ;;  %v631_v58 = vsel %vm244_vm0, %v624_v5, %v2664_v49  ;;  %v414_v16 = vshrl.u32 %v2701_v63, 16  ;;  %v417_v2 = vshll.u32 %v2701_v63, 16  ;;  %v500_v3 = vsel %vm490_vm4, 65537, %v2174_v0  ;;  %vm566_vm12 = vmpackc.low %vm536_vm5, %vm536_vm5 }
  0x34   : > { %1962 = vmatprep.subr.bf16.mxu1 %v2121_v13  ;;  %1804 = vmatmul.mubr.msk.bf16.gmra.mrb[4].mxu1 %vm2556_vm9, %v2554_v6  ;;  %v599_v35 = vsel %vm2666_vm2, %v2677_v54, 0  ;;  %v619_v13 = vrot.slane %v2376_v53, 4  ;;  %v1718_v5 = vcombine.low %v500_v3, %v501_v12  ;;  %vm535_vm4 = vcmp.ne.s32.totalorder %v323_v46, 7  ;;  %v2148_v3 = vld [vmem:[%s2899_s1 + $0x230] sm:$0xff]  }
  0x35   : > { %1923 = vmatpush3.bf16.msra.mxu0 %v2122_v10  ;;  %1350 = vmatprep.mubr.bf16.mxu1 %v631_v58  ;;  %v416_v10 = vrot.slane %v414_v16, 7  ;;  %v441_v20 = vrot.slane %v417_v2, 1  ;;  %v628_v31 = vrot.slane %v599_v35, 4  ;;  %vm565_vm7 = vmpackc.low %vm535_vm4, %vm535_vm4  ;;  %v576_v46 = vsel %vm566_vm12, 65537, %v2174_v0 }
  0x36   : > { %1924 = vmatprep.subr.bf16.mxu0 %v2125_v38  ;;  %vm2748_vm8 = vcmp.ne.s16.totalorder %v1718_v5, 0  ;;  %v440_v38 = vor.u32 %v438_v41, %v407_v23  ;;  %v620_v37 = vsel %vm244_vm0, %v618_v11, %v619_v13 }
  0x37   : > { %1963 = vmatpush3.bf16.msra.mxu1 %v2123_v15  ;;  %v574_v15 = vsel %vm564_vm1, 65537, %v2174_v0  ;;  %v419_v19 = vor.u32 %v417_v2, %v416_v10  ;;  %v629_v48 = vsel %vm244_vm0, %v2603_v33, %v628_v31  ;;  %v2144_v33 = vld [vmem:[%s2899_s1 + $0x210] sm:$0xff]   ;;  %v638_v2 = vrot.slane %v2701_v63, 4 }
  0x38   : > { %1801 = vmatmul.mubr.msk.bf16.gmra.mrb[8].mxu0 %vm2540_vm15, %v2565_v8  ;;  %1964 = vmatprep.subr.bf16.mxu1 %v2126_v29  ;;  %v1722_v22 = vcombine.low %v573_v4, %v574_v15  ;;  %v2140_v29 = vld [vmem:[%s2899_s1 + $0x138] sm:$0xff]   ;;  %v2779_v40 = vsel %vm429_vm13, %v440_v38, %v441_v20 }
  0x39   : > { %1293 = vmatprep.mubr.bf16.mxu0 %v2583_v17  ;;  %1925 = vmatpush3.bf16.msra.mxu0 %v2127_v32  ;;  %v2759_v28 = vsel %vm383_vm10, %v2620_v26, %v419_v19  ;;  %v2141_v26 = vld [vmem:[%s2899_s1 + $0x1b8] sm:$0xff]   ;;  %vm449_vm10 = vcmask 1047552   ;;  %v639_v11 = vsel %vm244_vm0, %v632_v61, %v638_v2 }
  0x3a   : > { %1926 = vmatprep.subr.bf16.mxu0 %v2129_v42  ;;  %v526_v32 = vsel %vm2748_vm8, %v2759_v28, 0  ;;  %vm2767_vm3 = vcmp.ne.s16.totalorder %v1722_v22, 0  ;;  %vm450_vm14 = vmand %vm449_vm10, %vm429_vm13 }
  0x3b   : > { %1965 = vmatpush3.bf16.msra.mxu1 %v2128_v14  ;;  %v636_v23 = vrot.slane %v526_v32, 4  ;;  %v2142_v14 = vld [vmem:[%s2899_s1 + $0x200] sm:$0xff]   ;;  %v600_v42 = vsel %vm2767_vm3, %v2779_v40, 0 }
  0x3c   : > { %1966 = vmatprep.subr.bf16.mxu1 %v2130_v45  ;;  %1805 = vmatmul.mubr.msk.bf16.gmra.mrb[8].mxu1 %vm2666_vm2, %v2677_v54  ;;  %v2143_v45 = vld [vmem:[%s2899_s1 + $0x208] sm:$0xff]  }
  0x3d   : > { %1927 = vmatpush3.bf16.msra.mxu0 %v2131_v51  ;;  %v637_v41 = vsel %vm244_vm0, %v2664_v49, %v636_v23  ;;  %v626_v49 = vrot.slane %v2488_v39, 4  ;;  %v634_v51 = vrot.slane %v600_v42, 4 }
  0x3e   : > { %1928 = vmatprep.subr.bf16.mxu0 %v2134_v60  ;;  %1358 = vmatprep.mubr.bf16.mxu1 %v637_v41 }
  0x3f   : > { %1967 = vmatpush3.bf16.msra.mxu1 %v2132_v52  ;;  %v443_v52 = vor.u32 %v441_v20, %v414_v16  ;;  %v627_v47 = vsel %vm244_vm0, %v619_v13, %v626_v49  ;;  %v635_v30 = vsel %vm244_vm0, %v628_v31, %v634_v51  ;;  %v633_v25 = vsel %vm244_vm0, %v626_v49, %v632_v61 }
  0x40   : > { %1802 = vmatmul.mubr.msk.bf16.gmra.mrb[12].mxu0 %vm2641_vm11, %v2655_v44  ;;  %1968 = vmatprep.subr.bf16.mxu1 %v2135_v9 }
  0x41   : > { %1399 = vmatprep.mubr.bf16.mxu0 %v623_v57  ;;  %1929 = vmatpush3.bf16.msra.mxu0 %v2136_v55  ;;  %v451_v57 = vsel %vm450_vm14, %v443_v52, 0 }
  0x42   : > { %1930 = vmatprep.subr.bf16.mxu0 %v2138_v24 }
  0x43   : > { %1969 = vmatpush3.bf16.msra.mxu1 %v2137_v18 }
  0x44   : > { %1970 = vmatprep.subr.bf16.mxu1 %v2139_v27  ;;  %1806 = vmatmul.mubr.msk.bf16.gmra.mrb[12].mxu1 %vm2767_vm3, %v2779_v40 }
  0x45   : > { %1931 = vmatpush3.bf16.msra.mxu0 %v2140_v29  ;;  %1464 = vmatprep.mubr.bf16.mxu1 %v2376_v53  ;;  %v575_v53 = vsel %vm565_vm7, 65537, %v2174_v0 }
  0x46   : > { %2008 = vmatprep.subr.bf16.mxu0 %v2142_v14  ;;  %v1723_v58 = vcombine.low %v575_v53, %v576_v46 }
  0x47   : > { %1971 = vmatpush3.bf16.msra.mxu1 %v2141_v26 }
  0x48   : > { %1400 = vmatmul.mubr.bf16.vlgmr.msra.gmra.mrb[16].mxu0 %v620_v37  ;;  %2032 = vmatprep.subr.bf16.mxu1 %v2142_v14  ;;  %vm2817_vm13 = vcmp.ne.s16.totalorder %v1723_v58, 0 }
  0x49   : > { %2009 = vmatpush3.bf16.msra.mxu0 %v2142_v14  ;;  %1407 = vmatprep.mubr.bf16.mxu0 %v629_v48  ;;  %v601_v0 = vsel %vm2817_vm13, %v451_v57, 0 }
  0x4a   : > { %2010 = vmatprep.subr.bf16.mxu0 %v2143_v45  ;;  %v640_v62 = vrot.slane %v601_v0, 4 }
  0x4c   : > { %1807 = vmatmul.mubr.msk.bf16.vlgmr.msra.gmra.mrb[16].mxu1 %vm2458_vm6, %v2450_v21  ;;  %v2146_v21 = vld [vmem:[%s2899_s1 + $0x220] sm:$0xff]   ;;  %v641_v16 = vsel %vm244_vm0, %v634_v51, %v640_v62 }
  0x4d   : > { %2011 = vmatpush3.bf16.msra.mxu0 %v2143_v45  ;;  %2040 = vmatpush3.bf16.msra.mxu1 %v2142_v14 }
  0x4e   : > { %2012 = vmatprep.subr.bf16.mxu0 %v2144_v33  ;;  %1472 = vmatprep.mubr.bf16.mxu1 %v2488_v39  ;;  %v2147_v39 = vld [vmem:[%s2899_s1 + $0x228] sm:$0xff]  }
  0x4f   : > { %2033 = vmatprep.subr.bf16.mxu1 %v2143_v45 }
  0x50   : > { %1408 = vmatmul.mubr.bf16.gmra.mrb[20].mxu0 %v627_v47 }
  0x51   : > { %1415 = vmatprep.mubr.bf16.mxu0 %v635_v30  ;;  %2013 = vmatpush3.bf16.msra.mxu0 %v2144_v33 }
  0x52   : > { %2014 = vmatprep.subr.bf16.mxu0 %v2145_v59  ;;  %2041 = vmatpush3.bf16.msra.mxu1 %v2143_v45 }
  0x53   : > { %2034 = vmatprep.subr.bf16.mxu1 %v2144_v33 }
  0x54   : > { %1808 = vmatmul.mubr.msk.bf16.gmra.mrb[20].mxu1 %vm2540_vm15, %v2565_v8 }
  0x55   : > { %2015 = vmatpush3.bf16.msra.mxu0 %v2145_v59  ;;  %1480 = vmatprep.mubr.bf16.mxu1 %v2583_v17 }
  0x56   : > { %2016 = vmatprep.subr.bf16.mxu0 %v2146_v21  ;;  %2042 = vmatpush3.bf16.msra.mxu1 %v2144_v33 }
  0x57   : > { %2035 = vmatprep.subr.bf16.mxu1 %v2145_v59 }
  0x58   : > { %1416 = vmatmul.mubr.bf16.gmra.mrb[24].mxu0 %v633_v25 }
  0x59   : > { %1423 = vmatprep.mubr.bf16.mxu0 %v641_v16  ;;  %2017 = vmatpush3.bf16.msra.mxu0 %v2146_v21 }
  0x5a   : > { %2018 = vmatprep.subr.bf16.mxu0 %v2147_v39  ;;  %2043 = vmatpush3.bf16.msra.mxu1 %v2145_v59 }
  0x5b   : > { %2036 = vmatprep.subr.bf16.mxu1 %v2146_v21 }
  0x5c   : > { %1809 = vmatmul.mubr.msk.bf16.gmra.mrb[24].mxu1 %vm2641_vm11, %v2655_v44 }
  0x5d   : > { %2019 = vmatpush3.bf16.msra.mxu0 %v2147_v39  ;;  %1810 = vmatprep.mubr.msk.bf16.mxu1 %vm244_vm0, %v2680_v56  ;;  %vm1602_vm0 = vcmask 257024  }
  0x5e   : > { %2020 = vmatprep.subr.bf16.mxu0 %v2148_v3  ;;  %2044 = vmatpush3.bf16.msra.mxu1 %v2146_v21 }
  0x5f   : > { %2037 = vmatprep.subr.bf16.mxu1 %v2147_v39 }
  0x60   : > { %1424 = vmatmul.mubr.bf16.gmra.mrb[28].mxu0 %v639_v11 }
  0x61   : > { %2024 = vmatprep.mubr.msk.bf16.mxu0 %vm2556_vm9, %v2554_v6  ;;  %2021 = vmatpush3.bf16.msra.mxu0 %v2148_v3 }
  0x62   : > { %2022 = vmatprep.subr.bf16.mxu0 %v2149_v1  ;;  %2045 = vmatpush3.bf16.msra.mxu1 %v2147_v39 }
  0x63   : > { %2038 = vmatprep.subr.bf16.mxu1 %v2148_v3 }
  0x64   : > { %1811 = vmatmul.mubr.msk.bf16.gmra.mrb[28].mxu1 %vm2748_vm8, %v2759_v28 }
  0x65   : > { %2023 = vmatpush3.bf16.msra.mxu0 %v2149_v1  ;;  %2028 = vmatprep.mubr.msk.bf16.mxu1 %vm2767_vm3, %v2779_v40 }
  0x66   : > { %2046 = vmatpush3.bf16.msra.mxu1 %v2148_v3 }
  0x67   : > { %2039 = vmatprep.subr.bf16.mxu1 %v2149_v1 }
  0x68   : > { %2025 = vmatmul.mubr.msk.bf16.vlgmr.msra.gmra.mrb[32].mxu0 %vm2666_vm2, %v2677_v54 }
  0x6a   : > { %2047 = vmatpush3.bf16.msra.mxu1 %v2149_v1 }
  0x6d   : > { %2029 = vmatmul.mubr.msk.bf16.vlgmr.msra.gmra.mrb[32].mxu1 %vm2817_vm13, %v451_v57 }
  0xfb   : > { %v1852_v6 = vpop.f32.mrb[0].mxu0 }
  0xfc   : > { %v1853_v7 = vpop.f32.mrb[1].mxu0 }
  0xfd   : > { %v1854_v8 = vadd.f32 %v1853_v7, %v1852_v6  ;;  %v1855_v17 = vpop.f32.mrb[2].mxu0  ;;  %v1892_v63 = vpop.f32.mrb[0].mxu1 }
  0xfe   : > { %v1856_v44 = vpop.f32.mrb[3].mxu0  ;;  %v1893_v4 = vpop.f32.mrb[1].mxu1 }
  0xff   : > { %v1857_v56 = vadd.f32 %v1856_v44, %v1855_v17  ;;  %v1272_v35 = vadd.f32 %v1854_v8, %v1724_v36  ;;  %v1894_v9 = vadd.f32 %v1893_v4, %v1892_v63  ;;  %v1895_v50 = vpop.f32.mrb[2].mxu1 }
 0x100   : > { %v1896_v12 = vpop.f32.mrb[3].mxu1 }
 0x101   : > { %v1275_v54 = vadd.f32 %v1857_v56, %v1724_v36  ;;  %v1337_v13 = vadd.f32 %v1894_v9, %v1272_v35  ;;  %v1897_v5 = vadd.f32 %v1896_v12, %v1895_v50 }
 0x103   : > { %v1858_v10 = vpop.f32.mrb[4].mxu0  ;;  %v1340_v20 = vadd.f32 %v1897_v5, %v1275_v54 }
 0x104   : > { %v1859_v55 = vpop.f32.mrb[5].mxu0 }
 0x105   : > { %v1860_v15 = vadd.f32 %v1859_v55, %v1858_v10  ;;  %v1861_v18 = vpop.f32.mrb[6].mxu0 }
 0x106   : > { %v1862_v19 = vpop.f32.mrb[7].mxu0 }
 0x107   : > { %v1863_v22 = vadd.f32 %v1862_v19, %v1861_v18  ;;  %v1898_v24 = vpop.f32.mrb[4].mxu1  ;;  %v1280_v43 = vadd.f32 %v1860_v15, %v1724_v36 }
 0x108   : > { %v1899_v27 = vpop.f32.mrb[5].mxu1 }
 0x109   : > { %v1900_v29 = vadd.f32 %v1899_v27, %v1898_v24  ;;  %v1901_v31 = vpop.f32.mrb[6].mxu1  ;;  %v1283_v32 = vadd.f32 %v1863_v22, %v1724_v36 }
 0x10a   : > { %v1902_v26 = vpop.f32.mrb[7].mxu1 }
 0x10b   : > { %v1864_v38 = vpop.f32.mrb[8].mxu0  ;;  %v1345_v14 = vadd.f32 %v1900_v29, %v1280_v43  ;;  %v1903_v40 = vadd.f32 %v1902_v26, %v1901_v31 }
 0x10c   : > { %v1865_v28 = vpop.f32.mrb[9].mxu0 }
 0x10d   : > { %v1866_v23 = vadd.f32 %v1865_v28, %v1864_v38  ;;  %v1867_v34 = vpop.f32.mrb[10].mxu0  ;;  %v1348_v42 = vadd.f32 %v1903_v40, %v1283_v32 }
 0x10e   : > { %v1868_v37 = vpop.f32.mrb[11].mxu0 }
 0x10f   : > { %v1869_v41 = vadd.f32 %v1868_v37, %v1867_v34  ;;  %v1904_v48 = vpop.f32.mrb[8].mxu1  ;;  %v1288_v49 = vadd.f32 %v1866_v23, %v1724_v36 }
 0x110   : > { %v1905_v33 = vpop.f32.mrb[9].mxu1 }
 0x111   : > { %v1906_v53 = vadd.f32 %v1905_v33, %v1904_v48  ;;  %v1907_v30 = vpop.f32.mrb[10].mxu1  ;;  %v1291_v46 = vadd.f32 %v1869_v41, %v1724_v36 }
 0x112   : > { %v1908_v58 = vpop.f32.mrb[11].mxu1 }
 0x113   : > { %v1870_v45 = vpop.f32.mrb[12].mxu0  ;;  %v1353_v61 = vadd.f32 %v1906_v53, %v1288_v49  ;;  %v1909_v60 = vadd.f32 %v1908_v58, %v1907_v30 }
 0x114   : > { %v1871_v51 = vpop.f32.mrb[13].mxu0 }
 0x115   : > { %v1872_v52 = vadd.f32 %v1871_v51, %v1870_v45  ;;  %v1873_v47 = vpop.f32.mrb[14].mxu0  ;;  %v1356_v0 = vadd.f32 %v1909_v60, %v1291_v46 }
 0x116   : > { %v1874_v57 = vpop.f32.mrb[15].mxu0 }
 0x117   : > { %v1875_v59 = vadd.f32 %v1874_v57, %v1873_v47  ;;  %v1910_v21 = vpop.f32.mrb[12].mxu1  ;;  %v1296_v25 = vadd.f32 %v1872_v52, %v1724_v36 }
 0x118   : > { %v1911_v39 = vpop.f32.mrb[13].mxu1 }
 0x119   : > { %v1912_v11 = vadd.f32 %v1911_v39, %v1910_v21  ;;  %v1913_v1 = vpop.f32.mrb[14].mxu1  ;;  %v1299_v6 = vadd.f32 %v1875_v59, %v1724_v36 }
 0x11a   : > { %v1914_v8 = vpop.f32.mrb[15].mxu1 }
 0x11b   : > { %v1932_v62 = vpop.f32.mrb[16].mxu0  ;;  %v1361_v56 = vadd.f32 %v1912_v11, %v1296_v25  ;;  %v1915_v63 = vadd.f32 %v1914_v8, %v1913_v1 }
 0x11c   : > { %v1933_v16 = vpop.f32.mrb[17].mxu0 }
 0x11d   : > { %v1934_v2 = vadd.f32 %v1933_v16, %v1932_v62  ;;  %v1935_v3 = vpop.f32.mrb[18].mxu0  ;;  %v1364_v4 = vadd.f32 %v1915_v63, %v1299_v6 }
 0x11e   : > { %v1936_v7 = vpop.f32.mrb[19].mxu0 }
 0x11f   : > { %v1402_v17 = vadd.f32 %v1934_v2, %v1337_v13  ;;  %v1937_v44 = vadd.f32 %v1936_v7, %v1935_v3  ;;  %v1972_v50 = vpop.f32.mrb[16].mxu1 }
 0x120   : > { %v1973_v10 = vpop.f32.mrb[17].mxu1 }
 0x121   : > { %v1405_v35 = vadd.f32 %v1937_v44, %v1340_v20  ;;  %v1974_v5 = vadd.f32 %v1973_v10, %v1972_v50  ;;  %v1975_v15 = vpop.f32.mrb[18].mxu1 }
 0x122   : > { %v1976_v19 = vpop.f32.mrb[19].mxu1 }
 0x123   : > { %v1938_v9 = vpop.f32.mrb[20].mxu0  ;;  %v1977_v24 = vadd.f32 %v1976_v19, %v1975_v15  ;;  %v1467_v43 = vadd.f32 %v1974_v5, %v1402_v17 }
 0x124   : > { %v1939_v54 = vpop.f32.mrb[21].mxu0 }
 0x125   : > { %v1940_v12 = vadd.f32 %v1939_v54, %v1938_v9  ;;  %v1941_v55 = vpop.f32.mrb[22].mxu0  ;;  %v1470_v38 = vadd.f32 %v1977_v24, %v1405_v35 }
 0x126   : > { %v1942_v18 = vpop.f32.mrb[23].mxu0 }
 0x127   : > { %v1410_v22 = vadd.f32 %v1940_v12, %v1345_v14  ;;  %v1943_v36 = vadd.f32 %v1942_v18, %v1941_v55  ;;  %v1978_v28 = vpop.f32.mrb[20].mxu1 }
 0x128   : > { %v1979_v29 = vpop.f32.mrb[21].mxu1 }
 0x129   : > { %v1413_v13 = vadd.f32 %v1943_v36, %v1348_v42  ;;  %v1980_v23 = vadd.f32 %v1979_v29, %v1978_v28  ;;  %v1981_v34 = vpop.f32.mrb[22].mxu1 }
 0x12a   : > { %v1982_v37 = vpop.f32.mrb[23].mxu1 }
 0x12b   : > { %v1944_v27 = vpop.f32.mrb[24].mxu0  ;;  %v1983_v45 = vadd.f32 %v1982_v37, %v1981_v34  ;;  %v1475_v48 = vadd.f32 %v1980_v23, %v1410_v22 }
 0x12c   : > { %v1945_v20 = vpop.f32.mrb[25].mxu0 }
 0x12d   : > { %v1946_v31 = vadd.f32 %v1945_v20, %v1944_v27  ;;  %v1947_v32 = vpop.f32.mrb[26].mxu0  ;;  %v1478_v49 = vadd.f32 %v1983_v45, %v1413_v13 }
 0x12e   : > { %v1948_v26 = vpop.f32.mrb[27].mxu0 }
 0x12f   : > { %v1418_v40 = vadd.f32 %v1946_v31, %v1353_v61  ;;  %v1949_v41 = vadd.f32 %v1948_v26, %v1947_v32  ;;  %v1984_v33 = vpop.f32.mrb[24].mxu1 }
 0x130   : > { %v1985_v52 = vpop.f32.mrb[25].mxu1 }
 0x131   : > { %v1421_v14 = vadd.f32 %v1949_v41, %v1356_v0  ;;  %v1986_v30 = vadd.f32 %v1985_v52, %v1984_v33  ;;  %v1987_v46 = vpop.f32.mrb[26].mxu1 }
 0x132   : > { %v1988_v58 = vpop.f32.mrb[27].mxu1 }
 0x133   : > { %v1950_v51 = vpop.f32.mrb[28].mxu0  ;;  %v1989_v62 = vadd.f32 %v1988_v58, %v1987_v46  ;;  %v1483_v21 = vadd.f32 %v1986_v30, %v1418_v40 }
 0x134   : > { %v1951_v42 = vpop.f32.mrb[29].mxu0 }
 0x135   : > { %v1952_v47 = vadd.f32 %v1951_v42, %v1950_v51  ;;  %v1953_v53 = vpop.f32.mrb[30].mxu0  ;;  %v1486_v25 = vadd.f32 %v1989_v62, %v1421_v14 }
 0x136   : > { %v1954_v57 = vpop.f32.mrb[31].mxu0 }
 0x137   : > { %v1426_v59 = vadd.f32 %v1952_v47, %v1361_v56  ;;  %v1955_v60 = vadd.f32 %v1954_v57, %v1953_v53  ;;  %v1990_v16 = vpop.f32.mrb[28].mxu1 }
 0x138   : > { %v1991_v0 = vpop.f32.mrb[29].mxu1 }
 0x139   : > { %v1429_v61 = vadd.f32 %v1955_v60, %v1364_v4  ;;  %v1992_v39 = vadd.f32 %v1991_v0, %v1990_v16  ;;  %v1993_v2 = vpop.f32.mrb[30].mxu1 }
 0x13a   : > { %v1994_v11 = vpop.f32.mrb[31].mxu1 }
 0x13b   : > { %v2026_v3 = vpop.f32.mrb[32].mxu0  ;;  %v1995_v7 = vadd.f32 %v1994_v11, %v1993_v2  ;;  %v1491_v8 = vadd.f32 %v1992_v39, %v1426_v59 }
 0x13c   : > { %v1540_v1 = vadd.f32 %v2026_v3, %v1475_v48  ;;  %v1531_v6 = vpop.f32.mrb[33].mxu0 }
 0x13d   : > { %v1532_v17 = vadd.f32 %v1531_v6, %v1467_v43  ;;  %v2027_v44 = vpop.f32.mrb[34].mxu0  ;;  %v1494_v9 = vadd.f32 %v1995_v7, %v1429_v61 }
 0x13e   : > { %v1564_v63 = vmax.f32 %v1540_v1, 0.0  ;;  %v1543_v56 = vadd.f32 %v2027_v44, %v1478_v49  ;;  %v1534_v35 = vpop.f32.mrb[35].mxu0 }
 0x13f   : > { %v1562_v4 = vmax.f32 %v1532_v17, 0.0  ;;  %v1535_v50 = vadd.f32 %v1534_v35, %v1470_v38 }
 0x140   : > { %v1830_v54 = vpack.c.bf16 %v1564_v63, %v1564_v63  ;;  %v1565_v10 = vmax.f32 %v1543_v56, 0.0  ;;  %v2030_v12 = vpop.f32.mrb[32].mxu1 }
 0x141   : > { %v1828_v55 = vpack.c.bf16 %v1562_v4, %v1562_v4  ;;  %v1563_v5 = vmax.f32 %v1535_v50, 0.0  ;;  %v1556_v15 = vadd.f32 %v2030_v12, %v1491_v8  ;;  %v1547_v18 = vpop.f32.mrb[33].mxu1 }
 0x142   : > { %1605 = vst.msk [vmem:[%s2871_s10 + $0x8] sm:$0xf] %vm1602_vm0, %v1830_v54  ;;  %v1831_v19 = vpack.c.bf16 %v1565_v10, %v1565_v10  ;;  %v1548_v22 = vadd.f32 %v1547_v18, %v1483_v21  ;;  %v2031_v36 = vpop.f32.mrb[34].mxu1 }
 0x143   : > { %1603 = vst.msk [vmem:[%s2871_s10] sm:$0xf] %vm1602_vm0, %v1828_v55  ;;  %v1829_v24 = vpack.c.bf16 %v1563_v5, %v1563_v5  ;;  %v1568_v43 = vmax.f32 %v1556_v15, 0.0  ;;  %v1559_v13 = vadd.f32 %v2031_v36, %v1494_v9  ;;  %v1550_v38 = vpop.f32.mrb[35].mxu1 }
 0x144   : > { %1606 = vst.msk [vmem:[%s2871_s10 + $0xc] sm:$0xf] %vm1602_vm0, %v1831_v19  ;;  %v1566_v27 = vmax.f32 %v1548_v22, 0.0  ;;  %v1551_v28 = vadd.f32 %v1550_v38, %v1486_v25 }
 0x145   : > { %1604 = vst.msk [vmem:[%s2871_s10 + $0x4] sm:$0xf] %vm1602_vm0, %v1829_v24  ;;  %v1834_v20 = vpack.c.bf16 %v1568_v43, %v1568_v43  ;;  %v1569_v29 = vmax.f32 %v1559_v13, 0.0 }
 0x146   : > { %v1832_v31 = vpack.c.bf16 %v1566_v27, %v1566_v27  ;;  %v1567_v32 = vmax.f32 %v1551_v28, 0.0 }
 0x147   : > { %1609 = vst.msk [vmem:[%s2871_s10 + $0x18] sm:$0xf] %vm1602_vm0, %v1834_v20  ;;  %v1835_v23 = vpack.c.bf16 %v1569_v29, %v1569_v29 }
 0x148   : > { %1607 = vst.msk [vmem:[%s2871_s10 + $0x10] sm:$0xf] %vm1602_vm0, %v1832_v31  ;;  %v1833_v34 = vpack.c.bf16 %v1567_v32, %v1567_v32 }
 0x149   : > { %1610 = vst.msk [vmem:[%s2871_s10 + $0x1c] sm:$0xf] %vm1602_vm0, %v1835_v23 }
 0x14a   : > { %1608 = vst.msk [vmem:[%s2871_s10 + $0x14] sm:$0xf] %vm1602_vm0, %v1833_v34 }
 0x14b PF: > { %s13_s14 = sadd.s32 1, %s2172_s14   ;;  %s2952_s12 = smov %s2168_s13 }
 0x14c   : > { %p10_p5 = scmp.ge.s32.totalorder %s13_s14, 4   ;;  %s2953_s13 = smov %s2955_s15 }
 0x14e   :  { %12 = sbr.rel (!%p10_p5) target bundleno = 2 (0x2), region = 62 }

// kernel: refinement_net_forward.25
= control target key start
LH: loop header
LB: loop body
LE: loop exit
PB: predicated region body
PF: predicated region fallthrough
CT: control target
= control target key end

     0   :  { %s2540_s12 = smov 0   ;;  %s2542_s13 = smov 0   ;;  %s3684_s0 = inlined_call_operand.vmem [shape: bf16[2,256,10], index: 0, kind: input, shape index: {}]   ;;  %s3685_s1 = inlined_call_operand.vmem [shape: bf16[90,4], index: 1, kind: input, shape index: {}]   ;;  %s3686_s2 = inlined_call_operand.vmem [shape: f32[1,4], index: 2, kind: input, shape index: {}]   ;;  %s3687_s3 = inlined_call_operand.vmem [shape: f32[2,1,256,4], index: 3, kind: output, shape index: {}]  }
   0x1   :  { %s2544_s14 = smov 0  }
   0x2 LB: > { %s25_s15 = sadd.s32 1, %s2508_s13  ;;  %p2269_p0 = scmp.ge.s32.totalorder %s2512_s14, 1  ;;  %s2512_s14 = sphi %s2544_s14, %s13_s14   ;;  %s2508_s13 = sphi %s2542_s13, %s3791_s13   ;;  %s2504_s12 = sphi %s2540_s12, %s3790_s12  }
   0x3   : > { %p27_p1 = scmp.ge.s32.totalorder %s25_s15, 2  ;;  %p158_p2 = scmp.lt.s32.totalorder %s2512_s14, 3 }
   0x5   : > { %s3793_s15 = smov (%p27_p1, %s25_s15), 0  ;;  %p159_p3 = pnand %p2269_p0, %p158_p2 }
   0x6   : > { %p191_p4 = scmp.lt.s32.totalorder (!%p159_p3), %s2504_s12, 1  ;;  %v324_v0 = vlaneseq (!%p159_p3)  ;;  %vm2514_vm0 = vmmov (!%p159_p3), 1   ;;  %v2515_v3 = vmov (!%p159_p3), 0   ;;  %vm951_vm2 = vsmask.f32 (!%p159_p3), 7424  ;;  %s2516_s20 = smov (!%p159_p3), 10  }
   0x7   : > { %162 = sbr.rel (%p159_p3) target bundleno = 540 (0x21c), region = 32  ;;  %vm1133_vm1 = vmpackc.low (!%p159_p3), %vm2514_vm0, %vm2514_vm0  ;;  %s2517_s21 = smov (!%p159_p3), 20  }
   0x8   : > { %v2560_v1 = vshrl.u32 (!%p159_p3), %v324_v0, 7  ;;  %v2570_v4 = vsel (!%p159_p3), %vm1133_vm1, 65537, %v2515_v3  ;;  %s2518_s7 = smov (!%p159_p3), 30   ;;  %s2519_s8 = smov (!%p159_p3), 60  }
   0xa   : > { %v344_v2 = vadd.s32 (!%p159_p3), 152, %v2560_v1  ;;  %v328_v5 = vadd.s32 (!%p159_p3), 24, %v2560_v1  ;;  %v346_v6 = vadd.s32 (!%p159_p3), 168, %v2560_v1  ;;  %v2575_v7 = vadd.s32 (!%p159_p3), 40, %v2560_v1 }
   0xb   : > { %v2579_v9 = vadd.s32 (!%p159_p3), 184, %v2560_v1  ;;  %v2585_v11 = vadd.s32 (!%p159_p3), 56, %v2560_v1  ;;  %v2603_v23 = vadd.s32 (!%p159_p3), 200, %v2560_v1 }
   0xc   : > { %v498_v13 = vand.u32 (!%p159_p3), 15, %v344_v2  ;;  %v386_v17 = vand.u32 (!%p159_p3), 15, %v328_v5  ;;  %v512_v41 = vand.u32 (!%p159_p3), 15, %v346_v6  ;;  %v400_v51 = vand.u32 (!%p159_p3), 15, %v2575_v7 }
   0xd   : > { %v526_v58 = vand.u32 (!%p159_p3), 15, %v2579_v9  ;;  %v414_v63 = vand.u32 (!%p159_p3), 15, %v2585_v11 }
   0xe   : > { %s3795_s12 = smov (!%p191_p4, %s2504_s12), 1  ;;  %vm1313_vm3 = vcmp.ne.s32.totalorder %v498_v13, 15  ;;  %vm1297_vm5 = vcmp.ne.s32.totalorder %v386_v17, 15  ;;  %vm1315_vm8 = vcmp.ne.s32.totalorder %v512_v41, 15  ;;  %vm1299_vm11 = vcmp.ne.s32.totalorder %v400_v51, 15 }
   0xf   : > { %s2351_s16 = sshll.u32 %s3795_s12, 7  ;;  %vm1421_vm4 = vmpackc.low %vm1313_vm3, %vm1313_vm3  ;;  %vm1317_vm14 = vcmp.ne.s32.totalorder %v526_v58, 15  ;;  %vm1301_vm0 = vcmp.ne.s32.totalorder %v414_v63, 15  ;;  %v334_v17 = vadd.s32 72, %v2560_v1  ;;  %v336_v63 = vadd.s32 88, %v2560_v1  ;;  %s2352_s9 = sshll.u32 %s3795_s12, 8 }
  0x10   : > { %s2567_s19 = scalar_lea.vmem %s3684_s0, %s2351_s16  ;;  %v1457_v37 = vsel %vm1421_vm4, 65537, %v2515_v3  ;;  %vm1405_vm6 = vmpackc.low %vm1297_vm5, %vm1297_vm5  ;;  %s3577_s18 = scalar_lea.vmem %s3687_s3, %s2352_s9 }
  0x11   : > { %v2468_v8 = vld [vmem:[%s2567_s19 + $0x8] sm:$0xff]   ;;  %v2582_v10 = vld [vmem:[%s2567_s19] sm:$0xff]   ;;  %v2609_v25 = vld [vmem:[%s2567_s19 + $0x50] sm:$0xff]   ;;  %v2317_v38 = vcombine.low %v2570_v4, %v1457_v37  ;;  %v1441_v40 = vsel %vm1405_vm6, 65537, %v2515_v3 }
  0x12   : > { %1569 = vrot.lane.b32.xlu1 %v2468_v8, %s2516_s20  ;;  %v810_v12 = vshrl.u32 %v2468_v8, 16  ;;  %v813_v14 = vshll.u32 %v2468_v8, 16  ;;  %1567 = vrot.lane.b32.xlu0 %v2582_v10, %s2516_s20  ;;  %v2591_v15 = vld [vmem:[%s2567_s19 + $0x48] sm:$0xff]   ;;  %v2594_v16 = vld [vmem:[%s2567_s19 + $0x40] sm:$0xff]   ;;  %v805_v19 = vshll.u32 %v2582_v10, 16  ;;  %v802_v24 = vshrl.u32 %v2582_v10, 16  ;;  %vm1423_vm10 = vmpackc.low %vm1315_vm8, %vm1315_vm8 }
  0x13   : > { %v877_v20 = vshll.u32 %v2591_v15, 16  ;;  %v866_v21 = vshrl.u32 %v2594_v16, 16  ;;  %v869_v22 = vshll.u32 %v2594_v16, 16  ;;  %v874_v27 = vshrl.u32 %v2591_v15, 16  ;;  %v2618_v28 = vld [vmem:[%s2567_s19 + $0x10] sm:$0xff]   ;;  %v2652_v46 = vld [vmem:[%s2567_s19 + $0x58] sm:$0xff]   ;;  %vm1407_vm12 = vmpackc.low %vm1299_vm11, %vm1299_vm11 }
  0x14   : > { %v2596_v18 = vrot.slane %v810_v12, 7  ;;  %v885_v31 = vshll.u32 %v2609_v25, 16  ;;  %v2629_v32 = vrot.slane %v805_v19, 1  ;;  %v957_v33 = vrot.slane %v813_v14, 1  ;;  %v2658_v49 = vld [vmem:[%s2567_s19 + $0x18] sm:$0xff]   ;;  %v2671_v60 = vld [vmem:[%s2567_s19 + $0x60] sm:$0xff]   ;;  %vm1425_vm15 = vmpackc.low %vm1317_vm14, %vm1317_vm14 }
  0x15   : > { %v2622_v29 = vrot.slane %v869_v22, 1  ;;  %v981_v30 = vrot.slane %v877_v20, 1  ;;  %v882_v34 = vshrl.u32 %v2609_v25, 16  ;;  %v821_v35 = vshll.u32 %v2618_v28, 16  ;;  %v2679_v2 = vld [vmem:[%s2567_s19 + $0x20] sm:$0xff]   ;;  %vm1409_vm3 = vmpackc.low %vm1301_vm0, %vm1301_vm0 }
  0x16   : > { %1585 = vrot.lane.b32.xlu1 %v2591_v15, %s2516_s20  ;;  %v2612_v26 = vor.u32 %v813_v14, %v2596_v18  ;;  %1583 = vrot.lane.b32.xlu0 %v2594_v16, %s2516_s20  ;;  %v956_v39 = vor.u32 %v2629_v32, %v802_v24  ;;  %v818_v42 = vshrl.u32 %v2618_v28, 16  ;;  %v2309_v44 = vcombine.low %v2570_v4, %v1441_v40 }
  0x17   : > { %v980_v36 = vor.u32 %v2622_v29, %v866_v21  ;;  %v983_v45 = vor.u32 %v981_v30, %v874_v27  ;;  %vm1537_vm7 = vcmp.ne.s16.totalorder %v2317_v38, 0  ;;  %v984_v48 = vrot.slane %v885_v31, 1 }
  0x18   : > { %v958_v47 = vsel %vm951_vm2, %v956_v39, %v957_v33  ;;  %vm1529_vm9 = vcmp.ne.s16.totalorder %v2309_v44, 0  ;;  %v959_v52 = vor.u32 %v957_v33, %v810_v12  ;;  %v1459_v55 = vsel %vm1423_vm10, 65537, %v2515_v3  ;;  %v2703_v44 = vld [vmem:[%s2567_s19 + $0x68] sm:$0xff]  }
  0x19   : > { %v982_v43 = vsel %vm951_vm2, %v980_v36, %v981_v30  ;;  %v1547_v53 = vsel %vm1529_vm9, %v958_v47, 0  ;;  %v985_v54 = vsel %vm951_vm2, %v983_v45, %v984_v48  ;;  %v960_v56 = vrot.slane %v821_v35, 1 }
  0x1a   : > { %1587 = vrot.lane.b32.xlu1 %v2609_v25, %s2516_s20  ;;  %1571 = vrot.lane.b32.xlu0 %v2618_v28, %s2516_s20  ;;  %v1555_v50 = vsel %vm1537_vm7, %v982_v43, 0  ;;  %v2318_v57 = vcombine.low %v2570_v4, %v1459_v55  ;;  %v893_v59 = vshll.u32 %v2652_v46, 16  ;;  %v986_v62 = vor.u32 %v984_v48, %v882_v34  ;;  %v2485_v25 = vld [vmem:[%s3685_s1 + $0x8] sm:$0xff]  }
  0x1b   : > { %v961_v61 = vsel %vm951_vm2, %v959_v52, %v960_v56  ;;  %v829_v0 = vshll.u32 %v2658_v49, 16  ;;  %v1443_v5 = vsel %vm1407_vm12, 65537, %v2515_v3  ;;  %v962_v9 = vor.u32 %v960_v56, %v818_v42  ;;  %v2713_v52 = vld [vmem:[%s2567_s19 + $0x28] sm:$0xff]  }
  0x1c   : > { %vm1538_vm13 = vcmp.ne.s16.totalorder %v2318_v57, 0  ;;  %v987_v6 = vrot.slane %v893_v59, 1  ;;  %v2310_v8 = vcombine.low %v2570_v4, %v1443_v5  ;;  %v1461_v12 = vsel %vm1425_vm15, 65537, %v2515_v3 }
  0x1d   : > { %v1556_v7 = vsel %vm1538_vm13, %v985_v54, 0  ;;  %v963_v11 = vrot.slane %v829_v0, 1  ;;  %v2319_v14 = vcombine.low %v2570_v4, %v1461_v12  ;;  %v1445_v36 = vsel %vm1409_vm3, 65537, %v2515_v3 }
  0x1e   : > { %1635 = vrot.lane.b32.xlu1 %v1555_v50, %s2517_s21  ;;  %1619 = vrot.lane.b32.xlu0 %v1547_v53, %s2517_s21  ;;  %vm1530_vm1 = vcmp.ne.s16.totalorder %v2310_v8, 0  ;;  %v988_v13 = vsel %vm951_vm2, %v986_v62, %v987_v6  ;;  %v901_v37 = vshll.u32 %v2671_v60, 16  ;;  %v2311_v38 = vcombine.low %v2570_v4, %v1445_v36 }
  0x1f   : > { %v1548_v30 = vsel %vm1530_vm1, %v961_v61, 0  ;;  %v964_v33 = vsel %vm951_vm2, %v962_v9, %v963_v11  ;;  %vm1539_vm4 = vcmp.ne.s16.totalorder %v2319_v14, 0  ;;  %v837_v39 = vshll.u32 %v2679_v2, 16 }
  0x20   : > { %v540_v40 = vand.u32 15, %v2603_v23  ;;  %v1557_v41 = vsel %vm1539_vm4, %v988_v13, 0  ;;  %v890_v43 = vshrl.u32 %v2652_v46, 16  ;;  %vm1531_vm5 = vcmp.ne.s16.totalorder %v2311_v38, 0 }
  0x21   : > { %v428_v45 = vand.u32 15, %v334_v17  ;;  %v826_v47 = vshrl.u32 %v2658_v49, 16  ;;  %v1549_v48 = vsel %vm1531_vm5, %v964_v33, 0  ;;  %v898_v50 = vshrl.u32 %v2671_v60, 16  ;;  %v2745_v17 = vld [vmem:[%s2567_s19 + $0x70] sm:$0xff]  }
  0x22   : > { %1637 = vrot.lane.b32.xlu1 %v1556_v7, %s2517_s21  ;;  %1621 = vrot.lane.b32.xlu0 %v1548_v30, %s2517_s21  ;;  %vm1319_vm6 = vcmp.ne.s32.totalorder %v540_v40, 15  ;;  %v989_v51 = vor.u32 %v987_v6, %v890_v43  ;;  %v990_v23 = vrot.slane %v901_v37, 1  ;;  %v834_v53 = vshrl.u32 %v2679_v2, 16 }
  0x23   : > { %vm1427_vm7 = vmpackc.low %vm1319_vm6, %vm1319_vm6  ;;  %v966_v55 = vrot.slane %v837_v39, 1  ;;  %vm1303_vm8 = vcmp.ne.s32.totalorder %v428_v45, 15  ;;  %v352_v57 = vadd.s32 216, %v2560_v1  ;;  %v909_v58 = vshll.u32 %v2703_v44, 16 }
  0x24   : > { %v1463_v54 = vsel %vm1427_vm7, 65537, %v2515_v3  ;;  %vm1411_vm9 = vmpackc.low %vm1303_vm8, %vm1303_vm8  ;;  %v965_v61 = vor.u32 %v963_v11, %v826_v47  ;;  %v991_v5 = vsel %vm951_vm2, %v989_v51, %v990_v23  ;;  %v992_v8 = vor.u32 %v990_v23, %v898_v50 }
  0x25   : > { %v2320_v56 = vcombine.low %v2570_v4, %v1463_v54  ;;  %v1447_v62 = vsel %vm1411_vm9, 65537, %v2515_v3  ;;  %v554_v7 = vand.u32 15, %v352_v57  ;;  %v993_v11 = vrot.slane %v909_v58, 1 }
  0x26   : > { %1639 = vrot.lane.b32.xlu1 %v1557_v41, %s2517_s21  ;;  %1623 = vrot.lane.b32.xlu0 %v1549_v48, %s2517_s21  ;;  %v2312_v6 = vcombine.low %v2570_v4, %v1447_v62  ;;  %v442_v12 = vand.u32 15, %v336_v63  ;;  %v3691_v13 = vshll.u32 %v2713_v52, 16  ;;  %v968_v14 = vor.u32 %v966_v55, %v834_v53  ;;  %v2760_v41 = vld [vmem:[%s2567_s19 + $0x30] sm:$0xff]  }
  0x27   : > { %vm2735_vm10 = vcmp.ne.s16.totalorder %v2320_v56, 0  ;;  %vm1321_vm11 = vcmp.ne.s32.totalorder %v554_v7, 15  ;;  %v967_v30 = vsel %vm951_vm2, %v965_v61, %v966_v55  ;;  %v994_v45 = vsel %vm951_vm2, %v992_v8, %v993_v11 }
  0x28   : > { %vm2750_vm12 = vcmp.ne.s16.totalorder %v2312_v6, 0  ;;  %vm1429_vm13 = vmpackc.low %vm1321_vm11, %vm1321_vm11  ;;  %v969_v36 = vrot.slane %v3691_v13, 1  ;;  %vm1305_vm14 = vcmp.ne.s32.totalorder %v442_v12, 15  ;;  %v1558_v38 = vsel %vm2735_vm10, %v991_v5, 0 }
  0x29   : > { %v1465_v40 = vsel %vm1429_vm13, 65537, %v2515_v3  ;;  %vm1413_vm15 = vmpackc.low %vm1305_vm14, %vm1305_vm14  ;;  %v354_v23 = vadd.s32 232, %v2560_v1  ;;  %v1550_v54 = vsel %vm2750_vm12, %v967_v30, 0  ;;  %v3689_v57 = vshll.u32 %v2745_v17, 16 }
  0x2a   : > { %1589 = vrot.lane.b32.xlu1 %v2652_v46, %s2516_s20  ;;  %1573 = vrot.lane.b32.xlu0 %v2658_v49, %s2516_s20  ;;  %v2321_v48 = vcombine.low %v2570_v4, %v1465_v40  ;;  %v1449_v51 = vsel %vm1413_vm15, 65537, %v2515_v3  ;;  %v970_v55 = vsel %vm951_vm2, %v968_v14, %v969_v36  ;;  %v906_v63 = vshrl.u32 %v2703_v44, 16  ;;  %v2790_v14 = vld [vmem:[%s2567_s19 + $0x78] sm:$0xff]  }
  0x2b   : > { %v2313_v56 = vcombine.low %v2570_v4, %v1449_v51  ;;  %v568_v62 = vand.u32 15, %v354_v23  ;;  %v338_v5 = vadd.s32 104, %v2560_v1  ;;  %v3688_v8 = vshll.u32 %v2760_v41, 16  ;;  %v2803_v51 = vld [vmem:[%s2567_s19 + $0x38] sm:$0xff]  }
  0x2c   : > { %vm2774_vm0 = vcmp.ne.s16.totalorder %v2321_v48, 0  ;;  %v842_v9 = vshrl.u32 %v2713_v52, 16  ;;  %v914_v33 = vshrl.u32 %v2745_v17, 16  ;;  %v995_v40 = vor.u32 %v993_v11, %v906_v63 }
  0x2d   : > { %v1559_v6 = vsel %vm2774_vm0, %v994_v45, 0  ;;  %vm2782_vm1 = vcmp.ne.s16.totalorder %v2313_v56, 0  ;;  %vm1323_vm3 = vcmp.ne.s32.totalorder %v568_v62, 15  ;;  %v456_v12 = vand.u32 15, %v338_v5 }
  0x2e   : > { %1591 = vrot.lane.b32.xlu1 %v2671_v60, %s2516_s20  ;;  %1575 = vrot.lane.b32.xlu0 %v2679_v2, %s2516_s20  ;;  %v1551_v30 = vsel %vm2782_vm1, %v970_v55, 0  ;;  %vm1431_vm4 = vmpackc.low %vm1323_vm3, %vm1323_vm3  ;;  %v996_v45 = vrot.slane %v3689_v57, 1  ;;  %v971_v23 = vor.u32 %v969_v36, %v842_v9  ;;  %v340_v56 = vadd.s32 120, %v2560_v1 }
  0x2f   : > { %v1467_v48 = vsel %vm1431_vm4, 65537, %v2515_v3  ;;  %vm1307_vm5 = vcmp.ne.s32.totalorder %v456_v12, 15  ;;  %v3690_v62 = vshll.u32 %v2790_v14, 16  ;;  %v3692_v5 = vshrl.u32 %v2760_v41, 16 }
  0x30   : > { %vm1415_vm6 = vmpackc.low %vm1307_vm5, %vm1307_vm5  ;;  %v2322_v11 = vcombine.low %v2570_v4, %v1467_v48  ;;  %v997_v36 = vsel %vm951_vm2, %v995_v40, %v996_v45  ;;  %v861_v12 = vshll.u32 %v2803_v51, 16  ;;  %v998_v48 = vor.u32 %v996_v45, %v914_v33 }
  0x31   : > { %v1451_v61 = vsel %vm1415_vm6, 65537, %v2515_v3  ;;  %vm1021_vm15 = vcmask 1047552   ;;  %vm793_vm6 = vsmask.f32 256  ;;  %v836_v46 = vrot.slane %v834_v53, 7 }
  0x32   : > { %1641 = vrot.lane.b32.xlu1 %v1558_v38, %s2517_s21  ;;  %1625 = vrot.lane.b32.xlu0 %v1550_v54, %s2517_s21  ;;  %v356_v38 = vadd.s32 248, %v2560_v1  ;;  %v972_v54 = vrot.slane %v3688_v8, 1  ;;  %v2314_v7 = vcombine.low %v2570_v4, %v1451_v61  ;;  %vm2827_vm10 = vcmp.ne.s16.totalorder %v2322_v11, 0 }
  0x33   : > { %v326_v8 = vadd.s32 8, %v2560_v1  ;;  %v360_v11 = vadd.s32 280, %v2560_v1  ;;  %v839_v53 = vor.u32 %v837_v39, %v836_v46  ;;  %v916_v60 = vrot.slane %v914_v33, 7 }
  0x34   : > { %v582_v55 = vand.u32 15, %v356_v38  ;;  %v973_v38 = vsel %vm951_vm2, %v971_v23, %v972_v54  ;;  %v974_v45 = vor.u32 %v972_v54, %v3692_v5  ;;  %vm2843_vm12 = vcmp.ne.s16.totalorder %v2314_v7, 0 }
  0x35   : > { %v1560_v54 = vsel %vm2827_vm10, %v997_v36, 0  ;;  %v610_v13 = vand.u32 15, %v360_v11  ;;  %v1552_v36 = vsel %vm2843_vm12, %v973_v38, 0  ;;  %v804_v38 = vrot.slane %v802_v24, 7 }
  0x36   : > { %1643 = vrot.lane.b32.xlu1 %v1559_v6, %s2517_s21  ;;  %1627 = vrot.lane.b32.xlu0 %v1551_v30, %s2517_s21  ;;  %vm1325_vm7 = vcmp.ne.s32.totalorder %v582_v55, 15  ;;  %v470_v6 = vand.u32 15, %v340_v56  ;;  %v342_v30 = vadd.s32 136, %v2560_v1  ;;  %v2833_v56 = vrot.slane %v3690_v62, 1 }
  0x37   : > { %vm1433_vm8 = vmpackc.low %vm1325_vm7, %vm1325_vm7  ;;  %v372_v62 = vand.u32 15, %v326_v8  ;;  %vm2865_vm3 = vcmp.ne.s32.totalorder %v610_v13, 15  ;;  %v2907_v40 = vor.u32 %v805_v19, %v804_v38  ;;  %v868_v19 = vrot.slane %v866_v21, 7 }
  0x38   : > { %v1469_v55 = vsel %vm1433_vm8, 65537, %v2515_v3  ;;  %vm1309_vm9 = vcmp.ne.s32.totalorder %v470_v6, 15  ;;  %v484_v23 = vand.u32 15, %v342_v30  ;;  %v1000_v7 = vsel %vm951_vm2, %v998_v48, %v2833_v56  ;;  %vm1437_vm7 = vmpackc.low %vm2865_vm3, %vm2865_vm3 }
  0x39   : > { %v2323_v61 = vcombine.low %v2570_v4, %v1469_v55  ;;  %vm1417_vm11 = vmpackc.low %vm1309_vm9, %vm1309_vm9  ;;  %v975_v55 = vrot.slane %v861_v12, 1  ;;  %vm1295_vm1 = vcmp.ne.s32.totalorder %v372_v62, 15  ;;  %v952_v62 = vrot.slane %v2515_v3, 1 }
  0x3a   : > { %1593 = vrot.lane.b32.xlu1 %v2703_v44, %s2516_s20  ;;  %1577 = vrot.lane.b32.xlu0 %v2713_v52, %s2516_s20  ;;  %v1453_v6 = vsel %vm1417_vm11, 65537, %v2515_v3  ;;  %vm1311_vm13 = vcmp.ne.s32.totalorder %v484_v23, 15  ;;  %v358_v23 = vadd.s32 264, %v2560_v1  ;;  %vm1403_vm5 = vmpackc.low %vm1295_vm1, %vm1295_vm1  ;;  %v871_v15 = vor.u32 %v869_v22, %v868_v19 }
  0x3b   : > { %v2315_v30 = vcombine.low %v2570_v4, %v1453_v6  ;;  %vm1419_vm14 = vmpackc.low %vm1311_vm13, %vm1311_vm13  ;;  %vm2856_vm0 = vcmp.ne.s16.totalorder %v2323_v61, 0  ;;  %v858_v6 = vshrl.u32 %v2803_v51, 16  ;;  %v976_v48 = vsel %vm951_vm2, %v974_v45, %v975_v55 }
  0x3c   : > { %v1455_v8 = vsel %vm1419_vm14, 65537, %v2515_v3  ;;  %v596_v11 = vand.u32 15, %v358_v23  ;;  %v1561_v57 = vsel %vm2856_vm0, %v1000_v7, 0  ;;  %v1439_v13 = vsel %vm1403_vm5, 65537, %v2515_v3  ;;  %vm2888_vm8 = vmand %vm1021_vm15, %vm951_vm2 }
  0x3d   : > { %vm2871_vm4 = vcmp.ne.s16.totalorder %v2315_v30, 0  ;;  %v977_v45 = vor.u32 %v975_v55, %v858_v6  ;;  %v2316_v30 = vcombine.low %v2570_v4, %v1455_v8  ;;  %v2308_v7 = vcombine.low %v2570_v4, %v1439_v13 }
  0x3e   : > { %1595 = vrot.lane.b32.xlu1 %v2745_v17, %s2516_s20  ;;  %1579 = vrot.lane.b32.xlu0 %v2760_v41, %s2516_s20  ;;  %v1553_v23 = vsel %vm2871_vm4, %v976_v48, 0  ;;  %vm1327_vm9 = vcmp.ne.s32.totalorder %v596_v11, 15  ;;  %v2899_v55 = vsel %vm793_vm6, %v804_v38, %v2612_v26  ;;  %v922_v8 = vshrl.u32 %v2790_v14, 16 }
  0x3f   : > { %vm1435_vm10 = vmpackc.low %vm1327_vm9, %vm1327_vm9  ;;  %v955_v48 = vsel %vm951_vm2, %v952_v62, %v2629_v32  ;;  %v1023_v61 = vsel %vm2888_vm8, %v952_v62, 0  ;;  %vm2917_vm11 = vcmp.ne.s16.totalorder %v2316_v30, 0  ;;  %vm2921_vm12 = vcmp.ne.s16.totalorder %v2308_v7, 0 }
  0x40   : > { %v1471_v26 = vsel %vm1435_vm10, 65537, %v2515_v3  ;;  %v884_v32 = vrot.slane %v882_v34, 7  ;;  %v820_v38 = vrot.slane %v818_v42, 7  ;;  %v1546_v34 = vsel %vm2921_vm12, %v955_v48, 0 }
  0x41   : > { %v860_v30 = vrot.slane %v858_v6, 7  ;;  %v892_v7 = vrot.slane %v890_v43, 7  ;;  %v828_v6 = vrot.slane %v826_v47, 7  ;;  %v3720_v2 = vshll.u32 %v2713_v52, 16 }
  0x42   : > { %1645 = vrot.lane.b32.xlu1 %v1560_v54, %s2517_s21  ;;  %1629 = vrot.lane.b32.xlu0 %v1552_v36, %s2517_s21  ;;  %v1473_v54 = vsel %vm1437_vm7, 65537, %v2515_v3  ;;  %v876_v36 = vrot.slane %v874_v27, 7  ;;  %v979_v27 = vsel %vm951_vm2, %v977_v45, %v2622_v29  ;;  %v1001_v29 = vor.u32 %v2833_v56, %v922_v8 }
  0x43   : > { %v2325_v24 = vcombine.low %v2570_v4, %v1473_v54  ;;  %v1554_v21 = vsel %vm2917_vm11, %v979_v27, 0  ;;  %v2957_v54 = vsel %vm793_vm6, %v860_v30, %v871_v15  ;;  %v887_v16 = vor.u32 %v885_v31, %v884_v32 }
  0x44   : > { %v879_v13 = vor.u32 %v877_v20, %v876_v36  ;;  %v1002_v42 = vsel %vm951_vm2, %v1001_v29, %v952_v62  ;;  %v823_v22 = vor.u32 %v821_v35, %v820_v38  ;;  %v2484_v62 = vld [vmem:[%s3685_s1] sm:$0xff]   ;;  %v900_v31 = vrot.slane %v898_v50, 7 }
  0x45   : > { %vm1545_vm13 = vcmp.ne.s16.totalorder %v2325_v24, 0  ;;  %v2975_v43 = vsel %vm793_vm6, %v876_v36, %v887_v16  ;;  %2375 = vmatprep.subr.bf16.mxu0 %v2484_v62  ;;  %v895_v35 = vor.u32 %v893_v59, %v892_v7  ;;  %v831_v47 = vor.u32 %v829_v0, %v828_v6  ;;  %2419 = vmatprep.subr.bf16.mxu1 %v2484_v62 }
  0x46   : > { %1647 = vrot.lane.b32.xlu1 %v1561_v57, %s2517_s21  ;;  %1631 = vrot.lane.b32.xlu0 %v1553_v23, %s2517_s21  ;;  %v2324_v57 = vcombine.low %v2570_v4, %v1471_v26  ;;  %v1563_v45 = vsel %vm1545_vm13, %v1023_v61, 0  ;;  %v2946_v56 = vsel %vm793_vm6, %v868_v19, %v879_v13  ;;  %v2983_v28 = vsel %vm793_vm6, %v2596_v18, %v823_v22  ;;  %v2486_v18 = vld [vmem:[%s3685_s1 + $0x10] sm:$0xff]  }
  0x47   : > { %v2463_v20 = vpack.i.bf16 %v1546_v34, %v1563_v45  ;;  %2376 = vmatpush3.bf16.msra.mxu0 %v2484_v62  ;;  %2425 = vmatpush3.bf16.msra.mxu1 %v2484_v62  ;;  %v2996_v24 = vsel %vm793_vm6, %v884_v32, %v895_v35  ;;  %v3001_v49 = vsel %vm793_vm6, %v820_v38, %v831_v47  ;;  %v908_v59 = vrot.slane %v906_v63, 7 }
  0x48   : > { %vm2952_vm14 = vcmp.ne.s16.totalorder %v2324_v57, 0  ;;  %2377 = vmatprep.subr.bf16.mxu0 %v2485_v25  ;;  %2420 = vmatprep.subr.bf16.mxu1 %v2485_v25  ;;  %v903_v0 = vor.u32 %v901_v37, %v900_v31  ;;  %v844_v50 = vrot.slane %v842_v9, 7  ;;  %v3019_v37 = vsel %vm793_vm6, %v828_v6, %v839_v53 }
  0x49   : > { %v1562_v23 = vsel %vm2952_vm14, %v1002_v42, 0  ;;  %v911_v48 = vor.u32 %v909_v58, %v908_v59  ;;  %v3719_v63 = vshrl.u32 %v2760_v41, 16  ;;  %v924_v58 = vrot.slane %v922_v8, 7 }
  0x4a   : > { %1597 = vrot.lane.b32.xlu1 %v2790_v14, %s2516_s20  ;;  %1581 = vrot.lane.b32.xlu0 %v2803_v51, %s2516_s20  ;;  %v3010_v36 = vsel %vm793_vm6, %v892_v7, %v903_v0  ;;  %v847_v39 = vor.u32 %v3720_v2, %v844_v50  ;;  %v3721_v33 = vshll.u32 %v2745_v17, 16  ;;  %v3722_v27 = vshll.u32 %v2760_v41, 16 }
  0x4b   : > { %2378 = vmatpush3.bf16.msra.mxu0 %v2485_v25  ;;  %2426 = vmatpush3.bf16.msra.mxu1 %v2485_v25  ;;  %v852_v9 = vrot.slane %v3719_v63, 7  ;;  %v3024_v61 = vsel %vm793_vm6, %v900_v31, %v911_v48  ;;  %v3723_v52 = vshll.u32 %v2790_v14, 16  ;;  %v863_v8 = vor.u32 %v861_v12, %v860_v30  ;;  %v2487_v25 = vld [vmem:[%s3685_s1 + $0x18] sm:$0xff]  }
  0x4c   : > { %2379 = vmatprep.subr.bf16.mxu0 %v2486_v18  ;;  %2421 = vmatprep.subr.bf16.mxu1 %v2486_v18  ;;  %v3029_v44 = vsel %vm793_vm6, %v836_v46, %v847_v39  ;;  %v919_v26 = vor.u32 %v3721_v33, %v916_v60  ;;  %v3051_v17 = vrot.slane %v2515_v3, 7  ;;  %vm948_vm2 = vcmask 1040384  }
  0x4d   : > { %v855_v11 = vor.u32 %v3722_v27, %v852_v9  ;;  %v927_v32 = vor.u32 %v3723_v52, %v924_v58  ;;  %v3054_v41 = vsel %vm793_vm6, %v852_v9, %v863_v8  ;;  %vm3061_vm15 = vmand %vm948_vm2, %vm793_vm6  ;;  %v343_v12 = vadd.s32 144, %v2560_v1 }
  0x4e   : > { %1633 = vrot.lane.b32.xlu1 %v1554_v21, %s2517_s21  ;;  %1565 = vrot.lane.b32.xlu0 %v2515_v3, %s2516_s20  ;;  %v3038_v10 = vsel %vm793_vm6, %v908_v59, %v919_v26  ;;  %v3058_v57 = vsel %vm793_vm6, %v924_v58, %v3051_v17  ;;  %v950_v51 = vsel %vm3061_vm15, 0, %v3051_v17  ;;  %v327_v13 = vadd.s32 16, %v2560_v1 }
  0x4f   : > { %2380 = vmatpush3.bf16.msra.mxu0 %v2486_v18  ;;  %2427 = vmatpush3.bf16.msra.mxu1 %v2486_v18  ;;  %v3041_v19 = vsel %vm793_vm6, %v844_v50, %v855_v11  ;;  %v3046_v29 = vsel %vm793_vm6, %v916_v60, %v927_v32  ;;  %v491_v38 = vand.u32 15, %v343_v12  ;;  %v345_v34 = vadd.s32 160, %v2560_v1  ;;  %v2489_v12 = vld [vmem:[%s3685_s1 + $0x28] sm:$0x1f]  }
  0x50   : > { %v379_v21 = vand.u32 15, %v327_v13  ;;  %v329_v45 = vadd.s32 32, %v2560_v1  ;;  %v331_v22 = vadd.s32 48, %v2560_v1  ;;  %2381 = vmatprep.subr.bf16.mxu0 %v2487_v25  ;;  %2422 = vmatprep.subr.bf16.mxu1 %v2487_v25  ;;  %v808_v59 = vsel %vm793_vm6, %v3051_v17, %v2907_v40  ;;  %v2488_v40 = vld [vmem:[%s3685_s1 + $0x20] sm:$0xff]  }
  0x51   : > { %vm1042_vm0 = vcmp.ne.s32.totalorder %v491_v38, 0  ;;  %v505_v30 = vand.u32 15, %v345_v34  ;;  %v349_v63 = vadd.s32 192, %v2560_v1  ;;  %v333_v33 = vadd.s32 64, %v2560_v1 }
  0x52   : > { %2464 = vrot.lane.b32.xlu1 %v2463_v20, %s2517_s21  ;;  %1649 = vrot.lane.b32.xlu0 %v1562_v23, %s2517_s21  ;;  %vm1026_vm1 = vcmp.ne.s32.totalorder %v379_v21, 0  ;;  %vm1150_vm3 = vmpackc.low %vm1042_vm0, %vm1042_vm0  ;;  %v393_v15 = vand.u32 15, %v329_v45  ;;  %v347_v20 = vadd.s32 176, %v2560_v1  ;;  %v407_v46 = vand.u32 15, %v331_v22 }
  0x53   : > { %vm1134_vm4 = vmpackc.low %vm1026_vm1, %vm1026_vm1  ;;  %vm1044_vm5 = vcmp.ne.s32.totalorder %v505_v30, 0  ;;  %v1186_v42 = vsel %vm1150_vm3, 65537, %v2515_v3  ;;  %2382 = vmatpush3.bf16.msra.mxu0 %v2487_v25  ;;  %2428 = vmatpush3.bf16.msra.mxu1 %v2487_v25  ;;  %vm1653_vm14 = vcmask 80896   ;;  %vm1707_vm2 = vcmask 162816  }
  0x54   : > { %v1170_v7 = vsel %vm1134_vm4, 65537, %v2515_v3  ;;  %vm3077_vm7 = vcmp.ne.s32.totalorder %v393_v15, 0  ;;  %vm1152_vm8 = vmpackc.low %vm1044_vm5, %vm1044_vm5  ;;  %v2299_v62 = vcombine.low %v1186_v42, %v2570_v4  ;;  %v519_v23 = vand.u32 15, %v347_v20  ;;  %2383 = vmatprep.subr.bf16.mxu0 %v2488_v40  ;;  %2423 = vmatprep.subr.bf16.mxu1 %v2488_v40 }
  0x55   : > { %v2291_v31 = vcombine.low %v1170_v7, %v2570_v4  ;;  %vm1136_vm9 = vmpackc.low %vm3077_vm7, %vm3077_vm7  ;;  %v1188_v35 = vsel %vm1152_vm8, 65537, %v2515_v3  ;;  %vm3120_vm13 = vcmp.ne.s32.totalorder %v407_v46, 0  ;;  %v533_v11 = vand.u32 15, %v349_v63 }
  0x56   : > { %vm3094_vm10 = vcmp.ne.s16.totalorder %v2299_v62, 0  ;;  %vm3098_vm11 = vcmp.ne.s32.totalorder %v519_v23, 0  ;;  %v1172_v53 = vsel %vm1136_vm9, 65537, %v2515_v3  ;;  %v2300_v60 = vcombine.low %v1188_v35, %v2570_v4  ;;  %vm1138_vm1 = vmpackc.low %vm3120_vm13, %vm3120_vm13 }
  0x57   : > { %vm3103_vm12 = vcmp.ne.s16.totalorder %v2291_v31, 0  ;;  %v1285_v2 = vsel %vm3094_vm10, %v2957_v54, 0  ;;  %vm1154_vm6 = vmpackc.low %vm3098_vm11, %vm3098_vm11  ;;  %v2292_v26 = vcombine.low %v1172_v53, %v2570_v4  ;;  %2384 = vmatpush3.bf16.msra.mxu0 %v2488_v40  ;;  %2429 = vmatpush3.bf16.msra.mxu1 %v2488_v40  ;;  %vm1978_vm3 = vcmask 1044480  }
  0x58   : > { %v1277_v27 = vsel %vm3103_vm12, %v808_v59, 0  ;;  %vm3130_vm0 = vcmp.ne.s16.totalorder %v2300_v60, 0  ;;  %v1190_v32 = vsel %vm1154_vm6, 65537, %v2515_v3  ;;  %v421_v34 = vand.u32 15, %v333_v33  ;;  %2431 = vmatprep.subr.msk.bf16.mxu0 %vm1978_vm3, %v2489_v12  ;;  %2432 = vmatprep.subr.msk.bf16.mxu1 %vm1978_vm3, %v2489_v12 }
  0x59   : > { %vm3146_vm4 = vcmp.ne.s16.totalorder %v2292_v26, 0  ;;  %v1286_v30 = vsel %vm3130_vm0, %v2946_v56, 0  ;;  %v1980_v20 = vsel %vm1978_vm3, %v2489_v12, 0  ;;  %v2301_v42 = vcombine.low %v1190_v32, %v2570_v4 }
  0x5a   : > { %v1174_v56 = vsel %vm1138_vm1, 65537, %v2515_v3  ;;  %vm3169_vm5 = vcmp.ne.s32.totalorder %v533_v11, 0  ;;  %v351_v6 = vadd.s32 208, %v2560_v1  ;;  %vm3179_vm7 = vcmp.ne.s32.totalorder %v421_v34, 0 }
  0x5b   : > { %2386 = vmatpush3.bf16.msra.mxu0 %v1980_v20  ;;  %2430 = vmatpush3.bf16.msra.mxu1 %v1980_v20  ;;  %v335_v25 = vadd.s32 80, %v2560_v1  ;;  %v2293_v31 = vcombine.low %v1174_v56, %v2570_v4  ;;  %vm1156_vm8 = vmpackc.low %vm3169_vm5, %vm3169_vm5  ;;  %vm3191_vm9 = vcmp.ne.s16.totalorder %v2301_v42, 0  ;;  %v355_v42 = vadd.s32 240, %v2560_v1 }
  0x5c   : > { %vm1140_vm10 = vmpackc.low %vm3179_vm7, %vm3179_vm7  ;;  %v1192_v0 = vsel %vm1156_vm8, 65537, %v2515_v3  ;;  %v1287_v53 = vsel %vm3191_vm9, %v2975_v43, 0  ;;  %v353_v43 = vadd.s32 224, %v2560_v1  ;;  %v359_v48 = vadd.s32 272, %v2560_v1 }
  0x5d   : > { %v435_v50 = vand.u32 15, %v335_v25  ;;  %vm3209_vm11 = vcmp.ne.s16.totalorder %v2293_v31, 0  ;;  %v1176_v60 = vsel %vm1140_vm10, 65537, %v2515_v3  ;;  %v575_v25 = vand.u32 15, %v355_v42 }
  0x5e   : > { %v1279_v33 = vsel %vm3209_vm11, %v2983_v28, 0  ;;  %v2294_v11 = vcombine.low %v1176_v60, %v2570_v4  ;;  %v561_v28 = vand.u32 15, %v353_v43  ;;  %v365_v26 = vand.u32 15, %v2560_v1 }
  0x5f   : > { %vm3229_vm6 = vcmp.ne.s32.totalorder %v435_v50, 0  ;;  %vm3319_vm11 = vcmp.ne.s32.totalorder %v575_v25, 0  ;;  %vm1825_vm15 = vcmask 244736  }
  0x60   : > { %vm1142_vm1 = vmpackc.low %vm3229_vm6, %vm3229_vm6  ;;  %vm3258_vm3 = vcmp.ne.s16.totalorder %v2294_v11, 0 }
  0x61   : > { %vm1162_vm6 = vmpackc.low %vm3319_vm11, %vm3319_vm11 }
  0x84   : > { %v3074_v5 = vpop.permute.xlu1 %1569  ;;  %v1568_v16 = vpop.permute.xlu0 %1567 }
  0x85   : > { %v1659_v13 = vsel %vm1653_vm14, %v1277_v27, %v1568_v16  ;;  %v1278_v16 = vsel %vm3146_vm4, %v2899_v55, 0  ;;  %v337_v27 = vadd.s32 96, %v2560_v1  ;;  %vm3270_vm4 = vcmp.ne.s32.totalorder %v561_v28, 0 }
  0x86   : > { %vm1160_vm7 = vmpackc.low %vm3270_vm4, %vm3270_vm4 }
  0x88   : > { %v1586_v47 = vpop.permute.xlu1 %1585  ;;  %v1584_v18 = vpop.permute.xlu0 %1583 }
  0x89   : > { %v1683_v52 = vsel %vm1653_vm14, %v1285_v2, %v1584_v18  ;;  %v1686_v22 = vsel %vm1653_vm14, %v1286_v30, %v1586_v47  ;;  %v547_v47 = vand.u32 15, %v351_v6  ;;  %v1662_v18 = vsel %vm1653_vm14, %v1278_v16, %v3074_v5 }
  0x8a   : > { %v2302_v2 = vcombine.low %v1192_v0, %v2570_v4  ;;  %v1178_v30 = vsel %vm1142_vm1, 65537, %v2515_v3  ;;  %v1280_v6 = vsel %vm3258_vm3, %v3001_v49, 0  ;;  %v339_v16 = vadd.s32 112, %v2560_v1 }
  0x8b   : > { %vm3218_vm12 = vcmp.ne.s32.totalorder %v547_v47, 0  ;;  %vm3360_vm1 = vcmp.ne.s32.totalorder %v365_v26, 0 }
  0x8c   : > { %v3109_v9 = vpop.permute.xlu1 %1587  ;;  %v3124_v58 = vpop.permute.xlu0 %1571  ;;  %vm1158_vm13 = vmpackc.low %vm3218_vm12, %vm3218_vm12  ;;  %vm3247_vm0 = vcmp.ne.s16.totalorder %v2302_v2, 0  ;;  %v463_v0 = vand.u32 15, %v339_v16  ;;  %v357_v2 = vadd.s32 256, %v2560_v1 }
  0x8d   : > { %v1689_v39 = vsel %vm1653_vm14, %v1287_v53, %v3109_v9  ;;  %v1665_v9 = vsel %vm1653_vm14, %v1279_v33, %v3124_v58  ;;  %v1288_v45 = vsel %vm3247_vm0, %v2996_v24, 0  ;;  %v341_v33 = vadd.s32 128, %v2560_v1 }
  0x8e   : > { %vm3330_vm12 = vcmp.ne.s32.totalorder %v463_v0, 0 }
  0x8f   : > { %vm1146_vm0 = vmpackc.low %vm3330_vm12, %vm3330_vm12  ;;  %v477_v34 = vand.u32 15, %v341_v33 }
  0x90   : > { %v1636_v8 = vpop.permute.xlu1 %1635  ;;  %v1620_v38 = vpop.permute.xlu0 %1619 }
  0x91   : > { %v3144_v21 = vsel %vm1707_vm2, %v1683_v52, %v1636_v8  ;;  %v3156_v15 = vsel %vm1707_vm2, %v1659_v13, %v1620_v38  ;;  %v1194_v13 = vsel %vm1158_vm13, 65537, %v2515_v3  ;;  %v449_v38 = vand.u32 15, %v337_v27 }
  0x92   : > { %1776 = vrot.lane.b32.xlu1 %v3144_v21, %s2518_s7  ;;  %1760 = vrot.lane.b32.xlu0 %v3156_v15, %s2518_s7  ;;  %v2303_v56 = vcombine.low %v1194_v13, %v2570_v4 }
  0x93   : > { %vm3279_vm5 = vcmp.ne.s32.totalorder %v449_v38, 0  ;;  %v1198_v38 = vsel %vm1162_vm6, 65537, %v2515_v3 }
  0x94   : > { %v1638_v62 = vpop.permute.xlu1 %1637  ;;  %v1622_v46 = vpop.permute.xlu0 %1621  ;;  %vm3295_vm8 = vcmp.ne.s16.totalorder %v2303_v56, 0  ;;  %vm1144_vm9 = vmpackc.low %vm3279_vm5, %vm3279_vm5  ;;  %v1182_v56 = vsel %vm1146_vm0, 65537, %v2515_v3 }
  0x95   : > { %v3186_v35 = vsel %vm1707_vm2, %v1686_v22, %v1638_v62  ;;  %v3203_v59 = vsel %vm1707_vm2, %v1662_v18, %v1622_v46  ;;  %v2295_v62 = vcombine.low %v1178_v30, %v2570_v4  ;;  %v1196_v46 = vsel %vm1160_vm7, 65537, %v2515_v3  ;;  %vm1132_vm7 = vmpackc.low %vm3360_vm1, %vm3360_vm1 }
  0x96   : > { %1778 = vrot.lane.b32.xlu1 %v3186_v35, %s2518_s7  ;;  %1762 = vrot.lane.b32.xlu0 %v3203_v59, %s2518_s7  ;;  %v1180_v60 = vsel %vm1144_vm9, 65537, %v2515_v3 }
  0x97   : > { %vm3308_vm10 = vcmp.ne.s16.totalorder %v2295_v62, 0  ;;  %v2296_v11 = vcombine.low %v1180_v60, %v2570_v4  ;;  %v2297_v62 = vcombine.low %v1182_v56, %v2570_v4 }
  0x98   : > { %v1640_v5 = vpop.permute.xlu1 %1639  ;;  %v1624_v40 = vpop.permute.xlu0 %1623 }
  0x99   : > { %v3238_v52 = vsel %vm1707_vm2, %v1689_v39, %v1640_v5  ;;  %v3255_v12 = vsel %vm1707_vm2, %v1665_v9, %v1624_v40  ;;  %v1289_v5 = vsel %vm3295_vm8, %v3010_v36, 0  ;;  %v2304_v40 = vcombine.low %v1196_v46, %v2570_v4 }
  0x9a   : > { %1809 = vrot.lane.b32.xlu1 %v3186_v35, %s2519_s8  ;;  %1793 = vrot.lane.b32.xlu0 %v3203_v59, %s2519_s8  ;;  %v1281_v39 = vsel %vm3308_vm10, %v3019_v37, 0  ;;  %v603_v37 = vand.u32 15, %v359_v48  ;;  %vm3364_vm3 = vcmp.ne.s16.totalorder %v2296_v11, 0  ;;  %vm3391_vm8 = vcmp.ne.s32.totalorder %v477_v34, 0 }
  0x9b   : > { %vm3347_vm13 = vcmp.ne.s16.totalorder %v2304_v40, 0  ;;  %vm1148_vm12 = vmpackc.low %vm3391_vm8, %vm3391_vm8  ;;  %vm3428_vm6 = vcmp.ne.s16.totalorder %v2297_v62, 0 }
  0x9c   : > { %v1590_v54 = vpop.permute.xlu1 %1589  ;;  %v1574_v8 = vpop.permute.xlu0 %1573  ;;  %vm3370_vm4 = vcmp.ne.s32.totalorder %v603_v37, 0  ;;  %v1290_v42 = vsel %vm3347_vm13, %v3024_v61, 0  ;;  %v1282_v61 = vsel %vm3364_vm3, %v3029_v44, 0  ;;  %v1184_v60 = vsel %vm1148_vm12, 65537, %v2515_v3 }
  0x9d   : > { %v1692_v22 = vsel %vm1653_vm14, %v1288_v45, %v1590_v54  ;;  %v1668_v31 = vsel %vm1653_vm14, %v1280_v6, %v1574_v8  ;;  %v589_v8 = vand.u32 15, %v357_v2  ;;  %vm1166_vm9 = vmpackc.low %vm3370_vm4, %vm3370_vm4  ;;  %v1283_v2 = vsel %vm3428_vm6, %v3041_v19, 0 }
  0x9e   : > { %1811 = vrot.lane.b32.xlu1 %v3238_v52, %s2519_s8  ;;  %1795 = vrot.lane.b32.xlu0 %v3255_v12, %s2519_s8  ;;  %v1202_v46 = vsel %vm1166_vm9, 65537, %v2515_v3  ;;  %v2298_v36 = vcombine.low %v1184_v60, %v2570_v4  ;;  %vm2143_vm4 = vcmask 31744  }
  0x9f   : > { %vm3381_vm5 = vcmp.ne.s32.totalorder %v589_v8, 0 }
  0xa0   : > { %v1592_v58 = vpop.permute.xlu1 %1591  ;;  %v1576_v7 = vpop.permute.xlu0 %1575  ;;  %vm1164_vm10 = vmpackc.low %vm3381_vm5, %vm3381_vm5  ;;  %vm3468_vm3 = vcmp.ne.s16.totalorder %v2298_v36, 0 }
  0xa1   : > { %v1695_v27 = vsel %vm1653_vm14, %v1289_v5, %v1592_v58  ;;  %v1671_v9 = vsel %vm1653_vm14, %v1281_v39, %v1576_v7  ;;  %v2305_v7 = vcombine.low %v1198_v38, %v2570_v4  ;;  %v1200_v48 = vsel %vm1164_vm10, 65537, %v2515_v3 }
  0xa2   : > { %1780 = vrot.lane.b32.xlu1 %v3238_v52, %s2518_s7  ;;  %1764 = vrot.lane.b32.xlu0 %v3255_v12, %s2518_s7  ;;  %v1284_v38 = vsel %vm3468_vm3, %v3054_v41, 0 }
  0xa3   : > { %vm3409_vm11 = vcmp.ne.s16.totalorder %v2305_v7, 0 }
  0xa4   : > { %v1642_v23 = vpop.permute.xlu1 %1641  ;;  %v1626_v47 = vpop.permute.xlu0 %1625  ;;  %v1291_v5 = vsel %vm3409_vm11, %v3038_v10, 0  ;;  %v2306_v10 = vcombine.low %v1200_v48, %v2570_v4 }
  0xa5   : > { %v3292_v49 = vsel %vm1707_vm2, %v1692_v22, %v1642_v23  ;;  %v3305_v18 = vsel %vm1707_vm2, %v1668_v31, %v1626_v47  ;;  %v1168_v47 = vsel %vm1132_vm7, 65537, %v2515_v3 }
  0xa6   : > { %1782 = vrot.lane.b32.xlu1 %v3292_v49, %s2518_s7  ;;  %1766 = vrot.lane.b32.xlu0 %v3305_v18, %s2518_s7  ;;  %v2290_v63 = vcombine.low %v1168_v47, %v2570_v4  ;;  %vm3464_vm1 = vcmp.ne.s16.totalorder %v2306_v10, 0 }
  0xa7   : > { %v1292_v8 = vsel %vm3464_vm1, %v3046_v29, 0 }
  0xa8   : > { %v1644_v53 = vpop.permute.xlu1 %1643  ;;  %v1628_v43 = vpop.permute.xlu0 %1627  ;;  %vm1258_vm13 = vcmp.ne.s16.totalorder %v2290_v63, 0 }
  0xa9   : > { %v3344_v28 = vsel %vm1707_vm2, %v1695_v27, %v1644_v53  ;;  %v3357_v13 = vsel %vm1707_vm2, %v1671_v9, %v1628_v43  ;;  %v2307_v43 = vcombine.low %v1202_v46, %v2570_v4  ;;  %v1276_v9 = vsel %vm1258_vm13, %v950_v51, 0 }
  0xaa   : > { %1813 = vrot.lane.b32.xlu1 %v3292_v49, %s2519_s8  ;;  %1797 = vrot.lane.b32.xlu0 %v3305_v18, %s2519_s8 }
  0xab   : > { %vm3454_vm0 = vcmp.ne.s16.totalorder %v2307_v43, 0 }
  0xac   : > { %v1594_v54 = vpop.permute.xlu1 %1593  ;;  %v1578_v32 = vpop.permute.xlu0 %1577  ;;  %v1293_v1 = vsel %vm3454_vm0, %v3058_v57, 0 }
  0xad   : > { %v1698_v22 = vsel %vm1653_vm14, %v1290_v42, %v1594_v54  ;;  %v1674_v44 = vsel %vm1653_vm14, %v1282_v61, %v1578_v32 }
  0xae   : > { %1815 = vrot.lane.b32.xlu1 %v3344_v28, %s2519_s8  ;;  %1799 = vrot.lane.b32.xlu0 %v3357_v13, %s2519_s8 }
  0xb0   : > { %v1596_v30 = vpop.permute.xlu1 %1595  ;;  %v1580_v6 = vpop.permute.xlu0 %1579 }
  0xb1   : > { %v1701_v39 = vsel %vm1653_vm14, %v1291_v5, %v1596_v30  ;;  %v1677_v19 = vsel %vm1653_vm14, %v1283_v2, %v1580_v6 }
  0xb2   : > { %1784 = vrot.lane.b32.xlu1 %v3344_v28, %s2518_s7  ;;  %1768 = vrot.lane.b32.xlu0 %v3357_v13, %s2518_s7 }
  0xb4   : > { %v1646_v23 = vpop.permute.xlu1 %1645  ;;  %v1630_v55 = vpop.permute.xlu0 %1629 }
  0xb5   : > { %v3403_v25 = vsel %vm1707_vm2, %v1698_v22, %v1646_v23  ;;  %v3426_v0 = vsel %vm1707_vm2, %v1674_v44, %v1630_v55 }
  0xb6   : > { %1786 = vrot.lane.b32.xlu1 %v3403_v25, %s2518_s7  ;;  %1770 = vrot.lane.b32.xlu0 %v3426_v0, %s2518_s7 }
  0xb8   : > { %v1648_v53 = vpop.permute.xlu1 %1647  ;;  %v1632_v40 = vpop.permute.xlu0 %1631 }
  0xb9   : > { %v3452_v33 = vsel %vm1707_vm2, %v1701_v39, %v1648_v53  ;;  %v3462_v54 = vsel %vm1707_vm2, %v1677_v19, %v1632_v40 }
  0xba   : > { %1817 = vrot.lane.b32.xlu1 %v3403_v25, %s2519_s8  ;;  %1801 = vrot.lane.b32.xlu0 %v3426_v0, %s2519_s8 }
  0xbc   : > { %v1598_v3 = vpop.permute.xlu1 %1597  ;;  %v1582_v27 = vpop.permute.xlu0 %1581 }
  0xbd   : > { %v1704_v58 = vsel %vm1653_vm14, %v1292_v8, %v1598_v3  ;;  %v1680_v45 = vsel %vm1653_vm14, %v1284_v38, %v1582_v27 }
  0xbe   : > { %1819 = vrot.lane.b32.xlu1 %v3452_v33, %s2519_s8  ;;  %1803 = vrot.lane.b32.xlu0 %v3462_v54, %s2519_s8 }
  0xc0   : > { %v1634_v37 = vpop.permute.xlu1 %1633  ;;  %v1566_v32 = vpop.permute.xlu0 %1565 }
  0xc1   : > { %v1656_v14 = vsel %vm1653_vm14, %v1276_v9, %v1566_v32  ;;  %v1706_v17 = vsel %vm1653_vm14, %v1293_v1, %v1566_v32  ;;  %v1725_v20 = vsel %vm1707_vm2, %v1680_v45, %v1634_v37  ;;  %vm1858_vm14 = vcmask 490496  }
  0xc2   : > { %1788 = vrot.lane.b32.xlu1 %v3452_v33, %s2518_s7  ;;  %1772 = vrot.lane.b32.xlu0 %v3462_v54, %s2518_s7 }
  0xc4   : > { %v2465_v57 = vpop.permute.xlu1 %2464  ;;  %v1650_v30 = vpop.permute.xlu0 %1649 }
  0xc5   : > { %v2467_v51 = vunpack.i.h.bf16 %v2465_v57  ;;  %v2466_v34 = vunpack.i.l.bf16 %v2465_v57  ;;  %v1741_v29 = vsel %vm1707_vm2, %v1704_v58, %v1650_v30 }
  0xc6   : > { %1790 = vrot.lane.b32.xlu1 %v1741_v29, %s2518_s7  ;;  %1774 = vrot.lane.b32.xlu0 %v1725_v20, %s2518_s7 }
  0xc7   : > { %v1743_v41 = vsel %vm1707_vm2, %v1706_v17, %v2466_v34  ;;  %v1709_v42 = vsel %vm1707_vm2, %v1656_v14, %v2467_v51  ;;  %vm1945_vm2 = vcmask 736256  }
  0xca   : > { %1821 = vrot.lane.b32.xlu1 %v1741_v29, %s2519_s8  ;;  %1805 = vrot.lane.b32.xlu0 %v1725_v20, %s2519_s8 }
  0xce   : > { %1823 = vrot.lane.b32.xlu1 %v1743_v41, %s2519_s8  ;;  %1807 = vrot.lane.b32.xlu0 %v3144_v21, %s2519_s8 }
 0x104   : > { %v1777_v56 = vpop.permute.xlu1 %1776  ;;  %v1761_v7 = vpop.permute.xlu0 %1760 }
 0x105   : > { %v1843_v61 = vsel %vm1825_vm15, %v1725_v20, %v1777_v56  ;;  %v1827_v62 = vsel %vm1825_vm15, %v1709_v42, %v1761_v7 }
 0x108   : > { %v1779_v6 = vpop.permute.xlu1 %1778  ;;  %v1763_v24 = vpop.permute.xlu0 %1762 }
 0x109   : > { %v1845_v44 = vsel %vm1825_vm15, %v3144_v21, %v1779_v6  ;;  %v1829_v46 = vsel %vm1825_vm15, %v3156_v15, %v1763_v24  ;;  %v3572_v6 = vld [vmem:[%s3686_s2] ss:$0 sm:$0xff] }
 0x10c   : > { %v1810_v16 = vpop.permute.xlu1 %1809  ;;  %v1794_v23 = vpop.permute.xlu0 %1793 }
 0x10d   : > { %v1876_v22 = vsel %vm1858_vm14, %v1843_v61, %v1810_v16  ;;  %v1860_v31 = vsel %vm1858_vm14, %v1827_v62, %v1794_v23 }
 0x10e   : > { %2403 = vmatprep.mubr.msk.bf16.mxu1 %vm1945_vm2, %v1876_v22  ;;  %2387 = vmatprep.mubr.msk.bf16.mxu0 %vm1945_vm2, %v1860_v31 }
 0x110   : > { %v1812_v55 = vpop.permute.xlu1 %1811  ;;  %v1796_v50 = vpop.permute.xlu0 %1795 }
 0x111   : > { %v1878_v47 = vsel %vm1858_vm14, %v1845_v44, %v1812_v55  ;;  %v1862_v53 = vsel %vm1858_vm14, %v1829_v46, %v1796_v50 }
 0x112   : > { %2404 = vmatmul.mubr.msk.bf16.vlgmr.msra.gmra.mrb[0].mxu1 %vm1945_vm2, %v1878_v47  ;;  %2388 = vmatmul.mubr.msk.bf16.vlgmr.msra.gmra.mrb[0].mxu0 %vm1945_vm2, %v1862_v53 }
 0x114   : > { %v1781_v48 = vpop.permute.xlu1 %1780  ;;  %v1765_v5 = vpop.permute.xlu0 %1764 }
 0x115   : > { %v1847_v63 = vsel %vm1825_vm15, %v3186_v35, %v1781_v48  ;;  %v1831_v2 = vsel %vm1825_vm15, %v3203_v59, %v1765_v5 }
 0x118   : > { %v1783_v21 = vpop.permute.xlu1 %1782  ;;  %v1767_v60 = vpop.permute.xlu0 %1766 }
 0x119   : > { %v1849_v10 = vsel %vm1825_vm15, %v3238_v52, %v1783_v21  ;;  %v1833_v35 = vsel %vm1825_vm15, %v3255_v12, %v1767_v60 }
 0x11c   : > { %v1814_v43 = vpop.permute.xlu1 %1813  ;;  %v1798_v39 = vpop.permute.xlu0 %1797 }
 0x11d   : > { %v1880_v40 = vsel %vm1858_vm14, %v1847_v63, %v1814_v43  ;;  %v1864_v15 = vsel %vm1858_vm14, %v1831_v2, %v1798_v39 }
 0x11e   : > { %2407 = vmatprep.mubr.msk.bf16.mxu1 %vm1945_vm2, %v1880_v40  ;;  %2391 = vmatprep.mubr.msk.bf16.mxu0 %vm1945_vm2, %v1864_v15 }
 0x120   : > { %v1816_v3 = vpop.permute.xlu1 %1815  ;;  %v1800_v26 = vpop.permute.xlu0 %1799 }
 0x121   : > { %v1882_v36 = vsel %vm1858_vm14, %v1849_v10, %v1816_v3  ;;  %v1866_v59 = vsel %vm1858_vm14, %v1833_v35, %v1800_v26 }
 0x122   : > { %2408 = vmatmul.mubr.msk.bf16.gmra.mrb[4].mxu1 %vm1945_vm2, %v1882_v36  ;;  %2392 = vmatmul.mubr.msk.bf16.gmra.mrb[4].mxu0 %vm1945_vm2, %v1866_v59 }
 0x124   : > { %v1785_v19 = vpop.permute.xlu1 %1784  ;;  %v1769_v27 = vpop.permute.xlu0 %1768 }
 0x125   : > { %v1851_v52 = vsel %vm1825_vm15, %v3292_v49, %v1785_v19  ;;  %v1835_v12 = vsel %vm1825_vm15, %v3305_v18, %v1769_v27 }
 0x128   : > { %v1787_v11 = vpop.permute.xlu1 %1786  ;;  %v1771_v4 = vpop.permute.xlu0 %1770 }
 0x129   : > { %v1853_v8 = vsel %vm1825_vm15, %v3344_v28, %v1787_v11  ;;  %v1837_v49 = vsel %vm1825_vm15, %v3357_v13, %v1771_v4 }
 0x12c   : > { %v1818_v37 = vpop.permute.xlu1 %1817  ;;  %v1802_v1 = vpop.permute.xlu0 %1801 }
 0x12d   : > { %v1884_v9 = vsel %vm1858_vm14, %v1851_v52, %v1818_v37  ;;  %v1868_v32 = vsel %vm1858_vm14, %v1835_v12, %v1802_v1 }
 0x12e   : > { %2411 = vmatprep.mubr.msk.bf16.mxu1 %vm1945_vm2, %v1884_v9  ;;  %2395 = vmatprep.mubr.msk.bf16.mxu0 %vm1945_vm2, %v1868_v32 }
 0x130   : > { %v1820_v38 = vpop.permute.xlu1 %1819  ;;  %v1804_v17 = vpop.permute.xlu0 %1803 }
 0x131   : > { %v1886_v14 = vsel %vm1858_vm14, %v1853_v8, %v1820_v38  ;;  %v1870_v18 = vsel %vm1858_vm14, %v1837_v49, %v1804_v17 }
 0x132   : > { %2412 = vmatmul.mubr.msk.bf16.gmra.mrb[8].mxu1 %vm1945_vm2, %v1886_v14  ;;  %2396 = vmatmul.mubr.msk.bf16.gmra.mrb[8].mxu0 %vm1945_vm2, %v1870_v18 }
 0x134   : > { %v1789_v57 = vpop.permute.xlu1 %1788  ;;  %v1773_v51 = vpop.permute.xlu0 %1772 }
 0x135   : > { %v1855_v28 = vsel %vm1825_vm15, %v3403_v25, %v1789_v57  ;;  %v1839_v45 = vsel %vm1825_vm15, %v3426_v0, %v1773_v51 }
 0x138   : > { %v1791_v34 = vpop.permute.xlu1 %1790  ;;  %v1775_v58 = vpop.permute.xlu0 %1774 }
 0x139   : > { %v1857_v41 = vsel %vm1825_vm15, %v3452_v33, %v1791_v34  ;;  %v1841_v25 = vsel %vm1825_vm15, %v3462_v54, %v1775_v58 }
 0x13c   : > { %v1822_v30 = vpop.permute.xlu1 %1821  ;;  %v1806_v13 = vpop.permute.xlu0 %1805 }
 0x13d   : > { %v1888_v29 = vsel %vm1858_vm14, %v1855_v28, %v1822_v30  ;;  %v1872_v20 = vsel %vm1858_vm14, %v1839_v45, %v1806_v13 }
 0x13e   : > { %2399 = vmatprep.mubr.msk.bf16.mxu0 %vm1945_vm2, %v1872_v20  ;;  %2415 = vmatprep.mubr.msk.bf16.mxu1 %vm1945_vm2, %v1888_v29 }
 0x140   : > { %v1824_v42 = vpop.permute.xlu1 %1823  ;;  %v1808_v56 = vpop.permute.xlu0 %1807 }
 0x141   : > { %v1890_v0 = vsel %vm1858_vm14, %v1857_v41, %v1824_v42  ;;  %v1874_v7 = vsel %vm1858_vm14, %v1841_v25, %v1808_v56 }
 0x142   : > { %2400 = vmatmul.mubr.msk.bf16.gmra.mrb[12].mxu0 %vm1945_vm2, %v1874_v7  ;;  %2416 = vmatmul.mubr.msk.bf16.gmra.mrb[12].mxu1 %vm1945_vm2, %v1890_v0 }
 0x1e5   : > { %v2405_v33 = vpop.f32.mrb[0].mxu1  ;;  %v2389_v22 = vpop.f32.mrb[0].mxu0 }
 0x1e6   : > { %v2089_v54 = vadd.f32 %v2405_v33, %v3572_v6  ;;  %v2080_v24 = vpop.f32.mrb[1].mxu1  ;;  %v2025_v44 = vadd.f32 %v2389_v22, %v3572_v6  ;;  %v2016_v31 = vpop.f32.mrb[1].mxu0 }
 0x1e7   : > { %v2081_v61 = vadd.f32 %v3572_v6, %v2080_v24  ;;  %v2406_v16 = vpop.f32.mrb[2].mxu1  ;;  %v2017_v47 = vadd.f32 %v3572_v6, %v2016_v31  ;;  %v2390_v46 = vpop.f32.mrb[2].mxu0 }
 0x1e8   : > { %2162 = vst.msk [vmem:[%s3577_s18 + $0x90] sm:$0xff] %vm2143_vm4, %v2089_v54  ;;  %v2092_v62 = vadd.f32 %v2406_v16, %v3572_v6  ;;  %v2083_v23 = vpop.f32.mrb[3].mxu1  ;;  %2146 = vst.msk [vmem:[%s3577_s18 + $0x10] sm:$0xff] %vm2143_vm4, %v2025_v44  ;;  %v2028_v50 = vadd.f32 %v2390_v46, %v3572_v6  ;;  %v2019_v53 = vpop.f32.mrb[3].mxu0 }
 0x1e9   : > { %2160 = vst.msk [vmem:[%s3577_s18 + $0x80] sm:$0xff] %vm2143_vm4, %v2081_v61  ;;  %v2084_v55 = vadd.f32 %v3572_v6, %v2083_v23  ;;  %2144 = vst.msk [vmem:[%s3577_s18] sm:$0xff] %vm2143_vm4, %v2017_v47  ;;  %v2020_v48 = vadd.f32 %v3572_v6, %v2019_v53 }
 0x1ea   : > { %2163 = vst.msk [vmem:[%s3577_s18 + $0x98] sm:$0xff] %vm2143_vm4, %v2092_v62  ;;  %2147 = vst.msk [vmem:[%s3577_s18 + $0x18] sm:$0xff] %vm2143_vm4, %v2028_v50 }
 0x1eb   : > { %2161 = vst.msk [vmem:[%s3577_s18 + $0x88] sm:$0xff] %vm2143_vm4, %v2084_v55  ;;  %2145 = vst.msk [vmem:[%s3577_s18 + $0x8] sm:$0xff] %vm2143_vm4, %v2020_v48 }
 0x1f5   : > { %v2409_v5 = vpop.f32.mrb[4].mxu1  ;;  %v2393_v63 = vpop.f32.mrb[4].mxu0 }
 0x1f6   : > { %v2105_v21 = vadd.f32 %v2409_v5, %v3572_v6  ;;  %v2096_v60 = vpop.f32.mrb[5].mxu1  ;;  %v2041_v2 = vadd.f32 %v2393_v63, %v3572_v6  ;;  %v2032_v39 = vpop.f32.mrb[5].mxu0 }
 0x1f7   : > { %v2097_v43 = vadd.f32 %v3572_v6, %v2096_v60  ;;  %v2410_v40 = vpop.f32.mrb[6].mxu1  ;;  %v2033_v3 = vadd.f32 %v3572_v6, %v2032_v39  ;;  %v2394_v36 = vpop.f32.mrb[6].mxu0 }
 0x1f8   : > { %2166 = vst.msk [vmem:[%s3577_s18 + $0xb0] sm:$0xff] %vm2143_vm4, %v2105_v21  ;;  %v2108_v15 = vadd.f32 %v2410_v40, %v3572_v6  ;;  %v2099_v10 = vpop.f32.mrb[7].mxu1  ;;  %2150 = vst.msk [vmem:[%s3577_s18 + $0x30] sm:$0xff] %vm2143_vm4, %v2041_v2  ;;  %v2044_v26 = vadd.f32 %v2394_v36, %v3572_v6  ;;  %v2035_v59 = vpop.f32.mrb[7].mxu0 }
 0x1f9   : > { %2164 = vst.msk [vmem:[%s3577_s18 + $0xa0] sm:$0xff] %vm2143_vm4, %v2097_v43  ;;  %v2100_v35 = vadd.f32 %v3572_v6, %v2099_v10  ;;  %2148 = vst.msk [vmem:[%s3577_s18 + $0x20] sm:$0xff] %vm2143_vm4, %v2033_v3  ;;  %v2036_v19 = vadd.f32 %v3572_v6, %v2035_v59 }
 0x1fa   : > { %2167 = vst.msk [vmem:[%s3577_s18 + $0xb8] sm:$0xff] %vm2143_vm4, %v2108_v15  ;;  %2151 = vst.msk [vmem:[%s3577_s18 + $0x38] sm:$0xff] %vm2143_vm4, %v2044_v26 }
 0x1fb   : > { %2165 = vst.msk [vmem:[%s3577_s18 + $0xa8] sm:$0xff] %vm2143_vm4, %v2100_v35  ;;  %2149 = vst.msk [vmem:[%s3577_s18 + $0x28] sm:$0xff] %vm2143_vm4, %v2036_v19 }
 0x205   : > { %v2413_v27 = vpop.f32.mrb[8].mxu1  ;;  %v2397_v52 = vpop.f32.mrb[8].mxu0 }
 0x206   : > { %v2121_v11 = vadd.f32 %v2413_v27, %v3572_v6  ;;  %v2112_v4 = vpop.f32.mrb[9].mxu1  ;;  %v2057_v12 = vadd.f32 %v2397_v52, %v3572_v6  ;;  %v2048_v1 = vpop.f32.mrb[9].mxu0 }
 0x207   : > { %v2113_v37 = vadd.f32 %v3572_v6, %v2112_v4  ;;  %v2414_v9 = vpop.f32.mrb[10].mxu1  ;;  %v2049_v38 = vadd.f32 %v3572_v6, %v2048_v1  ;;  %v2398_v14 = vpop.f32.mrb[10].mxu0 }
 0x208   : > { %2170 = vst.msk [vmem:[%s3577_s18 + $0xd0] sm:$0xff] %vm2143_vm4, %v2121_v11  ;;  %v2124_v32 = vadd.f32 %v2414_v9, %v3572_v6  ;;  %v2115_v8 = vpop.f32.mrb[11].mxu1  ;;  %2154 = vst.msk [vmem:[%s3577_s18 + $0x50] sm:$0xff] %vm2143_vm4, %v2057_v12  ;;  %v2060_v17 = vadd.f32 %v2398_v14, %v3572_v6  ;;  %v2051_v18 = vpop.f32.mrb[11].mxu0 }
 0x209   : > { %2168 = vst.msk [vmem:[%s3577_s18 + $0xc0] sm:$0xff] %vm2143_vm4, %v2113_v37  ;;  %v2116_v49 = vadd.f32 %v3572_v6, %v2115_v8  ;;  %2152 = vst.msk [vmem:[%s3577_s18 + $0x40] sm:$0xff] %vm2143_vm4, %v2049_v38  ;;  %v2052_v57 = vadd.f32 %v3572_v6, %v2051_v18 }
 0x20a   : > { %2171 = vst.msk [vmem:[%s3577_s18 + $0xd8] sm:$0xff] %vm2143_vm4, %v2124_v32  ;;  %2155 = vst.msk [vmem:[%s3577_s18 + $0x58] sm:$0xff] %vm2143_vm4, %v2060_v17 }
 0x20b   : > { %2169 = vst.msk [vmem:[%s3577_s18 + $0xc8] sm:$0xff] %vm2143_vm4, %v2116_v49  ;;  %2153 = vst.msk [vmem:[%s3577_s18 + $0x48] sm:$0xff] %vm2143_vm4, %v2052_v57 }
 0x215   : > { %v2401_v51 = vpop.f32.mrb[12].mxu0  ;;  %v2417_v34 = vpop.f32.mrb[12].mxu1 }
 0x216   : > { %v2073_v58 = vadd.f32 %v2401_v51, %v3572_v6  ;;  %v2137_v28 = vadd.f32 %v2417_v34, %v3572_v6  ;;  %v2064_v45 = vpop.f32.mrb[13].mxu0  ;;  %v2128_v30 = vpop.f32.mrb[13].mxu1 }
 0x217   : > { %v2065_v13 = vadd.f32 %v3572_v6, %v2064_v45  ;;  %v2129_v29 = vadd.f32 %v3572_v6, %v2128_v30  ;;  %v2402_v20 = vpop.f32.mrb[14].mxu0  ;;  %v2418_v41 = vpop.f32.mrb[14].mxu1 }
 0x218   : > { %2158 = vst.msk [vmem:[%s3577_s18 + $0x70] sm:$0xff] %vm2143_vm4, %v2073_v58  ;;  %2174 = vst.msk [vmem:[%s3577_s18 + $0xf0] sm:$0xff] %vm2143_vm4, %v2137_v28  ;;  %v2076_v25 = vadd.f32 %v2402_v20, %v3572_v6  ;;  %v2140_v42 = vadd.f32 %v2418_v41, %v3572_v6  ;;  %v2067_v56 = vpop.f32.mrb[15].mxu0  ;;  %v2131_v0 = vpop.f32.mrb[15].mxu1 }
 0x219   : > { %2156 = vst.msk [vmem:[%s3577_s18 + $0x60] sm:$0xff] %vm2143_vm4, %v2065_v13  ;;  %2172 = vst.msk [vmem:[%s3577_s18 + $0xe0] sm:$0xff] %vm2143_vm4, %v2129_v29  ;;  %v2068_v7 = vadd.f32 %v3572_v6, %v2067_v56  ;;  %v2132_v33 = vadd.f32 %v3572_v6, %v2131_v0 }
 0x21a   : > { %2159 = vst.msk [vmem:[%s3577_s18 + $0x78] sm:$0xff] %vm2143_vm4, %v2076_v25  ;;  %2175 = vst.msk [vmem:[%s3577_s18 + $0xf8] sm:$0xff] %vm2143_vm4, %v2140_v42 }
 0x21b   : > { %2157 = vst.msk [vmem:[%s3577_s18 + $0x68] sm:$0xff] %vm2143_vm4, %v2068_v7  ;;  %2173 = vst.msk [vmem:[%s3577_s18 + $0xe8] sm:$0xff] %vm2143_vm4, %v2132_v33 }
 0x21c PF: > { %s13_s14 = sadd.s32 1, %s2512_s14   ;;  %s3790_s12 = smov %s2508_s13 }
 0x21d   : > { %p10_p5 = scmp.ge.s32.totalorder %s13_s14, 4   ;;  %s3791_s13 = smov %s3793_s15 }
 0x21f   :  { %12 = sbr.rel (!%p10_p5) target bundleno = 2 (0x2), region = 62 }

// kernel: refinement_net_forward.24
= control target key start
LH: loop header
LB: loop body
LE: loop exit
PB: predicated region body
PF: predicated region fallthrough
CT: control target
= control target key end

     0   :  { %s3566_s12 = smov 0   ;;  %s3568_s13 = smov 0   ;;  %s4989_s0 = inlined_call_operand.vmem [shape: bf16[2,256,64], index: 0, kind: input, shape index: {}]   ;;  %s4990_s1 = inlined_call_operand.vmem [shape: bf16[576,10], index: 1, kind: input, shape index: {}]   ;;  %s4991_s2 = inlined_call_operand.vmem [shape: f32[1,10], index: 2, kind: input, shape index: {}]   ;;  %s4992_s3 = inlined_call_operand.vmem [shape: bf16[2,1,256,10], index: 3, kind: output, shape index: {}]  }
   0x1   :  { %s3570_s14 = smov 0  }
   0x2 LB: > { %s25_s15 = sadd.s32 1, %s3537_s13  ;;  %p2962_p0 = scmp.ge.s32.totalorder %s3541_s14, 1  ;;  %s3541_s14 = sphi %s3570_s14, %s13_s14   ;;  %s3537_s13 = sphi %s3568_s13, %s5100_s13   ;;  %s3533_s12 = sphi %s3566_s12, %s5099_s12  }
   0x3   : > { %p27_p1 = scmp.ge.s32.totalorder %s25_s15, 2  ;;  %p158_p2 = scmp.lt.s32.totalorder %s3541_s14, 3 }
   0x5   : > { %s5102_s15 = smov (%p27_p1, %s25_s15), 0  ;;  %p159_p3 = pnand %p2962_p0, %p158_p2 }
   0x6   : > { %p191_p4 = scmp.lt.s32.totalorder (!%p159_p3), %s3533_s12, 1  ;;  %s3543_s20 = smov (!%p159_p3), 64   ;;  %vm793_vm0 = vsmask.f32 (!%p159_p3), 256  ;;  %vm951_vm1 = vsmask.f32 (!%p159_p3), 7424 }
   0x7   : > { %162 = sbr.rel (%p159_p3) target bundleno = 689 (0x2b1), region = 32  ;;  %vm3544_vm3 = vmmov (!%p159_p3), 1  }
   0x8   : > { %vm1133_vm4 = vmpackc.low (!%p159_p3), %vm3544_vm3, %vm3544_vm3  ;;  %vm1599_vm3 = vcmask (!%p159_p3), 523264  }
   0xe   : > { %s5104_s12 = smov (!%p191_p4, %s3533_s12), 1 }
   0xf   : > { %s3106_s16 = sshll.u32 %s5104_s12, 7 }
  0x10   : > { %s3592_s19 = scalar_lea.vmem %s4989_s0, %s3106_s16  ;;  %s4853_s7 = scalar_lea.vmem %s4992_s3, %s3106_s16 }
  0x11   : > { %v3595_v0 = vld [vmem:[%s3592_s19 + $0x60] sm:$0xff]   ;;  %v3603_v2 = vld [vmem:[%s3592_s19 + $0x68] sm:$0xff]   ;;  %v3608_v5 = vld [vmem:[%s3592_s19 + $0x70] sm:$0xff]  }
  0x12   : > { %1591 = vrot.lane.b32.xlu0 %v3595_v0, %s3543_s20  ;;  %v3600_v1 = vld [vmem:[%s3592_s19] sm:$0xff]   ;;  %v3470_v3 = vld [vmem:[%s3592_s19 + $0x8] sm:$0xff]   ;;  %v898_v4 = vshrl.u32 %v3595_v0, 16  ;;  %1593 = vrot.lane.b32.xlu1 %v3603_v2, %s3543_s20  ;;  %v906_v7 = vshrl.u32 %v3603_v2, 16  ;;  %v909_v8 = vshll.u32 %v3603_v2, 16  ;;  %v4997_v11 = vshrl.u32 %v3608_v5, 16 }
  0x13   : > { %v802_v6 = vshrl.u32 %v3600_v1, 16  ;;  %v810_v9 = vshrl.u32 %v3470_v3, 16  ;;  %v813_v10 = vshll.u32 %v3470_v3, 16  ;;  %v917_v12 = vshll.u32 %v3608_v5, 16  ;;  %v3472_v13 = vld [vmem:[%s3592_s19 + $0x10] sm:$0xff]   ;;  %v3629_v19 = vld [vmem:[%s3592_s19 + $0x78] sm:$0xff]  }
  0x14   : > { %v908_v14 = vrot.slane %v906_v7, 7  ;;  %v3624_v16 = vrot.slane %v898_v4, 7  ;;  %v916_v17 = vrot.slane %v4997_v11, 7  ;;  %v818_v18 = vshrl.u32 %v3472_v13, 16  ;;  %v3474_v32 = vld [vmem:[%s3592_s19 + $0x18] sm:$0xff]   ;;  %v3475_v34 = vld [vmem:[%s3592_s19 + $0x20] sm:$0xff]  }
  0x15   : > { %v812_v15 = vrot.slane %v810_v9, 7  ;;  %v3631_v20 = vrot.slane %v802_v6, 7  ;;  %v821_v21 = vshll.u32 %v3472_v13, 16  ;;  %v4993_v25 = vshrl.u32 %v3629_v19, 16  ;;  %v3476_v38 = vld [vmem:[%s3592_s19 + $0x28] sm:$0xff]   ;;  %v3477_v39 = vld [vmem:[%s3592_s19 + $0x30] sm:$0xff]  }
  0x16   : > { %1567 = vrot.lane.b32.xlu0 %v3600_v1, %s3543_s20  ;;  %1569 = vrot.lane.b32.xlu1 %v3470_v3, %s3543_s20  ;;  %v911_v22 = vor.u32 %v909_v8, %v908_v14  ;;  %v820_v24 = vrot.slane %v818_v18, 7  ;;  %v4996_v26 = vshll.u32 %v3629_v19, 16  ;;  %v919_v27 = vor.u32 %v917_v12, %v916_v17  ;;  %v3478_v41 = vld [vmem:[%s3592_s19 + $0x38] sm:$0xff]  }
  0x17   : > { %v815_v23 = vor.u32 %v813_v10, %v812_v15  ;;  %v3652_v30 = vrot.slane %v4993_v25, 7  ;;  %v826_v40 = vshrl.u32 %v3474_v32, 16  ;;  %v829_v43 = vshll.u32 %v3474_v32, 16  ;;  %v3490_v2 = vld [vmem:[%s4990_s1 + $0x18] sm:$0xff]  }
  0x18   : > { %v3644_v28 = vsel %vm793_vm0, %v3624_v16, %v911_v22  ;;  %v3655_v31 = vsel %vm793_vm0, %v908_v14, %v919_v27  ;;  %v823_v33 = vor.u32 %v821_v21, %v820_v24  ;;  %v805_v44 = vshll.u32 %v3600_v1, 16 }
  0x19   : > { %v3648_v29 = vsel %vm793_vm0, %v3631_v20, %v815_v23  ;;  %v927_v35 = vor.u32 %v4996_v26, %v3652_v30  ;;  %v828_v42 = vrot.slane %v826_v40, 7  ;;  %v834_v45 = vshrl.u32 %v3475_v34, 16 }
  0x1a   : > { %1595 = vrot.lane.b32.xlu0 %v3608_v5, %s3543_s20  ;;  %1571 = vrot.lane.b32.xlu1 %v3472_v13, %s3543_s20  ;;  %v3666_v36 = vsel %vm793_vm0, %v812_v15, %v823_v33  ;;  %v3682_v46 = vrot.slane %v805_v44, 1  ;;  %v957_v47 = vrot.slane %v813_v10, 1  ;;  %v960_v51 = vrot.slane %v821_v21, 1  ;;  %v3710_v33 = vld [vmem:[%s3592_s19 + $0x40] sm:$0xff]  }
  0x1b   : > { %v3669_v37 = vsel %vm793_vm0, %v916_v17, %v927_v35  ;;  %v831_v48 = vor.u32 %v829_v43, %v828_v42  ;;  %v836_v52 = vrot.slane %v834_v45, 7  ;;  %v837_v53 = vshll.u32 %v3475_v34, 16 }
  0x1c   : > { %v956_v49 = vor.u32 %v3682_v46, %v802_v6  ;;  %v959_v50 = vor.u32 %v957_v47, %v810_v9  ;;  %v842_v57 = vshrl.u32 %v3476_v38, 16  ;;  %v962_v58 = vor.u32 %v960_v51, %v818_v18 }
  0x1d   : > { %v3686_v54 = vsel %vm793_vm0, %v820_v24, %v831_v48  ;;  %v963_v59 = vrot.slane %v829_v43, 1  ;;  %v839_v60 = vor.u32 %v837_v53, %v836_v52  ;;  %v845_v63 = vshll.u32 %v3476_v38, 16 }
  0x1e   : > { %1597 = vrot.lane.b32.xlu0 %v3629_v19, %s3543_s20  ;;  %1573 = vrot.lane.b32.xlu1 %v3474_v32, %s3543_s20  ;;  %v3689_v55 = vsel %vm951_vm1, %v956_v49, %v957_v47  ;;  %v3692_v56 = vsel %vm951_vm1, %v959_v50, %v960_v51  ;;  %v844_v62 = vrot.slane %v842_v57, 7  ;;  %v966_v9 = vrot.slane %v837_v53, 1  ;;  %v3484_v53 = vld [vmem:[%s4990_s1] sm:$0xff]  }
  0x1f   : > { %v3695_v61 = vsel %vm951_vm1, %v962_v58, %v963_v59  ;;  %v3698_v3 = vsel %vm793_vm0, %v828_v42, %v839_v60  ;;  %v965_v6 = vor.u32 %v963_v59, %v826_v40  ;;  %v969_v10 = vrot.slane %v845_v63, 1  ;;  %v3486_v59 = vld [vmem:[%s4990_s1 + $0x8] sm:$0xff]  }
  0x20   : > { %v847_v13 = vor.u32 %v845_v63, %v844_v62  ;;  %v850_v14 = vshrl.u32 %v3477_v39, 16  ;;  %v853_v15 = vshll.u32 %v3477_v39, 16  ;;  %v968_v18 = vor.u32 %v966_v9, %v834_v45  ;;  %v3487_v63 = vld [vmem:[%s4990_s1 + $0x50] sm:$0xff]  }
  0x21   : > { %v3701_v17 = vsel %vm951_vm1, %v965_v6, %v966_v9  ;;  %v861_v22 = vshll.u32 %v3478_v41, 16  ;;  %v971_v24 = vor.u32 %v969_v10, %v842_v57  ;;  %v3485_v57 = vld [vmem:[%s4990_s1 + $0x48] sm:$0xff]   ;;  %v901_v58 = vshll.u32 %v3595_v0, 16 }
  0x22   : > { %1575 = vrot.lane.b32.xlu0 %v3475_v34, %s3543_s20  ;;  %1577 = vrot.lane.b32.xlu1 %v3476_v38, %s3543_s20  ;;  %v3704_v21 = vsel %vm793_vm0, %v836_v52, %v847_v13  ;;  %v3707_v23 = vsel %vm951_vm1, %v968_v18, %v969_v10  ;;  %v852_v27 = vrot.slane %v850_v14, 7  ;;  %v972_v32 = vrot.slane %v853_v15, 1  ;;  %v3483_v52 = vld [vmem:[%s4990_s1 + $0x40] sm:$0xff]   ;;  %v3489_v13 = vld [vmem:[%s4990_s1 + $0x58] sm:$0xff]  }
  0x23   : > { %v858_v34 = vshrl.u32 %v3478_v41, 16  ;;  %v975_v40 = vrot.slane %v861_v22, 1  ;;  %3424 = vmatprep.subr.bf16.mxu1 %v3483_v52  ;;  %3140 = vmatprep.subr.bf16.mxu0 %v3483_v52  ;;  %v3751_v60 = vrot.slane %v901_v58, 1  ;;  %v324_v18 = vlaneseq }
  0x24   : > { %v3713_v35 = vsel %vm951_vm1, %v971_v24, %v972_v32  ;;  %v974_v38 = vor.u32 %v972_v32, %v850_v14  ;;  %v855_v42 = vor.u32 %v853_v15, %v852_v27  ;;  %3432 = vmatpush3.bf16.msra.mxu1 %v3484_v53  ;;  %3141 = vmatpush3.bf16.msra.mxu0 %v3484_v53  ;;  %v3493_v14 = vld [vmem:[%s4990_s1 + $0x68] sm:$0xff]   ;;  %v3496_v24 = vld [vmem:[%s4990_s1 + $0x30] sm:$0xff]   ;;  %v3806_v53 = vld [vmem:[%s3592_s19 + $0x58] sm:$0xff]  }
  0x25   : > { %v977_v47 = vor.u32 %v975_v40, %v858_v34  ;;  %3425 = vmatprep.subr.bf16.mxu1 %v3485_v57  ;;  %3142 = vmatprep.subr.bf16.mxu0 %v3485_v57  ;;  %v992_v6 = vor.u32 %v3751_v60, %v898_v4  ;;  %v3491_v4 = vld [vmem:[%s4990_s1 + $0x60] sm:$0xff]   ;;  %v3494_v15 = vld [vmem:[%s4990_s1 + $0x28] sm:$0xff]  }
  0x26   : > { %1579 = vrot.lane.b32.xlu0 %v3477_v39, %s3543_s20  ;;  %v869_v39 = vshll.u32 %v3710_v33, 16  ;;  %v3717_v43 = vsel %vm951_vm1, %v974_v38, %v975_v40  ;;  %v3720_v45 = vsel %vm793_vm0, %v844_v62, %v855_v42  ;;  %v993_v62 = vrot.slane %v909_v8, 1  ;;  %v3488_v8 = vld [vmem:[%s4990_s1 + $0x10] sm:$0xff]  }
  0x28   : > { %v3724_v48 = vrot.slane %v869_v39, 1  ;;  %v3763_v9 = vor.u32 %v993_v62, %v906_v7  ;;  %3433 = vmatpush3.bf16.msra.mxu1 %v3486_v59  ;;  %3143 = vmatpush3.bf16.msra.mxu0 %v3486_v59  ;;  %v3769_v10 = vsel %vm951_vm1, %v992_v6, %v993_v62  ;;  %v3492_v7 = vld [vmem:[%s4990_s1 + $0x20] sm:$0xff]  }
  0x29   : > { %3426 = vmatprep.subr.bf16.mxu1 %v3487_v63  ;;  %3144 = vmatprep.subr.bf16.mxu0 %v3487_v63 }
  0x2a   : > { %1581 = vrot.lane.b32.xlu0 %v3478_v41, %s3543_s20  ;;  %v3726_v41 = vrot.slane %v858_v34, 7  ;;  %v3730_v49 = vsel %vm951_vm1, %v977_v47, %v3724_v48 }
  0x2c   : > { %v863_v50 = vor.u32 %v861_v22, %v3726_v41  ;;  %3434 = vmatpush3.bf16.msra.mxu1 %v3488_v8  ;;  %3145 = vmatpush3.bf16.msra.mxu0 %v3488_v8  ;;  %v3495_v22 = vld [vmem:[%s4990_s1 + $0x70] sm:$0xff]   ;;  %v4995_v8 = vshrl.u32 %v3806_v53, 16 }
  0x2d   : > { %3427 = vmatprep.subr.bf16.mxu1 %v3489_v13  ;;  %3146 = vmatprep.subr.bf16.mxu0 %v3489_v13  ;;  %v3545_v13 = vmov 0  }
  0x2e   : > { %v3734_v51 = vsel %vm793_vm0, %v852_v27, %v863_v50  ;;  %v3795_v27 = vshrl.u32 %v324_v18, 7  ;;  %v903_v18 = vor.u32 %v901_v58, %v3624_v16  ;;  %v3499_v58 = vld [vmem:[%s4990_s1 + $0xc0] sm:$0xff]  }
  0x30   : > { %3435 = vmatpush3.bf16.msra.mxu1 %v3490_v2  ;;  %3147 = vmatpush3.bf16.msra.mxu0 %v3490_v2  ;;  %v351_v32 = vadd.s32 208, %v3795_v27  ;;  %v327_v34 = vadd.s32 16, %v3795_v27  ;;  %v353_v40 = vadd.s32 224, %v3795_v27  ;;  %v329_v52 = vadd.s32 32, %v3795_v27 }
  0x31   : > { %3428 = vmatprep.subr.bf16.mxu1 %v3491_v4  ;;  %3148 = vmatprep.subr.bf16.mxu0 %v3491_v4  ;;  %v355_v59 = vadd.s32 240, %v3795_v27  ;;  %v331_v6 = vadd.s32 48, %v3795_v27  ;;  %v3823_v2 = vsel %vm1133_vm4, 65537, %v3545_v13  ;;  %v357_v16 = vadd.s32 256, %v3795_v27 }
  0x32   : > { %v547_v38 = vand.u32 15, %v351_v32  ;;  %v379_v42 = vand.u32 15, %v327_v34  ;;  %v561_v50 = vand.u32 15, %v353_v40  ;;  %v393_v63 = vand.u32 15, %v329_v52 }
  0x33   : > { %v3847_v32 = vrot.slane %v4995_v8, 7  ;;  %v866_v40 = vshrl.u32 %v3710_v33, 16  ;;  %v807_v52 = vor.u32 %v805_v44, %v3631_v20  ;;  %v589_v20 = vand.u32 15, %v357_v16 }
  0x34   : > { %3436 = vmatpush3.bf16.msra.mxu1 %v3492_v7  ;;  %3149 = vmatpush3.bf16.msra.mxu0 %v3492_v7  ;;  %vm3800_vm2 = vcmp.ne.s32.totalorder %v547_v38, 0  ;;  %vm3811_vm6 = vcmp.ne.s32.totalorder %v379_v42, 0  ;;  %vm3816_vm7 = vcmp.ne.s32.totalorder %v561_v50, 0  ;;  %v3497_v7 = vld [vmem:[%s4990_s1 + $0x78] sm:$0xff]   ;;  %vm3841_vm10 = vcmp.ne.s32.totalorder %v393_v63, 0 }
  0x35   : > { %3429 = vmatprep.subr.bf16.mxu1 %v3493_v14  ;;  %3150 = vmatprep.subr.bf16.mxu0 %v3493_v14  ;;  %vm1158_vm5 = vmpackc.low %vm3800_vm2, %vm3800_vm2  ;;  %v575_v14 = vand.u32 15, %v355_v59  ;;  %v3859_v42 = vrot.slane %v866_v40, 7  ;;  %v3869_v50 = vrot.slane %v3545_v13, 7  ;;  %v904_v62 = vsel %vm793_vm0, %v3847_v32, %v903_v18 }
  0x36   : > { %v1194_v4 = vsel %vm1158_vm5, 65537, %v3545_v13  ;;  %vm1134_vm8 = vmpackc.low %vm3811_vm6, %vm3811_vm6  ;;  %v333_v44 = vadd.s32 64, %v3795_v27  ;;  %vm3920_vm6 = vcmp.ne.s32.totalorder %v589_v20, 0 }
  0x37   : > { %vm1160_vm9 = vmpackc.low %vm3816_vm7, %vm3816_vm7  ;;  %v2996_v34 = vcombine.low %v1194_v4, %v3823_v2  ;;  %v1170_v38 = vsel %vm1134_vm8, 65537, %v3545_v13  ;;  %vm3864_vm12 = vcmp.ne.s32.totalorder %v575_v14, 0  ;;  %v3887_v4 = vld [vmem:[%s3592_s19 + $0x48] sm:$0xff]   ;;  %v871_v14 = vor.u32 %v869_v39, %v3859_v42 }
  0x38   : > { %3437 = vmatpush3.bf16.msra.mxu1 %v3494_v15  ;;  %3151 = vmatpush3.bf16.msra.mxu0 %v3494_v15  ;;  %v3498_v15 = vld [vmem:[%s4990_s1 + $0x38] sm:$0xff]   ;;  %v1196_v0 = vsel %vm1160_vm9, 65537, %v3545_v13  ;;  %vm1136_vm11 = vmpackc.low %vm3841_vm10, %vm3841_vm10  ;;  %v2984_v57 = vcombine.low %v1170_v38, %v3823_v2  ;;  %v808_v18 = vsel %vm793_vm0, %v3869_v50, %v807_v52  ;;  %v421_v47 = vand.u32 15, %v333_v44 }
  0x39   : > { %3430 = vmatprep.subr.bf16.mxu1 %v3495_v22  ;;  %3152 = vmatprep.subr.bf16.mxu0 %v3495_v22  ;;  %vm3881_vm14 = vcmp.ne.s16.totalorder %v2996_v34, 0  ;;  %v1172_v1 = vsel %vm1136_vm11, 65537, %v3545_v13  ;;  %vm1162_vm15 = vmpackc.low %vm3864_vm12, %vm3864_vm12  ;;  %v3917_v39 = vsel %vm793_vm0, %v3726_v41, %v871_v14  ;;  %v335_v52 = vadd.s32 80, %v3795_v27 }
  0x3a   : > { %vm3905_vm4 = vcmp.ne.s16.totalorder %v2984_v57, 0  ;;  %v2985_v34 = vcombine.low %v1172_v1, %v3823_v2  ;;  %v1198_v38 = vsel %vm1162_vm15, 65537, %v3545_v13  ;;  %v328_v41 = vadd.s32 24, %v3795_v27  ;;  %vm1164_vm8 = vmpackc.low %vm3920_vm6, %vm3920_vm6 }
  0x3b   : > { %v877_v14 = vshll.u32 %v3887_v4, 16  ;;  %vm3954_vm9 = vcmp.ne.s32.totalorder %v421_v47, 0 }
  0x3c   : > { %3438 = vmatpush3.bf16.msra.mxu1 %v3496_v24  ;;  %3153 = vmatpush3.bf16.msra.mxu0 %v3496_v24  ;;  %v407_v24 = vand.u32 15, %v331_v6  ;;  %v2997_v6 = vcombine.low %v1196_v0, %v3823_v2  ;;  %vm3941_vm7 = vcmp.ne.s16.totalorder %v2985_v34, 0  ;;  %v337_v34 = vadd.s32 96, %v3795_v27  ;;  %vm1140_vm10 = vmpackc.low %vm3954_vm9, %vm3954_vm9 }
  0x3d   : > { %3431 = vmatprep.subr.bf16.mxu1 %v3497_v7  ;;  %3154 = vmatprep.subr.bf16.mxu0 %v3497_v7  ;;  %v4994_v7 = vshrl.u32 %v3887_v4, 16 }
  0x3e   : > { %vm3875_vm13 = vcmp.ne.s32.totalorder %v407_v24, 0  ;;  %vm3909_vm5 = vcmp.ne.s16.totalorder %v2997_v6, 0  ;;  %v2998_v6 = vcombine.low %v1198_v38, %v3823_v2  ;;  %v435_v24 = vand.u32 15, %v335_v52 }
  0x3f   : > { %vm1138_vm2 = vmpackc.low %vm3875_vm13, %vm3875_vm13  ;;  %v3930_v59 = vrot.slane %v4994_v7, 7  ;;  %v1290_v63 = vsel %vm3909_vm5, %v3644_v28, 0  ;;  %v3961_v38 = vrot.slane %v917_v12, 1  ;;  %v1278_v12 = vsel %vm3941_vm7, %v3648_v29, 0 }
  0x40   : > { %3439 = vmatpush3.bf16.msra.mxu1 %v3498_v15  ;;  %3155 = vmatpush3.bf16.msra.mxu0 %v3498_v15  ;;  %v1289_v15 = vsel %vm3881_vm14, %v904_v62, 0  ;;  %v1174_v16 = vsel %vm1138_vm2, 65537, %v3545_v13  ;;  %v1277_v62 = vsel %vm3905_vm4, %v808_v18, 0  ;;  %v330_v18 = vadd.s32 40, %v3795_v27 }
  0x41   : > { %3252 = vmatprep.subr.bf16.mxu1 %v3499_v58  ;;  %v2986_v44 = vcombine.low %v1174_v16, %v3823_v2  ;;  %v386_v58 = vand.u32 15, %v328_v41  ;;  %v879_v47 = vor.u32 %v877_v14, %v3930_v59  ;;  %v3982_v41 = vsel %vm951_vm1, %v3763_v9, %v3961_v38 }
  0x42   : > { %v400_v25 = vand.u32 15, %v330_v18  ;;  %vm3998_vm11 = vcmp.ne.s16.totalorder %v2998_v6, 0  ;;  %vm4002_vm12 = vcmp.ne.s32.totalorder %v435_v24, 0  ;;  %v339_v18 = vadd.s32 112, %v3795_v27 }
  0x43   : > { %v3996_v20 = vsel %vm793_vm0, %v3859_v42, %v879_v47  ;;  %vm4008_vm13 = vcmp.ne.s32.totalorder %v386_v58, 15  ;;  %v332_v42 = vadd.s32 56, %v3795_v27  ;;  %v1176_v24 = vsel %vm1140_vm10, 65537, %v3545_v13  ;;  %vm1142_vm15 = vmpackc.low %vm4002_vm12, %vm4002_vm12 }
  0x44   : > { %vm4026_vm14 = vcmp.ne.s32.totalorder %v400_v25, 15  ;;  %v334_v47 = vadd.s32 72, %v3795_v27  ;;  %v1291_v26 = vsel %vm3998_vm11, %v3655_v31, 0  ;;  %vm1405_vm2 = vmpackc.low %vm4008_vm13, %vm4008_vm13  ;;  %vm4045_vm5 = vcmp.ne.s16.totalorder %v2986_v44, 0 }
  0x45   : > { %v2987_v31 = vcombine.low %v1176_v24, %v3823_v2  ;;  %v414_v8 = vand.u32 15, %v332_v42  ;;  %vm1407_vm7 = vmpackc.low %vm4026_vm14, %vm4026_vm14  ;;  %v1178_v44 = vsel %vm1142_vm15, 65537, %v3545_v13  ;;  %v1279_v42 = vsel %vm4045_vm5, %v3666_v36, 0 }
  0x46   : > { %v2988_v11 = vcombine.low %v1178_v44, %v3823_v2 }
  0x47   : > { %vm4084_vm10 = vcmp.ne.s16.totalorder %v2987_v31, 0  ;;  %vm4088_vm11 = vcmp.ne.s32.totalorder %v414_v8, 15  ;;  %v336_v8 = vadd.s32 88, %v3795_v27 }
  0x48   : > { %v1280_v44 = vsel %vm4084_vm10, %v3686_v54, 0  ;;  %vm1409_vm14 = vmpackc.low %vm4088_vm11, %vm4088_vm11 }
  0x84   : > { %v1592_v0 = vpop.permute.xlu0 %1591  ;;  %v1594_v1 = vpop.permute.xlu1 %1593 }
  0x85   : > { %v3926_v57 = vsel %vm1599_vm3, %v1289_v15, %v1592_v0  ;;  %v3948_v15 = vld [vmem:[%s3592_s19 + $0x50] sm:$0xff]  }
  0x86   : > { %1751 = vrot.lane.b32.xlu1 %v3926_v57, %s3543_s20  ;;  %v4998_v16 = vshrl.u32 %v3948_v15, 16  ;;  %v885_v52 = vshll.u32 %v3948_v15, 16 }
  0x88   : > { %v1568_v28 = vpop.permute.xlu0 %1567  ;;  %v3992_v29 = vrot.slane %v4998_v16, 7  ;;  %v1570_v7 = vpop.permute.xlu1 %1569 }
  0x89   : > { %v3964_v0 = vsel %vm1599_vm3, %v1277_v62, %v1568_v28  ;;  %v1200_v62 = vsel %vm1164_vm8, 65537, %v3545_v13  ;;  %v3985_v28 = vsel %vm1599_vm3, %v1290_v63, %v1594_v1  ;;  %v449_v1 = vand.u32 15, %v337_v34 }
  0x8a   : > { %1589 = vrot.lane.b32.xlu1 %v3806_v53, %s3543_s20  ;;  %1703 = vrot.lane.b32.xlu0 %v3964_v0, %s3543_s20  ;;  %v2999_v22 = vcombine.low %v1200_v62, %v3823_v2  ;;  %v4016_v6 = vor.u32 %v885_v52, %v3992_v29  ;;  %v4024_v34 = vsel %vm1599_vm3, %v1278_v12, %v1570_v7  ;;  %v463_v7 = vand.u32 15, %v339_v18 }
  0x8b   : > { %vm4040_vm4 = vcmp.ne.s32.totalorder %v449_v1, 0  ;;  %v341_v12 = vadd.s32 128, %v3795_v27  ;;  %v1441_v1 = vsel %vm1405_vm2, 65537, %v3545_v13  ;;  %v428_v18 = vand.u32 15, %v334_v47 }
  0x8c   : > { %v1596_v62 = vpop.permute.xlu0 %1595  ;;  %vm4049_vm6 = vcmp.ne.s16.totalorder %v2999_v22, 0  ;;  %vm1144_vm8 = vmpackc.low %vm4040_vm4, %vm4040_vm4  ;;  %v1572_v22 = vpop.permute.xlu1 %1571  ;;  %vm4080_vm9 = vcmp.ne.s32.totalorder %v463_v7, 0  ;;  %v3002_v36 = vcombine.low %v3823_v2, %v1441_v1  ;;  %vm4129_vm2 = vcmp.ne.s16.totalorder %v2988_v11, 0 }
  0x8d   : > { %v4068_v9 = vsel %vm1599_vm3, %v1291_v26, %v1596_v62  ;;  %v1292_v63 = vsel %vm4049_vm6, %v3669_v37, 0  ;;  %v477_v62 = vand.u32 15, %v341_v12  ;;  %v1443_v37 = vsel %vm1407_vm7, 65537, %v3545_v13  ;;  %vm1146_vm13 = vmpackc.low %vm4080_vm9, %vm4080_vm9 }
  0x8e   : > { %1565 = vrot.lane.b32.xlu1 %v3545_v13, %s3543_s20  ;;  %1755 = vrot.lane.b32.xlu0 %v3985_v28, %s3543_s20  ;;  %v1180_v16 = vsel %vm1144_vm8, 65537, %v3545_v13  ;;  %v4106_v7 = vsel %vm1599_vm3, %v1279_v42, %v1572_v22  ;;  %vm4111_vm12 = vcmp.ne.s32.totalorder %v428_v18, 15  ;;  %vm1529_vm4 = vcmp.ne.s16.totalorder %v3002_v36, 0 }
  0x8f   : > { %vm4125_vm15 = vcmp.ne.s32.totalorder %v477_v62, 0  ;;  %v2989_v22 = vcombine.low %v1180_v16, %v3823_v2  ;;  %v3003_v54 = vcombine.low %v3823_v2, %v1443_v37  ;;  %vm1411_vm5 = vmpackc.low %vm4111_vm12, %vm4111_vm12  ;;  %v1182_v42 = vsel %vm1146_vm13, 65537, %v3545_v13 }
  0x90   : > { %v1598_v24 = vpop.permute.xlu0 %1597  ;;  %v1574_v58 = vpop.permute.xlu1 %1573  ;;  %v442_v26 = vand.u32 15, %v336_v8  ;;  %v338_v62 = vadd.s32 104, %v3795_v27  ;;  %vm1148_vm6 = vmpackc.low %vm4125_vm15, %vm4125_vm15  ;;  %v1281_v25 = vsel %vm4129_vm2, %v3698_v3, 0  ;;  %v4155_v11 = vsel %vm1529_vm4, %v3689_v55, 0 }
  0x91   : > { %v4109_v12 = vsel %vm1599_vm3, %v1292_v63, %v1598_v24  ;;  %v4144_v24 = vsel %vm1599_vm3, %v1280_v44, %v1574_v58  ;;  %v1445_v63 = vsel %vm1409_vm14, 65537, %v3545_v13  ;;  %vm4157_vm7 = vcmp.ne.s16.totalorder %v2989_v22, 0 }
  0x92   : > { %1583 = vrot.lane.b32.xlu1 %v3710_v33, %s3543_s20  ;;  %1707 = vrot.lane.b32.xlu0 %v4024_v34, %s3543_s20  ;;  %v2990_v37 = vcombine.low %v1182_v42, %v3823_v2  ;;  %vm1530_vm8 = vcmp.ne.s16.totalorder %v3003_v54, 0  ;;  %v3004_v16 = vcombine.low %v3823_v2, %v1445_v63  ;;  %v1447_v55 = vsel %vm1411_vm5, 65537, %v3545_v13 }
  0x93   : > { %v1184_v3 = vsel %vm1148_vm6, 65537, %v3545_v13  ;;  %vm4177_vm9 = vcmp.ne.s32.totalorder %v442_v26, 15  ;;  %v456_v44 = vand.u32 15, %v338_v62  ;;  %v340_v1 = vadd.s32 120, %v3795_v27 }
  0x94   : > { %v1576_v47 = vpop.permute.xlu0 %1575  ;;  %v1578_v18 = vpop.permute.xlu1 %1577  ;;  %v1282_v22 = vsel %vm4157_vm7, %v3704_v21, 0  ;;  %vm4185_vm10 = vcmp.ne.s16.totalorder %v2990_v37, 0  ;;  %v2991_v54 = vcombine.low %v1184_v3, %v3823_v2  ;;  %v4193_v42 = vsel %vm1530_vm8, %v3692_v56, 0  ;;  %vm1413_vm12 = vmpackc.low %vm4177_vm9, %vm4177_vm9 }
  0x95   : > { %v4175_v8 = vsel %vm1599_vm3, %v1281_v25, %v1576_v47  ;;  %vm1531_vm11 = vcmp.ne.s16.totalorder %v3004_v16, 0  ;;  %v3005_v63 = vcombine.low %v3823_v2, %v1447_v55  ;;  %v4202_v21 = vsel %vm1599_vm3, %v1282_v22, %v1578_v18 }
  0x96   : > { %1759 = vrot.lane.b32.xlu1 %v4068_v9, %s3543_s20  ;;  %1585 = vrot.lane.b32.xlu0 %v3887_v4, %s3543_s20  ;;  %vm4204_vm13 = vcmp.ne.s32.totalorder %v456_v44, 15  ;;  %v470_v62 = vand.u32 15, %v340_v1  ;;  %v342_v56 = vadd.s32 136, %v3795_v27  ;;  %v1283_v25 = vsel %vm4185_vm10, %v3720_v45, 0 }
  0x97   : > { %v1449_v36 = vsel %vm1413_vm12, 65537, %v3545_v13  ;;  %vm4213_vm14 = vcmp.ne.s16.totalorder %v2991_v54, 0  ;;  %v4220_v16 = vsel %vm1531_vm11, %v3695_v61, 0  ;;  %vm1532_vm15 = vcmp.ne.s16.totalorder %v3005_v63, 0  ;;  %vm1415_vm2 = vmpackc.low %vm4204_vm13, %vm4204_vm13 }
  0x98   : > { %v1580_v47 = vpop.permute.xlu0 %1579  ;;  %vm4227_vm4 = vcmp.ne.s32.totalorder %v470_v62, 15  ;;  %v484_v3 = vand.u32 15, %v342_v56  ;;  %v344_v58 = vadd.s32 152, %v3795_v27  ;;  %v3006_v61 = vcombine.low %v3823_v2, %v1449_v36 }
  0x99   : > { %v4232_v55 = vsel %vm1599_vm3, %v1283_v25, %v1580_v47  ;;  %v1284_v1 = vsel %vm4213_vm14, %v3734_v51, 0  ;;  %v1451_v18 = vsel %vm1415_vm2, 65537, %v3545_v13  ;;  %v4243_v22 = vsel %vm1532_vm15, %v3701_v17, 0  ;;  %vm1417_vm5 = vmpackc.low %vm4227_vm4, %vm4227_vm4 }
  0x9a   : > { %1711 = vrot.lane.b32.xlu1 %v4106_v7, %s3543_s20  ;;  %1763 = vrot.lane.b32.xlu0 %v4109_v12, %s3543_s20  ;;  %vm4250_vm6 = vcmp.ne.s32.totalorder %v484_v3, 15  ;;  %v498_v51 = vand.u32 15, %v344_v58  ;;  %v348_v63 = vadd.s32 184, %v3795_v27  ;;  %vm1533_vm7 = vcmp.ne.s16.totalorder %v3006_v61, 0 }
  0x9b   : > { %v3007_v17 = vcombine.low %v3823_v2, %v1451_v18  ;;  %v1453_v26 = vsel %vm1417_vm5, 65537, %v3545_v13  ;;  %vm1419_vm8 = vmpackc.low %vm4250_vm6, %vm4250_vm6  ;;  %v4268_v62 = vsel %vm1533_vm7, %v3707_v23, 0  ;;  %v352_v47 = vadd.s32 216, %v3795_v27 }
  0x9c   : > { %v1582_v44 = vpop.permute.xlu0 %1581  ;;  %vm1313_vm9 = vcmp.ne.s32.totalorder %v498_v51, 15  ;;  %v526_v56 = vand.u32 15, %v348_v63  ;;  %v3008_v25 = vcombine.low %v3823_v2, %v1453_v26  ;;  %v1455_v36 = vsel %vm1419_vm8, 65537, %v3545_v13 }
  0x9d   : > { %v4255_v54 = vsel %vm1599_vm3, %v1284_v1, %v1582_v44  ;;  %vm1534_vm10 = vcmp.ne.s16.totalorder %v3007_v17, 0  ;;  %vm1421_vm11 = vmpackc.low %vm1313_vm9, %vm1313_vm9  ;;  %v554_v23 = vand.u32 15, %v352_v47  ;;  %v356_v3 = vadd.s32 248, %v3795_v27 }
  0x9e   : > { %1587 = vrot.lane.b32.xlu1 %v3948_v15, %s3543_s20  ;;  %1715 = vrot.lane.b32.xlu0 %v4144_v24, %s3543_s20  ;;  %v4276_v37 = vsel %vm1534_vm10, %v3713_v35, 0  ;;  %vm4278_vm12 = vcmp.ne.s32.totalorder %v526_v56, 15  ;;  %vm1535_vm13 = vcmp.ne.s16.totalorder %v3008_v25, 0  ;;  %v3009_v58 = vcombine.low %v3823_v2, %v1455_v36 }
  0x9f   : > { %v1457_v61 = vsel %vm1421_vm11, 65537, %v3545_v13  ;;  %v980_v35 = vor.u32 %v3724_v48, %v866_v40  ;;  %vm1425_vm14 = vmpackc.low %vm4278_vm12, %vm4278_vm12  ;;  %v4294_v44 = vsel %vm1535_vm13, %v3717_v43, 0  ;;  %v4298_v1 = vrot.slane %v877_v14, 1  ;;  %v4319_v14 = vld [vmem:[%s4990_s1 + $0x100] sm:$0xff]  }
  0xa0   : > { %vm4300_vm15 = vcmp.ne.s32.totalorder %v554_v23, 15  ;;  %v582_v31 = vand.u32 15, %v356_v3  ;;  %vm1536_vm2 = vcmp.ne.s16.totalorder %v3009_v58, 0  ;;  %v3010_v33 = vcombine.low %v3823_v2, %v1457_v61  ;;  %3384 = vmatprep.subr.bf16.mxu0 %v4319_v14 }
  0xa1   : > { %v893_v48 = vshll.u32 %v3806_v53, 16  ;;  %v4308_v40 = vrot.slane %v885_v52, 1  ;;  %v1461_v43 = vsel %vm1425_vm14, 65537, %v3545_v13  ;;  %vm1429_vm4 = vmpackc.low %vm4300_vm15, %vm4300_vm15  ;;  %v4322_v51 = vsel %vm1536_vm2, %v3730_v49, 0 }
  0xa2   : > { %1705 = vrot.lane.b32.xlu1 %v4155_v11, %s3543_s20  ;;  %1719 = vrot.lane.b32.xlu0 %v4175_v8, %s3543_s20  ;;  %v982_v52 = vsel %vm951_vm1, %v980_v35, %v4298_v1  ;;  %vm1325_vm5 = vcmp.ne.s32.totalorder %v582_v31, 15  ;;  %vm1537_vm6 = vcmp.ne.s16.totalorder %v3010_v33, 0  ;;  %v5067_v63 = vshrl.u32 %v3948_v15, 16 }
  0xa3   : > { %v987_v26 = vrot.slane %v893_v48, 1  ;;  %v3012_v56 = vcombine.low %v3823_v2, %v1461_v43  ;;  %v1465_v47 = vsel %vm1429_vm4, 65537, %v3545_v13  ;;  %vm1433_vm7 = vmpackc.low %vm1325_vm5, %vm1325_vm5  ;;  %v4334_v49 = vsel %vm1537_vm6, %v982_v52, 0 }
  0xa4   : > { %v986_v17 = vor.u32 %v4308_v40, %v5067_v63  ;;  %v3014_v15 = vcombine.low %v3823_v2, %v1465_v47  ;;  %v1469_v36 = vsel %vm1433_vm7, 65537, %v3545_v13  ;;  %v5068_v23 = vshrl.u32 %v3608_v5, 16 }
  0xa5   : > { %vm1539_vm8 = vcmp.ne.s16.totalorder %v3012_v56, 0  ;;  %v5069_v58 = vshll.u32 %v3629_v19, 16  ;;  %v3016_v35 = vcombine.low %v3823_v2, %v1469_v36  ;;  %v349_v33 = vadd.s32 192, %v3795_v27 }
  0xa6   : > { %1709 = vrot.lane.b32.xlu1 %v4193_v42, %s3543_s20  ;;  %1723 = vrot.lane.b32.xlu0 %v4202_v21, %s3543_s20  ;;  %v988_v25 = vsel %vm951_vm1, %v986_v17, %v987_v26  ;;  %vm1541_vm9 = vcmp.ne.s16.totalorder %v3014_v15, 0  ;;  %v998_v3 = vor.u32 %v3961_v38, %v5068_v23  ;;  %v350_v38 = vadd.s32 200, %v3795_v27 }
  0xa7   : > { %v4341_v45 = vsel %vm1539_vm8, %v988_v25, 0  ;;  %v4348_v61 = vrot.slane %v5069_v58, 1  ;;  %v4354_v18 = vsel %vm1541_vm9, %v3769_v10, 0  ;;  %vm1543_vm10 = vcmp.ne.s16.totalorder %v3016_v35, 0 }
  0xa8   : > { %v540_v43 = vand.u32 15, %v350_v38  ;;  %v326_v10 = vadd.s32 8, %v3795_v27  ;;  %v533_v52 = vand.u32 15, %v349_v33  ;;  %v365_v17 = vand.u32 15, %v3795_v27 }
  0xa9   : > { %v1000_v31 = vsel %vm951_vm1, %v998_v3, %v4348_v61  ;;  %v343_v56 = vadd.s32 144, %v3795_v27  ;;  %v354_v25 = vadd.s32 232, %v3795_v27  ;;  %v5070_v15 = vshrl.u32 %v3806_v53, 16 }
  0xaa   : > { %1713 = vrot.lane.b32.xlu1 %v4220_v16, %s3543_s20  ;;  %1727 = vrot.lane.b32.xlu0 %v4232_v55, %s3543_s20  ;;  %v4360_v5 = vsel %vm1543_vm10, %v1000_v31, 0  ;;  %vm1319_vm11 = vcmp.ne.s32.totalorder %v540_v43, 15  ;;  %v372_v63 = vand.u32 15, %v326_v10  ;;  %vm1048_vm13 = vcmp.ne.s32.totalorder %v533_v52, 0 }
  0xab   : > { %vm1427_vm12 = vmpackc.low %vm1319_vm11, %vm1319_vm11  ;;  %v989_v36 = vor.u32 %v987_v26, %v5070_v15  ;;  %vm4373_vm4 = vcmp.ne.s32.totalorder %v365_v17, 0  ;;  %v491_v3 = vand.u32 15, %v343_v56  ;;  %v345_v58 = vadd.s32 160, %v3795_v27 }
  0xac   : > { %vm1295_vm14 = vcmp.ne.s32.totalorder %v372_v63, 15  ;;  %v1463_v47 = vsel %vm1427_vm12, 65537, %v3545_v13  ;;  %vm1156_vm15 = vmpackc.low %vm1048_vm13, %vm1048_vm13  ;;  %v568_v33 = vand.u32 15, %v354_v25  ;;  %v895_v26 = vor.u32 %v893_v48, %v3847_v32 }
  0xad   : > { %vm1403_vm2 = vmpackc.low %vm1295_vm14, %vm1295_vm14  ;;  %v3013_v35 = vcombine.low %v3823_v2, %v1463_v47  ;;  %v1192_v31 = vsel %vm1156_vm15, 65537, %v3545_v13  ;;  %v991_v53 = vsel %vm951_vm1, %v989_v36, %v3751_v60  ;;  %vm4387_vm6 = vcmp.ne.s32.totalorder %v491_v3, 0 }
  0xae   : > { %1717 = vrot.lane.b32.xlu1 %v4243_v22, %s3543_s20  ;;  %1731 = vrot.lane.b32.xlu0 %v4255_v54, %s3543_s20  ;;  %v1439_v38 = vsel %vm1403_vm2, 65537, %v3545_v13  ;;  %vm1132_vm5 = vmpackc.low %vm4373_vm4, %vm4373_vm4  ;;  %v505_v10 = vand.u32 15, %v345_v58  ;;  %v2995_v52 = vcombine.low %v1192_v31, %v3823_v2  ;;  %v4393_v63 = vrot.slane %v3545_v13, 1 }
  0xaf   : > { %vm1540_vm7 = vcmp.ne.s16.totalorder %v3013_v35, 0  ;;  %v3001_v17 = vcombine.low %v3823_v2, %v1439_v38  ;;  %vm948_vm8 = vcmask 1040384   ;;  %v1168_v56 = vsel %vm1132_vm5, 65537, %v3545_v13  ;;  %vm1150_vm9 = vmpackc.low %vm4387_vm6, %vm4387_vm6 }
  0xb0   : > { %vm4400_vm10 = vcmp.ne.s32.totalorder %v568_v33, 15  ;;  %v4404_v32 = vsel %vm1540_vm7, %v991_v53, 0  ;;  %v896_v48 = vsel %vm793_vm0, %v3992_v29, %v895_v26  ;;  %vm4408_vm11 = vcmp.ne.s32.totalorder %v505_v10, 0  ;;  %vm4425_vm14 = vmand %vm948_vm8, %vm793_vm0  ;;  %v3500_v53 = vld [vmem:[%s4990_s1 + $0x80] sm:$0xff]  }
  0xb1   : > { %v347_v25 = vadd.s32 176, %v3795_v27  ;;  %vm4413_vm12 = vcmp.ne.s16.totalorder %v2995_v52, 0  ;;  %v955_v36 = vsel %vm951_vm1, %v4393_v63, %v3682_v46  ;;  %vm4420_vm13 = vcmp.ne.s16.totalorder %v3001_v17, 0  ;;  %vm1431_vm15 = vmpackc.low %vm4400_vm10, %vm4400_vm10  ;;  %v3501_v17 = vld [vmem:[%s4990_s1 + $0xc8] sm:$0xff]  }
  0xb2   : > { %1721 = vrot.lane.b32.xlu1 %v4268_v62, %s3543_s20  ;;  %v2983_v3 = vcombine.low %v1168_v56, %v3823_v2  ;;  %v1186_v35 = vsel %vm1150_vm9, 65537, %v3545_v13  ;;  %vm1152_vm2 = vmpackc.low %vm4408_vm11, %vm4408_vm11  ;;  %v1288_v31 = vsel %vm4413_vm12, %v896_v48, 0  ;;  %v1546_v38 = vsel %vm4420_vm13, %v955_v36, 0  ;;  %v3502_v36 = vld [vmem:[%s4990_s1 + $0x88] sm:$0xff]  }
  0xb3   : > { %v519_v33 = vand.u32 15, %v347_v25  ;;  %v950_v26 = vsel %vm4425_vm14, 0, %v3869_v50  ;;  %v2992_v43 = vcombine.low %v1186_v35, %v3823_v2  ;;  %v1467_v56 = vsel %vm1431_vm15, 65537, %v3545_v13 }
  0xb4   : > { %vm1258_vm4 = vcmp.ne.s16.totalorder %v2983_v3, 0  ;;  %v1188_v60 = vsel %vm1152_vm2, 65537, %v3545_v13  ;;  %v3015_v29 = vcombine.low %v3823_v2, %v1467_v56  ;;  %v346_v35 = vadd.s32 168, %v3795_v27 }
  0xb5   : > { %v1276_v25 = vsel %vm1258_vm4, %v950_v26, 0  ;;  %vm4466_vm5 = vcmp.ne.s32.totalorder %v519_v33, 0  ;;  %vm4473_vm6 = vcmp.ne.s16.totalorder %v2992_v43, 0  ;;  %v2993_v3 = vcombine.low %v1188_v60, %v3823_v2  ;;  %v3516_v33 = vld [vmem:[%s4990_s1 + $0x108] sm:$0xff]  }
  0xb6   : > { %1725 = vrot.lane.b32.xlu1 %v4276_v37, %s3543_s20  ;;  %vm1154_vm7 = vmpackc.low %vm4466_vm5, %vm4466_vm5  ;;  %v1285_v43 = vsel %vm4473_vm6, %v3917_v39, 0  ;;  %vm1542_vm8 = vcmp.ne.s16.totalorder %v3015_v29, 0  ;;  %v512_v56 = vand.u32 15, %v346_v35  ;;  %v3505_v39 = vld [vmem:[%s4990_s1 + $0xd8] sm:$0xff]  }
  0xb7   : > { %vm4504_vm9 = vcmp.ne.s16.totalorder %v2993_v3, 0  ;;  %v4528_v23 = vsel %vm1542_vm8, %v3982_v41, 0  ;;  %vm1021_vm8 = vcmask 1047552  }
  0xb8   : > { %v1286_v29 = vsel %vm4504_vm9, %v3996_v20, 0  ;;  %vm4537_vm10 = vcmp.ne.s32.totalorder %v512_v56, 15  ;;  %v3507_v20 = vld [vmem:[%s4990_s1 + $0xe0] sm:$0xff]   ;;  %vm1022_vm9 = vmand %vm1021_vm8, %vm951_vm1 }
  0xb9   : > { %vm1423_vm11 = vmpackc.low %vm4537_vm10, %vm4537_vm10 }
  0xba   : > { %1729 = vrot.lane.b32.xlu1 %v4294_v44, %s3543_s20 }
  0xbe   : > { %1733 = vrot.lane.b32.xlu1 %v4322_v51, %s3543_s20 }
  0xc2   : > { %1737 = vrot.lane.b32.xlu1 %v4334_v49, %s3543_s20 }
  0xc6   : > { %1745 = vrot.lane.b32.xlu1 %v4341_v45, %s3543_s20 }
  0xca   : > { %1753 = vrot.lane.b32.xlu1 %v4354_v18, %s3543_s20 }
  0xce   : > { %1761 = vrot.lane.b32.xlu1 %v4360_v5, %s3543_s20 }
  0xf8   : > { %v4430_v58 = vpop.permute.xlu1 %1751 }
  0xf9   : > { %v1850_v46 = vsel %vm1599_vm3, %v4404_v32, %v4430_v58 }
  0xfa   : > { %2321 = vmatprep.mubr.bf16.mxu1 %v1850_v46 }
  0xfc   : > { %v1590_v10 = vpop.permute.xlu1 %1589  ;;  %v4453_v52 = vpop.permute.xlu0 %1703 }
  0xfd   : > { %v4461_v48 = vsel %vm1599_vm3, %v1288_v31, %v1590_v10  ;;  %v1802_v47 = vsel %vm1599_vm3, %v1546_v38, %v4453_v52  ;;  %v3503_v38 = vld [vmem:[%s4990_s1 + $0xd0] sm:$0xff]  }
  0xfe   : > { %2322 = vmatmul.mubr.bf16.vlgmr.msra.gmra.mrb[0].mxu1 %v4461_v48  ;;  %2225 = vmatprep.mubr.bf16.mxu0 %v1802_v47  ;;  %v3504_v10 = vld [vmem:[%s4990_s1 + $0x90] sm:$0xff]  }
  0xff   : > { %3253 = vmatpush3.bf16.msra.mxu1 %v3500_v53 }
 0x100   : > { %v4480_v46 = vpop.permute.xlu1 %1565  ;;  %3254 = vmatprep.subr.bf16.mxu1 %v3501_v17  ;;  %v4482_v31 = vpop.permute.xlu0 %1755 }
 0x101   : > { %v1602_v53 = vsel %vm1599_vm3, %v1276_v25, %v4480_v46  ;;  %v1854_v26 = vsel %vm1599_vm3, %v4354_v18, %v4482_v31  ;;  %v1190_v25 = vsel %vm1154_vm7, 65537, %v3545_v13 }
 0x102   : > { %2226 = vmatmul.mubr.bf16.vlgmr.msra.gmra.mrb[0].mxu0 %v1602_v53  ;;  %2329 = vmatprep.mubr.bf16.mxu1 %v1854_v26  ;;  %v2994_v3 = vcombine.low %v1190_v25, %v3823_v2  ;;  %v1459_v25 = vsel %vm1423_vm11, 65537, %v3545_v13 }
 0x103   : > { %3255 = vmatpush3.bf16.msra.mxu1 %v3502_v36  ;;  %3385 = vmatpush3.bf16.msra.mxu0 %v4319_v14  ;;  %v3517_v14 = vld [vmem:[%s4990_s1 + $0x110] sm:$0xff]  }
 0x104   : > { %v1584_v60 = vpop.permute.xlu1 %1583  ;;  %3256 = vmatprep.subr.bf16.mxu1 %v3503_v38  ;;  %v4509_v47 = vpop.permute.xlu0 %1707  ;;  %3386 = vmatprep.subr.bf16.mxu0 %v3516_v33  ;;  %vm4567_vm12 = vcmp.ne.s16.totalorder %v2994_v3, 0  ;;  %v3511_v3 = vld [vmem:[%s4990_s1 + $0xf0] sm:$0xff]  }
 0x105   : > { %v4516_v15 = vsel %vm1599_vm3, %v1285_v43, %v1584_v60  ;;  %v1806_v36 = vsel %vm1599_vm3, %v4155_v11, %v4509_v47  ;;  %v3506_v11 = vld [vmem:[%s4990_s1 + $0x98] sm:$0xff]   ;;  %v3509_v60 = vld [vmem:[%s4990_s1 + $0xe8] sm:$0xff]  }
 0x106   : > { %1735 = vrot.lane.b32.xlu0 %v4516_v15, %s3543_s20  ;;  %2330 = vmatmul.mubr.bf16.gmra.mrb[4].mxu1 %v3926_v57  ;;  %v3518_v43 = vld [vmem:[%s4990_s1 + $0x118] sm:$0xff]  }
 0x107   : > { %3257 = vmatpush3.bf16.msra.mxu1 %v3504_v10  ;;  %2233 = vmatprep.mubr.bf16.mxu0 %v1806_v36  ;;  %v888_v10 = vsel %vm793_vm0, %v3930_v59, %v4016_v6 }
 0x108   : > { %v4541_v38 = vpop.permute.xlu1 %1759  ;;  %3258 = vmatprep.subr.bf16.mxu1 %v3505_v39  ;;  %v1586_v41 = vpop.permute.xlu0 %1585  ;;  %3387 = vmatpush3.bf16.msra.mxu0 %v3516_v33  ;;  %v3508_v33 = vld [vmem:[%s4990_s1 + $0xa0] sm:$0xff]   ;;  %v1287_v36 = vsel %vm4567_vm12, %v888_v10, 0 }
 0x109   : > { %v1858_v53 = vsel %vm1599_vm3, %v4528_v23, %v4541_v38  ;;  %v4550_v26 = vsel %vm1599_vm3, %v1286_v29, %v1586_v41  ;;  %3388 = vmatprep.subr.bf16.mxu0 %v3517_v14  ;;  %v5095_v41 = vshrl.u32 %v3887_v4, 16  ;;  %v3512_v4 = vld [vmem:[%s4990_s1 + $0xb0] sm:$0xff]  }
 0x10a   : > { %2234 = vmatmul.mubr.bf16.gmra.mrb[4].mxu0 %v3964_v0  ;;  %2337 = vmatprep.mubr.bf16.mxu1 %v1858_v53  ;;  %v358_v0 = vadd.s32 264, %v3795_v27  ;;  %v3011_v53 = vcombine.low %v3823_v2, %v1459_v25 }
 0x10b   : > { %3259 = vmatpush3.bf16.msra.mxu1 %v3506_v11  ;;  %1739 = vrot.lane.b32.xlu0 %v4550_v26, %s3543_s20 }
 0x10c   : > { %v4572_v56 = vpop.permute.xlu1 %1711  ;;  %3260 = vmatprep.subr.bf16.mxu1 %v3507_v20  ;;  %v4577_v39 = vpop.permute.xlu0 %1763  ;;  %3389 = vmatpush3.bf16.msra.mxu0 %v3517_v14  ;;  %v3510_v14 = vld [vmem:[%s4990_s1 + $0xa8] sm:$0xff]   ;;  %v596_v29 = vand.u32 15, %v358_v0  ;;  %v983_v20 = vor.u32 %v4298_v1, %v5095_v41  ;;  %vm1538_vm14 = vcmp.ne.s16.totalorder %v3011_v53, 0 }
 0x10d   : > { %v1810_v59 = vsel %vm1599_vm3, %v4193_v42, %v4572_v56  ;;  %v1862_v6 = vsel %vm1599_vm3, %v4360_v5, %v4577_v39  ;;  %3390 = vmatprep.subr.bf16.mxu0 %v3518_v43 }
 0x10e   : > { %2338 = vmatmul.mubr.bf16.gmra.mrb[8].mxu1 %v3985_v28  ;;  %2241 = vmatprep.mubr.bf16.mxu0 %v1810_v59  ;;  %vm4613_vm13 = vcmp.ne.s32.totalorder %v596_v29, 15  ;;  %v985_v17 = vsel %vm951_vm1, %v983_v20, %v4308_v40  ;;  %v3514_v40 = vld [vmem:[%s4990_s1 + $0xb8] sm:$0xff]  }
 0x10f   : > { %3261 = vmatpush3.bf16.msra.mxu1 %v3508_v33  ;;  %2345 = vmatprep.mubr.bf16.mxu1 %v1862_v6  ;;  %vm1435_vm15 = vmpackc.low %vm4613_vm13, %vm4613_vm13 }
 0x110   : > { %v1588_v11 = vpop.permute.xlu1 %1587  ;;  %3262 = vmatprep.subr.bf16.mxu1 %v3509_v60  ;;  %v4595_v35 = vpop.permute.xlu0 %1715  ;;  %3391 = vmatpush3.bf16.msra.mxu0 %v3518_v43  ;;  %v3513_v43 = vld [vmem:[%s4990_s1 + $0xf8] sm:$0xff]   ;;  %v4629_v60 = vsel %vm1538_vm14, %v985_v17, 0  ;;  %v1471_v6 = vsel %vm1435_vm15, 65537, %v3545_v13 }
 0x111   : > { %v4602_v33 = vsel %vm1599_vm3, %v1287_v36, %v1588_v11  ;;  %v1814_v10 = vsel %vm1599_vm3, %v4220_v16, %v4595_v35 }
 0x112   : > { %2242 = vmatmul.mubr.bf16.gmra.mrb[8].mxu0 %v4024_v34  ;;  %1743 = vrot.lane.b32.xlu0 %v4602_v33, %s3543_s20 }
 0x113   : > { %3263 = vmatpush3.bf16.msra.mxu1 %v3510_v14  ;;  %2249 = vmatprep.mubr.bf16.mxu0 %v1814_v10  ;;  %v3017_v14 = vcombine.low %v3823_v2, %v1471_v6 }
 0x114   : > { %3264 = vmatprep.subr.bf16.mxu1 %v3511_v3  ;;  %v1720_v0 = vpop.permute.xlu0 %1719  ;;  %v1706_v25 = vpop.permute.xlu1 %1705 }
 0x115   : > { %v1818_v59 = vsel %vm1599_vm3, %v4243_v22, %v1720_v0  ;;  %v1768_v29 = vsel %vm1599_vm3, %v4453_v52, %v1706_v25  ;;  %vm1544_vm2 = vcmp.ne.s16.totalorder %v3017_v14, 0 }
 0x116   : > { %1747 = vrot.lane.b32.xlu0 %v4461_v48, %s3543_s20  ;;  %2346 = vmatmul.mubr.bf16.gmra.mrb[12].mxu1 %v4068_v9 }
 0x117   : > { %3265 = vmatpush3.bf16.msra.mxu1 %v3512_v4  ;;  %2386 = vmatprep.mubr.bf16.mxu1 %v4024_v34  ;;  %v5098_v34 = vshrl.u32 %v3629_v19, 16 }
 0x118   : > { %3266 = vmatprep.subr.bf16.mxu1 %v3513_v43  ;;  %v1724_v11 = vpop.permute.xlu0 %1723 }
 0x119   : > { %v1001_v36 = vor.u32 %v4348_v61, %v5098_v34  ;;  %v1822_v19 = vsel %vm1599_vm3, %v4268_v62, %v1724_v11  ;;  %v1710_v61 = vpop.permute.xlu1 %1709 }
 0x11a   : > { %1741 = vrot.lane.b32.xlu0 %v4629_v60, %s3543_s20  ;;  %2250 = vmatmul.mubr.bf16.gmra.mrb[12].mxu0 %v4106_v7  ;;  %v1769_v41 = vsel %vm1599_vm3, %v4509_v47, %v1710_v61 }
 0x11b   : > { %3267 = vmatpush3.bf16.msra.mxu1 %v3514_v40  ;;  %2257 = vmatprep.mubr.bf16.mxu0 %v1818_v59  ;;  %v1002_v3 = vsel %vm951_vm1, %v1001_v36, %v4393_v63  ;;  %vm2836_vm1 = vcmask 76800  }
 0x11c   : > { %v4656_v52 = vsel %vm1544_vm2, %v1002_v3, 0 }
 0x11d   : > { %v1714_v53 = vpop.permute.xlu1 %1713 }
 0x11e   : > { %1749 = vrot.lane.b32.xlu0 %v4404_v32, %s3543_s20  ;;  %2387 = vmatmul.mubr.bf16.vlgmr.msra.gmra.mrb[16].mxu1 %v1768_v29  ;;  %v1770_v10 = vsel %vm1599_vm3, %v4572_v56, %v1714_v53 }
 0x11f   : > { %2394 = vmatprep.mubr.bf16.mxu1 %v4106_v7  ;;  %v1728_v7 = vpop.permute.xlu0 %1727 }
 0x120   : > { %v1826_v20 = vsel %vm1599_vm3, %v4276_v37, %v1728_v7 }
 0x121   : > { %v1718_v1 = vpop.permute.xlu1 %1717 }
 0x122   : > { %1757 = vrot.lane.b32.xlu0 %v4528_v23, %s3543_s20  ;;  %2258 = vmatmul.mubr.bf16.gmra.mrb[16].mxu0 %v4144_v24 }
 0x123   : > { %2265 = vmatprep.mubr.bf16.mxu0 %v1822_v19  ;;  %v1732_v4 = vpop.permute.xlu0 %1731 }
 0x124   : > { %v1830_v47 = vsel %vm1599_vm3, %v4294_v44, %v1732_v4 }
 0x125   : > { %v1722_v43 = vpop.permute.xlu1 %1721 }
 0x126   : > { %1765 = vrot.lane.b32.xlu0 %v4656_v52, %s3543_s20  ;;  %2395 = vmatmul.mubr.bf16.gmra.mrb[20].mxu1 %v1769_v41  ;;  %v1772_v56 = vsel %vm1599_vm3, %v1720_v0, %v1722_v43  ;;  %v359_v41 = vadd.s32 272, %v3795_v27 }
 0x127   : > { %2402 = vmatprep.mubr.bf16.mxu1 %v4144_v24  ;;  %v1771_v24 = vsel %vm1599_vm3, %v4595_v35, %v1718_v1 }
 0x12a   : > { %2266 = vmatmul.mubr.bf16.gmra.mrb[20].mxu0 %v4175_v8 }
 0x12b   : > { %2273 = vmatprep.mubr.bf16.mxu0 %v1826_v20 }
 0x12e   : > { %2403 = vmatmul.mubr.bf16.gmra.mrb[24].mxu1 %v1770_v10 }
 0x12f   : > { %2410 = vmatprep.mubr.bf16.mxu1 %v4175_v8  ;;  %v1726_v8 = vpop.permute.xlu1 %1725 }
 0x130   : > { %v1773_v17 = vsel %vm1599_vm3, %v1724_v11, %v1726_v8 }
 0x132   : > { %2274 = vmatmul.mubr.bf16.gmra.mrb[24].mxu0 %v4202_v21 }
 0x133   : > { %2281 = vmatprep.mubr.bf16.mxu0 %v1830_v47  ;;  %v1730_v40 = vpop.permute.xlu1 %1729 }
 0x134   : > { %v1774_v35 = vsel %vm1599_vm3, %v1728_v7, %v1730_v40 }
 0x136   : > { %2411 = vmatmul.mubr.bf16.gmra.mrb[28].mxu1 %v1771_v24 }
 0x137   : > { %2418 = vmatprep.mubr.bf16.mxu1 %v4202_v21  ;;  %v1734_v21 = vpop.permute.xlu1 %1733 }
 0x138   : > { %v1775_v59 = vsel %vm1599_vm3, %v1732_v4, %v1734_v21 }
 0x13a   : > { %2282 = vmatmul.mubr.bf16.gmra.mrb[28].mxu0 %v4232_v55 }
 0x13b   : > { %v1738_v0 = vpop.permute.xlu1 %1737 }
 0x13e   : > { %2419 = vmatmul.mubr.bf16.gmra.mrb[32].mxu1 %v1772_v56 }
 0x13f   : > { %2426 = vmatprep.mubr.bf16.mxu1 %v4232_v55 }
 0x146   : > { %2427 = vmatmul.mubr.bf16.gmra.mrb[36].mxu1 %v1773_v17 }
 0x147   : > { %2434 = vmatprep.mubr.bf16.mxu1 %v4255_v54 }
 0x14e   : > { %2435 = vmatmul.mubr.bf16.gmra.mrb[40].mxu1 %v1774_v35 }
 0x14f   : > { %2442 = vmatprep.mubr.bf16.mxu1 %v4516_v15 }
 0x156   : > { %2443 = vmatmul.mubr.bf16.gmra.mrb[44].mxu1 %v1775_v59 }
 0x157   : > { %2450 = vmatprep.mubr.bf16.mxu1 %v4550_v26 }
 0x178   : > { %v1736_v55 = vpop.permute.xlu0 %1735 }
 0x179   : > { %v1834_v6 = vsel %vm1599_vm3, %v4322_v51, %v1736_v55  ;;  %v1776_v25 = vsel %vm1599_vm3, %v1736_v55, %v1738_v0 }
 0x17a   : > { %2289 = vmatprep.mubr.bf16.mxu0 %v1834_v6  ;;  %2451 = vmatmul.mubr.bf16.gmra.mrb[48].mxu1 %v1776_v25 }
 0x17b   : > { %2290 = vmatmul.mubr.bf16.gmra.mrb[32].mxu0 %v4255_v54  ;;  %2458 = vmatprep.mubr.bf16.mxu1 %v4602_v33 }
 0x17d   : > { %v1740_v34 = vpop.permute.xlu0 %1739 }
 0x17e   : > { %v1838_v36 = vsel %vm1599_vm3, %v4334_v49, %v1740_v34 }
 0x17f   : > { %2297 = vmatprep.mubr.bf16.mxu0 %v1838_v36 }
 0x183   : > { %2298 = vmatmul.mubr.bf16.gmra.mrb[36].mxu0 %v4516_v15  ;;  %v1746_v15 = vpop.permute.xlu1 %1745 }
 0x184   : > { %v1744_v14 = vpop.permute.xlu0 %1743 }
 0x185   : > { %v1842_v29 = vsel %vm1599_vm3, %v4629_v60, %v1744_v14  ;;  %v1778_v61 = vsel %vm1599_vm3, %v1744_v14, %v1746_v15 }
 0x186   : > { %2305 = vmatprep.mubr.bf16.mxu0 %v1842_v29 }
 0x188   : > { %v1748_v11 = vpop.permute.xlu0 %1747 }
 0x189   : > { %v1846_v54 = vsel %vm1599_vm3, %v4341_v45, %v1748_v11 }
 0x18b   : > { %2306 = vmatmul.mubr.bf16.gmra.mrb[40].mxu0 %v4550_v26 }
 0x18c   : > { %2313 = vmatprep.mubr.bf16.mxu0 %v1846_v54  ;;  %v1742_v3 = vpop.permute.xlu0 %1741 }
 0x18d   : > { %v1777_v19 = vsel %vm1599_vm3, %v1740_v34, %v1742_v3 }
 0x18e   : > { %2459 = vmatmul.mubr.bf16.gmra.mrb[52].mxu1 %v1777_v19 }
 0x18f   : > { %2466 = vmatprep.mubr.bf16.mxu1 %v4461_v48 }
 0x190   : > { %v1750_v26 = vpop.permute.xlu0 %1749 }
 0x191   : > { %v1779_v48 = vsel %vm1599_vm3, %v1748_v11, %v1750_v26 }
 0x193   : > { %2314 = vmatmul.mubr.bf16.gmra.mrb[44].mxu0 %v4602_v33  ;;  %v1754_v33 = vpop.permute.xlu1 %1753 }
 0x194   : > { %3392 = vmatprep.mubr.msk.bf16.mxu0 %vm1599_vm3, %v4193_v42  ;;  %v603_v42 = vand.u32 15, %v359_v41 }
 0x196   : > { %2467 = vmatmul.mubr.bf16.gmra.mrb[56].mxu1 %v1778_v61  ;;  %vm1058_vm4 = vcmp.ne.s32.totalorder %v603_v42, 0 }
 0x197   : > { %2474 = vmatprep.mubr.bf16.mxu1 %v3926_v57  ;;  %v1780_v57 = vsel %vm1599_vm3, %v4430_v58, %v1754_v33  ;;  %vm1166_vm5 = vmpackc.low %vm1058_vm4, %vm1058_vm4  ;;  %v360_v58 = vadd.s32 280, %v3795_v27 }
 0x19b   : > { %3393 = vmatmul.mubr.msk.bf16.vlgmr.msra.gmra.mrb[48].mxu0 %vm1599_vm3, %v4220_v16  ;;  %v1202_v16 = vsel %vm1166_vm5, 65537, %v3545_v13 }
 0x19c   : > { %3396 = vmatprep.mubr.msk.bf16.mxu0 %vm1599_vm3, %v4243_v22  ;;  %v1758_v22 = vpop.permute.xlu0 %1757 }
 0x19e   : > { %2475 = vmatmul.mubr.bf16.gmra.mrb[60].mxu1 %v1779_v48 }
 0x19f   : > { %2482 = vmatprep.mubr.bf16.mxu1 %v3985_v28  ;;  %v3000_v28 = vcombine.low %v1202_v16, %v3823_v2 }
 0x1a1   : > { %vm1275_vm6 = vcmp.ne.s16.totalorder %v3000_v28, 0  ;;  %v4777_v28 = vld [vmem:[%s4991_s2] ss:$0 sm:$0xff] }
 0x1a3   : > { %3397 = vmatmul.mubr.msk.bf16.gmra.mrb[52].mxu0 %vm1599_vm3, %v4268_v62  ;;  %v1781_v62 = vsel %vm1599_vm3, %v4482_v31, %v1758_v22 }
 0x1a4   : > { %3400 = vmatprep.mubr.msk.bf16.mxu0 %vm1599_vm3, %v4276_v37  ;;  %v1762_v37 = vpop.permute.xlu1 %1761 }
 0x1a6   : > { %2483 = vmatmul.mubr.bf16.gmra.mrb[64].mxu1 %v1780_v57 }
 0x1a7   : > { %2490 = vmatprep.mubr.bf16.mxu1 %v4068_v9  ;;  %v929_v9 = vsel %vm793_vm0, %v3652_v30, %v3869_v50  ;;  %v1766_v30 = vpop.permute.xlu0 %1765  ;;  %v610_v50 = vand.u32 15, %v360_v58 }
 0x1a9   : > { %vm1329_vm0 = vcmp.ne.s32.totalorder %v610_v50, 15 }
 0x1aa   : > { %vm1437_vm7 = vmpackc.low %vm1329_vm0, %vm1329_vm0 }
 0x1ab   : > { %3401 = vmatmul.mubr.msk.bf16.gmra.mrb[56].mxu0 %vm1599_vm3, %v4294_v44  ;;  %v1293_v44 = vsel %vm1275_vm6, %v929_v9, 0  ;;  %v1473_v27 = vsel %vm1437_vm7, 65537, %v3545_v13 }
 0x1ac   : > { %3404 = vmatprep.mubr.msk.bf16.mxu0 %vm1599_vm3, %v4322_v51  ;;  %v1782_v51 = vsel %vm1599_vm3, %v4541_v38, %v1762_v37 }
 0x1ae   : > { %2491 = vmatmul.mubr.bf16.gmra.mrb[68].mxu1 %v1781_v62 }
 0x1af   : > { %2498 = vmatprep.mubr.bf16.mxu1 %v4109_v12  ;;  %v1669_v12 = vsel %vm1599_vm3, %v1293_v44, %v4480_v46 }
 0x1b3   : > { %3405 = vmatmul.mubr.msk.bf16.gmra.mrb[60].mxu0 %vm1599_vm3, %v4334_v49  ;;  %v1783_v49 = vsel %vm1599_vm3, %v4577_v39, %v1766_v30 }
 0x1b4   : > { %3408 = vmatprep.mubr.msk.bf16.mxu0 %vm1599_vm3, %v4629_v60 }
 0x1b6   : > { %2499 = vmatmul.mubr.bf16.gmra.mrb[72].mxu1 %v1782_v51 }
 0x1b7   : > { %2506 = vmatprep.mubr.bf16.mxu1 %v1669_v12 }
 0x1bb   : > { %3409 = vmatmul.mubr.msk.bf16.gmra.mrb[64].mxu0 %vm1599_vm3, %v4341_v45  ;;  %v3018_v45 = vcombine.low %v3823_v2, %v1473_v27 }
 0x1bc   : > { %3412 = vmatprep.mubr.msk.bf16.mxu0 %vm1599_vm3, %v4404_v32  ;;  %v1023_v32 = vsel %vm1022_vm9, %v4393_v63, 0 }
 0x1bd   : > { %vm1545_vm10 = vcmp.ne.s16.totalorder %v3018_v45, 0 }
 0x1be   : > { %2507 = vmatmul.mubr.bf16.gmra.mrb[76].mxu1 %v1783_v49 }
 0x1c3   : > { %3413 = vmatmul.mubr.msk.bf16.gmra.mrb[68].mxu0 %vm1599_vm3, %v4354_v18  ;;  %v1563_v18 = vsel %vm1545_vm10, %v1023_v32, 0 }
 0x1c4   : > { %3416 = vmatprep.mubr.msk.bf16.mxu0 %vm1599_vm3, %v4528_v23 }
 0x1cb   : > { %3417 = vmatmul.mubr.msk.bf16.gmra.mrb[72].mxu0 %vm1599_vm3, %v4360_v5 }
 0x1cc   : > { %3420 = vmatprep.mubr.msk.bf16.mxu0 %vm1599_vm3, %v4656_v52 }
 0x1d1   : > { %v3228_v46 = vpop.f32.mrb[0].mxu1 }
 0x1d2   : > { %v3229_v31 = vpop.f32.mrb[1].mxu1 }
 0x1d3   : > { %v4757_v23 = vadd.f32 %v3229_v31, %v3228_v46  ;;  %v3231_v13 = vpop.f32.mrb[2].mxu1  ;;  %3421 = vmatmul.mubr.msk.bf16.gmra.mrb[76].mxu0 %vm1599_vm3, %v1563_v18 }
 0x1d4   : > { %v3232_v2 = vpop.f32.mrb[3].mxu1 }
 0x1d5   : > { %v4760_v38 = vadd.f32 %v3232_v2, %v3231_v13  ;;  %v3156_v39 = vpop.f32.mrb[0].mxu0 }
 0x1d6   : > { %v3157_v60 = vpop.f32.mrb[1].mxu0 }
 0x1d7   : > { %v3158_v5 = vadd.f32 %v3157_v60, %v3156_v39  ;;  %v3159_v7 = vpop.f32.mrb[2].mxu0 }
 0x1d8   : > { %v3160_v20 = vpop.f32.mrb[3].mxu0 }
 0x1d9   : > { %v3161_v52 = vadd.f32 %v3160_v20, %v3159_v7  ;;  %v3234_v53 = vpop.f32.mrb[4].mxu1  ;;  %v2228_v9 = vadd.f32 %v3158_v5, %v4777_v28 }
 0x1da   : > { %v3235_v63 = vpop.f32.mrb[5].mxu1 }
 0x1db   : > { %v4762_v10 = vadd.f32 %v3235_v63, %v3234_v53  ;;  %v3237_v4 = vpop.f32.mrb[6].mxu1  ;;  %v2231_v12 = vadd.f32 %v3161_v52, %v4777_v28 }
 0x1dc   : > { %v3238_v47 = vpop.f32.mrb[7].mxu1 }
 0x1dd   : > { %v4764_v1 = vadd.f32 %v3238_v47, %v3237_v4  ;;  %v3162_v24 = vpop.f32.mrb[4].mxu0 }
 0x1de   : > { %v3163_v43 = vpop.f32.mrb[5].mxu0 }
 0x1df   : > { %v3164_v56 = vadd.f32 %v3163_v43, %v3162_v24  ;;  %v3165_v8 = vpop.f32.mrb[6].mxu0 }
 0x1e0   : > { %v3166_v17 = vpop.f32.mrb[7].mxu0 }
 0x1e1   : > { %v3167_v40 = vadd.f32 %v3166_v17, %v3165_v8  ;;  %v3240_v35 = vpop.f32.mrb[8].mxu1  ;;  %v2236_v2 = vadd.f32 %v3164_v56, %v4777_v28 }
 0x1e2   : > { %v3241_v21 = vpop.f32.mrb[9].mxu1 }
 0x1e3   : > { %v4766_v59 = vadd.f32 %v3241_v21, %v3240_v35  ;;  %v3243_v0 = vpop.f32.mrb[10].mxu1  ;;  %v2239_v7 = vadd.f32 %v3167_v40, %v4777_v28 }
 0x1e4   : > { %v3244_v55 = vpop.f32.mrb[11].mxu1 }
 0x1e5   : > { %v4768_v6 = vadd.f32 %v3244_v55, %v3243_v0  ;;  %v3168_v25 = vpop.f32.mrb[8].mxu0 }
 0x1e6   : > { %v3169_v34 = vpop.f32.mrb[9].mxu0 }
 0x1e7   : > { %v3170_v36 = vadd.f32 %v3169_v34, %v3168_v25  ;;  %v3171_v14 = vpop.f32.mrb[10].mxu0 }
 0x1e8   : > { %v3172_v29 = vpop.f32.mrb[11].mxu0 }
 0x1e9   : > { %v3173_v11 = vadd.f32 %v3172_v29, %v3171_v14  ;;  %v3246_v54 = vpop.f32.mrb[12].mxu1  ;;  %v2244_v56 = vadd.f32 %v3170_v36, %v4777_v28 }
 0x1ea   : > { %v3247_v3 = vpop.f32.mrb[13].mxu1 }
 0x1eb   : > { %v4770_v19 = vadd.f32 %v3247_v3, %v3246_v54  ;;  %v3249_v15 = vpop.f32.mrb[14].mxu1  ;;  %v2247_v40 = vadd.f32 %v3173_v11, %v4777_v28 }
 0x1ec   : > { %v3250_v61 = vpop.f32.mrb[15].mxu1 }
 0x1ed   : > { %v4772_v26 = vadd.f32 %v3250_v61, %v3249_v15  ;;  %v3174_v41 = vpop.f32.mrb[12].mxu0 }
 0x1ee   : > { %v3175_v48 = vpop.f32.mrb[13].mxu0 }
 0x1ef   : > { %v3176_v42 = vadd.f32 %v3175_v48, %v3174_v41  ;;  %v3177_v33 = vpop.f32.mrb[14].mxu0 }
 0x1f0   : > { %v3178_v57 = vpop.f32.mrb[15].mxu0 }
 0x1f1   : > { %v3179_v16 = vadd.f32 %v3178_v57, %v3177_v33  ;;  %v3268_v22 = vpop.f32.mrb[16].mxu1  ;;  %v2252_v36 = vadd.f32 %v3176_v42, %v4777_v28 }
 0x1f2   : > { %v3269_v62 = vpop.f32.mrb[17].mxu1 }
 0x1f3   : > { %v3270_v37 = vadd.f32 %v3269_v62, %v3268_v22  ;;  %v3271_v44 = vpop.f32.mrb[18].mxu1  ;;  %v2255_v11 = vadd.f32 %v3179_v16, %v4777_v28 }
 0x1f4   : > { %v3272_v51 = vpop.f32.mrb[19].mxu1 }
 0x1f5   : > { %v3273_v58 = vadd.f32 %v3272_v51, %v3271_v44  ;;  %v3180_v30 = vpop.f32.mrb[16].mxu0  ;;  %v4781_v50 = vadd.f32 %v3270_v37, %v2228_v9 }
 0x1f6   : > { %v3181_v49 = vpop.f32.mrb[17].mxu0 }
 0x1f7   : > { %v3182_v27 = vadd.f32 %v3181_v49, %v3180_v30  ;;  %v3183_v45 = vpop.f32.mrb[18].mxu0  ;;  %v4783_v32 = vadd.f32 %v3273_v58, %v2231_v12 }
 0x1f8   : > { %v3184_v18 = vpop.f32.mrb[19].mxu0 }
 0x1f9   : > { %v3185_v46 = vadd.f32 %v3184_v18, %v3183_v45  ;;  %v3274_v31 = vpop.f32.mrb[20].mxu1  ;;  %v2260_v42 = vadd.f32 %v3182_v27, %v4777_v28 }
 0x1fa   : > { %v3275_v13 = vpop.f32.mrb[21].mxu1 }
 0x1fb   : > { %v3276_v39 = vadd.f32 %v3275_v13, %v3274_v31  ;;  %v3277_v60 = vpop.f32.mrb[22].mxu1  ;;  %v2263_v16 = vadd.f32 %v3185_v46, %v4777_v28 }
 0x1fc   : > { %v3278_v5 = vpop.f32.mrb[23].mxu1 }
 0x1fd   : > { %v3279_v20 = vadd.f32 %v3278_v5, %v3277_v60  ;;  %v3186_v52 = vpop.f32.mrb[20].mxu0  ;;  %v4787_v53 = vadd.f32 %v3276_v39, %v2236_v2 }
 0x1fe   : > { %v3187_v63 = vpop.f32.mrb[21].mxu0 }
 0x1ff   : > { %v3188_v4 = vadd.f32 %v3187_v63, %v3186_v52  ;;  %v3189_v47 = vpop.f32.mrb[22].mxu0  ;;  %v4789_v24 = vadd.f32 %v3279_v20, %v2239_v7 }
 0x200   : > { %v3190_v43 = vpop.f32.mrb[23].mxu0 }
 0x201   : > { %v3191_v8 = vadd.f32 %v3190_v43, %v3189_v47  ;;  %v3280_v17 = vpop.f32.mrb[24].mxu1  ;;  %v2268_v63 = vadd.f32 %v3188_v4, %v4777_v28 }
 0x202   : > { %v3281_v35 = vpop.f32.mrb[25].mxu1 }
 0x203   : > { %v3282_v21 = vadd.f32 %v3281_v35, %v3280_v17  ;;  %v3283_v0 = vpop.f32.mrb[26].mxu1  ;;  %v2271_v35 = vadd.f32 %v3191_v8, %v4777_v28 }
 0x204   : > { %v3284_v55 = vpop.f32.mrb[27].mxu1 }
 0x205   : > { %v3285_v25 = vadd.f32 %v3284_v55, %v3283_v0  ;;  %v3192_v34 = vpop.f32.mrb[24].mxu0  ;;  %v4793_v14 = vadd.f32 %v3282_v21, %v2244_v56 }
 0x206   : > { %v3193_v29 = vpop.f32.mrb[25].mxu0 }
 0x207   : > { %v3194_v54 = vadd.f32 %v3193_v29, %v3192_v34  ;;  %v3195_v3 = vpop.f32.mrb[26].mxu0  ;;  %v4795_v15 = vadd.f32 %v3285_v25, %v2247_v40 }
 0x208   : > { %v3196_v61 = vpop.f32.mrb[27].mxu0 }
 0x209   : > { %v3197_v41 = vadd.f32 %v3196_v61, %v3195_v3  ;;  %v3286_v48 = vpop.f32.mrb[28].mxu1  ;;  %v2276_v55 = vadd.f32 %v3194_v54, %v4777_v28 }
 0x20a   : > { %v3287_v33 = vpop.f32.mrb[29].mxu1 }
 0x20b   : > { %v3288_v57 = vadd.f32 %v3287_v33, %v3286_v48  ;;  %v3289_v22 = vpop.f32.mrb[30].mxu1  ;;  %v2279_v29 = vadd.f32 %v3197_v41, %v4777_v28 }
 0x20c   : > { %v3290_v62 = vpop.f32.mrb[31].mxu1 }
 0x20d   : > { %v3291_v9 = vadd.f32 %v3290_v62, %v3289_v22  ;;  %v3198_v37 = vpop.f32.mrb[28].mxu0  ;;  %v4799_v44 = vadd.f32 %v3288_v57, %v2252_v36 }
 0x20e   : > { %v3199_v51 = vpop.f32.mrb[29].mxu0 }
 0x20f   : > { %v3200_v12 = vadd.f32 %v3199_v51, %v3198_v37  ;;  %v3201_v58 = vpop.f32.mrb[30].mxu0  ;;  %v4801_v30 = vadd.f32 %v3291_v9, %v2255_v11 }
 0x210   : > { %v3202_v49 = vpop.f32.mrb[31].mxu0 }
 0x211   : > { %v3203_v45 = vadd.f32 %v3202_v49, %v3201_v58  ;;  %v3292_v18 = vpop.f32.mrb[32].mxu1  ;;  %v2284_v33 = vadd.f32 %v3200_v12, %v4777_v28 }
 0x212   : > { %v3293_v31 = vpop.f32.mrb[33].mxu1 }
 0x213   : > { %v3294_v13 = vadd.f32 %v3293_v31, %v3292_v18  ;;  %v3295_v2 = vpop.f32.mrb[34].mxu1  ;;  %v2287_v62 = vadd.f32 %v3203_v45, %v4777_v28 }
 0x214   : > { %v3296_v39 = vpop.f32.mrb[35].mxu1 }
 0x215   : > { %v3297_v60 = vadd.f32 %v3296_v39, %v3295_v2  ;;  %v4805_v5 = vadd.f32 %v3294_v13, %v2260_v42 }
 0x217   : > { %v4807_v7 = vadd.f32 %v3297_v60, %v2263_v16 }
 0x219   : > { %v3298_v20 = vpop.f32.mrb[36].mxu1 }
 0x21a   : > { %v3299_v52 = vpop.f32.mrb[37].mxu1 }
 0x21b   : > { %v3300_v47 = vadd.f32 %v3299_v52, %v3298_v20  ;;  %v3301_v43 = vpop.f32.mrb[38].mxu1 }
 0x21c   : > { %v3302_v17 = vpop.f32.mrb[39].mxu1 }
 0x21d   : > { %v3303_v27 = vadd.f32 %v3302_v17, %v3301_v43  ;;  %v4811_v56 = vadd.f32 %v3300_v47, %v2268_v63 }
 0x21f   : > { %v4813_v21 = vadd.f32 %v3303_v27, %v2271_v35 }
 0x221   : > { %v3304_v46 = vpop.f32.mrb[40].mxu1 }
 0x222   : > { %v3305_v0 = vpop.f32.mrb[41].mxu1 }
 0x223   : > { %v3306_v40 = vadd.f32 %v3305_v0, %v3304_v46  ;;  %v3307_v25 = vpop.f32.mrb[42].mxu1 }
 0x224   : > { %v3308_v34 = vpop.f32.mrb[43].mxu1 }
 0x225   : > { %v3309_v4 = vadd.f32 %v3308_v34, %v3307_v25  ;;  %v4817_v3 = vadd.f32 %v3306_v40, %v2276_v55 }
 0x227   : > { %v4819_v61 = vadd.f32 %v3309_v4, %v2279_v29 }
 0x229   : > { %v3310_v8 = vpop.f32.mrb[44].mxu1 }
 0x22a   : > { %v3311_v48 = vpop.f32.mrb[45].mxu1 }
 0x22b   : > { %v3312_v36 = vadd.f32 %v3311_v48, %v3310_v8  ;;  %v3313_v57 = vpop.f32.mrb[46].mxu1 }
 0x22c   : > { %v3314_v22 = vpop.f32.mrb[47].mxu1 }
 0x22d   : > { %v3315_v54 = vadd.f32 %v3314_v22, %v3313_v57  ;;  %v4823_v11 = vadd.f32 %v3312_v36, %v2284_v33 }
 0x22f   : > { %v4825_v9 = vadd.f32 %v3315_v54, %v2287_v62 }
 0x24d   : > { %v3316_v41 = vpop.f32.mrb[48].mxu1 }
 0x24e   : > { %v3204_v37 = vpop.f32.mrb[32].mxu0  ;;  %v3317_v51 = vpop.f32.mrb[49].mxu1 }
 0x24f   : > { %v3318_v58 = vadd.f32 %v3317_v51, %v3316_v41  ;;  %v3205_v49 = vpop.f32.mrb[33].mxu0  ;;  %v3319_v18 = vpop.f32.mrb[50].mxu1 }
 0x250   : > { %v3206_v31 = vadd.f32 %v3205_v49, %v3204_v37  ;;  %v3207_v42 = vpop.f32.mrb[34].mxu0  ;;  %v3320_v13 = vpop.f32.mrb[51].mxu1 }
 0x251   : > { %v3321_v12 = vadd.f32 %v3320_v13, %v3319_v18  ;;  %v3208_v2 = vpop.f32.mrb[35].mxu0 }
 0x252   : > { %v2292_v39 = vadd.f32 %v3206_v31, %v4777_v28  ;;  %v3209_v16 = vadd.f32 %v3208_v2, %v3207_v42 }
 0x254   : > { %v2295_v45 = vadd.f32 %v3209_v16, %v4777_v28  ;;  %v4829_v60 = vadd.f32 %v3318_v58, %v2292_v39 }
 0x256   : > { %v3210_v20 = vpop.f32.mrb[36].mxu0  ;;  %v4831_v52 = vadd.f32 %v3321_v12, %v2295_v45 }
 0x257   : > { %v3211_v63 = vpop.f32.mrb[37].mxu0 }
 0x258   : > { %v3212_v47 = vadd.f32 %v3211_v63, %v3210_v20  ;;  %v3213_v43 = vpop.f32.mrb[38].mxu0 }
 0x259   : > { %v3214_v17 = vpop.f32.mrb[39].mxu0 }
 0x25a   : > { %v3215_v35 = vadd.f32 %v3214_v17, %v3213_v43  ;;  %v2300_v4 = vadd.f32 %v3212_v47, %v4777_v28 }
 0x25c   : > { %v2303_v36 = vadd.f32 %v3215_v35, %v4777_v28 }
 0x25e   : > { %v3216_v27 = vpop.f32.mrb[40].mxu0 }
 0x25f   : > { %v3217_v46 = vpop.f32.mrb[41].mxu0 }
 0x260   : > { %v3218_v0 = vadd.f32 %v3217_v46, %v3216_v27  ;;  %v3219_v55 = vpop.f32.mrb[42].mxu0 }
 0x261   : > { %v3220_v40 = vpop.f32.mrb[43].mxu0  ;;  %v3322_v25 = vpop.f32.mrb[52].mxu1 }
 0x262   : > { %v3221_v34 = vadd.f32 %v3220_v40, %v3219_v55  ;;  %v3323_v29 = vpop.f32.mrb[53].mxu1  ;;  %v2308_v42 = vadd.f32 %v3218_v0, %v4777_v28 }
 0x263   : > { %v3324_v8 = vadd.f32 %v3323_v29, %v3322_v25  ;;  %v3325_v48 = vpop.f32.mrb[54].mxu1 }
 0x264   : > { %v3326_v33 = vpop.f32.mrb[55].mxu1  ;;  %v2311_v39 = vadd.f32 %v3221_v34, %v4777_v28 }
 0x265   : > { %v3327_v57 = vadd.f32 %v3326_v33, %v3325_v48  ;;  %v4835_v22 = vadd.f32 %v3324_v8, %v2300_v4 }
 0x266   : > { %v3222_v62 = vpop.f32.mrb[44].mxu0 }
 0x267   : > { %v3223_v54 = vpop.f32.mrb[45].mxu0  ;;  %v4837_v41 = vadd.f32 %v3327_v57, %v2303_v36 }
 0x268   : > { %v3224_v37 = vadd.f32 %v3223_v54, %v3222_v62  ;;  %v3225_v51 = vpop.f32.mrb[46].mxu0 }
 0x269   : > { %v3226_v58 = vpop.f32.mrb[47].mxu0  ;;  %v3328_v49 = vpop.f32.mrb[56].mxu1 }
 0x26a   : > { %v3227_v18 = vadd.f32 %v3226_v58, %v3225_v51  ;;  %v3329_v31 = vpop.f32.mrb[57].mxu1 }
 0x26b   : > { %v3330_v13 = vadd.f32 %v3329_v31, %v3328_v49  ;;  %v3331_v12 = vpop.f32.mrb[58].mxu1 }
 0x26c   : > { %v3332_v2 = vpop.f32.mrb[59].mxu1  ;;  %v2319_v36 = vadd.f32 %v3227_v18, %v4777_v28 }
 0x26d   : > { %v3333_v16 = vadd.f32 %v3332_v2, %v3331_v12  ;;  %v4841_v45 = vadd.f32 %v3330_v13, %v2308_v42 }
 0x26e   : > { %v3394_v20 = vpop.f32.mrb[48].mxu0 }
 0x26f   : > { %v2558_v63 = vadd.f32 %v3394_v20, %v4787_v53  ;;  %v2549_v47 = vpop.f32.mrb[49].mxu0  ;;  %v4844_v43 = vadd.f32 %v3333_v16, %v2311_v39 }
 0x270   : > { %v2550_v17 = vadd.f32 %v2549_v47, %v4781_v50  ;;  %v3395_v35 = vpop.f32.mrb[50].mxu0  ;;  %v2316_v50 = vadd.f32 %v3224_v37, %v4777_v28 }
 0x271   : > { %v2678_v27 = vmax.f32 %v2558_v63, 0.0  ;;  %v2561_v46 = vadd.f32 %v3395_v35, %v4789_v24  ;;  %v3334_v0 = vpop.f32.mrb[60].mxu1  ;;  %v2552_v55 = vpop.f32.mrb[51].mxu0 }
 0x272   : > { %v2676_v53 = vmax.f32 %v2550_v17, 0.0  ;;  %v2553_v40 = vadd.f32 %v2552_v55, %v4783_v32  ;;  %v3335_v25 = vpop.f32.mrb[61].mxu1 }
 0x273   : > { %v3110_v34 = vpack.c.bf16 %v2678_v27, %v2678_v27  ;;  %v2679_v24 = vmax.f32 %v2561_v46, 0.0  ;;  %v3336_v29 = vadd.f32 %v3335_v25, %v3334_v0  ;;  %v3337_v4 = vpop.f32.mrb[62].mxu1 }
 0x274   : > { %v3108_v8 = vpack.c.bf16 %v2676_v53, %v2676_v53  ;;  %v2677_v48 = vmax.f32 %v2553_v40, 0.0  ;;  %v3338_v33 = vpop.f32.mrb[63].mxu1 }
 0x275   : > { %2839 = vst.msk [vmem:[%s4853_s7 + $0x8] sm:$0xf] %vm2836_vm1, %v3110_v34  ;;  %v3111_v57 = vpack.c.bf16 %v2679_v24, %v2679_v24  ;;  %v3339_v62 = vadd.f32 %v3338_v33, %v3337_v4  ;;  %v4860_v54 = vadd.f32 %v3336_v29, %v2316_v50 }
 0x276   : > { %2837 = vst.msk [vmem:[%s4853_s7] sm:$0xf] %vm2836_vm1, %v3108_v8  ;;  %v3109_v32 = vpack.c.bf16 %v2677_v48, %v2677_v48  ;;  %v3398_v37 = vpop.f32.mrb[52].mxu0 }
 0x277   : > { %2840 = vst.msk [vmem:[%s4853_s7 + $0xc] sm:$0xf] %vm2836_vm1, %v3111_v57  ;;  %v2574_v51 = vadd.f32 %v3398_v37, %v4799_v44  ;;  %v2565_v58 = vpop.f32.mrb[53].mxu0  ;;  %v4867_v49 = vadd.f32 %v3339_v62, %v2319_v36  ;;  %v2324_v44 = vadd.f32 %v4757_v23, %v4777_v28 }
 0x278   : > { %2838 = vst.msk [vmem:[%s4853_s7 + $0x4] sm:$0xf] %vm2836_vm1, %v3109_v32  ;;  %v2566_v18 = vadd.f32 %v2565_v58, %v4793_v14  ;;  %v3399_v31 = vpop.f32.mrb[54].mxu0 }
 0x279   : > { %v2682_v42 = vmax.f32 %v2574_v51, 0.0  ;;  %v2577_v13 = vadd.f32 %v3399_v31, %v4801_v30  ;;  %v3340_v12 = vpop.f32.mrb[64].mxu1  ;;  %v2568_v2 = vpop.f32.mrb[55].mxu0  ;;  %v2327_v30 = vadd.f32 %v4760_v38, %v4777_v28 }
 0x27a   : > { %v2680_v39 = vmax.f32 %v2566_v18, 0.0  ;;  %v2569_v16 = vadd.f32 %v2568_v2, %v4795_v15  ;;  %v3341_v20 = vpop.f32.mrb[65].mxu1 }
 0x27b   : > { %v3114_v63 = vpack.c.bf16 %v2682_v42, %v2682_v42  ;;  %v2683_v47 = vmax.f32 %v2577_v13, 0.0  ;;  %v3342_v17 = vadd.f32 %v3341_v20, %v3340_v12  ;;  %v3343_v14 = vpop.f32.mrb[66].mxu1 }
 0x27c   : > { %v3112_v35 = vpack.c.bf16 %v2680_v39, %v2680_v39  ;;  %v2681_v27 = vmax.f32 %v2569_v16, 0.0  ;;  %v3344_v46 = vpop.f32.mrb[67].mxu1 }
 0x27d   : > { %2843 = vst.msk [vmem:[%s4853_s7 + $0x18] sm:$0xf] %vm2836_vm1, %v3114_v63  ;;  %v3115_v0 = vpack.c.bf16 %v2683_v47, %v2683_v47  ;;  %v3345_v15 = vadd.f32 %v3344_v46, %v3343_v14  ;;  %v4880_v55 = vadd.f32 %v3342_v17, %v2324_v44 }
 0x27e   : > { %2841 = vst.msk [vmem:[%s4853_s7 + $0x10] sm:$0xf] %vm2836_vm1, %v3112_v35  ;;  %v3113_v23 = vpack.c.bf16 %v2681_v27, %v2681_v27  ;;  %v3402_v53 = vpop.f32.mrb[56].mxu0 }
 0x27f   : > { %2844 = vst.msk [vmem:[%s4853_s7 + $0x1c] sm:$0xf] %vm2836_vm1, %v3115_v0  ;;  %v2590_v40 = vadd.f32 %v3402_v53, %v4811_v56  ;;  %v2581_v25 = vpop.f32.mrb[57].mxu0  ;;  %v4887_v50 = vadd.f32 %v3345_v15, %v2327_v30  ;;  %v2332_v56 = vadd.f32 %v4762_v10, %v4777_v28 }
 0x280   : > { %2842 = vst.msk [vmem:[%s4853_s7 + $0x14] sm:$0xf] %vm2836_vm1, %v3113_v23  ;;  %v2582_v38 = vadd.f32 %v2581_v25, %v4805_v5  ;;  %v3403_v34 = vpop.f32.mrb[58].mxu0 }
 0x281   : > { %v2686_v24 = vmax.f32 %v2590_v40, 0.0  ;;  %v2593_v29 = vadd.f32 %v3403_v34, %v4813_v21  ;;  %v3346_v4 = vpop.f32.mrb[68].mxu1  ;;  %v2584_v8 = vpop.f32.mrb[59].mxu0  ;;  %v2335_v21 = vadd.f32 %v4764_v1, %v4777_v28 }
 0x282   : > { %v2684_v48 = vmax.f32 %v2582_v38, 0.0  ;;  %v2585_v33 = vadd.f32 %v2584_v8, %v4807_v7  ;;  %v3347_v36 = vpop.f32.mrb[69].mxu1 }
 0x283   : > { %v3118_v57 = vpack.c.bf16 %v2686_v24, %v2686_v24  ;;  %v2687_v62 = vmax.f32 %v2593_v29, 0.0  ;;  %v3348_v32 = vadd.f32 %v3347_v36, %v3346_v4  ;;  %v3349_v5 = vpop.f32.mrb[70].mxu1 }
 0x284   : > { %v3116_v37 = vpack.c.bf16 %v2684_v48, %v2684_v48  ;;  %v2685_v51 = vmax.f32 %v2585_v33, 0.0  ;;  %v3350_v58 = vpop.f32.mrb[71].mxu1 }
 0x285   : > { %2847 = vst.msk [vmem:[%s4853_s7 + $0x28] sm:$0xf] %vm2836_vm1, %v3118_v57  ;;  %v3119_v18 = vpack.c.bf16 %v2687_v62, %v2687_v62  ;;  %v3351_v7 = vadd.f32 %v3350_v58, %v3349_v5  ;;  %v4900_v31 = vadd.f32 %v3348_v32, %v2332_v56 }
 0x286   : > { %2845 = vst.msk [vmem:[%s4853_s7 + $0x20] sm:$0xf] %vm2836_vm1, %v3116_v37  ;;  %v3117_v10 = vpack.c.bf16 %v2685_v51, %v2685_v51  ;;  %v3406_v42 = vpop.f32.mrb[60].mxu0 }
 0x287   : > { %2848 = vst.msk [vmem:[%s4853_s7 + $0x2c] sm:$0xf] %vm2836_vm1, %v3119_v18  ;;  %v2606_v13 = vadd.f32 %v3406_v42, %v4823_v11  ;;  %v2597_v12 = vpop.f32.mrb[61].mxu0  ;;  %v4907_v2 = vadd.f32 %v3351_v7, %v2335_v21  ;;  %v2340_v11 = vadd.f32 %v4766_v59, %v4777_v28 }
 0x288   : > { %2846 = vst.msk [vmem:[%s4853_s7 + $0x24] sm:$0xf] %vm2836_vm1, %v3117_v10  ;;  %v2598_v1 = vadd.f32 %v2597_v12, %v4817_v3  ;;  %v3407_v39 = vpop.f32.mrb[62].mxu0 }
 0x289   : > { %v2690_v16 = vmax.f32 %v2606_v13, 0.0  ;;  %v2609_v20 = vadd.f32 %v3407_v39, %v4825_v9  ;;  %v3352_v44 = vpop.f32.mrb[72].mxu1  ;;  %v2600_v63 = vpop.f32.mrb[63].mxu0  ;;  %v2343_v9 = vadd.f32 %v4768_v6, %v4777_v28 }
 0x28a   : > { %v2688_v47 = vmax.f32 %v2598_v1, 0.0  ;;  %v2601_v17 = vadd.f32 %v2600_v63, %v4819_v61  ;;  %v3353_v14 = vpop.f32.mrb[73].mxu1 }
 0x28b   : > { %v3122_v35 = vpack.c.bf16 %v2690_v16, %v2690_v16  ;;  %v2691_v27 = vmax.f32 %v2609_v20, 0.0  ;;  %v3354_v46 = vadd.f32 %v3353_v14, %v3352_v44  ;;  %v3355_v3 = vpop.f32.mrb[74].mxu1 }
 0x28c   : > { %v3120_v30 = vpack.c.bf16 %v2688_v47, %v2688_v47  ;;  %v2689_v0 = vmax.f32 %v2601_v17, 0.0  ;;  %v3356_v15 = vpop.f32.mrb[75].mxu1 }
 0x28d   : > { %2851 = vst.msk [vmem:[%s4853_s7 + $0x38] sm:$0xf] %vm2836_vm1, %v3122_v35  ;;  %v3123_v23 = vpack.c.bf16 %v2691_v27, %v2691_v27  ;;  %v3357_v61 = vadd.f32 %v3356_v15, %v3355_v3  ;;  %v4920_v53 = vadd.f32 %v3354_v46, %v2340_v11 }
 0x28e   : > { %2849 = vst.msk [vmem:[%s4853_s7 + $0x30] sm:$0xf] %vm2836_vm1, %v3120_v30  ;;  %v3121_v59 = vpack.c.bf16 %v2689_v0, %v2689_v0  ;;  %v3410_v40 = vpop.f32.mrb[64].mxu0 }
 0x28f   : > { %2852 = vst.msk [vmem:[%s4853_s7 + $0x3c] sm:$0xf] %vm2836_vm1, %v3123_v23  ;;  %v2622_v25 = vadd.f32 %v3410_v40, %v4835_v22  ;;  %v2613_v38 = vpop.f32.mrb[65].mxu0  ;;  %v4927_v34 = vadd.f32 %v3357_v61, %v2343_v9  ;;  %v2348_v22 = vadd.f32 %v4770_v19, %v4777_v28 }
 0x290   : > { %2850 = vst.msk [vmem:[%s4853_s7 + $0x34] sm:$0xf] %vm2836_vm1, %v3121_v59  ;;  %v2614_v6 = vadd.f32 %v2613_v38, %v4829_v60  ;;  %v3411_v24 = vpop.f32.mrb[66].mxu0 }
 0x291   : > { %v2694_v29 = vmax.f32 %v2622_v25, 0.0  ;;  %v2625_v4 = vadd.f32 %v3411_v24, %v4837_v41  ;;  %v3358_v8 = vpop.f32.mrb[76].mxu1  ;;  %v2616_v48 = vpop.f32.mrb[67].mxu0  ;;  %v2351_v41 = vadd.f32 %v4772_v26, %v4777_v28 }
 0x292   : > { %v2692_v33 = vmax.f32 %v2614_v6, 0.0  ;;  %v2617_v36 = vadd.f32 %v2616_v48, %v4831_v52  ;;  %v3359_v56 = vpop.f32.mrb[77].mxu1 }
 0x293   : > { %v3126_v57 = vpack.c.bf16 %v2694_v29, %v2694_v29  ;;  %v2695_v62 = vmax.f32 %v2625_v4, 0.0  ;;  %v3360_v32 = vadd.f32 %v3359_v56, %v3358_v8  ;;  %v3361_v60 = vpop.f32.mrb[78].mxu1 }
 0x294   : > { %v3124_v5 = vpack.c.bf16 %v2692_v33, %v2692_v33  ;;  %v2693_v37 = vmax.f32 %v2617_v36, 0.0  ;;  %v3362_v51 = vpop.f32.mrb[79].mxu1 }
 0x295   : > { %2855 = vst.msk [vmem:[%s4853_s7 + $0x48] sm:$0xf] %vm2836_vm1, %v3126_v57  ;;  %v3127_v58 = vpack.c.bf16 %v2695_v62, %v2695_v62  ;;  %v3363_v52 = vadd.f32 %v3362_v51, %v3361_v60  ;;  %v2509_v21 = vadd.f32 %v3360_v32, %v2348_v22 }
 0x296   : > { %2853 = vst.msk [vmem:[%s4853_s7 + $0x40] sm:$0xf] %vm2836_vm1, %v3124_v5  ;;  %v3125_v19 = vpack.c.bf16 %v2693_v37, %v2693_v37  ;;  %v3414_v18 = vpop.f32.mrb[68].mxu0 }
 0x297   : > { %2856 = vst.msk [vmem:[%s4853_s7 + $0x4c] sm:$0xf] %vm2836_vm1, %v3127_v58  ;;  %v2638_v7 = vadd.f32 %v3414_v18, %v4860_v54  ;;  %v2629_v10 = vpop.f32.mrb[69].mxu0  ;;  %v2512_v42 = vadd.f32 %v3363_v52, %v2351_v41 }
 0x298   : > { %2854 = vst.msk [vmem:[%s4853_s7 + $0x44] sm:$0xf] %vm2836_vm1, %v3125_v19  ;;  %v2630_v26 = vadd.f32 %v2629_v10, %v4841_v45  ;;  %v3415_v28 = vpop.f32.mrb[70].mxu0 }
 0x299   : > { %v2698_v13 = vmax.f32 %v2638_v7, 0.0  ;;  %v2641_v12 = vadd.f32 %v3415_v28, %v4867_v49  ;;  %v2632_v1 = vpop.f32.mrb[71].mxu0 }
 0x29a   : > { %v2696_v39 = vmax.f32 %v2630_v26, 0.0  ;;  %v2633_v16 = vadd.f32 %v2632_v1, %v4844_v43 }
 0x29b   : > { %v3130_v20 = vpack.c.bf16 %v2698_v13, %v2698_v13  ;;  %v2699_v44 = vmax.f32 %v2641_v12, 0.0 }
 0x29c   : > { %v3128_v54 = vpack.c.bf16 %v2696_v39, %v2696_v39  ;;  %v2697_v63 = vmax.f32 %v2633_v16, 0.0 }
 0x29d   : > { %2859 = vst.msk [vmem:[%s4853_s7 + $0x58] sm:$0xf] %vm2836_vm1, %v3130_v20  ;;  %v3131_v47 = vpack.c.bf16 %v2699_v44, %v2699_v44 }
 0x29e   : > { %2857 = vst.msk [vmem:[%s4853_s7 + $0x50] sm:$0xf] %vm2836_vm1, %v3128_v54  ;;  %v3129_v45 = vpack.c.bf16 %v2697_v63, %v2697_v63  ;;  %v3418_v17 = vpop.f32.mrb[72].mxu0 }
 0x29f   : > { %2860 = vst.msk [vmem:[%s4853_s7 + $0x5c] sm:$0xf] %vm2836_vm1, %v3131_v47  ;;  %v2654_v49 = vadd.f32 %v3418_v17, %v4900_v31  ;;  %v2645_v14 = vpop.f32.mrb[73].mxu0 }
 0x2a0   : > { %2858 = vst.msk [vmem:[%s4853_s7 + $0x54] sm:$0xf] %vm2836_vm1, %v3129_v45  ;;  %v2646_v43 = vadd.f32 %v2645_v14, %v4880_v55  ;;  %v3419_v11 = vpop.f32.mrb[74].mxu0 }
 0x2a1   : > { %v2702_v35 = vmax.f32 %v2654_v49, 0.0  ;;  %v2657_v27 = vadd.f32 %v3419_v11, %v4907_v2  ;;  %v2648_v46 = vpop.f32.mrb[75].mxu0 }
 0x2a2   : > { %v2700_v3 = vmax.f32 %v2646_v43, 0.0  ;;  %v2649_v30 = vadd.f32 %v2648_v46, %v4887_v50 }
 0x2a3   : > { %v3134_v0 = vpack.c.bf16 %v2702_v35, %v2702_v35  ;;  %v2703_v15 = vmax.f32 %v2657_v27, 0.0 }
 0x2a4   : > { %v3132_v9 = vpack.c.bf16 %v2700_v3, %v2700_v3  ;;  %v2701_v31 = vmax.f32 %v2649_v30, 0.0 }
 0x2a5   : > { %2863 = vst.msk [vmem:[%s4853_s7 + $0x68] sm:$0xf] %vm2836_vm1, %v3134_v0  ;;  %v3135_v23 = vpack.c.bf16 %v2703_v15, %v2703_v15 }
 0x2a6   : > { %2861 = vst.msk [vmem:[%s4853_s7 + $0x60] sm:$0xf] %vm2836_vm1, %v3132_v9  ;;  %v3133_v55 = vpack.c.bf16 %v2701_v31, %v2701_v31  ;;  %v3422_v61 = vpop.f32.mrb[76].mxu0 }
 0x2a7   : > { %2864 = vst.msk [vmem:[%s4853_s7 + $0x6c] sm:$0xf] %vm2836_vm1, %v3135_v23  ;;  %v2670_v2 = vadd.f32 %v3422_v61, %v2509_v21  ;;  %v2661_v59 = vpop.f32.mrb[77].mxu0 }
 0x2a8   : > { %2862 = vst.msk [vmem:[%s4853_s7 + $0x64] sm:$0xf] %vm2836_vm1, %v3133_v55  ;;  %v2662_v50 = vadd.f32 %v2661_v59, %v4920_v53  ;;  %v3423_v40 = vpop.f32.mrb[78].mxu0 }
 0x2a9   : > { %v2706_v25 = vmax.f32 %v2670_v2, 0.0  ;;  %v2673_v38 = vadd.f32 %v3423_v40, %v2512_v42  ;;  %v2664_v6 = vpop.f32.mrb[79].mxu0 }
 0x2aa   : > { %v2704_v24 = vmax.f32 %v2662_v50, 0.0  ;;  %v2665_v29 = vadd.f32 %v2664_v6, %v4927_v34 }
 0x2ab   : > { %v3138_v4 = vpack.c.bf16 %v2706_v25, %v2706_v25  ;;  %v2707_v8 = vmax.f32 %v2673_v38, 0.0 }
 0x2ac   : > { %v3136_v48 = vpack.c.bf16 %v2704_v24, %v2704_v24  ;;  %v2705_v33 = vmax.f32 %v2665_v29, 0.0 }
 0x2ad   : > { %2867 = vst.msk [vmem:[%s4853_s7 + $0x78] sm:$0xf] %vm2836_vm1, %v3138_v4  ;;  %v3139_v36 = vpack.c.bf16 %v2707_v8, %v2707_v8 }
 0x2ae   : > { %2865 = vst.msk [vmem:[%s4853_s7 + $0x70] sm:$0xf] %vm2836_vm1, %v3136_v48  ;;  %v3137_v56 = vpack.c.bf16 %v2705_v33, %v2705_v33 }
 0x2af   : > { %2868 = vst.msk [vmem:[%s4853_s7 + $0x7c] sm:$0xf] %vm2836_vm1, %v3139_v36 }
 0x2b0   : > { %2866 = vst.msk [vmem:[%s4853_s7 + $0x74] sm:$0xf] %vm2836_vm1, %v3137_v56 }
 0x2b1 PF: > { %s13_s14 = sadd.s32 1, %s3541_s14   ;;  %s5099_s12 = smov %s3537_s13 }
 0x2b2   : > { %p10_p5 = scmp.ge.s32.totalorder %s13_s14, 4   ;;  %s5100_s13 = smov %s5102_s15 }
 0x2b4   :  { %12 = sbr.rel (!%p10_p5) target bundleno = 2 (0x2), region = 62 }

</bundles_post_ra>
